<compile_context>
chip_gen: v7x
topology: tpu7x:2x2x1
jax: 0.10.0
libtpu: 0.0.40
codegen_flags: <defaults>
</compile_context>

<pallas_src>
import functools

import jax
import jax.numpy as jnp
from jax.experimental import pallas as pl
from jax.experimental.pallas import tpu as pltpu


# ----------------------------- Pallas kernels ------------------------------ #

def _conv_pool_act_kernel(x_ref, w_ref, b_ref, o_ref, *, neg_slope):
    """Fused conv-as-matmul + 2x2 maxpool + bias + LeakyReLU.

    x_ref: (4, Mpad, K) bf16 -- pool corners stacked on the leading dim,
           rows within a corner ordered (batch, hp, wp), padded to Mpad (x8).
    w_ref: (K, N) bf16, b_ref: (1, N) f32, o_ref: (Mpad, N) bf16.
    """
    w = w_ref[...]
    # Four per-corner dots with a running max: keeps the live f32 intermediate
    # at (Mpad, N) instead of (4*Mpad, N).
    pooled = jnp.dot(x_ref[0], w, preferred_element_type=jnp.float32)
    for c in range(1, 4):
        pooled = jnp.maximum(
            pooled, jnp.dot(x_ref[c], w, preferred_element_type=jnp.float32))
    # Bias after the max (bias is constant per channel -> commutes with max),
    # LeakyReLU after the pool (valid since neg_slope > 0 -> monotone).
    pooled = pooled + b_ref[...]
    pooled = jnp.where(pooled >= 0, pooled, pooled * neg_slope)
    o_ref[...] = pooled.astype(o_ref.dtype)


def _tail_kernel(p3_ref, w3_ref, b3_ref, w4_ref, b4_ref, wd_ref, bd_ref, o_ref,
                 *, neg_slope, n_spatial, bp):
    """conv3 (2x2) + LeakyReLU + conv4 (4x4 full-window) + Linear(128,512).

    p3_ref: (n_spatial*bp, 1024) bf16, rows ordered (spatial s, padded batch),
            so each per-spatial slab is bp (=8-aligned) contiguous rows.
    w3_ref: (1024, 256) bf16,  b3_ref: (1, 256) f32
    w4_ref: (n_spatial, 256, 128) bf16, b4_ref: (1, 128) f32
    wd_ref: (128, 512) bf16,   bd_ref: (1, 512) f32
    o_ref : (bp, 512) f32
    """
    h3 = jnp.dot(p3_ref[...], w3_ref[...], preferred_element_type=jnp.float32)
    h3 = h3 + b3_ref[...]
    h3 = jnp.where(h3 >= 0, h3, h3 * neg_slope)
    h3 = h3.astype(jnp.bfloat16)                       # (n_spatial*bp, 256)

    # conv4: contract over (spatial, cin) via n_spatial small dots on 8-row
    # aligned slabs -- avoids reshaping to 4096 lanes inside Mosaic.
    acc = jnp.dot(h3[0:bp, :], w4_ref[0], preferred_element_type=jnp.float32)
    for s in range(1, n_spatial):
        acc = acc + jnp.dot(h3[s * bp:(s + 1) * bp, :], w4_ref[s],
                            preferred_element_type=jnp.float32)
    acc = acc + b4_ref[...]                            # (bp, 128), no activation

    out = jnp.dot(acc.astype(jnp.bfloat16), wd_ref[...],
                  preferred_element_type=jnp.float32) + bd_ref[...]
    o_ref[...] = out                                   # (bp, 512) f32


# ------------------------------ call wrappers ------------------------------ #

_VMEM_SPEC = pl.BlockSpec(memory_space=pltpu.MemorySpace.VMEM)


def conv_pool_act(patches, m, w, b, neg_slope):
    """patches: (4, Mpad, K) bf16 -> (m, N) bf16. One grid-free pallas_call."""
    assert neg_slope > 0.0  # LeakyReLU-after-pool fusion requires monotonicity
    _, mpad, k = patches.shape
    n = w.shape[1]
    ce = pl.CostEstimate(
        flops=2 * 4 * mpad * k * n,
        transcendentals=0,
        bytes_accessed=4 * mpad * k * 2 + k * n * 2 + n * 4 + mpad * n * 2)
    out = pl.pallas_call(
        functools.partial(_conv_pool_act_kernel, neg_slope=neg_slope),
        out_shape=jax.ShapeDtypeStruct((mpad, n), jnp.bfloat16),
        in_specs=[_VMEM_SPEC, _VMEM_SPEC, _VMEM_SPEC],
        out_specs=_VMEM_SPEC,
        cost_estimate=ce,
    )(patches, w, b.reshape(1, n))
    return out[:m]                      # trim zero-padded rows in the wrapper


def tail_fused(p3, batch, w3, b3, w4_3d, b4, wd, bd, neg_slope):
    """p3: (n_spatial*bp, 1024) bf16 -> (batch, 512) f32."""
    assert neg_slope > 0.0
    n_spatial = w4_3d.shape[0]
    rows, k3 = p3.shape
    bp = rows // n_spatial
    n3 = w3.shape[1]
    nd = wd.shape[1]
    ce = pl.CostEstimate(
        flops=(2 * rows * k3 * n3 + 2 * n_spatial * bp * n3 * 128
               + 2 * bp * 128 * nd),
        transcendentals=0,
        bytes_accessed=(rows * k3 * 2 + k3 * n3 * 2 + n_spatial * n3 * 128 * 2
                        + 128 * nd * 2 + (n3 + 128 + nd) * 4 + bp * nd * 4))
    out = pl.pallas_call(
        functools.partial(_tail_kernel, neg_slope=neg_slope,
                          n_spatial=n_spatial, bp=bp),
        out_shape=jax.ShapeDtypeStruct((bp, nd), jnp.float32),
        in_specs=[_VMEM_SPEC] * 7,
        out_specs=_VMEM_SPEC,
        cost_estimate=ce,
    )(p3, w3, b3.reshape(1, n3), w4_3d, b4.reshape(1, 128), wd,
      bd.reshape(1, nd))
    return out[:batch]


# ------------------------- im2col glue (XLA wrapper) ------------------------ #

def _round_up(n, m):
    return (n + m - 1) // m * m


def _im2col_pooled(x, kh, kw):
    """Corner-major patch matrix for conv (valid, stride 1) + 2x2/2 max pool.

    Returns (patches (4, Mpad, kh*kw*C), m = B*Hp*Wp).  Rows within each
    corner block ordered (b, hp, wp), zero-padded to Mpad (multiple of 8);
    columns ordered (i, j, cin).
    """
    B, H, W, C = x.shape
    Ho, Wo = H - kh + 1, W - kw + 1
    Hp, Wp = Ho // 2, Wo // 2
    m = B * Hp * Wp
    mpad = _round_up(m, 8)
    corners = []
    for dh in range(2):
        for dw in range(2):
            taps = []
            for i in range(kh):
                for j in range(kw):
                    win = x[:, dh + i: dh + i + 2 * Hp: 2,
                              dw + j: dw + j + 2 * Wp: 2, :]     # (B,Hp,Wp,C)
                    taps.append(win.reshape(m, C))
            blk = jnp.concatenate(taps, axis=1)                  # (m, kh*kw*C)
            if mpad != m:
                blk = jnp.pad(blk, ((0, mpad - m), (0, 0)))
            corners.append(blk)
    return jnp.stack(corners, axis=0), m                         # (4, Mpad, K)


def _im2col_tail(h):
    """2x2 im2col for conv3 with rows ordered (spatial, padded-batch).

    h: (B, 5, 5, 256) -> (16*Bp, 1024) bf16, Bp = round_up(B, 8).
    """
    B, H, W, C = h.shape
    Ho, Wo = H - 1, W - 1
    cols = []
    for i in range(2):
        for j in range(2):
            cols.append(h[:, i:i + Ho, j:j + Wo, :].reshape(B, Ho * Wo, C))
    p = jnp.concatenate(cols, axis=2)                 # (B, 16, 4*C), (i,j,cin)
    bp = _round_up(B, 8)
    p = jnp.transpose(p, (1, 0, 2))                   # (16, B, 4*C)
    if bp != B:
        p = jnp.pad(p, ((0, 0), (0, bp - B), (0, 0)))
    return p.reshape(Ho * Wo * bp, 4 * C)


# -------------------------------- parameters -------------------------------- #

def init_params(key):
    ks = jax.random.split(key, 10)

    def conv_wb(kw_key, kb_key, cout, cin, kh, kw):
        # PyTorch Conv2d weight (Cout,Cin,KH,KW) -> matmul weight
        # (KH*KW*Cin, Cout) with rows ordered (i, j, cin).
        w = 0.05 * jax.random.normal(kw_key, (cout, cin, kh, kw), jnp.float32)
        b = 0.05 * jax.random.normal(kb_key, (cout,), jnp.float32)
        w2d = jnp.transpose(w, (2, 3, 1, 0)).reshape(kh * kw * cin, cout)
        return w2d, b

    w1, b1 = conv_wb(ks[0], ks[1], 128, 3, 3, 3)       # (27, 128)
    w2, b2 = conv_wb(ks[2], ks[3], 256, 128, 5, 5)     # (3200, 256)
    w3, b3 = conv_wb(ks[4], ks[5], 256, 256, 2, 2)     # (1024, 256)
    w4, b4 = conv_wb(ks[6], ks[7], 128, 256, 4, 4)     # (4096, 128)
    # nn.Linear(128, 512): torch weight (512,128) -> (128,512)
    wd = jnp.transpose(0.05 * jax.random.normal(ks[8], (512, 128), jnp.float32))
    bd = 0.05 * jax.random.normal(ks[9], (512,), jnp.float32)
    bf16 = lambda a: a.astype(jnp.bfloat16)
    return dict(
        w1=bf16(w1), b1=b1,
        w2=bf16(w2), b2=b2,
        w3=bf16(w3), b3=b3,
        # conv4 weight kept per-spatial (16, 256, 128): NOT folded with the
        # decode Linear (folding would 4x the weight HBM traffic).
        w4=bf16(w4.reshape(16, 256, 128)), b4=b4,
        wd=bf16(wd), bd=bd)


# -------------------------------- forward pass ------------------------------ #

@jax.jit
def teacher33_forward(x_nchw, params):
    slope = 0.005
    x = jnp.transpose(x_nchw, (0, 2, 3, 1)).astype(jnp.bfloat16)   # NCHW->NHWC
    B = x.shape[0]

    # conv1 3x3 (3->128) + LeakyReLU + MaxPool2x2 (fused, batch-collapsed)
    p1, m1 = _im2col_pooled(x, 3, 3)                               # (4, 456, 27)
    h = conv_pool_act(p1, m1, params['w1'], params['b1'], slope)   # (450, 128)
    h = h.reshape(B, 15, 15, 128)

    # conv2 5x5 (128->256) + LeakyReLU + MaxPool2x2 (fused, batch-collapsed)
    p2, m2 = _im2col_pooled(h, 5, 5)                               # (4, 56, 3200)
    h = conv_pool_act(p2, m2, params['w2'], params['b2'], slope)   # (50, 256)
    h = h.reshape(B, 5, 5, 256)

    # conv3 2x2 + LeakyReLU + conv4 4x4 (no act) + decode Linear, one kernel
    p3 = _im2col_tail(h)                                           # (128, 1024)
    out = tail_fused(p3, B, params['w3'], params['b3'], params['w4'],
                     params['b4'], params['wd'], params['bd'], slope)
    return out                                                     # (B, 512) f32


if __name__ == "__main__":
    key = jax.random.PRNGKey(0)
    k_x, k_p = jax.random.split(key)
    # Patch size 33 is implied by the architecture (spatial dims reduce to 1x1).
    x = jax.random.normal(k_x, (2, 3, 33, 33), jnp.float32)
    params = init_params(k_p)
    out = jax.block_until_ready(teacher33_forward(x, params))
    assert out.shape == (2, 512), out.shape
    assert bool(jnp.all(jnp.isfinite(out)))
    print("KERNEL_OK")
</pallas_src>

<mosaic_0001>
module attributes {stable_mosaic.version = 11 : i64} {
  func.func @_conv_pool_act_kernel(%arg0: memref<4x456x27xbf16, #tpu.memory_space<vmem>>, %arg1: memref<27x128xbf16, #tpu.memory_space<vmem>>, %arg2: memref<1x128xf32, #tpu.memory_space<vmem>>, %arg3: memref<456x128xbf16, #tpu.memory_space<vmem>>) attributes {dimension_semantics = [], scalar_prefetch = 0 : i64, scratch_operands = 0 : i64, tpu.core_type = #tpu.core_type<tc>} {
    %c0 = arith.constant 0 : index
    %c0_0 = arith.constant 0 : index
    %0 = vector.load %arg1[%c0, %c0_0] : memref<27x128xbf16, #tpu.memory_space<vmem>>, vector<27x128xbf16>
    %c0_1 = arith.constant 0 : index
    %c0_2 = arith.constant 0 : index
    %c0_3 = arith.constant 0 : index
    %1 = vector.load %arg0[%c0_1, %c0_2, %c0_3] : memref<4x456x27xbf16, #tpu.memory_space<vmem>>, vector<1x456x27xbf16>
    %2 = vector.shape_cast %1 : vector<1x456x27xbf16> to vector<456x27xbf16>
    %cst = arith.constant dense<0.000000e+00> : vector<456x128xf32>
    %3 = tpu.matmul %2, %0, %cst {dimension_numbers = #tpu.dot_dimension_numbers<[1], [0], [0], [1], [0, 0, 1, 1], [], []>} : vector<456x27xbf16>, vector<27x128xbf16>, vector<456x128xf32> -> vector<456x128xf32>
    %c1 = arith.constant 1 : index
    %c0_4 = arith.constant 0 : index
    %c0_5 = arith.constant 0 : index
    %4 = vector.load %arg0[%c1, %c0_4, %c0_5] : memref<4x456x27xbf16, #tpu.memory_space<vmem>>, vector<1x456x27xbf16>
    %5 = vector.shape_cast %4 : vector<1x456x27xbf16> to vector<456x27xbf16>
    %cst_6 = arith.constant dense<0.000000e+00> : vector<456x128xf32>
    %6 = tpu.matmul %5, %0, %cst_6 {dimension_numbers = #tpu.dot_dimension_numbers<[1], [0], [0], [1], [0, 0, 1, 1], [], []>} : vector<456x27xbf16>, vector<27x128xbf16>, vector<456x128xf32> -> vector<456x128xf32>
    %7 = arith.maximumf %3, %6 : vector<456x128xf32>
    %c2 = arith.constant 2 : index
    %c0_7 = arith.constant 0 : index
    %c0_8 = arith.constant 0 : index
    %8 = vector.load %arg0[%c2, %c0_7, %c0_8] : memref<4x456x27xbf16, #tpu.memory_space<vmem>>, vector<1x456x27xbf16>
    %9 = vector.shape_cast %8 : vector<1x456x27xbf16> to vector<456x27xbf16>
    %cst_9 = arith.constant dense<0.000000e+00> : vector<456x128xf32>
    %10 = tpu.matmul %9, %0, %cst_9 {dimension_numbers = #tpu.dot_dimension_numbers<[1], [0], [0], [1], [0, 0, 1, 1], [], []>} : vector<456x27xbf16>, vector<27x128xbf16>, vector<456x128xf32> -> vector<456x128xf32>
    %11 = arith.maximumf %7, %10 : vector<456x128xf32>
    %c3 = arith.constant 3 : index
    %c0_10 = arith.constant 0 : index
    %c0_11 = arith.constant 0 : index
    %12 = vector.load %arg0[%c3, %c0_10, %c0_11] : memref<4x456x27xbf16, #tpu.memory_space<vmem>>, vector<1x456x27xbf16>
    %13 = vector.shape_cast %12 : vector<1x456x27xbf16> to vector<456x27xbf16>
    %cst_12 = arith.constant dense<0.000000e+00> : vector<456x128xf32>
    %14 = tpu.matmul %13, %0, %cst_12 {dimension_numbers = #tpu.dot_dimension_numbers<[1], [0], [0], [1], [0, 0, 1, 1], [], []>} : vector<456x27xbf16>, vector<27x128xbf16>, vector<456x128xf32> -> vector<456x128xf32>
    %15 = arith.maximumf %11, %14 : vector<456x128xf32>
    %c0_13 = arith.constant 0 : index
    %c0_14 = arith.constant 0 : index
    %16 = vector.load %arg2[%c0_13, %c0_14] : memref<1x128xf32, #tpu.memory_space<vmem>>, vector<1x128xf32>
    %17 = vector.broadcast %16 : vector<1x128xf32> to vector<456x128xf32>
    %18 = arith.addf %15, %17 : vector<456x128xf32>
    %cst_15 = arith.constant 0.000000e+00 : f32
    %19 = vector.broadcast %cst_15 : f32 to vector<456x128xf32>
    %20 = arith.cmpf oge, %18, %19 : vector<456x128xf32>
    %cst_16 = arith.constant 5.000000e-03 : f32
    %21 = vector.broadcast %cst_16 : f32 to vector<456x128xf32>
    %22 = arith.mulf %18, %21 : vector<456x128xf32>
    %23 = arith.select %20, %18, %22 : vector<456x128xi1>, vector<456x128xf32>
    %24 = arith.truncf %23 : vector<456x128xf32> to vector<456x128xbf16>
    %c0_17 = arith.constant 0 : index
    %c0_18 = arith.constant 0 : index
    %25 = vector.load %arg3[%c0_17, %c0_18] : memref<456x128xbf16, #tpu.memory_space<vmem>>, vector<456x128xbf16>
    tpu.vector_store %arg3[%c0_17, %c0_18], %24 {strides = array<i32>} : memref<456x128xbf16, #tpu.memory_space<vmem>>, vector<456x128xbf16>,
    return
  }
}

module attributes {stable_mosaic.version = 11 : i64} {
  func.func @_conv_pool_act_kernel(%arg0: memref<4x56x3200xbf16, #tpu.memory_space<vmem>>, %arg1: memref<3200x256xbf16, #tpu.memory_space<vmem>>, %arg2: memref<1x256xf32, #tpu.memory_space<vmem>>, %arg3: memref<56x256xbf16, #tpu.memory_space<vmem>>) attributes {dimension_semantics = [], scalar_prefetch = 0 : i64, scratch_operands = 0 : i64, tpu.core_type = #tpu.core_type<tc>} {
    %c0 = arith.constant 0 : index
    %c0_0 = arith.constant 0 : index
    %0 = vector.load %arg1[%c0, %c0_0] : memref<3200x256xbf16, #tpu.memory_space<vmem>>, vector<3200x256xbf16>
    %c0_1 = arith.constant 0 : index
    %c0_2 = arith.constant 0 : index
    %c0_3 = arith.constant 0 : index
    %1 = vector.load %arg0[%c0_1, %c0_2, %c0_3] : memref<4x56x3200xbf16, #tpu.memory_space<vmem>>, vector<1x56x3200xbf16>
    %2 = vector.shape_cast %1 : vector<1x56x3200xbf16> to vector<56x3200xbf16>
    %cst = arith.constant dense<0.000000e+00> : vector<56x256xf32>
    %3 = tpu.matmul %2, %0, %cst {dimension_numbers = #tpu.dot_dimension_numbers<[1], [0], [0], [1], [0, 0, 1, 1], [], []>} : vector<56x3200xbf16>, vector<3200x256xbf16>, vector<56x256xf32> -> vector<56x256xf32>
    %c1 = arith.constant 1 : index
    %c0_4 = arith.constant 0 : index
    %c0_5 = arith.constant 0 : index
    %4 = vector.load %arg0[%c1, %c0_4, %c0_5] : memref<4x56x3200xbf16, #tpu.memory_space<vmem>>, vector<1x56x3200xbf16>
    %5 = vector.shape_cast %4 : vector<1x56x3200xbf16> to vector<56x3200xbf16>
    %cst_6 = arith.constant dense<0.000000e+00> : vector<56x256xf32>
    %6 = tpu.matmul %5, %0, %cst_6 {dimension_numbers = #tpu.dot_dimension_numbers<[1], [0], [0], [1], [0, 0, 1, 1], [], []>} : vector<56x3200xbf16>, vector<3200x256xbf16>, vector<56x256xf32> -> vector<56x256xf32>
    %7 = arith.maximumf %3, %6 : vector<56x256xf32>
    %c2 = arith.constant 2 : index
    %c0_7 = arith.constant 0 : index
    %c0_8 = arith.constant 0 : index
    %8 = vector.load %arg0[%c2, %c0_7, %c0_8] : memref<4x56x3200xbf16, #tpu.memory_space<vmem>>, vector<1x56x3200xbf16>
    %9 = vector.shape_cast %8 : vector<1x56x3200xbf16> to vector<56x3200xbf16>
    %cst_9 = arith.constant dense<0.000000e+00> : vector<56x256xf32>
    %10 = tpu.matmul %9, %0, %cst_9 {dimension_numbers = #tpu.dot_dimension_numbers<[1], [0], [0], [1], [0, 0, 1, 1], [], []>} : vector<56x3200xbf16>, vector<3200x256xbf16>, vector<56x256xf32> -> vector<56x256xf32>
    %11 = arith.maximumf %7, %10 : vector<56x256xf32>
    %c3 = arith.constant 3 : index
    %c0_10 = arith.constant 0 : index
    %c0_11 = arith.constant 0 : index
    %12 = vector.load %arg0[%c3, %c0_10, %c0_11] : memref<4x56x3200xbf16, #tpu.memory_space<vmem>>, vector<1x56x3200xbf16>
    %13 = vector.shape_cast %12 : vector<1x56x3200xbf16> to vector<56x3200xbf16>
    %cst_12 = arith.constant dense<0.000000e+00> : vector<56x256xf32>
    %14 = tpu.matmul %13, %0, %cst_12 {dimension_numbers = #tpu.dot_dimension_numbers<[1], [0], [0], [1], [0, 0, 1, 1], [], []>} : vector<56x3200xbf16>, vector<3200x256xbf16>, vector<56x256xf32> -> vector<56x256xf32>
    %15 = arith.maximumf %11, %14 : vector<56x256xf32>
    %c0_13 = arith.constant 0 : index
    %c0_14 = arith.constant 0 : index
    %16 = vector.load %arg2[%c0_13, %c0_14] : memref<1x256xf32, #tpu.memory_space<vmem>>, vector<1x256xf32>
    %17 = vector.broadcast %16 : vector<1x256xf32> to vector<56x256xf32>
    %18 = arith.addf %15, %17 : vector<56x256xf32>
    %cst_15 = arith.constant 0.000000e+00 : f32
    %19 = vector.broadcast %cst_15 : f32 to vector<56x256xf32>
    %20 = arith.cmpf oge, %18, %19 : vector<56x256xf32>
    %cst_16 = arith.constant 5.000000e-03 : f32
    %21 = vector.broadcast %cst_16 : f32 to vector<56x256xf32>
    %22 = arith.mulf %18, %21 : vector<56x256xf32>
    %23 = arith.select %20, %18, %22 : vector<56x256xi1>, vector<56x256xf32>
    %24 = arith.truncf %23 : vector<56x256xf32> to vector<56x256xbf16>
    %c0_17 = arith.constant 0 : index
    %c0_18 = arith.constant 0 : index
    %25 = vector.load %arg3[%c0_17, %c0_18] : memref<56x256xbf16, #tpu.memory_space<vmem>>, vector<56x256xbf16>
    tpu.vector_store %arg3[%c0_17, %c0_18], %24 {strides = array<i32>} : memref<56x256xbf16, #tpu.memory_space<vmem>>, vector<56x256xbf16>,
    return
  }
}

module attributes {stable_mosaic.version = 11 : i64} {
  func.func @_tail_kernel(%arg0: memref<128x1024xbf16, #tpu.memory_space<vmem>>, %arg1: memref<1024x256xbf16, #tpu.memory_space<vmem>>, %arg2: memref<1x256xf32, #tpu.memory_space<vmem>>, %arg3: memref<16x256x128xbf16, #tpu.memory_space<vmem>>, %arg4: memref<1x128xf32, #tpu.memory_space<vmem>>, %arg5: memref<128x512xbf16, #tpu.memory_space<vmem>>, %arg6: memref<1x512xf32, #tpu.memory_space<vmem>>, %arg7: memref<8x512xf32, #tpu.memory_space<vmem>>) attributes {dimension_semantics = [], scalar_prefetch = 0 : i64, scratch_operands = 0 : i64, tpu.core_type = #tpu.core_type<tc>} {
    %c0 = arith.constant 0 : index
    %c0_0 = arith.constant 0 : index
    %0 = vector.load %arg0[%c0, %c0_0] : memref<128x1024xbf16, #tpu.memory_space<vmem>>, vector<128x1024xbf16>
    %c0_1 = arith.constant 0 : index
    %c0_2 = arith.constant 0 : index
    %1 = vector.load %arg1[%c0_1, %c0_2] : memref<1024x256xbf16, #tpu.memory_space<vmem>>, vector<1024x256xbf16>
    %cst = arith.constant dense<0.000000e+00> : vector<128x256xf32>
    %2 = tpu.matmul %0, %1, %cst {dimension_numbers = #tpu.dot_dimension_numbers<[1], [0], [0], [1], [0, 0, 1, 1], [], []>} : vector<128x1024xbf16>, vector<1024x256xbf16>, vector<128x256xf32> -> vector<128x256xf32>
    %c0_3 = arith.constant 0 : index
    %c0_4 = arith.constant 0 : index
    %3 = vector.load %arg2[%c0_3, %c0_4] : memref<1x256xf32, #tpu.memory_space<vmem>>, vector<1x256xf32>
    %4 = vector.broadcast %3 : vector<1x256xf32> to vector<128x256xf32>
    %5 = arith.addf %2, %4 : vector<128x256xf32>
    %cst_5 = arith.constant 0.000000e+00 : f32
    %6 = vector.broadcast %cst_5 : f32 to vector<128x256xf32>
    %7 = arith.cmpf oge, %5, %6 : vector<128x256xf32>
    %cst_6 = arith.constant 5.000000e-03 : f32
    %8 = vector.broadcast %cst_6 : f32 to vector<128x256xf32>
    %9 = arith.mulf %5, %8 : vector<128x256xf32>
    %10 = arith.select %7, %5, %9 : vector<128x256xi1>, vector<128x256xf32>
    %11 = arith.truncf %10 : vector<128x256xf32> to vector<128x256xbf16>
    %12 = vector.extract_strided_slice %11 {offsets = [0, 0], sizes = [8, 256], strides = [1, 1]} : vector<128x256xbf16> to vector<8x256xbf16>
    %c0_7 = arith.constant 0 : index
    %c0_8 = arith.constant 0 : index
    %c0_9 = arith.constant 0 : index
    %13 = vector.load %arg3[%c0_7, %c0_8, %c0_9] : memref<16x256x128xbf16, #tpu.memory_space<vmem>>, vector<1x256x128xbf16>
    %14 = vector.shape_cast %13 : vector<1x256x128xbf16> to vector<256x128xbf16>
    %cst_10 = arith.constant dense<0.000000e+00> : vector<8x128xf32>
    %15 = tpu.matmul %12, %14, %cst_10 {dimension_numbers = #tpu.dot_dimension_numbers<[1], [0], [0], [1], [0, 0, 1, 1], [], []>} : vector<8x256xbf16>, vector<256x128xbf16>, vector<8x128xf32> -> vector<8x128xf32>
    %16 = vector.extract_strided_slice %11 {offsets = [8, 0], sizes = [8, 256], strides = [1, 1]} : vector<128x256xbf16> to vector<8x256xbf16>
    %c1 = arith.constant 1 : index
    %c0_11 = arith.constant 0 : index
    %c0_12 = arith.constant 0 : index
    %17 = vector.load %arg3[%c1, %c0_11, %c0_12] : memref<16x256x128xbf16, #tpu.memory_space<vmem>>, vector<1x256x128xbf16>
    %18 = vector.shape_cast %17 : vector<1x256x128xbf16> to vector<256x128xbf16>
    %cst_13 = arith.constant dense<0.000000e+00> : vector<8x128xf32>
    %19 = tpu.matmul %16, %18, %cst_13 {dimension_numbers = #tpu.dot_dimension_numbers<[1], [0], [0], [1], [0, 0, 1, 1], [], []>} : vector<8x256xbf16>, vector<256x128xbf16>, vector<8x128xf32> -> vector<8x128xf32>
    %20 = arith.addf %15, %19 : vector<8x128xf32>
    %21 = vector.extract_strided_slice %11 {offsets = [16, 0], sizes = [8, 256], strides = [1, 1]} : vector<128x256xbf16> to vector<8x256xbf16>
    %c2 = arith.constant 2 : index
    %c0_14 = arith.constant 0 : index
    %c0_15 = arith.constant 0 : index
    %22 = vector.load %arg3[%c2, %c0_14, %c0_15] : memref<16x256x128xbf16, #tpu.memory_space<vmem>>, vector<1x256x128xbf16>
    %23 = vector.shape_cast %22 : vector<1x256x128xbf16> to vector<256x128xbf16>
    %cst_16 = arith.constant dense<0.000000e+00> : vector<8x128xf32>
    %24 = tpu.matmul %21, %23, %cst_16 {dimension_numbers = #tpu.dot_dimension_numbers<[1], [0], [0], [1], [0, 0, 1, 1], [], []>} : vector<8x256xbf16>, vector<256x128xbf16>, vector<8x128xf32> -> vector<8x128xf32>
    %25 = arith.addf %20, %24 : vector<8x128xf32>
    %26 = vector.extract_strided_slice %11 {offsets = [24, 0], sizes = [8, 256], strides = [1, 1]} : vector<128x256xbf16> to vector<8x256xbf16>
    %c3 = arith.constant 3 : index
    %c0_17 = arith.constant 0 : index
    %c0_18 = arith.constant 0 : index
    %27 = vector.load %arg3[%c3, %c0_17, %c0_18] : memref<16x256x128xbf16, #tpu.memory_space<vmem>>, vector<1x256x128xbf16>
    %28 = vector.shape_cast %27 : vector<1x256x128xbf16> to vector<256x128xbf16>
    %cst_19 = arith.constant dense<0.000000e+00> : vector<8x128xf32>
    %29 = tpu.matmul %26, %28, %cst_19 {dimension_numbers = #tpu.dot_dimension_numbers<[1], [0], [0], [1], [0, 0, 1, 1], [], []>} : vector<8x256xbf16>, vector<256x128xbf16>, vector<8x128xf32> -> vector<8x128xf32>
    %30 = arith.addf %25, %29 : vector<8x128xf32>
    %31 = vector.extract_strided_slice %11 {offsets = [32, 0], sizes = [8, 256], strides = [1, 1]} : vector<128x256xbf16> to vector<8x256xbf16>
    %c4 = arith.constant 4 : index
    %c0_20 = arith.constant 0 : index
    %c0_21 = arith.constant 0 : index
    %32 = vector.load %arg3[%c4, %c0_20, %c0_21] : memref<16x256x128xbf16, #tpu.memory_space<vmem>>, vector<1x256x128xbf16>
    %33 = vector.shape_cast %32 : vector<1x256x128xbf16> to vector<256x128xbf16>
    %cst_22 = arith.constant dense<0.000000e+00> : vector<8x128xf32>
    %34 = tpu.matmul %31, %33, %cst_22 {dimension_numbers = #tpu.dot_dimension_numbers<[1], [0], [0], [1], [0, 0, 1, 1], [], []>} : vector<8x256xbf16>, vector<256x128xbf16>, vector<8x128xf32> -> vector<8x128xf32>
    %35 = arith.addf %30, %34 : vector<8x128xf32>
    %36 = vector.extract_strided_slice %11 {offsets = [40, 0], sizes = [8, 256], strides = [1, 1]} : vector<128x256xbf16> to vector<8x256xbf16>
    %c5 = arith.constant 5 : index
    %c0_23 = arith.constant 0 : index
    %c0_24 = arith.constant 0 : index
    %37 = vector.load %arg3[%c5, %c0_23, %c0_24] : memref<16x256x128xbf16, #tpu.memory_space<vmem>>, vector<1x256x128xbf16>
    %38 = vector.shape_cast %37 : vector<1x256x128xbf16> to vector<256x128xbf16>
    %cst_25 = arith.constant dense<0.000000e+00> : vector<8x128xf32>
    %39 = tpu.matmul %36, %38, %cst_25 {dimension_numbers = #tpu.dot_dimension_numbers<[1], [0], [0], [1], [0, 0, 1, 1], [], []>} : vector<8x256xbf16>, vector<256x128xbf16>, vector<8x128xf32> -> vector<8x128xf32>
    %40 = arith.addf %35, %39 : vector<8x128xf32>
    %41 = vector.extract_strided_slice %11 {offsets = [48, 0], sizes = [8, 256], strides = [1, 1]} : vector<128x256xbf16> to vector<8x256xbf16>
    %c6 = arith.constant 6 : index
    %c0_26 = arith.constant 0 : index
    %c0_27 = arith.constant 0 : index
    %42 = vector.load %arg3[%c6, %c0_26, %c0_27] : memref<16x256x128xbf16, #tpu.memory_space<vmem>>, vector<1x256x128xbf16>
    %43 = vector.shape_cast %42 : vector<1x256x128xbf16> to vector<256x128xbf16>
    %cst_28 = arith.constant dense<0.000000e+00> : vector<8x128xf32>
    %44 = tpu.matmul %41, %43, %cst_28 {dimension_numbers = #tpu.dot_dimension_numbers<[1], [0], [0], [1], [0, 0, 1, 1], [], []>} : vector<8x256xbf16>, vector<256x128xbf16>, vector<8x128xf32> -> vector<8x128xf32>
    %45 = arith.addf %40, %44 : vector<8x128xf32>
    %46 = vector.extract_strided_slice %11 {offsets = [56, 0], sizes = [8, 256], strides = [1, 1]} : vector<128x256xbf16> to vector<8x256xbf16>
    %c7 = arith.constant 7 : index
    %c0_29 = arith.constant 0 : index
    %c0_30 = arith.constant 0 : index
    %47 = vector.load %arg3[%c7, %c0_29, %c0_30] : memref<16x256x128xbf16, #tpu.memory_space<vmem>>, vector<1x256x128xbf16>
    %48 = vector.shape_cast %47 : vector<1x256x128xbf16> to vector<256x128xbf16>
    %cst_31 = arith.constant dense<0.000000e+00> : vector<8x128xf32>
    %49 = tpu.matmul %46, %48, %cst_31 {dimension_numbers = #tpu.dot_dimension_numbers<[1], [0], [0], [1], [0, 0, 1, 1], [], []>} : vector<8x256xbf16>, vector<256x128xbf16>, vector<8x128xf32> -> vector<8x128xf32>
    %50 = arith.addf %45, %49 : vector<8x128xf32>
    %51 = vector.extract_strided_slice %11 {offsets = [64, 0], sizes = [8, 256], strides = [1, 1]} : vector<128x256xbf16> to vector<8x256xbf16>
    %c8 = arith.constant 8 : index
    %c0_32 = arith.constant 0 : index
    %c0_33 = arith.constant 0 : index
    %52 = vector.load %arg3[%c8, %c0_32, %c0_33] : memref<16x256x128xbf16, #tpu.memory_space<vmem>>, vector<1x256x128xbf16>
    %53 = vector.shape_cast %52 : vector<1x256x128xbf16> to vector<256x128xbf16>
    %cst_34 = arith.constant dense<0.000000e+00> : vector<8x128xf32>
    %54 = tpu.matmul %51, %53, %cst_34 {dimension_numbers = #tpu.dot_dimension_numbers<[1], [0], [0], [1], [0, 0, 1, 1], [], []>} : vector<8x256xbf16>, vector<256x128xbf16>, vector<8x128xf32> -> vector<8x128xf32>
    %55 = arith.addf %50, %54 : vector<8x128xf32>
    %56 = vector.extract_strided_slice %11 {offsets = [72, 0], sizes = [8, 256], strides = [1, 1]} : vector<128x256xbf16> to vector<8x256xbf16>
    %c9 = arith.constant 9 : index
    %c0_35 = arith.constant 0 : index
    %c0_36 = arith.constant 0 : index
    %57 = vector.load %arg3[%c9, %c0_35, %c0_36] : memref<16x256x128xbf16, #tpu.memory_space<vmem>>, vector<1x256x128xbf16>
    %58 = vector.shape_cast %57 : vector<1x256x128xbf16> to vector<256x128xbf16>
    %cst_37 = arith.constant dense<0.000000e+00> : vector<8x128xf32>
    %59 = tpu.matmul %56, %58, %cst_37 {dimension_numbers = #tpu.dot_dimension_numbers<[1], [0], [0], [1], [0, 0, 1, 1], [], []>} : vector<8x256xbf16>, vector<256x128xbf16>, vector<8x128xf32> -> vector<8x128xf32>
    %60 = arith.addf %55, %59 : vector<8x128xf32>
    %61 = vector.extract_strided_slice %11 {offsets = [80, 0], sizes = [8, 256], strides = [1, 1]} : vector<128x256xbf16> to vector<8x256xbf16>
    %c10 = arith.constant 10 : index
    %c0_38 = arith.constant 0 : index
    %c0_39 = arith.constant 0 : index
    %62 = vector.load %arg3[%c10, %c0_38, %c0_39] : memref<16x256x128xbf16, #tpu.memory_space<vmem>>, vector<1x256x128xbf16>
    %63 = vector.shape_cast %62 : vector<1x256x128xbf16> to vector<256x128xbf16>
    %cst_40 = arith.constant dense<0.000000e+00> : vector<8x128xf32>
    %64 = tpu.matmul %61, %63, %cst_40 {dimension_numbers = #tpu.dot_dimension_numbers<[1], [0], [0], [1], [0, 0, 1, 1], [], []>} : vector<8x256xbf16>, vector<256x128xbf16>, vector<8x128xf32> -> vector<8x128xf32>
    %65 = arith.addf %60, %64 : vector<8x128xf32>
    %66 = vector.extract_strided_slice %11 {offsets = [88, 0], sizes = [8, 256], strides = [1, 1]} : vector<128x256xbf16> to vector<8x256xbf16>
    %c11 = arith.constant 11 : index
    %c0_41 = arith.constant 0 : index
    %c0_42 = arith.constant 0 : index
    %67 = vector.load %arg3[%c11, %c0_41, %c0_42] : memref<16x256x128xbf16, #tpu.memory_space<vmem>>, vector<1x256x128xbf16>
    %68 = vector.shape_cast %67 : vector<1x256x128xbf16> to vector<256x128xbf16>
    %cst_43 = arith.constant dense<0.000000e+00> : vector<8x128xf32>
    %69 = tpu.matmul %66, %68, %cst_43 {dimension_numbers = #tpu.dot_dimension_numbers<[1], [0], [0], [1], [0, 0, 1, 1], [], []>} : vector<8x256xbf16>, vector<256x128xbf16>, vector<8x128xf32> -> vector<8x128xf32>
    %70 = arith.addf %65, %69 : vector<8x128xf32>
    %71 = vector.extract_strided_slice %11 {offsets = [96, 0], sizes = [8, 256], strides = [1, 1]} : vector<128x256xbf16> to vector<8x256xbf16>
    %c12 = arith.constant 12 : index
    %c0_44 = arith.constant 0 : index
    %c0_45 = arith.constant 0 : index
    %72 = vector.load %arg3[%c12, %c0_44, %c0_45] : memref<16x256x128xbf16, #tpu.memory_space<vmem>>, vector<1x256x128xbf16>
    %73 = vector.shape_cast %72 : vector<1x256x128xbf16> to vector<256x128xbf16>
    %cst_46 = arith.constant dense<0.000000e+00> : vector<8x128xf32>
    %74 = tpu.matmul %71, %73, %cst_46 {dimension_numbers = #tpu.dot_dimension_numbers<[1], [0], [0], [1], [0, 0, 1, 1], [], []>} : vector<8x256xbf16>, vector<256x128xbf16>, vector<8x128xf32> -> vector<8x128xf32>
    %75 = arith.addf %70, %74 : vector<8x128xf32>
    %76 = vector.extract_strided_slice %11 {offsets = [104, 0], sizes = [8, 256], strides = [1, 1]} : vector<128x256xbf16> to vector<8x256xbf16>
    %c13 = arith.constant 13 : index
    %c0_47 = arith.constant 0 : index
    %c0_48 = arith.constant 0 : index
    %77 = vector.load %arg3[%c13, %c0_47, %c0_48] : memref<16x256x128xbf16, #tpu.memory_space<vmem>>, vector<1x256x128xbf16>
    %78 = vector.shape_cast %77 : vector<1x256x128xbf16> to vector<256x128xbf16>
    %cst_49 = arith.constant dense<0.000000e+00> : vector<8x128xf32>
    %79 = tpu.matmul %76, %78, %cst_49 {dimension_numbers = #tpu.dot_dimension_numbers<[1], [0], [0], [1], [0, 0, 1, 1], [], []>} : vector<8x256xbf16>, vector<256x128xbf16>, vector<8x128xf32> -> vector<8x128xf32>
    %80 = arith.addf %75, %79 : vector<8x128xf32>
    %81 = vector.extract_strided_slice %11 {offsets = [112, 0], sizes = [8, 256], strides = [1, 1]} : vector<128x256xbf16> to vector<8x256xbf16>
    %c14 = arith.constant 14 : index
    %c0_50 = arith.constant 0 : index
    %c0_51 = arith.constant 0 : index
    %82 = vector.load %arg3[%c14, %c0_50, %c0_51] : memref<16x256x128xbf16, #tpu.memory_space<vmem>>, vector<1x256x128xbf16>
    %83 = vector.shape_cast %82 : vector<1x256x128xbf16> to vector<256x128xbf16>
    %cst_52 = arith.constant dense<0.000000e+00> : vector<8x128xf32>
    %84 = tpu.matmul %81, %83, %cst_52 {dimension_numbers = #tpu.dot_dimension_numbers<[1], [0], [0], [1], [0, 0, 1, 1], [], []>} : vector<8x256xbf16>, vector<256x128xbf16>, vector<8x128xf32> -> vector<8x128xf32>
    %85 = arith.addf %80, %84 : vector<8x128xf32>
    %86 = vector.extract_strided_slice %11 {offsets = [120, 0], sizes = [8, 256], strides = [1, 1]} : vector<128x256xbf16> to vector<8x256xbf16>
    %c15 = arith.constant 15 : index
    %c0_53 = arith.constant 0 : index
    %c0_54 = arith.constant 0 : index
    %87 = vector.load %arg3[%c15, %c0_53, %c0_54] : memref<16x256x128xbf16, #tpu.memory_space<vmem>>, vector<1x256x128xbf16>
    %88 = vector.shape_cast %87 : vector<1x256x128xbf16> to vector<256x128xbf16>
    %cst_55 = arith.constant dense<0.000000e+00> : vector<8x128xf32>
    %89 = tpu.matmul %86, %88, %cst_55 {dimension_numbers = #tpu.dot_dimension_numbers<[1], [0], [0], [1], [0, 0, 1, 1], [], []>} : vector<8x256xbf16>, vector<256x128xbf16>, vector<8x128xf32> -> vector<8x128xf32>
    %90 = arith.addf %85, %89 : vector<8x128xf32>
    %c0_56 = arith.constant 0 : index
    %c0_57 = arith.constant 0 : index
    %91 = vector.load %arg4[%c0_56, %c0_57] : memref<1x128xf32, #tpu.memory_space<vmem>>, vector<1x128xf32>
    %92 = vector.broadcast %91 : vector<1x128xf32> to vector<8x128xf32>
    %93 = arith.addf %90, %92 : vector<8x128xf32>
    %94 = arith.truncf %93 : vector<8x128xf32> to vector<8x128xbf16>
    %c0_58 = arith.constant 0 : index
    %c0_59 = arith.constant 0 : index
    %95 = vector.load %arg5[%c0_58, %c0_59] : memref<128x512xbf16, #tpu.memory_space<vmem>>, vector<128x512xbf16>
    %cst_60 = arith.constant dense<0.000000e+00> : vector<8x512xf32>
    %96 = tpu.matmul %94, %95, %cst_60 {dimension_numbers = #tpu.dot_dimension_numbers<[1], [0], [0], [1], [0, 0, 1, 1], [], []>} : vector<8x128xbf16>, vector<128x512xbf16>, vector<8x512xf32> -> vector<8x512xf32>
    %c0_61 = arith.constant 0 : index
    %c0_62 = arith.constant 0 : index
    %97 = vector.load %arg6[%c0_61, %c0_62] : memref<1x512xf32, #tpu.memory_space<vmem>>, vector<1x512xf32>
    %98 = vector.broadcast %97 : vector<1x512xf32> to vector<8x512xf32>
    %99 = arith.addf %96, %98 : vector<8x512xf32>
    %c0_63 = arith.constant 0 : index
    %c0_64 = arith.constant 0 : index
    %100 = vector.load %arg7[%c0_63, %c0_64] : memref<8x512xf32, #tpu.memory_space<vmem>>, vector<8x512xf32>
    tpu.vector_store %arg7[%c0_63, %c0_64], %99 {strides = array<i32>} : memref<8x512xf32, #tpu.memory_space<vmem>>, vector<8x512xf32>,
    return
  }
}

</mosaic_0001>

<bundles_post_ra>
// kernel: teacher33_forward.3
= control target key start
LH: loop header
LB: loop body
LE: loop exit
PB: predicated region body
PF: predicated region fallthrough
CT: control target
= control target key end

     0   :  { %vm318_vm0 = vcmask 1044480   ;;  %vm319_vm1 = vcmask 1045504   ;;  %v5758_v0 = vmov 0.0   ;;  %v4355_v2 = vmov 65535   ;;  %s5754_s1 = inlined_call_operand.vmem [shape: bf16[27,128], index: 1, kind: input, shape index: {}]   ;;  %s5755_s0 = inlined_call_operand.vmem [shape: bf16[4,456,27], index: 0, kind: input, shape index: {}]   ;;  %s5756_s2 = inlined_call_operand.vmem [shape: f32[1,128], index: 2, kind: input, shape index: {}]   ;;  %s5757_s3 = inlined_call_operand.vmem [shape: bf16[456,128], index: 3, kind: output, shape index: {}]  }
   0x1   :  { %3752 = vmatprep.subr.bf16.mxu0 %v5758_v0  ;;  %3872 = vmatprep.subr.bf16.mxu1 %v5758_v0  ;;  %v4235_v1 = vld [vmem:[%s5754_s1] sm:$0xff]   ;;  %v320_v3 = vsel %vm318_vm0, 4294967295, %v4355_v2  ;;  %v4236_v4 = vld [vmem:[%s5754_s1 + $0x8] sm:$0x3f]   ;;  %vm4356_vm2 = vmmov 0   ;;  %vm230_vm3 = vcmask 220160  }
   0x2   :  { %3753 = vmatpush3.bf16.msra.mxu0 %v4235_v1  ;;  %3873 = vmatpush3.bf16.msra.mxu1 %v4235_v1  ;;  %v321_v5 = vsel %vm319_vm1, %v320_v3, 0  ;;  %v4237_v7 = vld [vmem:[%s5755_s0] sm:$0xff]   ;;  %v4239_v9 = vld [vmem:[%s5755_s0 + $0x8] sm:$0xff]   ;;  %v4241_v11 = vld [vmem:[%s5755_s0 + $0x10] sm:$0xff]  }
   0x3   :  { %3754 = vmatprep.subr.bf16.mxu0 %v5758_v0  ;;  %3874 = vmatprep.subr.bf16.mxu1 %v5758_v0  ;;  %v323_v6 = vand.u32 %v4236_v4, %v321_v5  ;;  %v4238_v8 = vld [vmem:[%s5755_s0 + $0xe4] sm:$0xff]   ;;  %v4240_v10 = vld [vmem:[%s5755_s0 + $0xec] sm:$0xff]   ;;  %v4242_v12 = vld [vmem:[%s5755_s0 + $0xf4] sm:$0xff]  }
   0x4   :  { %3756 = vmatprep.mubr.msk.bf16.mxu0 %vm4356_vm2, %v5758_v0  ;;  %3876 = vmatprep.mubr.msk.bf16.mxu1 %vm4356_vm2, %v5758_v0  ;;  %v4243_v13 = vld [vmem:[%s5755_s0 + $0x18] sm:$0xff]   ;;  %v4245_v15 = vld [vmem:[%s5755_s0 + $0x20] sm:$0xff]   ;;  %v4247_v17 = vld [vmem:[%s5755_s0 + $0x28] sm:$0xff]  }
   0x5   :  { %v4244_v14 = vld [vmem:[%s5755_s0 + $0xfc] sm:$0xff]   ;;  %v4246_v16 = vld [vmem:[%s5755_s0 + $0x104] sm:$0xff]   ;;  %v4248_v18 = vld [vmem:[%s5755_s0 + $0x10c] sm:$0xff]  }
   0x6   :  { %3755 = vmatpush3.bf16.msra.mxu0 %v323_v6  ;;  %3875 = vmatpush3.bf16.msra.mxu1 %v323_v6  ;;  %v4249_v19 = vld [vmem:[%s5755_s0 + $0x30] sm:$0xff]   ;;  %v4251_v21 = vld [vmem:[%s5755_s0 + $0x38] sm:$0xff]   ;;  %v4253_v23 = vld [vmem:[%s5755_s0 + $0x40] sm:$0xff]  }
   0x7   :  { %3992 = vmatprep.subr.bf16.mxu0 %v5758_v0  ;;  %4112 = vmatprep.subr.bf16.mxu1 %v5758_v0  ;;  %v4250_v20 = vld [vmem:[%s5755_s0 + $0x114] sm:$0xff]   ;;  %v4252_v22 = vld [vmem:[%s5755_s0 + $0x11c] sm:$0xff]   ;;  %v4254_v24 = vld [vmem:[%s5755_s0 + $0x124] sm:$0xff]  }
   0x8   :  { %v4255_v25 = vld [vmem:[%s5755_s0 + $0x48] sm:$0xff]   ;;  %v4257_v27 = vld [vmem:[%s5755_s0 + $0x50] sm:$0xff]   ;;  %v4259_v29 = vld [vmem:[%s5755_s0 + $0x58] sm:$0xff]  }
   0x9   :  { %3757 = vmatmul.mubr.msk.bf16.vlgmr.msra.gmra.mrb[0].mxu0 %vm230_vm3, %v4237_v7  ;;  %3877 = vmatmul.mubr.msk.bf16.vlgmr.msra.gmra.mrb[0].mxu1 %vm230_vm3, %v4238_v8  ;;  %v4256_v26 = vld [vmem:[%s5755_s0 + $0x12c] sm:$0xff]   ;;  %v4258_v28 = vld [vmem:[%s5755_s0 + $0x134] sm:$0xff]   ;;  %v4260_v30 = vld [vmem:[%s5755_s0 + $0x13c] sm:$0xff]  }
   0xa   :  { %3993 = vmatpush3.bf16.msra.mxu0 %v4235_v1  ;;  %4113 = vmatpush3.bf16.msra.mxu1 %v4235_v1  ;;  %v4261_v31 = vld [vmem:[%s5755_s0 + $0x60] sm:$0xff]   ;;  %v4263_v33 = vld [vmem:[%s5755_s0 + $0x68] sm:$0xff]   ;;  %v4265_v35 = vld [vmem:[%s5755_s0 + $0x70] sm:$0xff]  }
   0xb   :  { %3760 = vmatprep.mubr.msk.bf16.mxu0 %vm4356_vm2, %v5758_v0  ;;  %3880 = vmatprep.mubr.msk.bf16.mxu1 %vm4356_vm2, %v5758_v0  ;;  %v4262_v32 = vld [vmem:[%s5755_s0 + $0x144] sm:$0xff]   ;;  %v4264_v34 = vld [vmem:[%s5755_s0 + $0x14c] sm:$0xff]   ;;  %v4266_v36 = vld [vmem:[%s5755_s0 + $0x154] sm:$0xff]  }
   0xc   :  { %3994 = vmatprep.subr.bf16.mxu0 %v5758_v0  ;;  %4114 = vmatprep.subr.bf16.mxu1 %v5758_v0  ;;  %v4267_v37 = vld [vmem:[%s5755_s0 + $0x78] sm:$0xff]   ;;  %v4269_v39 = vld [vmem:[%s5755_s0 + $0x80] sm:$0xff]   ;;  %v4271_v41 = vld [vmem:[%s5755_s0 + $0x88] sm:$0xff]  }
   0xd   :  { %v4268_v38 = vld [vmem:[%s5755_s0 + $0x15c] sm:$0xff]   ;;  %v4270_v40 = vld [vmem:[%s5755_s0 + $0x164] sm:$0xff]   ;;  %v4272_v42 = vld [vmem:[%s5755_s0 + $0x16c] sm:$0xff]  }
   0xe   :  { %3995 = vmatpush3.bf16.msra.mxu0 %v323_v6  ;;  %4115 = vmatpush3.bf16.msra.mxu1 %v323_v6  ;;  %v4273_v43 = vld [vmem:[%s5755_s0 + $0x90] sm:$0xff]   ;;  %v4275_v45 = vld [vmem:[%s5755_s0 + $0x98] sm:$0xff]   ;;  %v4277_v47 = vld [vmem:[%s5755_s0 + $0xa0] sm:$0xff]  }
   0xf   :  { %v4274_v44 = vld [vmem:[%s5755_s0 + $0x174] sm:$0xff]   ;;  %v4276_v46 = vld [vmem:[%s5755_s0 + $0x17c] sm:$0xff]   ;;  %v4278_v48 = vld [vmem:[%s5755_s0 + $0x184] sm:$0xff]  }
  0x10   :  { %v4279_v49 = vld [vmem:[%s5755_s0 + $0xa8] sm:$0xff]   ;;  %v4281_v51 = vld [vmem:[%s5755_s0 + $0xb0] sm:$0xff]   ;;  %v4283_v53 = vld [vmem:[%s5755_s0 + $0xb8] sm:$0xff]  }
  0x11   :  { %3761 = vmatmul.mubr.msk.bf16.gmra.mrb[4].mxu0 %vm230_vm3, %v4239_v9  ;;  %3881 = vmatmul.mubr.msk.bf16.gmra.mrb[4].mxu1 %vm230_vm3, %v4240_v10  ;;  %v4280_v50 = vld [vmem:[%s5755_s0 + $0x18c] sm:$0xff]   ;;  %v4282_v52 = vld [vmem:[%s5755_s0 + $0x194] sm:$0xff]   ;;  %v4284_v54 = vld [vmem:[%s5755_s0 + $0x19c] sm:$0xff]  }
  0x12   :  { %3764 = vmatprep.mubr.msk.bf16.mxu0 %vm4356_vm2, %v5758_v0  ;;  %3884 = vmatprep.mubr.msk.bf16.mxu1 %vm4356_vm2, %v5758_v0  ;;  %v4285_v55 = vld [vmem:[%s5755_s0 + $0xc0] sm:$0xff]   ;;  %v4287_v57 = vld [vmem:[%s5755_s0 + $0xc8] sm:$0xff]   ;;  %v4289_v59 = vld [vmem:[%s5755_s0 + $0xd0] sm:$0xff]  }
  0x13   :  { %v4286_v56 = vld [vmem:[%s5755_s0 + $0x1a4] sm:$0xff]   ;;  %v4288_v58 = vld [vmem:[%s5755_s0 + $0x1ac] sm:$0xff]   ;;  %v4290_v60 = vld [vmem:[%s5755_s0 + $0x1b4] sm:$0xff]  }
  0x14   :  { %v4291_v3 = vld [vmem:[%s5755_s0 + $0xd8] sm:$0xff]  }
  0x15   :  { %v4292_v4 = vld [vmem:[%s5755_s0 + $0x1bc] sm:$0xff]  }
  0x19   :  { %3765 = vmatmul.mubr.msk.bf16.gmra.mrb[8].mxu0 %vm230_vm3, %v4241_v11  ;;  %3885 = vmatmul.mubr.msk.bf16.gmra.mrb[8].mxu1 %vm230_vm3, %v4242_v12 }
  0x1a   :  { %3768 = vmatprep.mubr.msk.bf16.mxu0 %vm4356_vm2, %v5758_v0  ;;  %3888 = vmatprep.mubr.msk.bf16.mxu1 %vm4356_vm2, %v5758_v0 }
  0x21   :  { %3769 = vmatmul.mubr.msk.bf16.gmra.mrb[12].mxu0 %vm230_vm3, %v4243_v13  ;;  %3889 = vmatmul.mubr.msk.bf16.gmra.mrb[12].mxu1 %vm230_vm3, %v4244_v14 }
  0x22   :  { %3772 = vmatprep.mubr.msk.bf16.mxu0 %vm4356_vm2, %v5758_v0  ;;  %3892 = vmatprep.mubr.msk.bf16.mxu1 %vm4356_vm2, %v5758_v0 }
  0x29   :  { %3773 = vmatmul.mubr.msk.bf16.gmra.mrb[16].mxu0 %vm230_vm3, %v4245_v15  ;;  %3893 = vmatmul.mubr.msk.bf16.gmra.mrb[16].mxu1 %vm230_vm3, %v4246_v16  ;;  %v4293_v15 = vld [vmem:[%s5755_s0 + $0xe0] ss:$0 sps:$4 sm:$0xff]   ;;  %v4294_v16 = vld [vmem:[%s5755_s0 + $0x1c4] ss:$0 sps:$4 sm:$0xff]  }
  0x2a   :  { %3776 = vmatprep.mubr.msk.bf16.mxu0 %vm4356_vm2, %v5758_v0  ;;  %3896 = vmatprep.mubr.msk.bf16.mxu1 %vm4356_vm2, %v5758_v0 }
  0x31   :  { %3777 = vmatmul.mubr.msk.bf16.gmra.mrb[20].mxu0 %vm230_vm3, %v4247_v17  ;;  %3897 = vmatmul.mubr.msk.bf16.gmra.mrb[20].mxu1 %vm230_vm3, %v4248_v18 }
  0x32   :  { %3780 = vmatprep.mubr.msk.bf16.mxu0 %vm4356_vm2, %v5758_v0  ;;  %3900 = vmatprep.mubr.msk.bf16.mxu1 %vm4356_vm2, %v5758_v0 }
  0x39   :  { %3781 = vmatmul.mubr.msk.bf16.gmra.mrb[24].mxu0 %vm230_vm3, %v4249_v19  ;;  %3901 = vmatmul.mubr.msk.bf16.gmra.mrb[24].mxu1 %vm230_vm3, %v4250_v20 }
  0x3a   :  { %3784 = vmatprep.mubr.msk.bf16.mxu0 %vm4356_vm2, %v5758_v0  ;;  %3904 = vmatprep.mubr.msk.bf16.mxu1 %vm4356_vm2, %v5758_v0 }
  0x41   :  { %3785 = vmatmul.mubr.msk.bf16.gmra.mrb[28].mxu0 %vm230_vm3, %v4251_v21  ;;  %3905 = vmatmul.mubr.msk.bf16.gmra.mrb[28].mxu1 %vm230_vm3, %v4252_v22 }
  0x42   :  { %3788 = vmatprep.mubr.msk.bf16.mxu0 %vm4356_vm2, %v5758_v0  ;;  %3908 = vmatprep.mubr.msk.bf16.mxu1 %vm4356_vm2, %v5758_v0 }
  0x49   :  { %3789 = vmatmul.mubr.msk.bf16.gmra.mrb[32].mxu0 %vm230_vm3, %v4253_v23  ;;  %3909 = vmatmul.mubr.msk.bf16.gmra.mrb[32].mxu1 %vm230_vm3, %v4254_v24 }
  0x4a   :  { %3792 = vmatprep.mubr.msk.bf16.mxu0 %vm4356_vm2, %v5758_v0  ;;  %3912 = vmatprep.mubr.msk.bf16.mxu1 %vm4356_vm2, %v5758_v0 }
  0x51   :  { %3793 = vmatmul.mubr.msk.bf16.gmra.mrb[36].mxu0 %vm230_vm3, %v4255_v25  ;;  %3913 = vmatmul.mubr.msk.bf16.gmra.mrb[36].mxu1 %vm230_vm3, %v4256_v26 }
  0x52   :  { %3796 = vmatprep.mubr.msk.bf16.mxu0 %vm4356_vm2, %v5758_v0  ;;  %3916 = vmatprep.mubr.msk.bf16.mxu1 %vm4356_vm2, %v5758_v0 }
  0x59   :  { %3797 = vmatmul.mubr.msk.bf16.gmra.mrb[40].mxu0 %vm230_vm3, %v4257_v27  ;;  %3917 = vmatmul.mubr.msk.bf16.gmra.mrb[40].mxu1 %vm230_vm3, %v4258_v28  ;;  %v4295_v27 = vld [vmem:[%s5755_s0 + $0x1c8] sm:$0xff]  }
  0x5a   :  { %3800 = vmatprep.mubr.msk.bf16.mxu0 %vm4356_vm2, %v5758_v0  ;;  %3920 = vmatprep.mubr.msk.bf16.mxu1 %vm4356_vm2, %v5758_v0  ;;  %v4296_v28 = vld [vmem:[%s5755_s0 + $0x2ac] sm:$0xff]  }
  0x61   :  { %3801 = vmatmul.mubr.msk.bf16.gmra.mrb[44].mxu0 %vm230_vm3, %v4259_v29  ;;  %3921 = vmatmul.mubr.msk.bf16.gmra.mrb[44].mxu1 %vm230_vm3, %v4260_v30 }
  0x62   :  { %3804 = vmatprep.mubr.msk.bf16.mxu0 %vm4356_vm2, %v5758_v0  ;;  %3924 = vmatprep.mubr.msk.bf16.mxu1 %vm4356_vm2, %v5758_v0 }
  0x69   :  { %3805 = vmatmul.mubr.msk.bf16.gmra.mrb[48].mxu0 %vm230_vm3, %v4261_v31  ;;  %3925 = vmatmul.mubr.msk.bf16.gmra.mrb[48].mxu1 %vm230_vm3, %v4262_v32 }
  0x6a   :  { %3808 = vmatprep.mubr.msk.bf16.mxu0 %vm4356_vm2, %v5758_v0  ;;  %3928 = vmatprep.mubr.msk.bf16.mxu1 %vm4356_vm2, %v5758_v0 }
  0x71   :  { %3809 = vmatmul.mubr.msk.bf16.gmra.mrb[52].mxu0 %vm230_vm3, %v4263_v33  ;;  %3929 = vmatmul.mubr.msk.bf16.gmra.mrb[52].mxu1 %vm230_vm3, %v4264_v34 }
  0x72   :  { %3812 = vmatprep.mubr.msk.bf16.mxu0 %vm4356_vm2, %v5758_v0  ;;  %3932 = vmatprep.mubr.msk.bf16.mxu1 %vm4356_vm2, %v5758_v0 }
  0x79   :  { %3813 = vmatmul.mubr.msk.bf16.gmra.mrb[56].mxu0 %vm230_vm3, %v4265_v35  ;;  %3933 = vmatmul.mubr.msk.bf16.gmra.mrb[56].mxu1 %vm230_vm3, %v4266_v36 }
  0x7a   :  { %3816 = vmatprep.mubr.msk.bf16.mxu0 %vm4356_vm2, %v5758_v0  ;;  %3936 = vmatprep.mubr.msk.bf16.mxu1 %vm4356_vm2, %v5758_v0 }
  0x81   :  { %3817 = vmatmul.mubr.msk.bf16.gmra.mrb[60].mxu0 %vm230_vm3, %v4267_v37  ;;  %3937 = vmatmul.mubr.msk.bf16.gmra.mrb[60].mxu1 %vm230_vm3, %v4268_v38 }
  0x82   :  { %3820 = vmatprep.mubr.msk.bf16.mxu0 %vm4356_vm2, %v5758_v0  ;;  %3940 = vmatprep.mubr.msk.bf16.mxu1 %vm4356_vm2, %v5758_v0 }
  0x89   :  { %3821 = vmatmul.mubr.msk.bf16.gmra.mrb[64].mxu0 %vm230_vm3, %v4269_v39  ;;  %3941 = vmatmul.mubr.msk.bf16.gmra.mrb[64].mxu1 %vm230_vm3, %v4270_v40  ;;  %v4297_v39 = vld [vmem:[%s5755_s0 + $0x1d0] sm:$0xff]  }
  0x8a   :  { %3824 = vmatprep.mubr.msk.bf16.mxu0 %vm4356_vm2, %v5758_v0  ;;  %3944 = vmatprep.mubr.msk.bf16.mxu1 %vm4356_vm2, %v5758_v0  ;;  %v4298_v40 = vld [vmem:[%s5755_s0 + $0x2b4] sm:$0xff]  }
  0x91   :  { %3825 = vmatmul.mubr.msk.bf16.gmra.mrb[68].mxu0 %vm230_vm3, %v4271_v41  ;;  %3945 = vmatmul.mubr.msk.bf16.gmra.mrb[68].mxu1 %vm230_vm3, %v4272_v42 }
  0x92   :  { %3828 = vmatprep.mubr.msk.bf16.mxu0 %vm4356_vm2, %v5758_v0  ;;  %3948 = vmatprep.mubr.msk.bf16.mxu1 %vm4356_vm2, %v5758_v0 }
  0x99   :  { %3829 = vmatmul.mubr.msk.bf16.gmra.mrb[72].mxu0 %vm230_vm3, %v4273_v43  ;;  %3949 = vmatmul.mubr.msk.bf16.gmra.mrb[72].mxu1 %vm230_vm3, %v4274_v44 }
  0x9a   :  { %3832 = vmatprep.mubr.msk.bf16.mxu0 %vm4356_vm2, %v5758_v0  ;;  %3952 = vmatprep.mubr.msk.bf16.mxu1 %vm4356_vm2, %v5758_v0 }
  0xa1   :  { %3833 = vmatmul.mubr.msk.bf16.gmra.mrb[76].mxu0 %vm230_vm3, %v4275_v45  ;;  %3953 = vmatmul.mubr.msk.bf16.gmra.mrb[76].mxu1 %vm230_vm3, %v4276_v46 }
  0xa2   :  { %3836 = vmatprep.mubr.msk.bf16.mxu0 %vm4356_vm2, %v5758_v0  ;;  %3956 = vmatprep.mubr.msk.bf16.mxu1 %vm4356_vm2, %v5758_v0 }
  0xa9   :  { %3837 = vmatmul.mubr.msk.bf16.gmra.mrb[80].mxu0 %vm230_vm3, %v4277_v47  ;;  %3957 = vmatmul.mubr.msk.bf16.gmra.mrb[80].mxu1 %vm230_vm3, %v4278_v48 }
  0xaa   :  { %3840 = vmatprep.mubr.msk.bf16.mxu0 %vm4356_vm2, %v5758_v0  ;;  %3960 = vmatprep.mubr.msk.bf16.mxu1 %vm4356_vm2, %v5758_v0 }
  0xb1   :  { %3841 = vmatmul.mubr.msk.bf16.gmra.mrb[84].mxu0 %vm230_vm3, %v4279_v49  ;;  %3961 = vmatmul.mubr.msk.bf16.gmra.mrb[84].mxu1 %vm230_vm3, %v4280_v50 }
  0xb2   :  { %3844 = vmatprep.mubr.msk.bf16.mxu0 %vm4356_vm2, %v5758_v0  ;;  %3964 = vmatprep.mubr.msk.bf16.mxu1 %vm4356_vm2, %v5758_v0 }
  0xb9   :  { %3845 = vmatmul.mubr.msk.bf16.gmra.mrb[88].mxu0 %vm230_vm3, %v4281_v51  ;;  %3965 = vmatmul.mubr.msk.bf16.gmra.mrb[88].mxu1 %vm230_vm3, %v4282_v52  ;;  %v4299_v51 = vld [vmem:[%s5755_s0 + $0x1d8] sm:$0xff]  }
  0xba   :  { %3848 = vmatprep.mubr.msk.bf16.mxu0 %vm4356_vm2, %v5758_v0  ;;  %3968 = vmatprep.mubr.msk.bf16.mxu1 %vm4356_vm2, %v5758_v0  ;;  %v4300_v52 = vld [vmem:[%s5755_s0 + $0x2bc] sm:$0xff]  }
  0xc1   :  { %3849 = vmatmul.mubr.msk.bf16.gmra.mrb[92].mxu0 %vm230_vm3, %v4283_v53  ;;  %3969 = vmatmul.mubr.msk.bf16.gmra.mrb[92].mxu1 %vm230_vm3, %v4284_v54 }
  0xc2   :  { %3852 = vmatprep.mubr.msk.bf16.mxu0 %vm4356_vm2, %v5758_v0  ;;  %3972 = vmatprep.mubr.msk.bf16.mxu1 %vm4356_vm2, %v5758_v0 }
  0xc9   :  { %3853 = vmatmul.mubr.msk.bf16.gmra.mrb[96].mxu0 %vm230_vm3, %v4285_v55  ;;  %3973 = vmatmul.mubr.msk.bf16.gmra.mrb[96].mxu1 %vm230_vm3, %v4286_v56 }
  0xca   :  { %3856 = vmatprep.mubr.msk.bf16.mxu0 %vm4356_vm2, %v5758_v0  ;;  %3976 = vmatprep.mubr.msk.bf16.mxu1 %vm4356_vm2, %v5758_v0 }
  0xd1   :  { %3857 = vmatmul.mubr.msk.bf16.gmra.mrb[100].mxu0 %vm230_vm3, %v4287_v57  ;;  %3977 = vmatmul.mubr.msk.bf16.gmra.mrb[100].mxu1 %vm230_vm3, %v4288_v58 }
  0xd2   :  { %3860 = vmatprep.mubr.msk.bf16.mxu0 %vm4356_vm2, %v5758_v0  ;;  %3980 = vmatprep.mubr.msk.bf16.mxu1 %vm4356_vm2, %v5758_v0 }
  0xd9   :  { %3861 = vmatmul.mubr.msk.bf16.gmra.mrb[104].mxu0 %vm230_vm3, %v4289_v59  ;;  %3981 = vmatmul.mubr.msk.bf16.gmra.mrb[104].mxu1 %vm230_vm3, %v4290_v60 }
  0xda   :  { %3864 = vmatprep.mubr.msk.bf16.mxu0 %vm4356_vm2, %v5758_v0  ;;  %3984 = vmatprep.mubr.msk.bf16.mxu1 %vm4356_vm2, %v5758_v0 }
  0xdc   :  { %v4719_v61 = vpop.f32.mrb[0].mxu0  ;;  %v4721_v62 = vpop.f32.mrb[0].mxu1 }
  0xdd   :  { %v3758_v1 = vpop.f32.mrb[1].mxu0  ;;  %v3878_v2 = vpop.f32.mrb[1].mxu1 }
  0xde   :  { %v4731_v5 = vpop.f32.mrb[2].mxu0  ;;  %v4733_v6 = vpop.f32.mrb[2].mxu1 }
  0xdf   :  { %v3759_v8 = vpop.f32.mrb[3].mxu0  ;;  %v3879_v9 = vpop.f32.mrb[3].mxu1 }
  0xe1   :  { %3865 = vmatmul.mubr.msk.bf16.gmra.mrb[108].mxu0 %vm230_vm3, %v4291_v3  ;;  %3985 = vmatmul.mubr.msk.bf16.gmra.mrb[108].mxu1 %vm230_vm3, %v4292_v4  ;;  %v4301_v3 = vld [vmem:[%s5755_s0 + $0x1e0] sm:$0xff]  }
  0xe2   :  { %3868 = vmatprep.mubr.msk.bf16.mxu0 %vm4356_vm2, %v5758_v0  ;;  %3988 = vmatprep.mubr.msk.bf16.mxu1 %vm4356_vm2, %v5758_v0  ;;  %v4302_v4 = vld [vmem:[%s5755_s0 + $0x2c4] sm:$0xff]  }
  0xe4   :  { %v4743_v10 = vpop.f32.mrb[4].mxu0  ;;  %v4745_v11 = vpop.f32.mrb[4].mxu1 }
  0xe5   :  { %v3762_v13 = vpop.f32.mrb[5].mxu0  ;;  %v3882_v14 = vpop.f32.mrb[5].mxu1 }
  0xe6   :  { %v4755_v17 = vpop.f32.mrb[6].mxu0  ;;  %v4757_v18 = vpop.f32.mrb[6].mxu1 }
  0xe7   :  { %v3763_v20 = vpop.f32.mrb[7].mxu0  ;;  %v3883_v21 = vpop.f32.mrb[7].mxu1 }
  0xe9   :  { %3869 = vmatmul.mubr.msk.bf16.gmra.mrb[112].mxu0 %vm230_vm3, %v4293_v15  ;;  %3989 = vmatmul.mubr.msk.bf16.gmra.mrb[112].mxu1 %vm230_vm3, %v4294_v16 }
  0xea   :  { %3996 = vmatprep.mubr.msk.bf16.mxu0 %vm4356_vm2, %v5758_v0  ;;  %4116 = vmatprep.mubr.msk.bf16.mxu1 %vm4356_vm2, %v5758_v0 }
  0xec   :  { %v4767_v22 = vpop.f32.mrb[8].mxu0  ;;  %v4769_v23 = vpop.f32.mrb[8].mxu1 }
  0xed   :  { %v3766_v25 = vpop.f32.mrb[9].mxu0  ;;  %v3886_v26 = vpop.f32.mrb[9].mxu1 }
  0xee   :  { %v4779_v29 = vpop.f32.mrb[10].mxu0  ;;  %v4781_v30 = vpop.f32.mrb[10].mxu1 }
  0xef   :  { %v3767_v32 = vpop.f32.mrb[11].mxu0  ;;  %v3887_v33 = vpop.f32.mrb[11].mxu1 }
  0xf1   :  { %3997 = vmatmul.mubr.msk.bf16.vlgmr.msra.gmra.mrb[116].mxu0 %vm230_vm3, %v4295_v27  ;;  %4117 = vmatmul.mubr.msk.bf16.vlgmr.msra.gmra.mrb[116].mxu1 %vm230_vm3, %v4296_v28  ;;  %v4303_v27 = vld [vmem:[%s5755_s0 + $0x1e8] sm:$0xff]  }
  0xf2   :  { %4000 = vmatprep.mubr.msk.bf16.mxu0 %vm4356_vm2, %v5758_v0  ;;  %4120 = vmatprep.mubr.msk.bf16.mxu1 %vm4356_vm2, %v5758_v0  ;;  %v4304_v28 = vld [vmem:[%s5755_s0 + $0x2cc] sm:$0xff]  }
  0xf4   :  { %v4791_v34 = vpop.f32.mrb[12].mxu0  ;;  %v4793_v35 = vpop.f32.mrb[12].mxu1 }
  0xf5   :  { %v3770_v37 = vpop.f32.mrb[13].mxu0  ;;  %v3890_v38 = vpop.f32.mrb[13].mxu1 }
  0xf6   :  { %v4803_v41 = vpop.f32.mrb[14].mxu0  ;;  %v4805_v42 = vpop.f32.mrb[14].mxu1 }
  0xf7   :  { %v3771_v44 = vpop.f32.mrb[15].mxu0  ;;  %v3891_v45 = vpop.f32.mrb[15].mxu1 }
  0xf9   :  { %4001 = vmatmul.mubr.msk.bf16.gmra.mrb[120].mxu0 %vm230_vm3, %v4297_v39  ;;  %4121 = vmatmul.mubr.msk.bf16.gmra.mrb[120].mxu1 %vm230_vm3, %v4298_v40 }
  0xfa   :  { %4004 = vmatprep.mubr.msk.bf16.mxu0 %vm4356_vm2, %v5758_v0  ;;  %4124 = vmatprep.mubr.msk.bf16.mxu1 %vm4356_vm2, %v5758_v0 }
  0xfc   :  { %v4815_v46 = vpop.f32.mrb[16].mxu0  ;;  %v4817_v47 = vpop.f32.mrb[16].mxu1 }
  0xfd   :  { %v3774_v49 = vpop.f32.mrb[17].mxu0  ;;  %v3894_v50 = vpop.f32.mrb[17].mxu1 }
  0xfe   :  { %v4827_v53 = vpop.f32.mrb[18].mxu0  ;;  %v4829_v54 = vpop.f32.mrb[18].mxu1 }
  0xff   :  { %v3775_v56 = vpop.f32.mrb[19].mxu0  ;;  %v3895_v57 = vpop.f32.mrb[19].mxu1 }
 0x101   :  { %4005 = vmatmul.mubr.msk.bf16.gmra.mrb[124].mxu0 %vm230_vm3, %v4299_v51  ;;  %4125 = vmatmul.mubr.msk.bf16.gmra.mrb[124].mxu1 %vm230_vm3, %v4300_v52  ;;  %v4305_v51 = vld [vmem:[%s5755_s0 + $0x1f0] sm:$0xff]  }
 0x102   :  { %4008 = vmatprep.mubr.msk.bf16.mxu0 %vm4356_vm2, %v5758_v0  ;;  %4128 = vmatprep.mubr.msk.bf16.mxu1 %vm4356_vm2, %v5758_v0  ;;  %v4306_v52 = vld [vmem:[%s5755_s0 + $0x2d4] sm:$0xff]  }
 0x104   :  { %v4839_v58 = vpop.f32.mrb[20].mxu0  ;;  %v4841_v59 = vpop.f32.mrb[20].mxu1 }
 0x105   :  { %v3778_v1 = vpop.f32.mrb[21].mxu0  ;;  %v3898_v2 = vpop.f32.mrb[21].mxu1 }
 0x106   :  { %v4851_v8 = vpop.f32.mrb[22].mxu0  ;;  %v4853_v9 = vpop.f32.mrb[22].mxu1 }
 0x107   :  { %v3779_v14 = vpop.f32.mrb[23].mxu0  ;;  %v3899_v15 = vpop.f32.mrb[23].mxu1 }
 0x109   :  { %4009 = vmatmul.mubr.msk.bf16.gmra.mrb[128].mxu0 %vm230_vm3, %v4301_v3  ;;  %4129 = vmatmul.mubr.msk.bf16.gmra.mrb[128].mxu1 %vm230_vm3, %v4302_v4 }
 0x10a   :  { %4012 = vmatprep.mubr.msk.bf16.mxu0 %vm4356_vm2, %v5758_v0  ;;  %4132 = vmatprep.mubr.msk.bf16.mxu1 %vm4356_vm2, %v5758_v0 }
 0x10c   :  { %v4863_v16 = vpop.f32.mrb[24].mxu0  ;;  %v4865_v20 = vpop.f32.mrb[24].mxu1 }
 0x10d   :  { %v3782_v25 = vpop.f32.mrb[25].mxu0  ;;  %v3902_v26 = vpop.f32.mrb[25].mxu1 }
 0x10e   :  { %v4875_v32 = vpop.f32.mrb[26].mxu0  ;;  %v4877_v33 = vpop.f32.mrb[26].mxu1 }
 0x10f   :  { %v3783_v38 = vpop.f32.mrb[27].mxu0  ;;  %v3903_v39 = vpop.f32.mrb[27].mxu1 }
 0x111   :  { %4013 = vmatmul.mubr.msk.bf16.gmra.mrb[132].mxu0 %vm230_vm3, %v4303_v27  ;;  %4133 = vmatmul.mubr.msk.bf16.gmra.mrb[132].mxu1 %vm230_vm3, %v4304_v28  ;;  %v4307_v27 = vld [vmem:[%s5755_s0 + $0x1f8] sm:$0xff]  }
 0x112   :  { %4016 = vmatprep.mubr.msk.bf16.mxu0 %vm4356_vm2, %v5758_v0  ;;  %4136 = vmatprep.mubr.msk.bf16.mxu1 %vm4356_vm2, %v5758_v0  ;;  %v4308_v28 = vld [vmem:[%s5755_s0 + $0x2dc] sm:$0xff]  }
 0x114   :  { %v4887_v40 = vpop.f32.mrb[28].mxu0  ;;  %v4889_v44 = vpop.f32.mrb[28].mxu1 }
 0x115   :  { %v3786_v49 = vpop.f32.mrb[29].mxu0  ;;  %v3906_v50 = vpop.f32.mrb[29].mxu1 }
 0x116   :  { %v4899_v56 = vpop.f32.mrb[30].mxu0  ;;  %v4901_v57 = vpop.f32.mrb[30].mxu1 }
 0x117   :  { %v3787_v2 = vpop.f32.mrb[31].mxu0  ;;  %v3907_v3 = vpop.f32.mrb[31].mxu1 }
 0x119   :  { %4017 = vmatmul.mubr.msk.bf16.gmra.mrb[136].mxu0 %vm230_vm3, %v4305_v51  ;;  %4137 = vmatmul.mubr.msk.bf16.gmra.mrb[136].mxu1 %vm230_vm3, %v4306_v52 }
 0x11a   :  { %4020 = vmatprep.mubr.msk.bf16.mxu0 %vm4356_vm2, %v5758_v0  ;;  %4140 = vmatprep.mubr.msk.bf16.mxu1 %vm4356_vm2, %v5758_v0 }
 0x11c   :  { %v4911_v4 = vpop.f32.mrb[32].mxu0  ;;  %v4913_v14 = vpop.f32.mrb[32].mxu1 }
 0x11d   :  { %v3790_v25 = vpop.f32.mrb[33].mxu0  ;;  %v3910_v26 = vpop.f32.mrb[33].mxu1 }
 0x11e   :  { %v4923_v38 = vpop.f32.mrb[34].mxu0  ;;  %v4925_v39 = vpop.f32.mrb[34].mxu1 }
 0x11f   :  { %v3791_v50 = vpop.f32.mrb[35].mxu0  ;;  %v3911_v51 = vpop.f32.mrb[35].mxu1 }
 0x121   :  { %4021 = vmatmul.mubr.msk.bf16.gmra.mrb[140].mxu0 %vm230_vm3, %v4307_v27  ;;  %4141 = vmatmul.mubr.msk.bf16.gmra.mrb[140].mxu1 %vm230_vm3, %v4308_v28  ;;  %v4309_v27 = vld [vmem:[%s5755_s0 + $0x200] sm:$0xff]  }
 0x122   :  { %4024 = vmatprep.mubr.msk.bf16.mxu0 %vm4356_vm2, %v5758_v0  ;;  %4144 = vmatprep.mubr.msk.bf16.mxu1 %vm4356_vm2, %v5758_v0  ;;  %v4310_v28 = vld [vmem:[%s5755_s0 + $0x2e4] sm:$0xff]  }
 0x124   :  { %v4935_v52 = vpop.f32.mrb[36].mxu0  ;;  %v4937_v2 = vpop.f32.mrb[36].mxu1 }
 0x125   :  { %v3794_v25 = vpop.f32.mrb[37].mxu0  ;;  %v3914_v26 = vpop.f32.mrb[37].mxu1 }
 0x126   :  { %v4947_v50 = vpop.f32.mrb[38].mxu0  ;;  %v4949_v51 = vpop.f32.mrb[38].mxu1 }
 0x127   :  { %v3795_v15 = vpop.f32.mrb[39].mxu0  ;;  %v3915_v1 = vpop.f32.mrb[39].mxu1 }
 0x128   :  { %v4311_v1 = vld [vmem:[%s5755_s0 + $0x208] sm:$0xff]  }
 0x129   :  { %4025 = vmatmul.mubr.msk.bf16.gmra.mrb[144].mxu0 %vm230_vm3, %v4309_v27  ;;  %4145 = vmatmul.mubr.msk.bf16.gmra.mrb[144].mxu1 %vm230_vm3, %v4310_v28  ;;  %v4312_v27 = vld [vmem:[%s5755_s0 + $0x2ec] sm:$0xff]  }
 0x12a   :  { %4028 = vmatprep.mubr.msk.bf16.mxu0 %vm4356_vm2, %v5758_v0  ;;  %4148 = vmatprep.mubr.msk.bf16.mxu1 %vm4356_vm2, %v5758_v0 }
 0x12c   :  { %v4959_v25 = vpop.f32.mrb[40].mxu0  ;;  %v4961_v26 = vpop.f32.mrb[40].mxu1 }
 0x12d   :  { %v3798_v49 = vpop.f32.mrb[41].mxu0  ;;  %v3918_v15 = vpop.f32.mrb[41].mxu1 }
 0x12e   :  { %v4971_v28 = vpop.f32.mrb[42].mxu0  ;;  %v4973_v45 = vpop.f32.mrb[42].mxu1 }
 0x12f   :  { %5831 = vst [vmem:[#allocation2_spill] sm:$0xff] %v4973_v45  ;;  %v3799_v21 = vpop.f32.mrb[43].mxu0  ;;  %v3919_v13 = vpop.f32.mrb[43].mxu1 }
 0x130   :  { %v4313_v13 = vld [vmem:[%s5755_s0 + $0x210] sm:$0xff]  }
 0x131   :  { %4029 = vmatmul.mubr.msk.bf16.gmra.mrb[148].mxu0 %vm230_vm3, %v4311_v1  ;;  %4149 = vmatmul.mubr.msk.bf16.gmra.mrb[148].mxu1 %vm230_vm3, %v4312_v27  ;;  %v4314_v1 = vld [vmem:[%s5755_s0 + $0x2f4] sm:$0xff]  }
 0x132   :  { %4032 = vmatprep.mubr.msk.bf16.mxu0 %vm4356_vm2, %v5758_v0  ;;  %4152 = vmatprep.mubr.msk.bf16.mxu1 %vm4356_vm2, %v5758_v0 }
 0x134   :  { %v4983_v49 = vpop.f32.mrb[44].mxu0  ;;  %v4985_v15 = vpop.f32.mrb[44].mxu1 }
 0x135   :  { %5832 = vst [vmem:[#allocation3_spill] sm:$0xff] %v4983_v49  ;;  %5833 = vst [vmem:[#allocation4_spill] sm:$0xff] %v4985_v15  ;;  %v3802_v37 = vpop.f32.mrb[45].mxu0  ;;  %v3922_v21 = vpop.f32.mrb[45].mxu1 }
 0x136   :  { %v4995_v27 = vpop.f32.mrb[46].mxu0  ;;  %v4997_v60 = vpop.f32.mrb[46].mxu1 }
 0x137   :  { %5834 = vst [vmem:[#allocation5_spill] sm:$0xff] %v4995_v27  ;;  %5835 = vst [vmem:[#allocation6_spill] sm:$0xff] %v4997_v60  ;;  %v3803_v48 = vpop.f32.mrb[47].mxu0  ;;  %v3923_v43 = vpop.f32.mrb[47].mxu1 }
 0x138   :  { %v4315_v43 = vld [vmem:[%s5755_s0 + $0x218] sm:$0xff]  }
 0x139   :  { %4033 = vmatmul.mubr.msk.bf16.gmra.mrb[152].mxu0 %vm230_vm3, %v4313_v13  ;;  %4153 = vmatmul.mubr.msk.bf16.gmra.mrb[152].mxu1 %vm230_vm3, %v4314_v1  ;;  %v4316_v13 = vld [vmem:[%s5755_s0 + $0x2fc] sm:$0xff]  }
 0x13a   :  { %4036 = vmatprep.mubr.msk.bf16.mxu0 %vm4356_vm2, %v5758_v0  ;;  %4156 = vmatprep.mubr.msk.bf16.mxu1 %vm4356_vm2, %v5758_v0 }
 0x13c   :  { %v5007_v37 = vpop.f32.mrb[48].mxu0  ;;  %v5009_v21 = vpop.f32.mrb[48].mxu1 }
 0x13d   :  { %5836 = vst [vmem:[#allocation7_spill] sm:$0xff] %v5007_v37  ;;  %5837 = vst [vmem:[#allocation8_spill] sm:$0xff] %v5009_v21  ;;  %v3806_v55 = vpop.f32.mrb[49].mxu0  ;;  %v3926_v48 = vpop.f32.mrb[49].mxu1  ;;  %v5906_v21 = vmax.f32 %v4755_v17, %v4757_v18 }
 0x13e   :  { %v5019_v1 = vpop.f32.mrb[50].mxu0  ;;  %v5021_v36 = vpop.f32.mrb[50].mxu1 }
 0x13f   :  { %5838 = vst [vmem:[#allocation9_spill] sm:$0xff] %v5019_v1  ;;  %5839 = vst [vmem:[#allocation10_spill] sm:$0xff] %v5021_v36  ;;  %v3807_v24 = vpop.f32.mrb[51].mxu0  ;;  %v3927_v19 = vpop.f32.mrb[51].mxu1 }
 0x140   :  { %v4317_v19 = vld [vmem:[%s5755_s0 + $0x220] sm:$0xff]  }
 0x141   :  { %4037 = vmatmul.mubr.msk.bf16.gmra.mrb[156].mxu0 %vm230_vm3, %v4315_v43  ;;  %4157 = vmatmul.mubr.msk.bf16.gmra.mrb[156].mxu1 %vm230_vm3, %v4316_v13  ;;  %v4318_v43 = vld [vmem:[%s5755_s0 + $0x304] sm:$0xff]  }
 0x142   :  { %4040 = vmatprep.mubr.msk.bf16.mxu0 %vm4356_vm2, %v5758_v0  ;;  %4160 = vmatprep.mubr.msk.bf16.mxu1 %vm4356_vm2, %v5758_v0 }
 0x144   :  { %v5031_v55 = vpop.f32.mrb[52].mxu0  ;;  %v5033_v48 = vpop.f32.mrb[52].mxu1 }
 0x145   :  { %5840 = vst [vmem:[#allocation11_spill] sm:$0xff] %v5031_v55  ;;  %5841 = vst [vmem:[#allocation12_spill] sm:$0xff] %v5033_v48  ;;  %v3810_v31 = vpop.f32.mrb[53].mxu0  ;;  %v3930_v24 = vpop.f32.mrb[53].mxu1  ;;  %v5903_v48 = vmax.f32 %v4719_v61, %v4721_v62  ;;  %v5904_v61 = vmax.f32 %v4731_v5, %v4733_v6  ;;  %v4351_v5 = vld [vmem:[%s5755_s0 + $0x2a8] ss:$0 sps:$4 sm:$0xff]  }
 0x146   :  { %v5043_v13 = vpop.f32.mrb[54].mxu0  ;;  %v5045_v12 = vpop.f32.mrb[54].mxu1  ;;  %v5844_v31 = vmov 0.0  }
 0x147   :  { %5842 = vst [vmem:[#allocation13_spill] sm:$0xff] %v5043_v13  ;;  %5843 = vst [vmem:[#allocation14_spill] sm:$0xff] %v5045_v12  ;;  %v3811_v63 = vpop.f32.mrb[55].mxu0  ;;  %v3931_v0 = vpop.f32.mrb[55].mxu1 }
 0x148   :  { %v4319_v0 = vld [vmem:[%s5755_s0 + $0x228] sm:$0xff]  }
 0x149   :  { %4041 = vmatmul.mubr.msk.bf16.gmra.mrb[160].mxu0 %vm230_vm3, %v4317_v19  ;;  %4161 = vmatmul.mubr.msk.bf16.gmra.mrb[160].mxu1 %vm230_vm3, %v4318_v43  ;;  %v4320_v19 = vld [vmem:[%s5755_s0 + $0x30c] sm:$0xff]  }
 0x14a   :  { %4044 = vmatprep.mubr.msk.bf16.mxu0 %vm4356_vm2, %v5844_v31  ;;  %4164 = vmatprep.mubr.msk.bf16.mxu1 %vm4356_vm2, %v5844_v31 }
 0x14c   :  { %v5055_v24 = vpop.f32.mrb[56].mxu0  ;;  %v5057_v3 = vpop.f32.mrb[56].mxu1 }
 0x14d   :  { %5845 = vst [vmem:[#allocation15_spill] sm:$0xff] %v5055_v24  ;;  %5846 = vst [vmem:[#allocation16_spill] sm:$0xff] %v5057_v3  ;;  %v3814_v7 = vpop.f32.mrb[57].mxu0  ;;  %v3934_v63 = vpop.f32.mrb[57].mxu1 }
 0x14e   :  { %v5067_v43 = vpop.f32.mrb[58].mxu0  ;;  %v5069_v12 = vpop.f32.mrb[58].mxu1 }
 0x14f   :  { %5847 = vst [vmem:[#allocation17_spill] sm:$0xff] %v5067_v43  ;;  %5848 = vst [vmem:[#allocation18_spill] sm:$0xff] %v5069_v12  ;;  %v3815_v55 = vpop.f32.mrb[59].mxu0  ;;  %v3935_v36 = vpop.f32.mrb[59].mxu1 }
 0x150   :  { %v4321_v36 = vld [vmem:[%s5755_s0 + $0x230] sm:$0xff]  }
 0x151   :  { %4045 = vmatmul.mubr.msk.bf16.gmra.mrb[164].mxu0 %vm230_vm3, %v4319_v0  ;;  %4165 = vmatmul.mubr.msk.bf16.gmra.mrb[164].mxu1 %vm230_vm3, %v4320_v19  ;;  %v4322_v0 = vld [vmem:[%s5755_s0 + $0x314] sm:$0xff]  }
 0x152   :  { %4048 = vmatprep.mubr.msk.bf16.mxu0 %vm4356_vm2, %v5844_v31  ;;  %4168 = vmatprep.mubr.msk.bf16.mxu1 %vm4356_vm2, %v5844_v31 }
 0x154   :  { %v5079_v7 = vpop.f32.mrb[60].mxu0  ;;  %v5081_v63 = vpop.f32.mrb[60].mxu1 }
 0x155   :  { %5849 = vst [vmem:[#allocation19_spill] sm:$0xff] %v5079_v7  ;;  %5850 = vst [vmem:[#allocation20_spill] sm:$0xff] %v5081_v63  ;;  %v3818_v13 = vpop.f32.mrb[61].mxu0  ;;  %v3938_v55 = vpop.f32.mrb[61].mxu1 }
 0x156   :  { %v5091_v19 = vpop.f32.mrb[62].mxu0  ;;  %v5093_v12 = vpop.f32.mrb[62].mxu1 }
 0x157   :  { %5851 = vst [vmem:[#allocation21_spill] sm:$0xff] %v5091_v19  ;;  %5852 = vst [vmem:[#allocation22_spill] sm:$0xff] %v5093_v12  ;;  %v3819_v3 = vpop.f32.mrb[63].mxu0  ;;  %v3939_v24 = vpop.f32.mrb[63].mxu1 }
 0x158   :  { %v4323_v24 = vld [vmem:[%s5755_s0 + $0x238] sm:$0xff]  }
 0x159   :  { %4049 = vmatmul.mubr.msk.bf16.gmra.mrb[168].mxu0 %vm230_vm3, %v4321_v36  ;;  %4169 = vmatmul.mubr.msk.bf16.gmra.mrb[168].mxu1 %vm230_vm3, %v4322_v0  ;;  %v4324_v36 = vld [vmem:[%s5755_s0 + $0x31c] sm:$0xff]  }
 0x15a   :  { %4052 = vmatprep.mubr.msk.bf16.mxu0 %vm4356_vm2, %v5844_v31  ;;  %4172 = vmatprep.mubr.msk.bf16.mxu1 %vm4356_vm2, %v5844_v31 }
 0x15c   :  { %v5103_v13 = vpop.f32.mrb[64].mxu0  ;;  %v5105_v55 = vpop.f32.mrb[64].mxu1 }
 0x15d   :  { %5853 = vst [vmem:[#allocation23_spill] sm:$0xff] %v5103_v13  ;;  %5854 = vst [vmem:[#allocation24_spill] sm:$0xff] %v5105_v55  ;;  %v3822_v43 = vpop.f32.mrb[65].mxu0  ;;  %v3942_v3 = vpop.f32.mrb[65].mxu1 }
 0x15e   :  { %v5115_v0 = vpop.f32.mrb[66].mxu0  ;;  %v5117_v12 = vpop.f32.mrb[66].mxu1 }
 0x15f   :  { %5855 = vst [vmem:[#allocation25_spill] sm:$0xff] %v5115_v0  ;;  %5856 = vst [vmem:[#allocation26_spill] sm:$0xff] %v5117_v12  ;;  %v3823_v63 = vpop.f32.mrb[67].mxu0  ;;  %v3943_v7 = vpop.f32.mrb[67].mxu1 }
 0x160   :  { %v4325_v7 = vld [vmem:[%s5755_s0 + $0x240] sm:$0xff]  }
 0x161   :  { %4053 = vmatmul.mubr.msk.bf16.gmra.mrb[172].mxu0 %vm230_vm3, %v4323_v24  ;;  %4173 = vmatmul.mubr.msk.bf16.gmra.mrb[172].mxu1 %vm230_vm3, %v4324_v36  ;;  %v4326_v24 = vld [vmem:[%s5755_s0 + $0x324] sm:$0xff]  }
 0x162   :  { %4056 = vmatprep.mubr.msk.bf16.mxu0 %vm4356_vm2, %v5844_v31  ;;  %4176 = vmatprep.mubr.msk.bf16.mxu1 %vm4356_vm2, %v5844_v31 }
 0x164   :  { %v5127_v43 = vpop.f32.mrb[68].mxu0  ;;  %v5129_v3 = vpop.f32.mrb[68].mxu1 }
 0x165   :  { %5857 = vst [vmem:[#allocation27_spill] sm:$0xff] %v5127_v43  ;;  %5858 = vst [vmem:[#allocation28_spill] sm:$0xff] %v5129_v3  ;;  %v3826_v19 = vpop.f32.mrb[69].mxu0  ;;  %v3946_v63 = vpop.f32.mrb[69].mxu1 }
 0x166   :  { %v5139_v36 = vpop.f32.mrb[70].mxu0  ;;  %v5141_v12 = vpop.f32.mrb[70].mxu1 }
 0x167   :  { %5859 = vst [vmem:[#allocation29_spill] sm:$0xff] %v5139_v36  ;;  %5860 = vst [vmem:[#allocation30_spill] sm:$0xff] %v5141_v12  ;;  %v3827_v55 = vpop.f32.mrb[71].mxu0  ;;  %v3947_v13 = vpop.f32.mrb[71].mxu1 }
 0x168   :  { %v4327_v13 = vld [vmem:[%s5755_s0 + $0x248] sm:$0xff]  }
 0x169   :  { %4057 = vmatmul.mubr.msk.bf16.gmra.mrb[176].mxu0 %vm230_vm3, %v4325_v7  ;;  %4177 = vmatmul.mubr.msk.bf16.gmra.mrb[176].mxu1 %vm230_vm3, %v4326_v24  ;;  %v4328_v7 = vld [vmem:[%s5755_s0 + $0x32c] sm:$0xff]  }
 0x16a   :  { %4060 = vmatprep.mubr.msk.bf16.mxu0 %vm4356_vm2, %v5844_v31  ;;  %4180 = vmatprep.mubr.msk.bf16.mxu1 %vm4356_vm2, %v5844_v31 }
 0x16c   :  { %v5151_v19 = vpop.f32.mrb[72].mxu0  ;;  %v5153_v63 = vpop.f32.mrb[72].mxu1 }
 0x16d   :  { %5861 = vst [vmem:[#allocation31_spill] sm:$0xff] %v5151_v19  ;;  %5862 = vst [vmem:[#allocation32_spill] sm:$0xff] %v5153_v63  ;;  %v3830_v0 = vpop.f32.mrb[73].mxu0  ;;  %v3950_v55 = vpop.f32.mrb[73].mxu1 }
 0x16e   :  { %v5163_v24 = vpop.f32.mrb[74].mxu0  ;;  %v5165_v12 = vpop.f32.mrb[74].mxu1 }
 0x16f   :  { %5863 = vst [vmem:[#allocation33_spill] sm:$0xff] %v5163_v24  ;;  %5864 = vst [vmem:[#allocation34_spill] sm:$0xff] %v5165_v12  ;;  %v3831_v3 = vpop.f32.mrb[75].mxu0  ;;  %v3951_v43 = vpop.f32.mrb[75].mxu1 }
 0x170   :  { %v4329_v43 = vld [vmem:[%s5755_s0 + $0x250] sm:$0xff]  }
 0x171   :  { %4061 = vmatmul.mubr.msk.bf16.gmra.mrb[180].mxu0 %vm230_vm3, %v4327_v13  ;;  %4181 = vmatmul.mubr.msk.bf16.gmra.mrb[180].mxu1 %vm230_vm3, %v4328_v7  ;;  %v4330_v13 = vld [vmem:[%s5755_s0 + $0x334] sm:$0xff]  }
 0x172   :  { %4064 = vmatprep.mubr.msk.bf16.mxu0 %vm4356_vm2, %v5844_v31  ;;  %4184 = vmatprep.mubr.msk.bf16.mxu1 %vm4356_vm2, %v5844_v31 }
 0x174   :  { %v5175_v0 = vpop.f32.mrb[76].mxu0  ;;  %v5177_v55 = vpop.f32.mrb[76].mxu1 }
 0x175   :  { %5865 = vst [vmem:[#allocation35_spill] sm:$0xff] %v5175_v0  ;;  %5866 = vst [vmem:[#allocation36_spill] sm:$0xff] %v5177_v55  ;;  %v3834_v36 = vpop.f32.mrb[77].mxu0  ;;  %v3954_v3 = vpop.f32.mrb[77].mxu1 }
 0x176   :  { %v5187_v7 = vpop.f32.mrb[78].mxu0  ;;  %v5189_v12 = vpop.f32.mrb[78].mxu1 }
 0x177   :  { %5867 = vst [vmem:[#allocation37_spill] sm:$0xff] %v5187_v7  ;;  %5868 = vst [vmem:[#allocation38_spill] sm:$0xff] %v5189_v12  ;;  %v3835_v63 = vpop.f32.mrb[79].mxu0  ;;  %v3955_v19 = vpop.f32.mrb[79].mxu1 }
 0x178   :  { %v4331_v19 = vld [vmem:[%s5755_s0 + $0x258] sm:$0xff]  }
 0x179   :  { %4065 = vmatmul.mubr.msk.bf16.gmra.mrb[184].mxu0 %vm230_vm3, %v4329_v43  ;;  %4185 = vmatmul.mubr.msk.bf16.gmra.mrb[184].mxu1 %vm230_vm3, %v4330_v13  ;;  %v4332_v43 = vld [vmem:[%s5755_s0 + $0x33c] sm:$0xff]  }
 0x17a   :  { %4068 = vmatprep.mubr.msk.bf16.mxu0 %vm4356_vm2, %v5844_v31  ;;  %4188 = vmatprep.mubr.msk.bf16.mxu1 %vm4356_vm2, %v5844_v31 }
 0x17c   :  { %v5199_v36 = vpop.f32.mrb[80].mxu0  ;;  %v5201_v3 = vpop.f32.mrb[80].mxu1 }
 0x17d   :  { %5869 = vst [vmem:[#allocation39_spill] sm:$0xff] %v5199_v36  ;;  %5870 = vst [vmem:[#allocation40_spill] sm:$0xff] %v5201_v3  ;;  %v3838_v24 = vpop.f32.mrb[81].mxu0  ;;  %v3958_v63 = vpop.f32.mrb[81].mxu1 }
 0x17e   :  { %v5211_v13 = vpop.f32.mrb[82].mxu0  ;;  %v5213_v12 = vpop.f32.mrb[82].mxu1 }
 0x17f   :  { %5871 = vst [vmem:[#allocation41_spill] sm:$0xff] %v5211_v13  ;;  %5872 = vst [vmem:[#allocation42_spill] sm:$0xff] %v5213_v12  ;;  %v3839_v55 = vpop.f32.mrb[83].mxu0  ;;  %v3959_v0 = vpop.f32.mrb[83].mxu1 }
 0x180   :  { %v4333_v0 = vld [vmem:[%s5755_s0 + $0x260] sm:$0xff]  }
 0x181   :  { %4069 = vmatmul.mubr.msk.bf16.gmra.mrb[188].mxu0 %vm230_vm3, %v4331_v19  ;;  %4189 = vmatmul.mubr.msk.bf16.gmra.mrb[188].mxu1 %vm230_vm3, %v4332_v43  ;;  %v4334_v19 = vld [vmem:[%s5755_s0 + $0x344] sm:$0xff]  }
 0x182   :  { %4072 = vmatprep.mubr.msk.bf16.mxu0 %vm4356_vm2, %v5844_v31  ;;  %4192 = vmatprep.mubr.msk.bf16.mxu1 %vm4356_vm2, %v5844_v31 }
 0x184   :  { %v5223_v24 = vpop.f32.mrb[84].mxu0  ;;  %v5225_v63 = vpop.f32.mrb[84].mxu1 }
 0x185   :  { %5873 = vst [vmem:[#allocation43_spill] sm:$0xff] %v5223_v24  ;;  %5874 = vst [vmem:[#allocation44_spill] sm:$0xff] %v5225_v63  ;;  %v3842_v7 = vpop.f32.mrb[85].mxu0  ;;  %v3962_v55 = vpop.f32.mrb[85].mxu1 }
 0x186   :  { %v5235_v43 = vpop.f32.mrb[86].mxu0  ;;  %v5237_v12 = vpop.f32.mrb[86].mxu1 }
 0x187   :  { %5875 = vst [vmem:[#allocation45_spill] sm:$0xff] %v5235_v43  ;;  %5876 = vst [vmem:[#allocation46_spill] sm:$0xff] %v5237_v12  ;;  %v3843_v3 = vpop.f32.mrb[87].mxu0  ;;  %v3963_v36 = vpop.f32.mrb[87].mxu1 }
 0x188   :  { %v4335_v36 = vld [vmem:[%s5755_s0 + $0x268] sm:$0xff]  }
 0x189   :  { %4073 = vmatmul.mubr.msk.bf16.gmra.mrb[192].mxu0 %vm230_vm3, %v4333_v0  ;;  %4193 = vmatmul.mubr.msk.bf16.gmra.mrb[192].mxu1 %vm230_vm3, %v4334_v19  ;;  %v4336_v0 = vld [vmem:[%s5755_s0 + $0x34c] sm:$0xff]  }
 0x18a   :  { %4076 = vmatprep.mubr.msk.bf16.mxu0 %vm4356_vm2, %v5844_v31  ;;  %4196 = vmatprep.mubr.msk.bf16.mxu1 %vm4356_vm2, %v5844_v31 }
 0x18c   :  { %v5247_v7 = vpop.f32.mrb[88].mxu0  ;;  %v5249_v55 = vpop.f32.mrb[88].mxu1 }
 0x18d   :  { %5877 = vst [vmem:[#allocation47_spill] sm:$0xff] %v5247_v7  ;;  %5878 = vst [vmem:[#allocation48_spill] sm:$0xff] %v5249_v55  ;;  %v3846_v13 = vpop.f32.mrb[89].mxu0  ;;  %v3966_v3 = vpop.f32.mrb[89].mxu1 }
 0x18e   :  { %v5259_v19 = vpop.f32.mrb[90].mxu0  ;;  %v5261_v12 = vpop.f32.mrb[90].mxu1 }
 0x18f   :  { %5879 = vst [vmem:[#allocation49_spill] sm:$0xff] %v5259_v19  ;;  %5880 = vst [vmem:[#allocation50_spill] sm:$0xff] %v5261_v12  ;;  %v3847_v63 = vpop.f32.mrb[91].mxu0  ;;  %v3967_v24 = vpop.f32.mrb[91].mxu1 }
 0x190   :  { %v4337_v24 = vld [vmem:[%s5755_s0 + $0x270] sm:$0xff]  }
 0x191   :  { %4077 = vmatmul.mubr.msk.bf16.gmra.mrb[196].mxu0 %vm230_vm3, %v4335_v36  ;;  %4197 = vmatmul.mubr.msk.bf16.gmra.mrb[196].mxu1 %vm230_vm3, %v4336_v0  ;;  %v4338_v36 = vld [vmem:[%s5755_s0 + $0x354] sm:$0xff]  }
 0x192   :  { %4080 = vmatprep.mubr.msk.bf16.mxu0 %vm4356_vm2, %v5844_v31  ;;  %4200 = vmatprep.mubr.msk.bf16.mxu1 %vm4356_vm2, %v5844_v31 }
 0x194   :  { %v5271_v13 = vpop.f32.mrb[92].mxu0  ;;  %v5273_v3 = vpop.f32.mrb[92].mxu1 }
 0x195   :  { %5881 = vst [vmem:[#allocation51_spill] sm:$0xff] %v5271_v13  ;;  %5882 = vst [vmem:[#allocation52_spill] sm:$0xff] %v5273_v3  ;;  %v3850_v43 = vpop.f32.mrb[93].mxu0  ;;  %v3970_v63 = vpop.f32.mrb[93].mxu1 }
 0x196   :  { %v5283_v0 = vpop.f32.mrb[94].mxu0  ;;  %v5285_v12 = vpop.f32.mrb[94].mxu1 }
 0x197   :  { %5883 = vst [vmem:[#allocation53_spill] sm:$0xff] %v5283_v0  ;;  %5884 = vst [vmem:[#allocation54_spill] sm:$0xff] %v5285_v12  ;;  %v3851_v55 = vpop.f32.mrb[95].mxu0  ;;  %v3971_v7 = vpop.f32.mrb[95].mxu1 }
 0x198   :  { %v4339_v7 = vld [vmem:[%s5755_s0 + $0x278] sm:$0xff]  }
 0x199   :  { %4081 = vmatmul.mubr.msk.bf16.gmra.mrb[200].mxu0 %vm230_vm3, %v4337_v24  ;;  %4201 = vmatmul.mubr.msk.bf16.gmra.mrb[200].mxu1 %vm230_vm3, %v4338_v36  ;;  %v4340_v24 = vld [vmem:[%s5755_s0 + $0x35c] sm:$0xff]  }
 0x19a   :  { %4084 = vmatprep.mubr.msk.bf16.mxu0 %vm4356_vm2, %v5844_v31  ;;  %4204 = vmatprep.mubr.msk.bf16.mxu1 %vm4356_vm2, %v5844_v31 }
 0x19c   :  { %v5295_v43 = vpop.f32.mrb[96].mxu0  ;;  %v5297_v63 = vpop.f32.mrb[96].mxu1 }
 0x19d   :  { %5885 = vst [vmem:[#allocation55_spill] sm:$0xff] %v5295_v43  ;;  %5886 = vst [vmem:[#allocation56_spill] sm:$0xff] %v5297_v63  ;;  %v3854_v19 = vpop.f32.mrb[97].mxu0  ;;  %v3974_v55 = vpop.f32.mrb[97].mxu1 }
 0x19e   :  { %v5307_v36 = vpop.f32.mrb[98].mxu0  ;;  %v5309_v12 = vpop.f32.mrb[98].mxu1 }
 0x19f   :  { %5887 = vst [vmem:[#allocation57_spill] sm:$0xff] %v5307_v36  ;;  %5888 = vst [vmem:[#allocation58_spill] sm:$0xff] %v5309_v12  ;;  %v3855_v3 = vpop.f32.mrb[99].mxu0  ;;  %v3975_v13 = vpop.f32.mrb[99].mxu1 }
 0x1a0   :  { %v4341_v13 = vld [vmem:[%s5755_s0 + $0x280] sm:$0xff]  }
 0x1a1   :  { %4085 = vmatmul.mubr.msk.bf16.gmra.mrb[204].mxu0 %vm230_vm3, %v4339_v7  ;;  %4205 = vmatmul.mubr.msk.bf16.gmra.mrb[204].mxu1 %vm230_vm3, %v4340_v24  ;;  %v4342_v7 = vld [vmem:[%s5755_s0 + $0x364] sm:$0xff]  }
 0x1a2   :  { %4088 = vmatprep.mubr.msk.bf16.mxu0 %vm4356_vm2, %v5844_v31  ;;  %4208 = vmatprep.mubr.msk.bf16.mxu1 %vm4356_vm2, %v5844_v31 }
 0x1a4   :  { %v5319_v19 = vpop.f32.mrb[100].mxu0  ;;  %v5321_v55 = vpop.f32.mrb[100].mxu1 }
 0x1a5   :  { %5889 = vst [vmem:[#allocation59_spill] sm:$0xff] %v5319_v19  ;;  %5890 = vst [vmem:[#allocation60_spill] sm:$0xff] %v5321_v55  ;;  %v3858_v0 = vpop.f32.mrb[101].mxu0  ;;  %v3978_v3 = vpop.f32.mrb[101].mxu1 }
 0x1a6   :  { %v5331_v24 = vpop.f32.mrb[102].mxu0  ;;  %v5333_v12 = vpop.f32.mrb[102].mxu1 }
 0x1a7   :  { %5891 = vst [vmem:[#allocation61_spill] sm:$0xff] %v5331_v24  ;;  %5892 = vst [vmem:[#allocation62_spill] sm:$0xff] %v5333_v12  ;;  %v3859_v63 = vpop.f32.mrb[103].mxu0  ;;  %v3979_v43 = vpop.f32.mrb[103].mxu1 }
 0x1a8   :  { %v4343_v43 = vld [vmem:[%s5755_s0 + $0x288] sm:$0xff]  }
 0x1a9   :  { %4089 = vmatmul.mubr.msk.bf16.gmra.mrb[208].mxu0 %vm230_vm3, %v4341_v13  ;;  %4209 = vmatmul.mubr.msk.bf16.gmra.mrb[208].mxu1 %vm230_vm3, %v4342_v7  ;;  %v4344_v13 = vld [vmem:[%s5755_s0 + $0x36c] sm:$0xff]  }
 0x1aa   :  { %4092 = vmatprep.mubr.msk.bf16.mxu0 %vm4356_vm2, %v5844_v31  ;;  %4212 = vmatprep.mubr.msk.bf16.mxu1 %vm4356_vm2, %v5844_v31 }
 0x1ac   :  { %v5343_v0 = vpop.f32.mrb[104].mxu0  ;;  %v5345_v3 = vpop.f32.mrb[104].mxu1 }
 0x1ad   :  { %5893 = vst [vmem:[#allocation63_spill] sm:$0xff] %v5343_v0  ;;  %5894 = vst [vmem:[#allocation64_spill] sm:$0xff] %v5345_v3  ;;  %v3862_v36 = vpop.f32.mrb[105].mxu0  ;;  %v3982_v63 = vpop.f32.mrb[105].mxu1 }
 0x1ae   :  { %v5355_v7 = vpop.f32.mrb[106].mxu0  ;;  %v5357_v12 = vpop.f32.mrb[106].mxu1 }
 0x1af   :  { %5895 = vst [vmem:[#allocation65_spill] sm:$0xff] %v5355_v7  ;;  %5896 = vst [vmem:[#allocation66_spill] sm:$0xff] %v5357_v12  ;;  %v3863_v55 = vpop.f32.mrb[107].mxu0  ;;  %v3983_v19 = vpop.f32.mrb[107].mxu1 }
 0x1b0   :  { %v4345_v19 = vld [vmem:[%s5755_s0 + $0x290] sm:$0xff]  }
 0x1b1   :  { %4093 = vmatmul.mubr.msk.bf16.gmra.mrb[212].mxu0 %vm230_vm3, %v4343_v43  ;;  %4213 = vmatmul.mubr.msk.bf16.gmra.mrb[212].mxu1 %vm230_vm3, %v4344_v13  ;;  %v4346_v43 = vld [vmem:[%s5755_s0 + $0x374] sm:$0xff]  }
 0x1b2   :  { %4096 = vmatprep.mubr.msk.bf16.mxu0 %vm4356_vm2, %v5844_v31  ;;  %4216 = vmatprep.mubr.msk.bf16.mxu1 %vm4356_vm2, %v5844_v31 }
 0x1b4   :  { %v5367_v36 = vpop.f32.mrb[108].mxu0  ;;  %v5369_v63 = vpop.f32.mrb[108].mxu1 }
 0x1b5   :  { %5897 = vst [vmem:[#allocation67_spill] sm:$0xff] %v5367_v36  ;;  %5898 = vst [vmem:[#allocation68_spill] sm:$0xff] %v5369_v63  ;;  %v3866_v24 = vpop.f32.mrb[109].mxu0  ;;  %v3986_v55 = vpop.f32.mrb[109].mxu1 }
 0x1b6   :  { %v5379_v13 = vpop.f32.mrb[110].mxu0  ;;  %v5381_v12 = vpop.f32.mrb[110].mxu1 }
 0x1b7   :  { %5899 = vst [vmem:[#allocation69_spill] sm:$0xff] %v5379_v13  ;;  %5900 = vst [vmem:[#allocation70_spill] sm:$0xff] %v5381_v12  ;;  %v3867_v3 = vpop.f32.mrb[111].mxu0  ;;  %v3987_v0 = vpop.f32.mrb[111].mxu1 }
 0x1b8   :  { %v4347_v0 = vld [vmem:[%s5755_s0 + $0x298] sm:$0xff]  }
 0x1b9   :  { %4097 = vmatmul.mubr.msk.bf16.gmra.mrb[216].mxu0 %vm230_vm3, %v4345_v19  ;;  %4217 = vmatmul.mubr.msk.bf16.gmra.mrb[216].mxu1 %vm230_vm3, %v4346_v43  ;;  %v4348_v19 = vld [vmem:[%s5755_s0 + $0x37c] sm:$0xff]  }
 0x1ba   :  { %4100 = vmatprep.mubr.msk.bf16.mxu0 %vm4356_vm2, %v5844_v31  ;;  %4220 = vmatprep.mubr.msk.bf16.mxu1 %vm4356_vm2, %v5844_v31 }
 0x1bc   :  { %v5391_v24 = vpop.f32.mrb[112].mxu0  ;;  %v5393_v55 = vpop.f32.mrb[112].mxu1 }
 0x1bd   :  { %5901 = vst [vmem:[#allocation71_spill] sm:$0xff] %v5391_v24  ;;  %5902 = vst [vmem:[#allocation72_spill] sm:$0xff] %v5393_v55  ;;  %v3870_v7 = vpop.f32.mrb[113].mxu0  ;;  %v3990_v3 = vpop.f32.mrb[113].mxu1 }
 0x1be   :  { %v586_v43 = vpop.f32.mrb[114].mxu0  ;;  %v1138_v12 = vpop.f32.mrb[114].mxu1 }
 0x1bf   :  { %v3871_v13 = vpop.f32.mrb[115].mxu0  ;;  %v3991_v63 = vpop.f32.mrb[115].mxu1 }
 0x1c0   :  { %v4349_v63 = vld [vmem:[%s5755_s0 + $0x2a0] sm:$0xff]  }
 0x1c1   :  { %4101 = vmatmul.mubr.msk.bf16.gmra.mrb[220].mxu0 %vm230_vm3, %v4347_v0  ;;  %4221 = vmatmul.mubr.msk.bf16.gmra.mrb[220].mxu1 %vm230_vm3, %v4348_v19  ;;  %v4350_v13 = vld [vmem:[%s5755_s0 + $0x384] sm:$0xff]   ;;  %v5421_v0 = vld [vmem:[%s5756_s2] ss:$0 sm:$0xff] }
 0x1c2   :  { %4104 = vmatprep.mubr.msk.bf16.mxu0 %vm4356_vm2, %v5844_v31  ;;  %4224 = vmatprep.mubr.msk.bf16.mxu1 %vm4356_vm2, %v5844_v31 }
 0x1c4   :  { %v1520_v7 = vpop.f32.mrb[116].mxu0  ;;  %v2129_v3 = vpop.f32.mrb[116].mxu1 }
 0x1c5   :  { %v1750_v55 = vmax.f32 %v5903_v48, %v1520_v7  ;;  %v3998_v43 = vpop.f32.mrb[117].mxu0  ;;  %v4118_v12 = vpop.f32.mrb[117].mxu1 }
 0x1c6   :  { %v1523_v19 = vpop.f32.mrb[118].mxu0  ;;  %v2132_v24 = vpop.f32.mrb[118].mxu1 }
 0x1c7   :  { %v2359_v36 = vmax.f32 %v1750_v55, %v2129_v3  ;;  %v1751_v62 = vmax.f32 %v5904_v61, %v1523_v19  ;;  %v3999_v48 = vpop.f32.mrb[119].mxu0  ;;  %v4119_v7 = vpop.f32.mrb[119].mxu1 }
 0x1c9   :  { %v2423_v43 = vadd.f32 %v5421_v0, %v2359_v36  ;;  %v2360_v12 = vmax.f32 %v1751_v62, %v2132_v24  ;;  %4105 = vmatmul.mubr.msk.bf16.gmra.mrb[224].mxu0 %vm230_vm3, %v4349_v63  ;;  %4225 = vmatmul.mubr.msk.bf16.gmra.mrb[224].mxu1 %vm230_vm3, %v4350_v13  ;;  %v4352_v24 = vld [vmem:[%s5755_s0 + $0x38c] ss:$0 sps:$4 sm:$0xff]   ;;  %v5905_v13 = vmax.f32 %v4743_v10, %v4745_v11 }
 0x1ca   :  { %4108 = vmatprep.mubr.msk.bf16.mxu0 %vm4356_vm2, %v5844_v31  ;;  %4228 = vmatprep.mubr.msk.bf16.mxu1 %vm4356_vm2, %v5844_v31 }
 0x1cb   :  { %v2537_v55 = vmul.f32 0.005, %v2423_v43  ;;  %v2424_v3 = vadd.f32 %v5421_v0, %v2360_v12  ;;  %vm2480_vm4 = vcmp.ge.f32.partialorder %v2423_v43, 0.0 }
 0x1cc   :  { %v1528_v6 = vpop.f32.mrb[120].mxu0  ;;  %v2137_v36 = vpop.f32.mrb[120].mxu1 }
 0x1cd   :  { %vm2481_vm5 = vcmp.ge.f32.partialorder %v2424_v3, 0.0  ;;  %v2538_v63 = vmul.f32 0.005, %v2424_v3  ;;  %v1752_v31 = vmax.f32 %v5905_v13, %v1528_v6  ;;  %v4002_v19 = vpop.f32.mrb[121].mxu0  ;;  %v4122_v61 = vpop.f32.mrb[121].mxu1  ;;  %v2594_v7 = vsel %vm2480_vm4, %v2423_v43, %v2537_v55 }
 0x1ce   :  { %v1531_v62 = vpop.f32.mrb[122].mxu0  ;;  %v2140_v48 = vpop.f32.mrb[122].mxu1 }
 0x1cf   :  { %v2595_v12 = vsel %vm2481_vm5, %v2424_v3, %v2538_v63  ;;  %v2361_v1 = vmax.f32 %v1752_v31, %v2137_v36  ;;  %v1753_v37 = vmax.f32 %v5906_v21, %v1531_v62  ;;  %v4003_v60 = vpop.f32.mrb[123].mxu0  ;;  %v4123_v27 = vpop.f32.mrb[123].mxu1 }
 0x1d0   :  { %v3464_v15 = vpack.c.bf16 %v2595_v12, %v2594_v7  ;;  %v5907_v27 = vmax.f32 %v4767_v22, %v4769_v23 }
 0x1d1   :  { %v2425_v49 = vadd.f32 %v5421_v0, %v2361_v1  ;;  %v2362_v45 = vmax.f32 %v1753_v37, %v2140_v48  ;;  %4109 = vmatmul.mubr.msk.bf16.gmra.mrb[228].mxu0 %vm230_vm3, %v4351_v5  ;;  %4229 = vmatmul.mubr.msk.bf16.gmra.mrb[228].mxu1 %vm230_vm3, %v4352_v24 }
 0x1d2   :  { %3465 = vst [vmem:[%s5757_s3] sm:$0xff] %v3464_v15   ;;  %v5908_v15 = vmax.f32 %v4779_v29, %v4781_v30  ;;  %v5909_v29 = vmax.f32 %v4791_v34, %v4793_v35 }
 0x1d3   :  { %v2539_v10 = vmul.f32 0.005, %v2425_v49  ;;  %v2426_v11 = vadd.f32 %v5421_v0, %v2362_v45  ;;  %vm2482_vm6 = vcmp.ge.f32.partialorder %v2425_v49, 0.0 }
 0x1d4   :  { %v1536_v17 = vpop.f32.mrb[124].mxu0  ;;  %v2145_v18 = vpop.f32.mrb[124].mxu1 }
 0x1d5   :  { %vm2483_vm7 = vcmp.ge.f32.partialorder %v2426_v11, 0.0  ;;  %v2540_v60 = vmul.f32 0.005, %v2426_v11  ;;  %v1754_v37 = vmax.f32 %v5907_v27, %v1536_v17  ;;  %v4006_v21 = vpop.f32.mrb[125].mxu0  ;;  %v4126_v1 = vpop.f32.mrb[125].mxu1  ;;  %v2596_v3 = vsel %vm2482_vm6, %v2425_v49, %v2539_v10 }
 0x1d6   :  { %v1539_v43 = vpop.f32.mrb[126].mxu0  ;;  %v2148_v55 = vpop.f32.mrb[126].mxu1 }
 0x1d7   :  { %v2597_v5 = vsel %vm2483_vm7, %v2426_v11, %v2540_v60  ;;  %v2363_v6 = vmax.f32 %v1754_v37, %v2145_v18  ;;  %v1755_v45 = vmax.f32 %v5908_v15, %v1539_v43  ;;  %v4007_v36 = vpop.f32.mrb[127].mxu0  ;;  %v4127_v24 = vpop.f32.mrb[127].mxu1  ;;  %v5910_v18 = vmax.f32 %v4803_v41, %v4805_v42 }
 0x1d8   :  { %v3469_v63 = vpack.c.bf16 %v2597_v5, %v2596_v3  ;;  %v5911_v41 = vmax.f32 %v4815_v46, %v4817_v47 }
 0x1d9   :  { %v2427_v13 = vadd.f32 %v5421_v0, %v2363_v6  ;;  %v2364_v31 = vmax.f32 %v1755_v45, %v2148_v55 }
 0x1da   :  { %3601 = vst [vmem:[%s5757_s3 + $0x8] sm:$0xff] %v3469_v63  }
 0x1db   :  { %v2541_v22 = vmul.f32 0.005, %v2427_v13  ;;  %v2428_v23 = vadd.f32 %v5421_v0, %v2364_v31  ;;  %vm2484_vm8 = vcmp.ge.f32.partialorder %v2427_v13, 0.0  ;;  %v5912_v31 = vmax.f32 %v4827_v53, %v4829_v54 }
 0x1dc   :  { %v1544_v49 = vpop.f32.mrb[128].mxu0  ;;  %v2153_v19 = vpop.f32.mrb[128].mxu1  ;;  %v5913_v53 = vmax.f32 %v4839_v58, %v4841_v59 }
 0x1dd   :  { %vm2485_vm9 = vcmp.ge.f32.partialorder %v2428_v23, 0.0  ;;  %v2542_v61 = vmul.f32 0.005, %v2428_v23  ;;  %v1756_v30 = vmax.f32 %v5909_v29, %v1544_v49  ;;  %v4010_v62 = vpop.f32.mrb[129].mxu0  ;;  %v4130_v48 = vpop.f32.mrb[129].mxu1  ;;  %v2598_v10 = vsel %vm2484_vm8, %v2427_v13, %v2541_v22 }
 0x1de   :  { %v1547_v7 = vpop.f32.mrb[130].mxu0  ;;  %v2156_v12 = vpop.f32.mrb[130].mxu1 }
 0x1df   :  { %v2599_v11 = vsel %vm2485_vm9, %v2428_v23, %v2542_v61  ;;  %v2365_v17 = vmax.f32 %v1756_v30, %v2153_v19  ;;  %v1757_v60 = vmax.f32 %v5910_v18, %v1547_v7  ;;  %v4011_v27 = vpop.f32.mrb[131].mxu0  ;;  %v4131_v37 = vpop.f32.mrb[131].mxu1 }
 0x1e0   :  { %v3474_v21 = vpack.c.bf16 %v2599_v11, %v2598_v10  ;;  %v5914_v27 = vmax.f32 %v4851_v8, %v4853_v9  ;;  %v5915_v8 = vmax.f32 %v4863_v16, %v4865_v20 }
 0x1e1   :  { %v2429_v1 = vadd.f32 %v5421_v0, %v2365_v17  ;;  %v2366_v43 = vmax.f32 %v1757_v60, %v2156_v12 }
 0x1e2   :  { %3602 = vst [vmem:[%s5757_s3 + $0x10] sm:$0xff] %v3474_v21  }
 0x1e3   :  { %v2543_v34 = vmul.f32 0.005, %v2429_v1  ;;  %v2430_v35 = vadd.f32 %v5421_v0, %v2366_v43  ;;  %vm2486_vm10 = vcmp.ge.f32.partialorder %v2429_v1, 0.0 }
 0x1e4   :  { %v1552_v55 = vpop.f32.mrb[132].mxu0  ;;  %v2161_v3 = vpop.f32.mrb[132].mxu1 }
 0x1e5   :  { %vm2487_vm11 = vcmp.ge.f32.partialorder %v2430_v35, 0.0  ;;  %v2544_v5 = vmul.f32 0.005, %v2430_v35  ;;  %v1758_v42 = vmax.f32 %v5911_v41, %v1552_v55  ;;  %v4014_v6 = vpop.f32.mrb[133].mxu0  ;;  %v4134_v15 = vpop.f32.mrb[133].mxu1  ;;  %v2600_v24 = vsel %vm2486_vm10, %v2429_v1, %v2543_v34 }
 0x1e6   :  { %v1555_v45 = vpop.f32.mrb[134].mxu0  ;;  %v2164_v36 = vpop.f32.mrb[134].mxu1 }
 0x1e7   :  { %v2601_v63 = vsel %vm2487_vm11, %v2430_v35, %v2544_v5  ;;  %v2367_v13 = vmax.f32 %v1758_v42, %v2161_v3  ;;  %v1759_v22 = vmax.f32 %v5912_v31, %v1555_v45  ;;  %v4015_v23 = vpop.f32.mrb[135].mxu0  ;;  %v4135_v49 = vpop.f32.mrb[135].mxu1 }
 0x1e8   :  { %v3479_v19 = vpack.c.bf16 %v2601_v63, %v2600_v24  ;;  %v5916_v63 = vmax.f32 %v4875_v32, %v4877_v33  ;;  %v5917_v32 = vmax.f32 %v4887_v40, %v4889_v44 }
 0x1e9   :  { %v2431_v61 = vadd.f32 %v5421_v0, %v2367_v13  ;;  %v2368_v29 = vmax.f32 %v1759_v22, %v2164_v36 }
 0x1ea   :  { %3603 = vst [vmem:[%s5757_s3 + $0x18] sm:$0xff] %v3479_v19  }
 0x1eb   :  { %v2545_v46 = vmul.f32 0.005, %v2431_v61  ;;  %v2432_v47 = vadd.f32 %v5421_v0, %v2368_v29  ;;  %vm2488_vm12 = vcmp.ge.f32.partialorder %v2431_v61, 0.0 }
 0x1ec   :  { %v1560_v30 = vpop.f32.mrb[136].mxu0  ;;  %v2169_v62 = vpop.f32.mrb[136].mxu1 }
 0x1ed   :  { %vm2489_vm13 = vcmp.ge.f32.partialorder %v2432_v47, 0.0  ;;  %v2546_v48 = vmul.f32 0.005, %v2432_v47  ;;  %v1760_v54 = vmax.f32 %v5913_v53, %v1560_v30  ;;  %v4018_v7 = vpop.f32.mrb[137].mxu0  ;;  %v4138_v12 = vpop.f32.mrb[137].mxu1  ;;  %v2602_v17 = vsel %vm2488_vm12, %v2431_v61, %v2545_v46 }
 0x1ee   :  { %v1563_v10 = vpop.f32.mrb[138].mxu0  ;;  %v2172_v11 = vpop.f32.mrb[138].mxu1  ;;  %v5918_v12 = vmax.f32 %v4899_v56, %v4901_v57  ;;  %v5919_v56 = vmax.f32 %v4911_v4, %v4913_v14 }
 0x1ef   :  { %v2603_v18 = vsel %vm2489_vm13, %v2432_v47, %v2546_v48  ;;  %v2369_v60 = vmax.f32 %v1760_v54, %v2169_v62  ;;  %v1761_v37 = vmax.f32 %v5914_v27, %v1563_v10  ;;  %v4019_v21 = vpop.f32.mrb[139].mxu0  ;;  %v4139_v1 = vpop.f32.mrb[139].mxu1 }
 0x1f0   :  { %v3484_v43 = vpack.c.bf16 %v2603_v18, %v2602_v17 }
 0x1f1   :  { %v2433_v34 = vadd.f32 %v5421_v0, %v2369_v60  ;;  %v2370_v35 = vmax.f32 %v1761_v37, %v2172_v11 }
 0x1f2   :  { %3604 = vst [vmem:[%s5757_s3 + $0x20] sm:$0xff] %v3484_v43  }
 0x1f3   :  { %v2547_v58 = vmul.f32 0.005, %v2433_v34  ;;  %v2434_v59 = vadd.f32 %v5421_v0, %v2370_v35  ;;  %vm2490_vm14 = vcmp.ge.f32.partialorder %v2433_v34, 0.0 }
 0x1f4   :  { %v1568_v55 = vpop.f32.mrb[140].mxu0  ;;  %v2177_v3 = vpop.f32.mrb[140].mxu1 }
 0x1f5   :  { %vm2491_vm15 = vcmp.ge.f32.partialorder %v2434_v59, 0.0  ;;  %v2548_v5 = vmul.f32 0.005, %v2434_v59  ;;  %v1762_v9 = vmax.f32 %v5915_v8, %v1568_v55  ;;  %v4022_v41 = vpop.f32.mrb[141].mxu0  ;;  %v4142_v42 = vpop.f32.mrb[141].mxu1  ;;  %v2604_v45 = vsel %vm2490_vm14, %v2433_v34, %v2547_v58 }
 0x1f6   :  { %v1571_v6 = vpop.f32.mrb[142].mxu0  ;;  %v2180_v15 = vpop.f32.mrb[142].mxu1 }
 0x1f7   :  { %v2605_v36 = vsel %vm2491_vm15, %v2434_v59, %v2548_v5  ;;  %v2371_v24 = vmax.f32 %v1762_v9, %v2177_v3  ;;  %v1763_v13 = vmax.f32 %v5916_v63, %v1571_v6  ;;  %v4023_v31 = vpop.f32.mrb[143].mxu0  ;;  %v4143_v22 = vpop.f32.mrb[143].mxu1  ;;  %v5920_v5 = vmax.f32 %v4923_v38, %v4925_v39 }
 0x1f8   :  { %v3489_v23 = vpack.c.bf16 %v2605_v36, %v2604_v45  ;;  %v5921_v38 = vmax.f32 %v4935_v52, %v4937_v2 }
 0x1f9   :  { %v2435_v49 = vadd.f32 %v5421_v0, %v2371_v24  ;;  %v2372_v19 = vmax.f32 %v1763_v13, %v2180_v15 }
 0x1fa   :  { %3605 = vst [vmem:[%s5757_s3 + $0x28] sm:$0xff] %v3489_v23  }
 0x1fb   :  { %v2549_v16 = vmul.f32 0.005, %v2435_v49  ;;  %v2436_v20 = vadd.f32 %v5421_v0, %v2372_v19  ;;  %vm2492_vm0 = vcmp.ge.f32.partialorder %v2435_v49, 0.0 }
 0x1fc   :  { %v1576_v61 = vpop.f32.mrb[144].mxu0  ;;  %v2185_v29 = vpop.f32.mrb[144].mxu1 }
 0x1fd   :  { %vm2493_vm1 = vcmp.ge.f32.partialorder %v2436_v20, 0.0  ;;  %v2550_v46 = vmul.f32 0.005, %v2436_v20  ;;  %v1764_v33 = vmax.f32 %v5917_v32, %v1576_v61  ;;  %v4026_v47 = vpop.f32.mrb[145].mxu0  ;;  %v4146_v30 = vpop.f32.mrb[145].mxu1  ;;  %v2606_v53 = vsel %vm2492_vm0, %v2435_v49, %v2549_v16 }
 0x1fe   :  { %v1579_v62 = vpop.f32.mrb[146].mxu0  ;;  %v2188_v48 = vpop.f32.mrb[146].mxu1  ;;  %v5922_v16 = vmax.f32 %v4947_v50, %v4949_v51  ;;  %v5923_v50 = vmax.f32 %v4959_v25, %v4961_v26 }
 0x1ff   :  { %v2607_v54 = vsel %vm2493_vm1, %v2436_v20, %v2550_v46  ;;  %v2373_v7 = vmax.f32 %v1764_v33, %v2185_v29  ;;  %v1765_v10 = vmax.f32 %v5918_v12, %v1579_v62  ;;  %v4027_v11 = vpop.f32.mrb[147].mxu0  ;;  %v4147_v17 = vpop.f32.mrb[147].mxu1 }
 0x200   :  { %v3494_v18 = vpack.c.bf16 %v2607_v54, %v2606_v53  ;;  %v5924_v17 = vld [vmem:[#allocation2_spill] sm:$0xff] }
 0x201   :  { %v2437_v60 = vadd.f32 %v5421_v0, %v2373_v7  ;;  %v2374_v27 = vmax.f32 %v1765_v10, %v2188_v48 }
 0x202   :  { %3606 = vst [vmem:[%s5757_s3 + $0x30] sm:$0xff] %v3494_v18   ;;  %v5925_v18 = vmax.f32 %v4971_v28, %v5924_v17  ;;  %v5926_v28 = vld [vmem:[#allocation3_spill] sm:$0xff] }
 0x203   :  { %v2551_v40 = vmul.f32 0.005, %v2437_v60  ;;  %v2438_v44 = vadd.f32 %v5421_v0, %v2374_v27  ;;  %vm2494_vm2 = vcmp.ge.f32.partialorder %v2437_v60, 0.0  ;;  %v5938_v17 = vld [vmem:[#allocation11_spill] sm:$0xff] }
 0x204   :  { %v1584_v37 = vpop.f32.mrb[148].mxu0  ;;  %v2193_v21 = vpop.f32.mrb[148].mxu1 }
 0x205   :  { %vm2495_vm3 = vcmp.ge.f32.partialorder %v2438_v44, 0.0  ;;  %v2552_v1 = vmul.f32 0.005, %v2438_v44  ;;  %v1766_v57 = vmax.f32 %v5919_v56, %v1584_v37  ;;  %v4030_v43 = vpop.f32.mrb[149].mxu0  ;;  %v4150_v34 = vpop.f32.mrb[149].mxu1  ;;  %v2608_v59 = vsel %vm2494_vm2, %v2437_v60, %v2551_v40 }
 0x206   :  { %v1587_v35 = vpop.f32.mrb[150].mxu0  ;;  %v2196_v58 = vpop.f32.mrb[150].mxu1  ;;  %v5927_v43 = vld [vmem:[#allocation4_spill] sm:$0xff] }
 0x207   :  { %v2609_v55 = vsel %vm2495_vm3, %v2438_v44, %v2552_v1  ;;  %v2375_v3 = vmax.f32 %v1766_v57, %v2193_v21  ;;  %v1767_v8 = vmax.f32 %v5920_v5, %v1587_v35  ;;  %v4031_v9 = vpop.f32.mrb[151].mxu0  ;;  %v4151_v41 = vpop.f32.mrb[151].mxu1  ;;  %v5928_v34 = vmax.f32 %v5926_v28, %v5927_v43 }
 0x208   :  { %v3499_v42 = vpack.c.bf16 %v2609_v55, %v2608_v59  ;;  %v5929_v41 = vld [vmem:[#allocation5_spill] sm:$0xff] }
 0x209   :  { %v2439_v6 = vadd.f32 %v5421_v0, %v2375_v3  ;;  %v2376_v15 = vmax.f32 %v1767_v8, %v2196_v58 }
 0x20a   :  { %3607 = vst [vmem:[%s5757_s3 + $0x38] sm:$0xff] %v3499_v42   ;;  %v5930_v42 = vld [vmem:[#allocation6_spill] sm:$0xff] }
 0x20b   :  { %v2553_v4 = vmul.f32 0.005, %v2439_v6  ;;  %v2440_v14 = vadd.f32 %v5421_v0, %v2376_v15  ;;  %vm2496_vm4 = vcmp.ge.f32.partialorder %v2439_v6, 0.0 }
 0x20c   :  { %v1592_v45 = vpop.f32.mrb[152].mxu0  ;;  %v2201_v36 = vpop.f32.mrb[152].mxu1 }
 0x20d   :  { %vm2497_vm5 = vcmp.ge.f32.partialorder %v2440_v14, 0.0  ;;  %v2554_v24 = vmul.f32 0.005, %v2440_v14  ;;  %v1768_v39 = vmax.f32 %v5921_v38, %v1592_v45  ;;  %v4034_v63 = vpop.f32.mrb[153].mxu0  ;;  %v4154_v13 = vpop.f32.mrb[153].mxu1  ;;  %v2610_v23 = vsel %vm2496_vm4, %v2439_v6, %v2553_v4 }
 0x20e   :  { %v1595_v31 = vpop.f32.mrb[154].mxu0  ;;  %v2204_v22 = vpop.f32.mrb[154].mxu1  ;;  %v5931_v6 = vmax.f32 %v5929_v41, %v5930_v42  ;;  %v5944_v42 = vld [vmem:[#allocation15_spill] sm:$0xff] }
 0x20f   :  { %v2611_v49 = vsel %vm2497_vm5, %v2440_v14, %v2554_v24  ;;  %v2377_v19 = vmax.f32 %v1768_v39, %v2201_v36  ;;  %v1769_v20 = vmax.f32 %v5922_v16, %v1595_v31  ;;  %v4035_v61 = vpop.f32.mrb[155].mxu0  ;;  %v4155_v29 = vpop.f32.mrb[155].mxu1 }
 0x210   :  { %v3504_v46 = vpack.c.bf16 %v2611_v49, %v2610_v23  ;;  %v5933_v23 = vld [vmem:[#allocation8_spill] sm:$0xff] }
 0x211   :  { %v2441_v32 = vadd.f32 %v5421_v0, %v2377_v19  ;;  %v2378_v33 = vmax.f32 %v1769_v20, %v2204_v22  ;;  %v5932_v22 = vld [vmem:[#allocation7_spill] sm:$0xff] }
 0x212   :  { %3608 = vst [vmem:[%s5757_s3 + $0x40] sm:$0xff] %v3504_v46   ;;  %v5934_v49 = vmax.f32 %v5932_v22, %v5933_v23 }
 0x213   :  { %v2555_v52 = vmul.f32 0.005, %v2441_v32  ;;  %v2442_v2 = vadd.f32 %v5421_v0, %v2378_v33  ;;  %vm2498_vm6 = vcmp.ge.f32.partialorder %v2441_v32, 0.0 }
 0x214   :  { %v1600_v47 = vpop.f32.mrb[156].mxu0  ;;  %v2209_v30 = vpop.f32.mrb[156].mxu1 }
 0x215   :  { %vm2499_vm7 = vcmp.ge.f32.partialorder %v2442_v2, 0.0  ;;  %v2556_v62 = vmul.f32 0.005, %v2442_v2  ;;  %v1770_v51 = vmax.f32 %v5923_v50, %v1600_v47  ;;  %v4038_v48 = vpop.f32.mrb[157].mxu0  ;;  %v4158_v53 = vpop.f32.mrb[157].mxu1  ;;  %v2612_v12 = vsel %vm2498_vm6, %v2441_v32, %v2555_v52  ;;  %v5935_v52 = vld [vmem:[#allocation9_spill] sm:$0xff] }
 0x216   :  { %v1603_v54 = vpop.f32.mrb[158].mxu0  ;;  %v2212_v7 = vpop.f32.mrb[158].mxu1 }
 0x217   :  { %v2613_v10 = vsel %vm2499_vm7, %v2442_v2, %v2556_v62  ;;  %v2379_v11 = vmax.f32 %v1770_v51, %v2209_v30  ;;  %v1771_v60 = vmax.f32 %v5925_v18, %v1603_v54  ;;  %v4039_v27 = vpop.f32.mrb[159].mxu0  ;;  %v4159_v40 = vpop.f32.mrb[159].mxu1  ;;  %v5936_v2 = vld [vmem:[#allocation10_spill] sm:$0xff]  ;;  %v5939_v18 = vld [vmem:[#allocation12_spill] sm:$0xff] }
 0x218   :  { %v3509_v44 = vpack.c.bf16 %v2613_v10, %v2612_v12  ;;  %v5937_v47 = vmax.f32 %v5935_v52, %v5936_v2  ;;  %v5950_v2 = vld [vmem:[#allocation19_spill] sm:$0xff] }
 0x219   :  { %v2443_v37 = vadd.f32 %v5421_v0, %v2379_v11  ;;  %v2380_v21 = vmax.f32 %v1771_v60, %v2212_v7  ;;  %v5940_v60 = vmax.f32 %v5938_v17, %v5939_v18 }
 0x21a   :  { %3609 = vst [vmem:[%s5757_s3 + $0x48] sm:$0xff] %v3509_v44  }
 0x21b   :  { %v2557_v25 = vmul.f32 0.005, %v2443_v37  ;;  %v2444_v26 = vadd.f32 %v5421_v0, %v2380_v21  ;;  %vm2500_vm8 = vcmp.ge.f32.partialorder %v2443_v37, 0.0 }
 0x21c   :  { %v1608_v1 = vpop.f32.mrb[160].mxu0  ;;  %v2217_v56 = vpop.f32.mrb[160].mxu1 }
 0x21d   :  { %vm2501_vm9 = vcmp.ge.f32.partialorder %v2444_v26, 0.0  ;;  %v2558_v57 = vmul.f32 0.005, %v2444_v26  ;;  %v1772_v35 = vmax.f32 %v5928_v34, %v1608_v1  ;;  %v4042_v58 = vpop.f32.mrb[161].mxu0  ;;  %v4162_v59 = vpop.f32.mrb[161].mxu1  ;;  %v2614_v5 = vsel %vm2500_vm8, %v2443_v37, %v2557_v25 }
 0x21e   :  { %v1611_v55 = vpop.f32.mrb[162].mxu0  ;;  %v2220_v3 = vpop.f32.mrb[162].mxu1 }
 0x21f   :  { %v2615_v8 = vsel %vm2501_vm9, %v2444_v26, %v2558_v57  ;;  %v2381_v9 = vmax.f32 %v1772_v35, %v2217_v56  ;;  %v1773_v15 = vmax.f32 %v5931_v6, %v1611_v55  ;;  %v4043_v4 = vpop.f32.mrb[163].mxu0  ;;  %v4163_v14 = vpop.f32.mrb[163].mxu1  ;;  %v5941_v56 = vld [vmem:[#allocation13_spill] sm:$0xff]  ;;  %v5942_v57 = vld [vmem:[#allocation14_spill] sm:$0xff]  ;;  %v5945_v6 = vld [vmem:[#allocation16_spill] sm:$0xff] }
 0x220   :  { %v3514_v45 = vpack.c.bf16 %v2615_v8, %v2614_v5  ;;  %v5943_v28 = vmax.f32 %v5941_v56, %v5942_v57  ;;  %v5956_v57 = vld [vmem:[#allocation23_spill] sm:$0xff] }
 0x221   :  { %v2445_v36 = vadd.f32 %v5421_v0, %v2381_v9  ;;  %v2382_v24 = vmax.f32 %v1773_v15, %v2220_v3  ;;  %v5946_v15 = vmax.f32 %v5944_v42, %v5945_v6 }
 0x222   :  { %3610 = vst [vmem:[%s5757_s3 + $0x50] sm:$0xff] %v3514_v45  }
 0x223   :  { %v2559_v38 = vmul.f32 0.005, %v2445_v36  ;;  %v2446_v39 = vadd.f32 %v5421_v0, %v2382_v24  ;;  %vm2502_vm10 = vcmp.ge.f32.partialorder %v2445_v36, 0.0 }
 0x224   :  { %v1616_v63 = vpop.f32.mrb[164].mxu0  ;;  %v2225_v13 = vpop.f32.mrb[164].mxu1 }
 0x225   :  { %vm2503_vm11 = vcmp.ge.f32.partialorder %v2446_v39, 0.0  ;;  %v2560_v31 = vmul.f32 0.005, %v2446_v39  ;;  %v1774_v19 = vmax.f32 %v5934_v49, %v1616_v63  ;;  %v4046_v16 = vpop.f32.mrb[165].mxu0  ;;  %v4166_v20 = vpop.f32.mrb[165].mxu1  ;;  %v2616_v46 = vsel %vm2502_vm10, %v2445_v36, %v2559_v38 }
 0x226   :  { %v1619_v61 = vpop.f32.mrb[166].mxu0  ;;  %v2228_v29 = vpop.f32.mrb[166].mxu1 }
 0x227   :  { %v2617_v32 = vsel %vm2503_vm11, %v2446_v39, %v2560_v31  ;;  %v2383_v33 = vmax.f32 %v1774_v19, %v2225_v13  ;;  %v1775_v30 = vmax.f32 %v5937_v47, %v1619_v61  ;;  %v4047_v62 = vpop.f32.mrb[167].mxu0  ;;  %v4167_v50 = vpop.f32.mrb[167].mxu1  ;;  %v5947_v13 = vld [vmem:[#allocation17_spill] sm:$0xff]  ;;  %v5948_v31 = vld [vmem:[#allocation18_spill] sm:$0xff]  ;;  %v5951_v47 = vld [vmem:[#allocation20_spill] sm:$0xff] }
 0x228   :  { %v3519_v51 = vpack.c.bf16 %v2617_v32, %v2616_v46  ;;  %v5949_v22 = vmax.f32 %v5947_v13, %v5948_v31  ;;  %v5962_v31 = vld [vmem:[#allocation27_spill] sm:$0xff] }
 0x229   :  { %v2447_v48 = vadd.f32 %v5421_v0, %v2383_v33  ;;  %v2384_v53 = vmax.f32 %v1775_v30, %v2228_v29  ;;  %v5952_v30 = vmax.f32 %v5950_v2, %v5951_v47 }
 0x22a   :  { %3611 = vst [vmem:[%s5757_s3 + $0x58] sm:$0xff] %v3519_v51  }
 0x22b   :  { %v2561_v54 = vmul.f32 0.005, %v2447_v48  ;;  %v2448_v7 = vadd.f32 %v5421_v0, %v2384_v53  ;;  %vm2504_vm12 = vcmp.ge.f32.partialorder %v2447_v48, 0.0 }
 0x22c   :  { %v1624_v12 = vpop.f32.mrb[168].mxu0  ;;  %v2233_v10 = vpop.f32.mrb[168].mxu1 }
 0x22d   :  { %vm2505_vm13 = vcmp.ge.f32.partialorder %v2448_v7, 0.0  ;;  %v2562_v11 = vmul.f32 0.005, %v2448_v7  ;;  %v1776_v27 = vmax.f32 %v5940_v60, %v1624_v12  ;;  %v4050_v40 = vpop.f32.mrb[169].mxu0  ;;  %v4170_v44 = vpop.f32.mrb[169].mxu1  ;;  %v2618_v25 = vsel %vm2504_vm12, %v2447_v48, %v2561_v54 }
 0x22e   :  { %v1627_v37 = vpop.f32.mrb[170].mxu0  ;;  %v2236_v21 = vpop.f32.mrb[170].mxu1 }
 0x22f   :  { %v2619_v26 = vsel %vm2505_vm13, %v2448_v7, %v2562_v11  ;;  %v2385_v1 = vmax.f32 %v1776_v27, %v2233_v10  ;;  %v1777_v43 = vmax.f32 %v5943_v28, %v1627_v37  ;;  %v4051_v34 = vpop.f32.mrb[171].mxu0  ;;  %v4171_v35 = vpop.f32.mrb[171].mxu1  ;;  %v5953_v10 = vld [vmem:[#allocation21_spill] sm:$0xff]  ;;  %v5954_v11 = vld [vmem:[#allocation22_spill] sm:$0xff]  ;;  %v5957_v28 = vld [vmem:[#allocation24_spill] sm:$0xff] }
 0x230   :  { %v3524_v58 = vpack.c.bf16 %v2619_v26, %v2618_v25  ;;  %v5955_v17 = vmax.f32 %v5953_v10, %v5954_v11  ;;  %v5968_v11 = vld [vmem:[#allocation31_spill] sm:$0xff] }
 0x231   :  { %v2449_v59 = vadd.f32 %v5421_v0, %v2385_v1  ;;  %v2386_v55 = vmax.f32 %v1777_v43, %v2236_v21  ;;  %v5958_v43 = vmax.f32 %v5956_v57, %v5957_v28 }
 0x232   :  { %3612 = vst [vmem:[%s5757_s3 + $0x60] sm:$0xff] %v3524_v58  }
 0x233   :  { %v2563_v3 = vmul.f32 0.005, %v2449_v59  ;;  %v2450_v5 = vadd.f32 %v5421_v0, %v2386_v55  ;;  %vm2506_vm14 = vcmp.ge.f32.partialorder %v2449_v59, 0.0 }
 0x234   :  { %v1632_v8 = vpop.f32.mrb[172].mxu0  ;;  %v2241_v9 = vpop.f32.mrb[172].mxu1 }
 0x235   :  { %vm2507_vm15 = vcmp.ge.f32.partialorder %v2450_v5, 0.0  ;;  %v2564_v41 = vmul.f32 0.005, %v2450_v5  ;;  %v1778_v4 = vmax.f32 %v5946_v15, %v1632_v8  ;;  %v4054_v14 = vpop.f32.mrb[173].mxu0  ;;  %v4174_v45 = vpop.f32.mrb[173].mxu1  ;;  %v2620_v38 = vsel %vm2506_vm14, %v2449_v59, %v2563_v3 }
 0x236   :  { %v1635_v36 = vpop.f32.mrb[174].mxu0  ;;  %v2244_v24 = vpop.f32.mrb[174].mxu1 }
 0x237   :  { %v2621_v39 = vsel %vm2507_vm15, %v2450_v5, %v2564_v41  ;;  %v2387_v63 = vmax.f32 %v1778_v4, %v2241_v9  ;;  %v1779_v23 = vmax.f32 %v5949_v22, %v1635_v36  ;;  %v4055_v49 = vpop.f32.mrb[175].mxu0  ;;  %v4175_v19 = vpop.f32.mrb[175].mxu1  ;;  %v5959_v9 = vld [vmem:[#allocation25_spill] sm:$0xff]  ;;  %v5960_v41 = vld [vmem:[#allocation26_spill] sm:$0xff]  ;;  %v5963_v22 = vld [vmem:[#allocation28_spill] sm:$0xff] }
 0x238   :  { %v3529_v16 = vpack.c.bf16 %v2621_v39, %v2620_v38  ;;  %v5961_v42 = vmax.f32 %v5959_v9, %v5960_v41  ;;  %v5974_v41 = vld [vmem:[#allocation35_spill] sm:$0xff] }
 0x239   :  { %v2451_v20 = vadd.f32 %v5421_v0, %v2387_v63  ;;  %v2388_v61 = vmax.f32 %v1779_v23, %v2244_v24  ;;  %v5964_v23 = vmax.f32 %v5962_v31, %v5963_v22 }
 0x23a   :  { %3613 = vst [vmem:[%s5757_s3 + $0x68] sm:$0xff] %v3529_v16  }
 0x23b   :  { %v2565_v29 = vmul.f32 0.005, %v2451_v20  ;;  %v2452_v46 = vadd.f32 %v5421_v0, %v2388_v61  ;;  %vm2508_vm0 = vcmp.ge.f32.partialorder %v2451_v20, 0.0 }
 0x23c   :  { %v1640_v32 = vpop.f32.mrb[176].mxu0  ;;  %v2249_v33 = vpop.f32.mrb[176].mxu1 }
 0x23d   :  { %vm2509_vm1 = vcmp.ge.f32.partialorder %v2452_v46, 0.0  ;;  %v2566_v52 = vmul.f32 0.005, %v2452_v46  ;;  %v1780_v62 = vmax.f32 %v5952_v30, %v1640_v32  ;;  %v4058_v50 = vpop.f32.mrb[177].mxu0  ;;  %v4178_v51 = vpop.f32.mrb[177].mxu1  ;;  %v2622_v54 = vsel %vm2508_vm0, %v2451_v20, %v2565_v29 }
 0x23e   :  { %v1643_v48 = vpop.f32.mrb[178].mxu0  ;;  %v2252_v53 = vpop.f32.mrb[178].mxu1 }
 0x23f   :  { %v2623_v7 = vsel %vm2509_vm1, %v2452_v46, %v2566_v52  ;;  %v2389_v12 = vmax.f32 %v1780_v62, %v2249_v33  ;;  %v1781_v18 = vmax.f32 %v5955_v17, %v1643_v48  ;;  %v4059_v60 = vpop.f32.mrb[179].mxu0  ;;  %v4179_v27 = vpop.f32.mrb[179].mxu1  ;;  %v5965_v33 = vld [vmem:[#allocation29_spill] sm:$0xff]  ;;  %v5966_v52 = vld [vmem:[#allocation30_spill] sm:$0xff]  ;;  %v5969_v17 = vld [vmem:[#allocation32_spill] sm:$0xff] }
 0x240   :  { %v3534_v40 = vpack.c.bf16 %v2623_v7, %v2622_v54  ;;  %v5967_v2 = vmax.f32 %v5965_v33, %v5966_v52  ;;  %v5980_v52 = vld [vmem:[#allocation39_spill] sm:$0xff] }
 0x241   :  { %v2453_v44 = vadd.f32 %v5421_v0, %v2389_v12  ;;  %v2390_v37 = vmax.f32 %v1781_v18, %v2252_v53  ;;  %v5970_v18 = vmax.f32 %v5968_v11, %v5969_v17 }
 0x242   :  { %3614 = vst [vmem:[%s5757_s3 + $0x70] sm:$0xff] %v3534_v40  }
 0x243   :  { %v2567_v21 = vmul.f32 0.005, %v2453_v44  ;;  %v2454_v25 = vadd.f32 %v5421_v0, %v2390_v37  ;;  %vm2510_vm2 = vcmp.ge.f32.partialorder %v2453_v44, 0.0 }
 0x244   :  { %v1648_v26 = vpop.f32.mrb[180].mxu0  ;;  %v2257_v1 = vpop.f32.mrb[180].mxu1 }
 0x245   :  { %vm2511_vm3 = vcmp.ge.f32.partialorder %v2454_v25, 0.0  ;;  %v2568_v56 = vmul.f32 0.005, %v2454_v25  ;;  %v1782_v34 = vmax.f32 %v5958_v43, %v1648_v26  ;;  %v4062_v35 = vpop.f32.mrb[181].mxu0  ;;  %v4182_v58 = vpop.f32.mrb[181].mxu1  ;;  %v2624_v3 = vsel %vm2510_vm2, %v2453_v44, %v2567_v21 }
 0x246   :  { %v1651_v59 = vpop.f32.mrb[182].mxu0  ;;  %v2260_v55 = vpop.f32.mrb[182].mxu1 }
 0x247   :  { %v2625_v5 = vsel %vm2511_vm3, %v2454_v25, %v2568_v56  ;;  %v2391_v8 = vmax.f32 %v1782_v34, %v2257_v1  ;;  %v1783_v6 = vmax.f32 %v5961_v42, %v1651_v59  ;;  %v4063_v15 = vpop.f32.mrb[183].mxu0  ;;  %v4183_v4 = vpop.f32.mrb[183].mxu1  ;;  %v5971_v1 = vld [vmem:[#allocation33_spill] sm:$0xff]  ;;  %v5972_v56 = vld [vmem:[#allocation34_spill] sm:$0xff]  ;;  %v5975_v42 = vld [vmem:[#allocation36_spill] sm:$0xff] }
 0x248   :  { %v3539_v14 = vpack.c.bf16 %v2625_v5, %v2624_v3  ;;  %v5973_v57 = vmax.f32 %v5971_v1, %v5972_v56  ;;  %v5986_v56 = vld [vmem:[#allocation43_spill] sm:$0xff] }
 0x249   :  { %v2455_v45 = vadd.f32 %v5421_v0, %v2391_v8  ;;  %v2392_v36 = vmax.f32 %v1783_v6, %v2260_v55  ;;  %v5976_v6 = vmax.f32 %v5974_v41, %v5975_v42 }
 0x24a   :  { %3615 = vst [vmem:[%s5757_s3 + $0x78] sm:$0xff] %v3539_v14  }
 0x24b   :  { %v2569_v24 = vmul.f32 0.005, %v2455_v45  ;;  %v2456_v38 = vadd.f32 %v5421_v0, %v2392_v36  ;;  %vm2512_vm4 = vcmp.ge.f32.partialorder %v2455_v45, 0.0 }
 0x24c   :  { %v1656_v39 = vpop.f32.mrb[184].mxu0  ;;  %v2265_v63 = vpop.f32.mrb[184].mxu1 }
 0x24d   :  { %vm2513_vm5 = vcmp.ge.f32.partialorder %v2456_v38, 0.0  ;;  %v2570_v13 = vmul.f32 0.005, %v2456_v38  ;;  %v1784_v49 = vmax.f32 %v5964_v23, %v1656_v39  ;;  %v4066_v19 = vpop.f32.mrb[185].mxu0  ;;  %v4186_v16 = vpop.f32.mrb[185].mxu1  ;;  %v2626_v29 = vsel %vm2512_vm4, %v2455_v45, %v2569_v24 }
 0x24e   :  { %v1659_v20 = vpop.f32.mrb[186].mxu0  ;;  %v2268_v61 = vpop.f32.mrb[186].mxu1 }
 0x24f   :  { %v2627_v46 = vsel %vm2513_vm5, %v2456_v38, %v2570_v13  ;;  %v2393_v32 = vmax.f32 %v1784_v49, %v2265_v63  ;;  %v1785_v47 = vmax.f32 %v5967_v2, %v1659_v20  ;;  %v4067_v30 = vpop.f32.mrb[187].mxu0  ;;  %v4187_v62 = vpop.f32.mrb[187].mxu1  ;;  %v5977_v63 = vld [vmem:[#allocation37_spill] sm:$0xff]  ;;  %v5978_v13 = vld [vmem:[#allocation38_spill] sm:$0xff]  ;;  %v5981_v2 = vld [vmem:[#allocation40_spill] sm:$0xff] }
 0x250   :  { %v3544_v50 = vpack.c.bf16 %v2627_v46, %v2626_v29  ;;  %v5979_v31 = vmax.f32 %v5977_v63, %v5978_v13  ;;  %v5992_v13 = vld [vmem:[#allocation47_spill] sm:$0xff] }
 0x251   :  { %v2457_v51 = vadd.f32 %v5421_v0, %v2393_v32  ;;  %v2394_v48 = vmax.f32 %v1785_v47, %v2268_v61  ;;  %v5982_v47 = vmax.f32 %v5980_v52, %v5981_v2 }
 0x252   :  { %3616 = vst [vmem:[%s5757_s3 + $0x80] sm:$0xff] %v3544_v50  }
 0x253   :  { %v2571_v53 = vmul.f32 0.005, %v2457_v51  ;;  %v2458_v54 = vadd.f32 %v5421_v0, %v2394_v48  ;;  %vm2514_vm6 = vcmp.ge.f32.partialorder %v2457_v51, 0.0 }
 0x254   :  { %v1664_v7 = vpop.f32.mrb[188].mxu0  ;;  %v2273_v12 = vpop.f32.mrb[188].mxu1 }
 0x255   :  { %vm2515_vm7 = vcmp.ge.f32.partialorder %v2458_v54, 0.0  ;;  %v2572_v10 = vmul.f32 0.005, %v2458_v54  ;;  %v1786_v60 = vmax.f32 %v5970_v18, %v1664_v7  ;;  %v4070_v27 = vpop.f32.mrb[189].mxu0  ;;  %v4190_v40 = vpop.f32.mrb[189].mxu1  ;;  %v2628_v21 = vsel %vm2514_vm6, %v2457_v51, %v2571_v53 }
 0x256   :  { %v1667_v44 = vpop.f32.mrb[190].mxu0  ;;  %v2276_v37 = vpop.f32.mrb[190].mxu1 }
 0x257   :  { %v2629_v25 = vsel %vm2515_vm7, %v2458_v54, %v2572_v10  ;;  %v2395_v26 = vmax.f32 %v1786_v60, %v2273_v12  ;;  %v1787_v28 = vmax.f32 %v5973_v57, %v1667_v44  ;;  %v4071_v43 = vpop.f32.mrb[191].mxu0  ;;  %v4191_v34 = vpop.f32.mrb[191].mxu1  ;;  %v5983_v12 = vld [vmem:[#allocation41_spill] sm:$0xff]  ;;  %v5984_v10 = vld [vmem:[#allocation42_spill] sm:$0xff]  ;;  %v5987_v57 = vld [vmem:[#allocation44_spill] sm:$0xff] }
 0x258   :  { %v3549_v35 = vpack.c.bf16 %v2629_v25, %v2628_v21  ;;  %v5985_v11 = vmax.f32 %v5983_v12, %v5984_v10  ;;  %v5998_v10 = vld [vmem:[#allocation51_spill] sm:$0xff] }
 0x259   :  { %v2459_v58 = vadd.f32 %v5421_v0, %v2395_v26  ;;  %v2396_v59 = vmax.f32 %v1787_v28, %v2276_v37  ;;  %v5988_v28 = vmax.f32 %v5986_v56, %v5987_v57 }
 0x25a   :  { %3617 = vst [vmem:[%s5757_s3 + $0x88] sm:$0xff] %v3549_v35  }
 0x25b   :  { %v2573_v55 = vmul.f32 0.005, %v2459_v58  ;;  %v2460_v3 = vadd.f32 %v5421_v0, %v2396_v59  ;;  %vm2516_vm8 = vcmp.ge.f32.partialorder %v2459_v58, 0.0 }
 0x25c   :  { %v1672_v5 = vpop.f32.mrb[192].mxu0  ;;  %v2281_v8 = vpop.f32.mrb[192].mxu1 }
 0x25d   :  { %vm2517_vm9 = vcmp.ge.f32.partialorder %v2460_v3, 0.0  ;;  %v2574_v9 = vmul.f32 0.005, %v2460_v3  ;;  %v1788_v15 = vmax.f32 %v5976_v6, %v1672_v5  ;;  %v4074_v4 = vpop.f32.mrb[193].mxu0  ;;  %v4194_v14 = vpop.f32.mrb[193].mxu1  ;;  %v2630_v24 = vsel %vm2516_vm8, %v2459_v58, %v2573_v55 }
 0x25e   :  { %v1675_v45 = vpop.f32.mrb[194].mxu0  ;;  %v2284_v36 = vpop.f32.mrb[194].mxu1 }
 0x25f   :  { %v2631_v38 = vsel %vm2517_vm9, %v2460_v3, %v2574_v9  ;;  %v2397_v39 = vmax.f32 %v1788_v15, %v2281_v8  ;;  %v1789_v22 = vmax.f32 %v5979_v31, %v1675_v45  ;;  %v4075_v23 = vpop.f32.mrb[195].mxu0  ;;  %v4195_v49 = vpop.f32.mrb[195].mxu1  ;;  %v5989_v8 = vld [vmem:[#allocation45_spill] sm:$0xff]  ;;  %v5990_v9 = vld [vmem:[#allocation46_spill] sm:$0xff]  ;;  %v5993_v31 = vld [vmem:[#allocation48_spill] sm:$0xff] }
 0x260   :  { %v3554_v19 = vpack.c.bf16 %v2631_v38, %v2630_v24  ;;  %v5991_v41 = vmax.f32 %v5989_v8, %v5990_v9  ;;  %v6004_v9 = vld [vmem:[#allocation55_spill] sm:$0xff] }
 0x261   :  { %v2461_v16 = vadd.f32 %v5421_v0, %v2397_v39  ;;  %v2398_v20 = vmax.f32 %v1789_v22, %v2284_v36  ;;  %v5994_v22 = vmax.f32 %v5992_v13, %v5993_v31 }
 0x262   :  { %3618 = vst [vmem:[%s5757_s3 + $0x90] sm:$0xff] %v3554_v19  }
 0x263   :  { %v2575_v61 = vmul.f32 0.005, %v2461_v16  ;;  %v2462_v29 = vadd.f32 %v5421_v0, %v2398_v20  ;;  %vm2518_vm10 = vcmp.ge.f32.partialorder %v2461_v16, 0.0 }
 0x264   :  { %v1680_v46 = vpop.f32.mrb[196].mxu0  ;;  %v2289_v32 = vpop.f32.mrb[196].mxu1 }
 0x265   :  { %vm2519_vm11 = vcmp.ge.f32.partialorder %v2462_v29, 0.0  ;;  %v2576_v33 = vmul.f32 0.005, %v2462_v29  ;;  %v1790_v30 = vmax.f32 %v5982_v47, %v1680_v46  ;;  %v4078_v62 = vpop.f32.mrb[197].mxu0  ;;  %v4198_v50 = vpop.f32.mrb[197].mxu1  ;;  %v2632_v53 = vsel %vm2518_vm10, %v2461_v16, %v2575_v61 }
 0x266   :  { %v1683_v51 = vpop.f32.mrb[198].mxu0  ;;  %v2292_v48 = vpop.f32.mrb[198].mxu1 }
 0x267   :  { %v2633_v54 = vsel %vm2519_vm11, %v2462_v29, %v2576_v33  ;;  %v2399_v7 = vmax.f32 %v1790_v30, %v2289_v32  ;;  %v1791_v17 = vmax.f32 %v5985_v11, %v1683_v51  ;;  %v4079_v18 = vpop.f32.mrb[199].mxu0  ;;  %v4199_v60 = vpop.f32.mrb[199].mxu1  ;;  %v5995_v32 = vld [vmem:[#allocation49_spill] sm:$0xff]  ;;  %v5996_v33 = vld [vmem:[#allocation50_spill] sm:$0xff]  ;;  %v5999_v11 = vld [vmem:[#allocation52_spill] sm:$0xff] }
 0x268   :  { %v3559_v27 = vpack.c.bf16 %v2633_v54, %v2632_v53  ;;  %v5997_v52 = vmax.f32 %v5995_v32, %v5996_v33  ;;  %v6010_v33 = vld [vmem:[#allocation59_spill] sm:$0xff] }
 0x269   :  { %v2463_v40 = vadd.f32 %v5421_v0, %v2399_v7  ;;  %v2400_v44 = vmax.f32 %v1791_v17, %v2292_v48  ;;  %v6000_v17 = vmax.f32 %v5998_v10, %v5999_v11 }
 0x26a   :  { %3619 = vst [vmem:[%s5757_s3 + $0x98] sm:$0xff] %v3559_v27  }
 0x26b   :  { %v2577_v37 = vmul.f32 0.005, %v2463_v40  ;;  %v2464_v21 = vadd.f32 %v5421_v0, %v2400_v44  ;;  %vm2520_vm12 = vcmp.ge.f32.partialorder %v2463_v40, 0.0 }
 0x26c   :  { %v1688_v25 = vpop.f32.mrb[200].mxu0  ;;  %v2297_v26 = vpop.f32.mrb[200].mxu1 }
 0x26d   :  { %vm2521_vm13 = vcmp.ge.f32.partialorder %v2464_v21, 0.0  ;;  %v2578_v1 = vmul.f32 0.005, %v2464_v21  ;;  %v1792_v43 = vmax.f32 %v5988_v28, %v1688_v25  ;;  %v4082_v34 = vpop.f32.mrb[201].mxu0  ;;  %v4202_v35 = vpop.f32.mrb[201].mxu1  ;;  %v2634_v55 = vsel %vm2520_vm12, %v2463_v40, %v2577_v37 }
 0x26e   :  { %v1691_v58 = vpop.f32.mrb[202].mxu0  ;;  %v2300_v59 = vpop.f32.mrb[202].mxu1  ;;  %v5693_v34 = vld [vmem:[%s5756_s2] ss:$0 sm:$0xff] }
 0x26f   :  { %v2635_v3 = vsel %vm2521_vm13, %v2464_v21, %v2578_v1  ;;  %v2401_v5 = vmax.f32 %v1792_v43, %v2297_v26  ;;  %v1793_v42 = vmax.f32 %v5991_v41, %v1691_v58  ;;  %v4083_v6 = vpop.f32.mrb[203].mxu0  ;;  %v4203_v15 = vpop.f32.mrb[203].mxu1  ;;  %v6001_v26 = vld [vmem:[#allocation53_spill] sm:$0xff]  ;;  %v6002_v1 = vld [vmem:[#allocation54_spill] sm:$0xff]  ;;  %v6005_v41 = vld [vmem:[#allocation56_spill] sm:$0xff] }
 0x270   :  { %v3564_v4 = vpack.c.bf16 %v2635_v3, %v2634_v55  ;;  %v6003_v56 = vmax.f32 %v6001_v26, %v6002_v1  ;;  %v6016_v1 = vld [vmem:[#allocation63_spill] sm:$0xff] }
 0x271   :  { %v2465_v14 = vadd.f32 %v5421_v0, %v2401_v5  ;;  %v2402_v45 = vmax.f32 %v1793_v42, %v2300_v59  ;;  %v6006_v42 = vmax.f32 %v6004_v9, %v6005_v41 }
 0x272   :  { %3620 = vst [vmem:[%s5757_s3 + $0xa0] sm:$0xff] %v3564_v4  }
 0x273   :  { %v2579_v36 = vmul.f32 0.005, %v2465_v14  ;;  %v2466_v24 = vadd.f32 %v5421_v0, %v2402_v45  ;;  %vm2522_vm14 = vcmp.ge.f32.partialorder %v2465_v14, 0.0 }
 0x274   :  { %v1696_v38 = vpop.f32.mrb[204].mxu0  ;;  %v2305_v39 = vpop.f32.mrb[204].mxu1 }
 0x275   :  { %vm2523_vm15 = vcmp.ge.f32.partialorder %v2466_v24, 0.0  ;;  %v2580_v63 = vmul.f32 0.005, %v2466_v24  ;;  %v1794_v23 = vmax.f32 %v5994_v22, %v1696_v38  ;;  %v4086_v49 = vpop.f32.mrb[205].mxu0  ;;  %v4206_v19 = vpop.f32.mrb[205].mxu1  ;;  %v2636_v61 = vsel %vm2522_vm14, %v2465_v14, %v2579_v36 }
 0x276   :  { %v1699_v16 = vpop.f32.mrb[206].mxu0  ;;  %v2308_v20 = vpop.f32.mrb[206].mxu1 }
 0x277   :  { %v2637_v29 = vsel %vm2523_vm15, %v2466_v24, %v2580_v63  ;;  %v2403_v46 = vmax.f32 %v1794_v23, %v2305_v39  ;;  %v1795_v2 = vmax.f32 %v5997_v52, %v1699_v16  ;;  %v4087_v47 = vpop.f32.mrb[207].mxu0  ;;  %v4207_v30 = vpop.f32.mrb[207].mxu1  ;;  %v6007_v39 = vld [vmem:[#allocation57_spill] sm:$0xff]  ;;  %v6008_v63 = vld [vmem:[#allocation58_spill] sm:$0xff]  ;;  %v6011_v52 = vld [vmem:[#allocation60_spill] sm:$0xff] }
 0x278   :  { %v3569_v62 = vpack.c.bf16 %v2637_v29, %v2636_v61  ;;  %v6009_v13 = vmax.f32 %v6007_v39, %v6008_v63  ;;  %v6022_v63 = vld [vmem:[#allocation67_spill] sm:$0xff] }
 0x279   :  { %v2467_v50 = vadd.f32 %v5421_v0, %v2403_v46  ;;  %v2404_v51 = vmax.f32 %v1795_v2, %v2308_v20  ;;  %v6012_v2 = vmax.f32 %v6010_v33, %v6011_v52 }
 0x27a   :  { %3621 = vst [vmem:[%s5757_s3 + $0xa8] sm:$0xff] %v3569_v62  }
 0x27b   :  { %v2581_v48 = vmul.f32 0.005, %v2467_v50  ;;  %v2468_v53 = vadd.f32 %v5421_v0, %v2404_v51  ;;  %vm2524_vm0 = vcmp.ge.f32.partialorder %v2467_v50, 0.0 }
 0x27c   :  { %v1704_v54 = vpop.f32.mrb[208].mxu0  ;;  %v2313_v7 = vpop.f32.mrb[208].mxu1 }
 0x27d   :  { %vm2525_vm1 = vcmp.ge.f32.partialorder %v2468_v53, 0.0  ;;  %v2582_v12 = vmul.f32 0.005, %v2468_v53  ;;  %v1796_v18 = vmax.f32 %v6000_v17, %v1704_v54  ;;  %v4090_v60 = vpop.f32.mrb[209].mxu0  ;;  %v4210_v27 = vpop.f32.mrb[209].mxu1  ;;  %v2638_v37 = vsel %vm2524_vm0, %v2467_v50, %v2581_v48 }
 0x27e   :  { %v1707_v40 = vpop.f32.mrb[210].mxu0  ;;  %v2316_v44 = vpop.f32.mrb[210].mxu1 }
 0x27f   :  { %v2639_v21 = vsel %vm2525_vm1, %v2468_v53, %v2582_v12  ;;  %v2405_v25 = vmax.f32 %v1796_v18, %v2313_v7  ;;  %v1797_v0 = vmax.f32 %v6003_v56, %v1707_v40  ;;  %v4091_v57 = vpop.f32.mrb[211].mxu0  ;;  %v4211_v28 = vpop.f32.mrb[211].mxu1  ;;  %v6013_v7 = vld [vmem:[#allocation61_spill] sm:$0xff]  ;;  %v6014_v12 = vld [vmem:[#allocation62_spill] sm:$0xff]  ;;  %v6017_v56 = vld [vmem:[#allocation64_spill] sm:$0xff] }
 0x280   :  { %v3574_v43 = vpack.c.bf16 %v2639_v21, %v2638_v37  ;;  %v6015_v10 = vmax.f32 %v6013_v7, %v6014_v12  ;;  %v6028_v12 = vld [vmem:[#allocation71_spill] sm:$0xff] }
 0x281   :  { %v2469_v35 = vadd.f32 %v5693_v34, %v2405_v25  ;;  %v2406_v58 = vmax.f32 %v1797_v0, %v2316_v44  ;;  %v6018_v0 = vmax.f32 %v6016_v1, %v6017_v56 }
 0x282   :  { %3622 = vst [vmem:[%s5757_s3 + $0xb0] sm:$0xff] %v3574_v43  }
 0x283   :  { %v2583_v59 = vmul.f32 0.005, %v2469_v35  ;;  %v2470_v55 = vadd.f32 %v5693_v34, %v2406_v58  ;;  %vm2526_vm2 = vcmp.ge.f32.partialorder %v2469_v35, 0.0 }
 0x284   :  { %v1712_v3 = vpop.f32.mrb[212].mxu0  ;;  %v2321_v5 = vpop.f32.mrb[212].mxu1 }
 0x285   :  { %vm2527_vm3 = vcmp.ge.f32.partialorder %v2470_v55, 0.0  ;;  %v2584_v8 = vmul.f32 0.005, %v2470_v55  ;;  %v1798_v6 = vmax.f32 %v6006_v42, %v1712_v3  ;;  %v4094_v15 = vpop.f32.mrb[213].mxu0  ;;  %v4214_v4 = vpop.f32.mrb[213].mxu1  ;;  %v2640_v36 = vsel %vm2526_vm2, %v2469_v35, %v2583_v59 }
 0x286   :  { %v1715_v14 = vpop.f32.mrb[214].mxu0  ;;  %v2324_v45 = vpop.f32.mrb[214].mxu1 }
 0x287   :  { %v2641_v24 = vsel %vm2527_vm3, %v2470_v55, %v2584_v8  ;;  %v2407_v38 = vmax.f32 %v1798_v6, %v2321_v5  ;;  %v1799_v31 = vmax.f32 %v6009_v13, %v1715_v14  ;;  %v4095_v22 = vpop.f32.mrb[215].mxu0  ;;  %v4215_v23 = vpop.f32.mrb[215].mxu1  ;;  %v6019_v5 = vld [vmem:[#allocation65_spill] sm:$0xff]  ;;  %v6020_v8 = vld [vmem:[#allocation66_spill] sm:$0xff]  ;;  %v6023_v13 = vld [vmem:[#allocation68_spill] sm:$0xff] }
 0x288   :  { %v3579_v49 = vpack.c.bf16 %v2641_v24, %v2640_v36  ;;  %v6021_v9 = vmax.f32 %v6019_v5, %v6020_v8 }
 0x289   :  { %v2471_v19 = vadd.f32 %v5693_v34, %v2407_v38  ;;  %v2408_v16 = vmax.f32 %v1799_v31, %v2324_v45  ;;  %v6024_v31 = vmax.f32 %v6022_v63, %v6023_v13 }
 0x28a   :  { %3623 = vst [vmem:[%s5757_s3 + $0xb8] sm:$0xff] %v3579_v49  }
 0x28b   :  { %v2585_v20 = vmul.f32 0.005, %v2471_v19  ;;  %v2472_v61 = vadd.f32 %v5693_v34, %v2408_v16  ;;  %vm2528_vm4 = vcmp.ge.f32.partialorder %v2471_v19, 0.0 }
 0x28c   :  { %v1720_v29 = vpop.f32.mrb[216].mxu0  ;;  %v2329_v46 = vpop.f32.mrb[216].mxu1 }
 0x28d   :  { %vm2529_vm5 = vcmp.ge.f32.partialorder %v2472_v61, 0.0  ;;  %v2586_v32 = vmul.f32 0.005, %v2472_v61  ;;  %v1800_v47 = vmax.f32 %v6012_v2, %v1720_v29  ;;  %v4098_v30 = vpop.f32.mrb[217].mxu0  ;;  %v4218_v62 = vpop.f32.mrb[217].mxu1  ;;  %v2642_v48 = vsel %vm2528_vm4, %v2471_v19, %v2585_v20 }
 0x28e   :  { %v1723_v50 = vpop.f32.mrb[218].mxu0  ;;  %v2332_v51 = vpop.f32.mrb[218].mxu1 }
 0x28f   :  { %v2643_v53 = vsel %vm2529_vm5, %v2472_v61, %v2586_v32  ;;  %v2409_v54 = vmax.f32 %v1800_v47, %v2329_v46  ;;  %v1801_v11 = vmax.f32 %v6015_v10, %v1723_v50  ;;  %v4099_v17 = vpop.f32.mrb[219].mxu0  ;;  %v4219_v18 = vpop.f32.mrb[219].mxu1  ;;  %v6025_v46 = vld [vmem:[#allocation69_spill] sm:$0xff]  ;;  %v6026_v32 = vld [vmem:[#allocation70_spill] sm:$0xff]  ;;  %v6029_v10 = vld [vmem:[#allocation72_spill] sm:$0xff] }
 0x290   :  { %v3584_v60 = vpack.c.bf16 %v2643_v53, %v2642_v48  ;;  %v6027_v33 = vmax.f32 %v6025_v46, %v6026_v32 }
 0x291   :  { %v2473_v27 = vadd.f32 %v5693_v34, %v2409_v54  ;;  %v2410_v40 = vmax.f32 %v1801_v11, %v2332_v51  ;;  %v6030_v11 = vmax.f32 %v6028_v12, %v6029_v10 }
 0x292   :  { %3624 = vst [vmem:[%s5757_s3 + $0xc0] sm:$0xff] %v3584_v60  }
 0x293   :  { %v2587_v44 = vmul.f32 0.005, %v2473_v27  ;;  %v2474_v37 = vadd.f32 %v5693_v34, %v2410_v40  ;;  %vm2530_vm6 = vcmp.ge.f32.partialorder %v2473_v27, 0.0 }
 0x294   :  { %v1728_v21 = vpop.f32.mrb[220].mxu0  ;;  %v2337_v25 = vpop.f32.mrb[220].mxu1 }
 0x295   :  { %vm2531_vm7 = vcmp.ge.f32.partialorder %v2474_v37, 0.0  ;;  %v2588_v26 = vmul.f32 0.005, %v2474_v37  ;;  %v1802_v57 = vmax.f32 %v6018_v0, %v1728_v21  ;;  %v4102_v28 = vpop.f32.mrb[221].mxu0  ;;  %v4222_v43 = vpop.f32.mrb[221].mxu1  ;;  %v2644_v59 = vsel %vm2530_vm6, %v2473_v27, %v2587_v44 }
 0x296   :  { %v1731_v35 = vpop.f32.mrb[222].mxu0  ;;  %v2340_v58 = vpop.f32.mrb[222].mxu1 }
 0x297   :  { %v2645_v55 = vsel %vm2531_vm7, %v2474_v37, %v2588_v26  ;;  %v2411_v3 = vmax.f32 %v1802_v57, %v2337_v25  ;;  %v1803_v41 = vmax.f32 %v6021_v9, %v1731_v35  ;;  %v4103_v42 = vpop.f32.mrb[223].mxu0  ;;  %v4223_v6 = vpop.f32.mrb[223].mxu1 }
 0x298   :  { %v3589_v15 = vpack.c.bf16 %v2645_v55, %v2644_v59 }
 0x299   :  { %v2475_v4 = vadd.f32 %v5693_v34, %v2411_v3  ;;  %v2412_v14 = vmax.f32 %v1803_v41, %v2340_v58 }
 0x29a   :  { %3625 = vst [vmem:[%s5757_s3 + $0xc8] sm:$0xff] %v3589_v15  }
 0x29b   :  { %v2589_v45 = vmul.f32 0.005, %v2475_v4  ;;  %v2476_v36 = vadd.f32 %v5693_v34, %v2412_v14  ;;  %vm2532_vm8 = vcmp.ge.f32.partialorder %v2475_v4, 0.0 }
 0x29c   :  { %v1736_v24 = vpop.f32.mrb[224].mxu0  ;;  %v2345_v38 = vpop.f32.mrb[224].mxu1 }
 0x29d   :  { %vm2533_vm9 = vcmp.ge.f32.partialorder %v2476_v36, 0.0  ;;  %v2590_v39 = vmul.f32 0.005, %v2476_v36  ;;  %v1804_v22 = vmax.f32 %v6024_v31, %v1736_v24  ;;  %v4106_v23 = vpop.f32.mrb[225].mxu0  ;;  %v4226_v49 = vpop.f32.mrb[225].mxu1  ;;  %v2646_v20 = vsel %vm2532_vm8, %v2475_v4, %v2589_v45 }
 0x29e   :  { %v1739_v19 = vpop.f32.mrb[226].mxu0  ;;  %v2348_v16 = vpop.f32.mrb[226].mxu1 }
 0x29f   :  { %v2647_v61 = vsel %vm2533_vm9, %v2476_v36, %v2590_v39  ;;  %v2413_v29 = vmax.f32 %v1804_v22, %v2345_v38  ;;  %v1805_v52 = vmax.f32 %v6027_v33, %v1739_v19  ;;  %v4107_v2 = vpop.f32.mrb[227].mxu0  ;;  %v4227_v47 = vpop.f32.mrb[227].mxu1 }
 0x2a0   :  { %v3594_v30 = vpack.c.bf16 %v2647_v61, %v2646_v20 }
 0x2a1   :  { %v2477_v62 = vadd.f32 %v5693_v34, %v2413_v29  ;;  %v2414_v50 = vmax.f32 %v1805_v52, %v2348_v16 }
 0x2a2   :  { %3626 = vst [vmem:[%s5757_s3 + $0xd0] sm:$0xff] %v3594_v30  }
 0x2a3   :  { %v2591_v51 = vmul.f32 0.005, %v2477_v62  ;;  %v2478_v48 = vadd.f32 %v5693_v34, %v2414_v50  ;;  %vm2534_vm10 = vcmp.ge.f32.partialorder %v2477_v62, 0.0 }
 0x2a4   :  { %v1744_v53 = vpop.f32.mrb[228].mxu0  ;;  %v2353_v54 = vpop.f32.mrb[228].mxu1 }
 0x2a5   :  { %vm2535_vm11 = vcmp.ge.f32.partialorder %v2478_v48, 0.0  ;;  %v2592_v7 = vmul.f32 0.005, %v2478_v48  ;;  %v1806_v17 = vmax.f32 %v6030_v11, %v1744_v53  ;;  %v4110_v18 = vpop.f32.mrb[229].mxu0  ;;  %v4230_v60 = vpop.f32.mrb[229].mxu1  ;;  %v2648_v44 = vsel %vm2534_vm10, %v2477_v62, %v2591_v51 }
 0x2a6   :  { %v1747_v27 = vpop.f32.mrb[230].mxu0  ;;  %v2356_v40 = vpop.f32.mrb[230].mxu1 }
 0x2a7   :  { %v2649_v37 = vsel %vm2535_vm11, %v2478_v48, %v2592_v7  ;;  %v2415_v21 = vmax.f32 %v1806_v17, %v2353_v54  ;;  %v4111_v25 = vpop.f32.mrb[231].mxu0  ;;  %v4231_v26 = vpop.f32.mrb[231].mxu1 }
 0x2a8   :  { %v3599_v1 = vpack.c.bf16 %v2649_v37, %v2648_v44 }
 0x2a9   :  { %v2479_v56 = vadd.f32 %v5693_v34, %v2415_v21 }
 0x2aa   :  { %3627 = vst [vmem:[%s5757_s3 + $0xd8] sm:$0xff] %v3599_v1  }
 0x2ab   :  { %vm2536_vm12 = vcmp.ge.f32.partialorder %v2479_v56, 0.0  ;;  %v2593_v0 = vmul.f32 0.005, %v2479_v56 }
 0x2ad   :  { %v2650_v57 = vsel %vm2536_vm12, %v2479_v56, %v2593_v0 }
 0x2ae   :  { %v3460_v28 = vpack.c.bf16 %v2650_v57, %v2650_v57 }
 0x2b0   :  { %2936 = vst [vmem:[%s5757_s3 + $0xe0] sm:$0xf] %v3460_v28 }

// kernel: teacher33_forward.5
= control target key start
LH: loop header
LB: loop body
LE: loop exit
PB: predicated region body
PF: predicated region fallthrough
CT: control target
= control target key end

     0   :  { %s8396_s1 = inlined_call_operand.vmem [shape: bf16[1024,256], index: 1, kind: input, shape index: {}]   ;;  %s8397_s0 = inlined_call_operand.vmem [shape: bf16[128,1024], index: 0, kind: input, shape index: {}]   ;;  %s8398_s3 = inlined_call_operand.vmem [shape: bf16[16,256,128], index: 3, kind: input, shape index: {}]   ;;  %s8399_s2 = inlined_call_operand.vmem [shape: f32[1,256], index: 2, kind: input, shape index: {}]   ;;  %s8400_s5 = inlined_call_operand.vmem [shape: bf16[128,512], index: 5, kind: input, shape index: {}]   ;;  %s8401_s4 = inlined_call_operand.vmem [shape: f32[1,128], index: 4, kind: input, shape index: {}]   ;;  %s8402_s6 = inlined_call_operand.vmem [shape: f32[1,512], index: 6, kind: input, shape index: {}]   ;;  %s8403_s7 = inlined_call_operand.vmem [shape: f32[8,512], index: 7, kind: output, shape index: {}]  }
   0x1   :  { %v6275_v0 = vld [vmem:[%s8396_s1 + $0x4] ss:$8 sps:$4 sm:$0xff]   ;;  %v6277_v1 = vld [vmem:[%s8396_s1] ss:$8 sps:$4 sm:$0xff]   ;;  %v6278_v2 = vld [vmem:[%s8396_s1 + $0x14] ss:$8 sps:$4 sm:$0xff]  }
   0x2   :  { %1191 = vmatprep.subr.bf16.mxu0 %v6275_v0  ;;  %v6280_v3 = vld [vmem:[%s8396_s1 + $0x10] ss:$8 sps:$4 sm:$0xff]   ;;  %v6281_v4 = vld [vmem:[%s8396_s1 + $0x24] ss:$8 sps:$4 sm:$0xff]   ;;  %v6283_v5 = vld [vmem:[%s8396_s1 + $0x20] ss:$8 sps:$4 sm:$0xff]  }
   0x3   :  { %1192 = vmatpush1.bf16.msra.mxu0 %v6277_v1  ;;  %v6284_v6 = vld [vmem:[%s8396_s1 + $0x34] ss:$8 sps:$4 sm:$0xff]   ;;  %v6286_v7 = vld [vmem:[%s8396_s1 + $0x30] ss:$8 sps:$4 sm:$0xff]   ;;  %v6287_v8 = vld [vmem:[%s8396_s1 + $0x44] ss:$8 sps:$4 sm:$0xff]  }
   0x4   :  { %1193 = vmatprep.subr.bf16.mxu0 %v6278_v2  ;;  %v6289_v9 = vld [vmem:[%s8396_s1 + $0x40] ss:$8 sps:$4 sm:$0xff]   ;;  %v6290_v10 = vld [vmem:[%s8396_s1 + $0x54] ss:$8 sps:$4 sm:$0xff]   ;;  %v6292_v11 = vld [vmem:[%s8396_s1 + $0x50] ss:$8 sps:$4 sm:$0xff]  }
   0x5   :  { %v6293_v12 = vld [vmem:[%s8396_s1 + $0x64] ss:$8 sps:$4 sm:$0xff]   ;;  %v6295_v16 = vld [vmem:[%s8396_s1 + $0x60] ss:$8 sps:$4 sm:$0xff]   ;;  %v6296_v17 = vld [vmem:[%s8396_s1 + $0x74] ss:$8 sps:$4 sm:$0xff]  }
   0x6   :  { %v27_v13 = vld [vmem:[%s8397_s0] sm:$0xff]  ;;  %v6298_v18 = vld [vmem:[%s8396_s1 + $0x70] ss:$8 sps:$4 sm:$0xff]   ;;  %v6302_v21 = vld [vmem:[%s8396_s1 + $0x94] ss:$8 sps:$4 sm:$0xff]  }
   0x7   :  { %1194 = vmatpush1.bf16.msra.mxu0 %v6280_v3  ;;  %v31_v14 = vld [vmem:[%s8397_s0 + $0x20] sm:$0xff]  ;;  %v6304_v22 = vld [vmem:[%s8396_s1 + $0x90] ss:$8 sps:$4 sm:$0xff]   ;;  %v6308_v25 = vld [vmem:[%s8396_s1 + $0xb4] ss:$8 sps:$4 sm:$0xff]  }
   0x8   :  { %1195 = vmatprep.subr.bf16.mxu0 %v6281_v4  ;;  %v4834_v15 = vcombine.high %v27_v13, %v31_v14  ;;  %v6299_v19 = vld [vmem:[%s8396_s1 + $0x84] ss:$8 sps:$4 sm:$0xff]   ;;  %v6301_v20 = vld [vmem:[%s8396_s1 + $0x80] ss:$8 sps:$4 sm:$0xff]   ;;  %v6310_v26 = vld [vmem:[%s8396_s1 + $0xb0] ss:$8 sps:$4 sm:$0xff]   ;;  %v4833_v38 = vcombine.low %v27_v13, %v31_v14 }
   0x9   :  { %v6305_v23 = vld [vmem:[%s8396_s1 + $0xa4] ss:$8 sps:$4 sm:$0xff]   ;;  %v6307_v24 = vld [vmem:[%s8396_s1 + $0xa0] ss:$8 sps:$4 sm:$0xff]   ;;  %v6314_v29 = vld [vmem:[%s8396_s1 + $0xd4] ss:$8 sps:$4 sm:$0xff]  }
   0xa   :  { %1223 = vmatprep.mubr.bf16.mxu0 %v4834_v15  ;;  %v6311_v27 = vld [vmem:[%s8396_s1 + $0xc4] ss:$8 sps:$4 sm:$0xff]   ;;  %v6313_v28 = vld [vmem:[%s8396_s1 + $0xc0] ss:$8 sps:$4 sm:$0xff]   ;;  %v6316_v30 = vld [vmem:[%s8396_s1 + $0xd0] ss:$8 sps:$4 sm:$0xff]  }
   0xb   :  { %1196 = vmatpush1.bf16.msra.mxu0 %v6283_v5  ;;  %v6317_v31 = vld [vmem:[%s8396_s1 + $0xe4] ss:$8 sps:$4 sm:$0xff]   ;;  %v6319_v32 = vld [vmem:[%s8396_s1 + $0xe0] ss:$8 sps:$4 sm:$0xff]   ;;  %v6320_v33 = vld [vmem:[%s8396_s1 + $0xf4] ss:$8 sps:$4 sm:$0xff]  }
   0xc   :  { %1197 = vmatprep.subr.bf16.mxu0 %v6284_v6  ;;  %v6322_v34 = vld [vmem:[%s8396_s1 + $0xf0] ss:$8 sps:$4 sm:$0xff]   ;;  %v6325_v35 = vld [vmem:[%s8396_s1 + $0x104] ss:$8 sps:$4 sm:$0xff]   ;;  %v6323_v39 = vld [vmem:[%s8396_s1 + $0x100] ss:$8 sps:$4 sm:$0xff]  }
   0xd   :  { %v35_v36 = vld [vmem:[%s8397_s0 + $0x40] sm:$0xff]  ;;  %v6328_v41 = vld [vmem:[%s8396_s1 + $0x114] ss:$8 sps:$4 sm:$0xff]   ;;  %v6326_v42 = vld [vmem:[%s8396_s1 + $0x110] ss:$8 sps:$4 sm:$0xff]  }
   0xe   :  { %v39_v37 = vld [vmem:[%s8397_s0 + $0x60] sm:$0xff]  ;;  %v6334_v49 = vld [vmem:[%s8396_s1 + $0x134] ss:$8 sps:$4 sm:$0xff]   ;;  %v6332_v50 = vld [vmem:[%s8396_s1 + $0x130] ss:$8 sps:$4 sm:$0xff]  }
   0xf   :  { %1198 = vmatpush1.bf16.msra.mxu0 %v6286_v7  ;;  %v4842_v40 = vcombine.high %v35_v36, %v39_v37  ;;  %v6331_v43 = vld [vmem:[%s8396_s1 + $0x124] ss:$8 sps:$4 sm:$0xff]   ;;  %v4841_v46 = vcombine.low %v35_v36, %v39_v37  ;;  %v6329_v47 = vld [vmem:[%s8396_s1 + $0x120] ss:$8 sps:$4 sm:$0xff]   ;;  %v6340_v57 = vld [vmem:[%s8396_s1 + $0x154] ss:$8 sps:$4 sm:$0xff]  }
  0x10   :  { %1199 = vmatprep.subr.bf16.mxu0 %v6287_v8  ;;  %v43_v44 = vld [vmem:[%s8397_s0 + $0x80] sm:$0xff]  ;;  %v6338_v58 = vld [vmem:[%s8396_s1 + $0x150] ss:$8 sps:$4 sm:$0xff]   ;;  %v6346_v1 = vld [vmem:[%s8396_s1 + $0x174] ss:$8 sps:$4 sm:$0xff]  }
  0x11   :  { %v47_v45 = vld [vmem:[%s8397_s0 + $0xa0] sm:$0xff]  ;;  %v6344_v2 = vld [vmem:[%s8396_s1 + $0x170] ss:$8 sps:$4 sm:$0xff]   ;;  %v36_v36 = vld [vmem:[%s8397_s0 + $0x48] sm:$0xff] }
  0x12   :  { %v4850_v48 = vcombine.high %v43_v44, %v47_v45  ;;  %v6337_v51 = vld [vmem:[%s8396_s1 + $0x144] ss:$8 sps:$4 sm:$0xff]   ;;  %v4849_v54 = vcombine.low %v43_v44, %v47_v45  ;;  %v6335_v55 = vld [vmem:[%s8396_s1 + $0x140] ss:$8 sps:$4 sm:$0xff]  }
  0x13   :  { %1200 = vmatpush1.bf16.msra.mxu0 %v6289_v9  ;;  %v51_v52 = vld [vmem:[%s8397_s0 + $0xc0] sm:$0xff]  ;;  %v6352_v9 = vld [vmem:[%s8396_s1 + $0x194] ss:$8 sps:$4 sm:$0xff]   ;;  %v40_v37 = vld [vmem:[%s8397_s0 + $0x68] sm:$0xff] }
  0x14   :  { %1201 = vmatprep.subr.bf16.mxu0 %v6290_v10  ;;  %v55_v53 = vld [vmem:[%s8397_s0 + $0xe0] sm:$0xff]  ;;  %v6350_v10 = vld [vmem:[%s8396_s1 + $0x190] ss:$8 sps:$4 sm:$0xff]   ;;  %v44_v44 = vld [vmem:[%s8397_s0 + $0x88] sm:$0xff] }
  0x15   :  { %v4858_v56 = vcombine.high %v51_v52, %v55_v53  ;;  %v6343_v59 = vld [vmem:[%s8396_s1 + $0x164] ss:$8 sps:$4 sm:$0xff]   ;;  %v4857_v62 = vcombine.low %v51_v52, %v55_v53  ;;  %v6341_v63 = vld [vmem:[%s8396_s1 + $0x160] ss:$8 sps:$4 sm:$0xff]  }
  0x16   :  { %v59_v60 = vld [vmem:[%s8397_s0 + $0x100] sm:$0xff]  ;;  %v48_v45 = vld [vmem:[%s8397_s0 + $0xa8] sm:$0xff] }
  0x17   :  { %1202 = vmatpush1.bf16.msra.mxu0 %v6292_v11  ;;  %v63_v61 = vld [vmem:[%s8397_s0 + $0x120] sm:$0xff]  ;;  %v52_v52 = vld [vmem:[%s8397_s0 + $0xc8] sm:$0xff] }
  0x18   :  { %1203 = vmatprep.subr.bf16.mxu0 %v6293_v12  ;;  %v4866_v0 = vcombine.high %v59_v60, %v63_v61  ;;  %v6349_v3 = vld [vmem:[%s8396_s1 + $0x184] ss:$8 sps:$4 sm:$0xff]   ;;  %v4865_v6 = vcombine.low %v59_v60, %v63_v61  ;;  %v6347_v7 = vld [vmem:[%s8396_s1 + $0x180] ss:$8 sps:$4 sm:$0xff]  }
  0x19   :  { %v67_v4 = vld [vmem:[%s8397_s0 + $0x140] sm:$0xff]  ;;  %v56_v53 = vld [vmem:[%s8397_s0 + $0xe8] sm:$0xff] }
  0x1a   :  { %v71_v5 = vld [vmem:[%s8397_s0 + $0x160] sm:$0xff]  ;;  %v60_v60 = vld [vmem:[%s8397_s0 + $0x108] sm:$0xff] }
  0x1b   :  { %1204 = vmatpush1.bf16.msra.mxu0 %v6295_v16  ;;  %v4874_v8 = vcombine.high %v67_v4, %v71_v5  ;;  %v6355_v11 = vld [vmem:[%s8396_s1 + $0x1a4] ss:$8 sps:$4 sm:$0xff]   ;;  %v4873_v14 = vcombine.low %v67_v4, %v71_v5  ;;  %v6353_v15 = vld [vmem:[%s8396_s1 + $0x1a0] ss:$8 sps:$4 sm:$0xff]  }
  0x1c   :  { %1205 = vmatprep.subr.bf16.mxu0 %v6296_v17  ;;  %v75_v12 = vld [vmem:[%s8397_s0 + $0x180] sm:$0xff]  ;;  %v6358_v17 = vld [vmem:[%s8396_s1 + $0x1b4] ss:$8 sps:$4 sm:$0xff]   ;;  %v64_v61 = vld [vmem:[%s8397_s0 + $0x128] sm:$0xff] }
  0x1d   :  { %v79_v13 = vld [vmem:[%s8397_s0 + $0x1a0] sm:$0xff]  ;;  %v68_v4 = vld [vmem:[%s8397_s0 + $0x148] sm:$0xff] }
  0x1e   :  { %v4882_v16 = vcombine.high %v75_v12, %v79_v13  ;;  %v72_v5 = vld [vmem:[%s8397_s0 + $0x168] sm:$0xff] }
  0x1f   :  { %1206 = vmatpush1.bf16.msra.mxu0 %v6298_v18  ;;  %v6356_v18 = vld [vmem:[%s8396_s1 + $0x1b0] ss:$8 sps:$4 sm:$0xff]  }
  0x20   :  { %1207 = vmatprep.subr.bf16.mxu0 %v6299_v19  ;;  %v6361_v19 = vld [vmem:[%s8396_s1 + $0x1c4] ss:$8 sps:$4 sm:$0xff]  }
  0x23   :  { %1208 = vmatpush1.bf16.msra.mxu0 %v6301_v20  ;;  %v83_v20 = vld [vmem:[%s8397_s0 + $0x1c0] sm:$0xff] }
  0x24   :  { %1209 = vmatprep.subr.bf16.mxu0 %v6302_v21  ;;  %v87_v21 = vld [vmem:[%s8397_s0 + $0x1e0] sm:$0xff] }
  0x27   :  { %1210 = vmatpush1.bf16.msra.mxu0 %v6304_v22  ;;  %v4881_v22 = vcombine.low %v75_v12, %v79_v13  ;;  %v76_v12 = vld [vmem:[%s8397_s0 + $0x188] sm:$0xff] }
  0x28   :  { %1211 = vmatprep.subr.bf16.mxu0 %v6305_v23  ;;  %v6359_v23 = vld [vmem:[%s8396_s1 + $0x1c0] ss:$8 sps:$4 sm:$0xff]  }
  0x29   :  { %v80_v13 = vld [vmem:[%s8397_s0 + $0x1a8] sm:$0xff] }
  0x2b   :  { %1212 = vmatpush1.bf16.msra.mxu0 %v6307_v24  ;;  %v4890_v24 = vcombine.high %v83_v20, %v87_v21 }
  0x2c   :  { %1213 = vmatprep.subr.bf16.mxu0 %v6308_v25  ;;  %v6364_v25 = vld [vmem:[%s8396_s1 + $0x1d4] ss:$8 sps:$4 sm:$0xff]  }
  0x2f   :  { %1214 = vmatpush1.bf16.msra.mxu0 %v6310_v26  ;;  %v6362_v26 = vld [vmem:[%s8396_s1 + $0x1d0] ss:$8 sps:$4 sm:$0xff]  }
  0x30   :  { %1215 = vmatprep.subr.bf16.mxu0 %v6311_v27  ;;  %v6367_v27 = vld [vmem:[%s8396_s1 + $0x1e4] ss:$8 sps:$4 sm:$0xff]  }
  0x33   :  { %1216 = vmatpush1.bf16.msra.mxu0 %v6313_v28  ;;  %v28_v28 = vld [vmem:[%s8397_s0 + $0x8] sm:$0xff] }
  0x34   :  { %1217 = vmatprep.subr.bf16.mxu0 %v6314_v29  ;;  %v32_v29 = vld [vmem:[%s8397_s0 + $0x28] sm:$0xff] }
  0x37   :  { %1218 = vmatpush1.bf16.msra.mxu0 %v6316_v30  ;;  %v4889_v30 = vcombine.low %v83_v20, %v87_v21  ;;  %v84_v20 = vld [vmem:[%s8397_s0 + $0x1c8] sm:$0xff] }
  0x38   :  { %1219 = vmatprep.subr.bf16.mxu0 %v6317_v31  ;;  %v6365_v31 = vld [vmem:[%s8396_s1 + $0x1e0] ss:$8 sps:$4 sm:$0xff]  }
  0x39   :  { %v88_v21 = vld [vmem:[%s8397_s0 + $0x1e8] sm:$0xff] }
  0x3b   :  { %1220 = vmatpush1.bf16.msra.mxu0 %v6319_v32  ;;  %v4836_v32 = vcombine.high %v28_v28, %v32_v29 }
  0x3c   :  { %1221 = vmatprep.subr.bf16.mxu0 %v6320_v33  ;;  %v6370_v33 = vld [vmem:[%s8396_s1 + $0x1f4] ss:$8 sps:$4 sm:$0xff]  }
  0x3f   :  { %1222 = vmatpush1.bf16.msra.mxu0 %v6322_v34  ;;  %v6368_v34 = vld [vmem:[%s8396_s1 + $0x1f0] ss:$8 sps:$4 sm:$0xff]  }
  0x40   :  { %1304 = vmatprep.subr.bf16.mxu0 %v6325_v35  ;;  %v6373_v35 = vld [vmem:[%s8396_s1 + $0x204] ss:$8 sps:$4 sm:$0xff]  }
  0x42   :  { %1224 = vmatmul.mubr.bf16.vlgmr.msra.gmra.mrb[0].mxu0 %v4833_v38  ;;  %v4835_v38 = vcombine.low %v28_v28, %v32_v29  ;;  %v29_v28 = vld [vmem:[%s8397_s0 + $0x10] sm:$0xff] }
  0x43   :  { %1305 = vmatpush1.bf16.msra.mxu0 %v6323_v39  ;;  %1233 = vmatprep.mubr.bf16.mxu0 %v4842_v40  ;;  %v6371_v39 = vld [vmem:[%s8396_s1 + $0x200] ss:$8 sps:$4 sm:$0xff]   ;;  %v4844_v40 = vcombine.high %v36_v36, %v40_v37  ;;  %v33_v29 = vld [vmem:[%s8397_s0 + $0x30] sm:$0xff] }
  0x44   :  { %1306 = vmatprep.subr.bf16.mxu0 %v6328_v41  ;;  %v6376_v41 = vld [vmem:[%s8396_s1 + $0x214] ss:$8 sps:$4 sm:$0xff]  }
  0x47   :  { %1307 = vmatpush1.bf16.msra.mxu0 %v6326_v42  ;;  %v6374_v42 = vld [vmem:[%s8396_s1 + $0x210] ss:$8 sps:$4 sm:$0xff]  }
  0x48   :  { %1308 = vmatprep.subr.bf16.mxu0 %v6331_v43  ;;  %v6379_v43 = vld [vmem:[%s8396_s1 + $0x224] ss:$8 sps:$4 sm:$0xff]  }
  0x4a   :  { %1234 = vmatmul.mubr.bf16.gmra.mrb[4].mxu0 %v4841_v46  ;;  %v4843_v46 = vcombine.low %v36_v36, %v40_v37  ;;  %v37_v36 = vld [vmem:[%s8397_s0 + $0x50] sm:$0xff] }
  0x4b   :  { %1309 = vmatpush1.bf16.msra.mxu0 %v6329_v47  ;;  %1243 = vmatprep.mubr.bf16.mxu0 %v4850_v48  ;;  %v6377_v47 = vld [vmem:[%s8396_s1 + $0x220] ss:$8 sps:$4 sm:$0xff]   ;;  %v4852_v48 = vcombine.high %v44_v44, %v48_v45  ;;  %v41_v37 = vld [vmem:[%s8397_s0 + $0x70] sm:$0xff] }
  0x4c   :  { %1310 = vmatprep.subr.bf16.mxu0 %v6334_v49  ;;  %v6382_v49 = vld [vmem:[%s8396_s1 + $0x234] ss:$8 sps:$4 sm:$0xff]  }
  0x4f   :  { %1311 = vmatpush1.bf16.msra.mxu0 %v6332_v50  ;;  %v6380_v50 = vld [vmem:[%s8396_s1 + $0x230] ss:$8 sps:$4 sm:$0xff]  }
  0x50   :  { %1312 = vmatprep.subr.bf16.mxu0 %v6337_v51  ;;  %v6385_v51 = vld [vmem:[%s8396_s1 + $0x244] ss:$8 sps:$4 sm:$0xff]  }
  0x52   :  { %1244 = vmatmul.mubr.bf16.gmra.mrb[8].mxu0 %v4849_v54  ;;  %v4851_v54 = vcombine.low %v44_v44, %v48_v45  ;;  %v6424_v44 = vld [vmem:[%s8396_s1 + $0x314] ss:$8 sps:$4 sm:$0xff]   ;;  %v4846_v45 = vcombine.high %v37_v36, %v41_v37 }
  0x53   :  { %1313 = vmatpush1.bf16.msra.mxu0 %v6335_v55  ;;  %1253 = vmatprep.mubr.bf16.mxu0 %v4858_v56  ;;  %v6383_v55 = vld [vmem:[%s8396_s1 + $0x240] ss:$8 sps:$4 sm:$0xff]   ;;  %v4860_v56 = vcombine.high %v52_v52, %v56_v53 }
  0x54   :  { %1314 = vmatprep.subr.bf16.mxu0 %v6340_v57  ;;  %v6388_v57 = vld [vmem:[%s8396_s1 + $0x254] ss:$8 sps:$4 sm:$0xff]  }
  0x57   :  { %1315 = vmatpush1.bf16.msra.mxu0 %v6338_v58  ;;  %v6386_v58 = vld [vmem:[%s8396_s1 + $0x250] ss:$8 sps:$4 sm:$0xff]  }
  0x58   :  { %1316 = vmatprep.subr.bf16.mxu0 %v6343_v59  ;;  %v6391_v59 = vld [vmem:[%s8396_s1 + $0x264] ss:$8 sps:$4 sm:$0xff]  }
  0x5a   :  { %1254 = vmatmul.mubr.bf16.gmra.mrb[12].mxu0 %v4857_v62  ;;  %v4859_v62 = vcombine.low %v52_v52, %v56_v53  ;;  %v49_v52 = vld [vmem:[%s8397_s0 + $0xb0] sm:$0xff]  ;;  %v6425_v53 = vld [vmem:[%s8396_s1 + $0x320] ss:$8 sps:$4 sm:$0xff]  }
  0x5b   :  { %1317 = vmatpush1.bf16.msra.mxu0 %v6341_v63  ;;  %1263 = vmatprep.mubr.bf16.mxu0 %v4866_v0  ;;  %v6389_v63 = vld [vmem:[%s8396_s1 + $0x260] ss:$8 sps:$4 sm:$0xff]   ;;  %v4868_v0 = vcombine.high %v60_v60, %v64_v61 }
  0x5c   :  { %1318 = vmatprep.subr.bf16.mxu0 %v6346_v1  ;;  %v6394_v1 = vld [vmem:[%s8396_s1 + $0x274] ss:$8 sps:$4 sm:$0xff]  }
  0x5f   :  { %1319 = vmatpush1.bf16.msra.mxu0 %v6344_v2  ;;  %v6392_v2 = vld [vmem:[%s8396_s1 + $0x270] ss:$8 sps:$4 sm:$0xff]  }
  0x60   :  { %1320 = vmatprep.subr.bf16.mxu0 %v6349_v3  ;;  %v6397_v3 = vld [vmem:[%s8396_s1 + $0x284] ss:$8 sps:$4 sm:$0xff]  }
  0x62   :  { %1264 = vmatmul.mubr.bf16.gmra.mrb[16].mxu0 %v4865_v6  ;;  %v4867_v6 = vcombine.low %v60_v60, %v64_v61  ;;  %v6428_v60 = vld [vmem:[%s8396_s1 + $0x330] ss:$8 sps:$4 sm:$0xff]   ;;  %v6433_v61 = vld [vmem:[%s8396_s1 + $0x344] ss:$8 sps:$4 sm:$0xff]  }
  0x63   :  { %1321 = vmatpush1.bf16.msra.mxu0 %v6347_v7  ;;  %1273 = vmatprep.mubr.bf16.mxu0 %v4874_v8  ;;  %v6395_v7 = vld [vmem:[%s8396_s1 + $0x280] ss:$8 sps:$4 sm:$0xff]   ;;  %v4876_v8 = vcombine.high %v68_v4, %v72_v5 }
  0x64   :  { %1322 = vmatprep.subr.bf16.mxu0 %v6352_v9  ;;  %v6400_v9 = vld [vmem:[%s8396_s1 + $0x294] ss:$8 sps:$4 sm:$0xff]  }
  0x67   :  { %1323 = vmatpush1.bf16.msra.mxu0 %v6350_v10  ;;  %v6398_v10 = vld [vmem:[%s8396_s1 + $0x290] ss:$8 sps:$4 sm:$0xff]  }
  0x68   :  { %1324 = vmatprep.subr.bf16.mxu0 %v6355_v11  ;;  %v6403_v11 = vld [vmem:[%s8396_s1 + $0x2a4] ss:$8 sps:$4 sm:$0xff]  }
  0x6a   :  { %1274 = vmatmul.mubr.bf16.gmra.mrb[20].mxu0 %v4873_v14  ;;  %v4875_v14 = vcombine.low %v68_v4, %v72_v5  ;;  %v6434_v4 = vld [vmem:[%s8396_s1 + $0x350] ss:$8 sps:$4 sm:$0xff]   ;;  %v6439_v5 = vld [vmem:[%s8396_s1 + $0x364] ss:$8 sps:$4 sm:$0xff]  }
  0x6b   :  { %1325 = vmatpush1.bf16.msra.mxu0 %v6353_v15  ;;  %1283 = vmatprep.mubr.bf16.mxu0 %v4882_v16  ;;  %v6401_v15 = vld [vmem:[%s8396_s1 + $0x2a0] ss:$8 sps:$4 sm:$0xff]   ;;  %v4884_v16 = vcombine.high %v76_v12, %v80_v13 }
  0x6c   :  { %1326 = vmatprep.subr.bf16.mxu0 %v6358_v17  ;;  %v6406_v17 = vld [vmem:[%s8396_s1 + $0x2b4] ss:$8 sps:$4 sm:$0xff]  }
  0x6f   :  { %1327 = vmatpush1.bf16.msra.mxu0 %v6356_v18  ;;  %v6404_v18 = vld [vmem:[%s8396_s1 + $0x2b0] ss:$8 sps:$4 sm:$0xff]  }
  0x70   :  { %1328 = vmatprep.subr.bf16.mxu0 %v6361_v19  ;;  %v6409_v19 = vld [vmem:[%s8396_s1 + $0x2c4] ss:$8 sps:$4 sm:$0xff]  }
  0x72   :  { %1284 = vmatmul.mubr.bf16.gmra.mrb[24].mxu0 %v4881_v22  ;;  %v4883_v22 = vcombine.low %v76_v12, %v80_v13  ;;  %v6440_v12 = vld [vmem:[%s8396_s1 + $0x370] ss:$8 sps:$4 sm:$0xff]   ;;  %v6445_v13 = vld [vmem:[%s8396_s1 + $0x384] ss:$8 sps:$4 sm:$0xff]  }
  0x73   :  { %1329 = vmatpush1.bf16.msra.mxu0 %v6359_v23  ;;  %1293 = vmatprep.mubr.bf16.mxu0 %v4890_v24  ;;  %v6407_v23 = vld [vmem:[%s8396_s1 + $0x2c0] ss:$8 sps:$4 sm:$0xff]   ;;  %v4892_v24 = vcombine.high %v84_v20, %v88_v21 }
  0x74   :  { %1330 = vmatprep.subr.bf16.mxu0 %v6364_v25  ;;  %v6412_v25 = vld [vmem:[%s8396_s1 + $0x2d4] ss:$8 sps:$4 sm:$0xff]  }
  0x77   :  { %1331 = vmatpush1.bf16.msra.mxu0 %v6362_v26  ;;  %v6410_v26 = vld [vmem:[%s8396_s1 + $0x2d0] ss:$8 sps:$4 sm:$0xff]  }
  0x78   :  { %1332 = vmatprep.subr.bf16.mxu0 %v6367_v27  ;;  %v6415_v27 = vld [vmem:[%s8396_s1 + $0x2e4] ss:$8 sps:$4 sm:$0xff]  }
  0x7a   :  { %1294 = vmatmul.mubr.bf16.gmra.mrb[28].mxu0 %v4889_v30  ;;  %v4891_v30 = vcombine.low %v84_v20, %v88_v21  ;;  %v6446_v20 = vld [vmem:[%s8396_s1 + $0x390] ss:$8 sps:$4 sm:$0xff]   ;;  %v6451_v21 = vld [vmem:[%s8396_s1 + $0x3a4] ss:$8 sps:$4 sm:$0xff]  }
  0x7b   :  { %1333 = vmatpush1.bf16.msra.mxu0 %v6365_v31  ;;  %1336 = vmatprep.mubr.bf16.mxu0 %v4836_v32  ;;  %v6413_v31 = vld [vmem:[%s8396_s1 + $0x2e0] ss:$8 sps:$4 sm:$0xff]   ;;  %v4838_v32 = vcombine.high %v29_v28, %v33_v29 }
  0x7c   :  { %1334 = vmatprep.subr.bf16.mxu0 %v6370_v33  ;;  %v6418_v33 = vld [vmem:[%s8396_s1 + $0x2f4] ss:$8 sps:$4 sm:$0xff]  }
  0x7f   :  { %1335 = vmatpush1.bf16.msra.mxu0 %v6368_v34  ;;  %v6416_v34 = vld [vmem:[%s8396_s1 + $0x2f0] ss:$8 sps:$4 sm:$0xff]  }
  0x80   :  { %1417 = vmatprep.subr.bf16.mxu0 %v6373_v35  ;;  %v6421_v35 = vld [vmem:[%s8396_s1 + $0x304] ss:$8 sps:$4 sm:$0xff]  }
  0x82   :  { %1337 = vmatmul.mubr.bf16.vlgmr.msra.gmra.mrb[0].mxu0 %v4835_v38  ;;  %v6467_v38 = vld [vmem:[%s8398_s3 + $0xc0] sm:$0xff]  }
  0x83   :  { %1418 = vmatpush1.bf16.msra.mxu0 %v6371_v39  ;;  %1346 = vmatprep.mubr.bf16.mxu0 %v4844_v40  ;;  %v6468_v39 = vld [vmem:[%s8398_s3 + $0x80] sm:$0xff]  }
  0x84   :  { %1419 = vmatprep.subr.bf16.mxu0 %v6376_v41  ;;  %v6419_v40 = vld [vmem:[%s8396_s1 + $0x300] ss:$8 sps:$4 sm:$0xff]   ;;  %5794 = vmatprep.subr.bf16.mxu1 %v6467_v38  ;;  %v30_v38 = vld [vmem:[%s8397_s0 + $0x18] sm:$0xff] }
  0x85   :  { %v6469_v41 = vld [vmem:[%s8398_s3 + $0xc8] sm:$0xff]   ;;  %5795 = vmatpush3.bf16.msra.mxu1 %v6468_v39  ;;  %v34_v39 = vld [vmem:[%s8397_s0 + $0x38] sm:$0xff] }
  0x86   :  { %5796 = vmatprep.subr.bf16.mxu1 %v6469_v41 }
  0x87   :  { %1420 = vmatpush1.bf16.msra.mxu0 %v6374_v42  ;;  %v4837_v42 = vcombine.low %v29_v28, %v33_v29  ;;  %v6452_v28 = vld [vmem:[%s8396_s1 + $0x3b0] ss:$8 sps:$4 sm:$0xff]   ;;  %v6457_v29 = vld [vmem:[%s8396_s1 + $0x3c4] ss:$8 sps:$4 sm:$0xff]  }
  0x88   :  { %1421 = vmatprep.subr.bf16.mxu0 %v6379_v43  ;;  %v6470_v43 = vld [vmem:[%s8398_s3 + $0x88] sm:$0xff]  }
  0x89   :  { %5797 = vmatpush3.bf16.msra.mxu1 %v6470_v43  ;;  %v4840_v43 = vcombine.high %v30_v38, %v34_v39 }
  0x8a   :  { %1347 = vmatmul.mubr.bf16.gmra.mrb[4].mxu0 %v4843_v46  ;;  %v6471_v46 = vld [vmem:[%s8398_s3 + $0xd0] sm:$0xff]  }
  0x8b   :  { %1422 = vmatpush1.bf16.msra.mxu0 %v6377_v47  ;;  %1356 = vmatprep.mubr.bf16.mxu0 %v4852_v48  ;;  %v6422_v47 = vld [vmem:[%s8396_s1 + $0x310] ss:$8 sps:$4 sm:$0xff]   ;;  %v6427_v48 = vld [vmem:[%s8396_s1 + $0x324] ss:$8 sps:$4 sm:$0xff]  }
  0x8c   :  { %1423 = vmatprep.subr.bf16.mxu0 %v6382_v49  ;;  %v45_v49 = vld [vmem:[%s8397_s0 + $0x90] sm:$0xff]  ;;  %5798 = vmatprep.subr.bf16.mxu1 %v6471_v46  ;;  %v42_v46 = vld [vmem:[%s8397_s0 + $0x78] sm:$0xff] }
  0x8f   :  { %1424 = vmatpush1.bf16.msra.mxu0 %v6380_v50  ;;  %v6472_v50 = vld [vmem:[%s8398_s3 + $0x90] sm:$0xff]  }
  0x90   :  { %1425 = vmatprep.subr.bf16.mxu0 %v6385_v51  ;;  %v6473_v51 = vld [vmem:[%s8398_s3 + $0xd8] sm:$0xff]   ;;  %5799 = vmatpush3.bf16.msra.mxu1 %v6472_v50 }
  0x91   :  { %5800 = vmatprep.subr.bf16.mxu1 %v6473_v51  ;;  %v50_v50 = vld [vmem:[%s8397_s0 + $0xb8] sm:$0xff] }
  0x92   :  { %1357 = vmatmul.mubr.bf16.gmra.mrb[8].mxu0 %v4851_v54  ;;  %v6474_v54 = vld [vmem:[%s8398_s3 + $0x98] sm:$0xff]  }
  0x93   :  { %1426 = vmatpush1.bf16.msra.mxu0 %v6383_v55  ;;  %1366 = vmatprep.mubr.bf16.mxu0 %v4860_v56  ;;  %v4845_v55 = vcombine.low %v37_v36, %v41_v37  ;;  %v6430_v56 = vld [vmem:[%s8396_s1 + $0x334] ss:$8 sps:$4 sm:$0xff]   ;;  %v6458_v36 = vld [vmem:[%s8396_s1 + $0x3d0] ss:$8 sps:$4 sm:$0xff]   ;;  %v6463_v37 = vld [vmem:[%s8396_s1 + $0x3e4] ss:$8 sps:$4 sm:$0xff]  }
  0x94   :  { %1427 = vmatprep.subr.bf16.mxu0 %v6388_v57  ;;  %v6475_v57 = vld [vmem:[%s8398_s3 + $0xe0] sm:$0xff]   ;;  %5801 = vmatpush3.bf16.msra.mxu1 %v6474_v54  ;;  %v58_v54 = vld [vmem:[%s8397_s0 + $0xf8] sm:$0xff] }
  0x95   :  { %5802 = vmatprep.subr.bf16.mxu1 %v6475_v57  ;;  %v62_v57 = vld [vmem:[%s8397_s0 + $0x118] sm:$0xff] }
  0x97   :  { %1428 = vmatpush1.bf16.msra.mxu0 %v6386_v58  ;;  %v4854_v58 = vcombine.high %v45_v49, %v49_v52 }
  0x98   :  { %1429 = vmatprep.subr.bf16.mxu0 %v6391_v59  ;;  %v6476_v59 = vld [vmem:[%s8398_s3 + $0xa0] sm:$0xff]  }
  0x99   :  { %5803 = vmatpush3.bf16.msra.mxu1 %v6476_v59 }
  0x9a   :  { %1367 = vmatmul.mubr.bf16.gmra.mrb[12].mxu0 %v4859_v62  ;;  %v53_v62 = vld [vmem:[%s8397_s0 + $0xd0] sm:$0xff] }
  0x9b   :  { %1430 = vmatpush1.bf16.msra.mxu0 %v6389_v63  ;;  %1376 = vmatprep.mubr.bf16.mxu0 %v4868_v0  ;;  %v57_v63 = vld [vmem:[%s8397_s0 + $0xf0] sm:$0xff]  ;;  %v6431_v0 = vld [vmem:[%s8396_s1 + $0x340] ss:$8 sps:$4 sm:$0xff]  }
  0x9c   :  { %1431 = vmatprep.subr.bf16.mxu0 %v6394_v1  ;;  %v4853_v1 = vcombine.low %v45_v49, %v49_v52  ;;  %v46_v49 = vld [vmem:[%s8397_s0 + $0x98] sm:$0xff] }
  0x9d   :  { %v4856_v52 = vcombine.high %v46_v49, %v50_v50 }
  0x9f   :  { %1432 = vmatpush1.bf16.msra.mxu0 %v6392_v2  ;;  %v6436_v2 = vld [vmem:[%s8396_s1 + $0x354] ss:$8 sps:$4 sm:$0xff]  }
  0xa0   :  { %1433 = vmatprep.subr.bf16.mxu0 %v6397_v3  ;;  %v4862_v3 = vcombine.high %v53_v62, %v57_v63 }
  0xa2   :  { %1377 = vmatmul.mubr.bf16.gmra.mrb[16].mxu0 %v4867_v6  ;;  %v61_v6 = vld [vmem:[%s8397_s0 + $0x110] sm:$0xff] }
  0xa3   :  { %1434 = vmatpush1.bf16.msra.mxu0 %v6395_v7  ;;  %1386 = vmatprep.mubr.bf16.mxu0 %v4876_v8  ;;  %v65_v7 = vld [vmem:[%s8397_s0 + $0x130] sm:$0xff]  ;;  %v6437_v8 = vld [vmem:[%s8396_s1 + $0x360] ss:$8 sps:$4 sm:$0xff]  }
  0xa4   :  { %1435 = vmatprep.subr.bf16.mxu0 %v6400_v9  ;;  %v4861_v9 = vcombine.low %v53_v62, %v57_v63  ;;  %v74_v62 = vld [vmem:[%s8397_s0 + $0x178] sm:$0xff] }
  0xa7   :  { %1436 = vmatpush1.bf16.msra.mxu0 %v6398_v10  ;;  %v6442_v10 = vld [vmem:[%s8396_s1 + $0x374] ss:$8 sps:$4 sm:$0xff]  }
  0xa8   :  { %1437 = vmatprep.subr.bf16.mxu0 %v6403_v11  ;;  %v4870_v11 = vcombine.high %v61_v6, %v65_v7 }
  0xaa   :  { %1387 = vmatmul.mubr.bf16.gmra.mrb[20].mxu0 %v4875_v14  ;;  %v69_v14 = vld [vmem:[%s8397_s0 + $0x150] sm:$0xff] }
  0xab   :  { %1438 = vmatpush1.bf16.msra.mxu0 %v6401_v15  ;;  %1396 = vmatprep.mubr.bf16.mxu0 %v4884_v16  ;;  %v73_v15 = vld [vmem:[%s8397_s0 + $0x170] sm:$0xff]  ;;  %v6443_v16 = vld [vmem:[%s8396_s1 + $0x380] ss:$8 sps:$4 sm:$0xff]  }
  0xac   :  { %1439 = vmatprep.subr.bf16.mxu0 %v6406_v17  ;;  %v4869_v17 = vcombine.low %v61_v6, %v65_v7  ;;  %v90_v6 = vld [vmem:[%s8397_s0 + $0x1f8] sm:$0xff] }
  0xaf   :  { %1440 = vmatpush1.bf16.msra.mxu0 %v6404_v18  ;;  %v6448_v18 = vld [vmem:[%s8396_s1 + $0x394] ss:$8 sps:$4 sm:$0xff]  }
  0xb0   :  { %1441 = vmatprep.subr.bf16.mxu0 %v6409_v19  ;;  %v4878_v19 = vcombine.high %v69_v14, %v73_v15 }
  0xb2   :  { %1397 = vmatmul.mubr.bf16.gmra.mrb[24].mxu0 %v4883_v22  ;;  %v77_v22 = vld [vmem:[%s8397_s0 + $0x190] sm:$0xff] }
  0xb3   :  { %1442 = vmatpush1.bf16.msra.mxu0 %v6407_v23  ;;  %1406 = vmatprep.mubr.bf16.mxu0 %v4892_v24  ;;  %v81_v23 = vld [vmem:[%s8397_s0 + $0x1b0] sm:$0xff]  ;;  %v6449_v24 = vld [vmem:[%s8396_s1 + $0x3a0] ss:$8 sps:$4 sm:$0xff]  }
  0xb4   :  { %1443 = vmatprep.subr.bf16.mxu0 %v6412_v25  ;;  %v4877_v25 = vcombine.low %v69_v14, %v73_v15  ;;  %v6481_v14 = vld [vmem:[%s8398_s3 + $0xf8] sm:$0xff]  }
  0xb5   :  { %v6482_v15 = vld [vmem:[%s8398_s3 + $0xb8] sm:$0xff]  }
  0xb7   :  { %1444 = vmatpush1.bf16.msra.mxu0 %v6410_v26  ;;  %v6454_v26 = vld [vmem:[%s8396_s1 + $0x3b4] ss:$8 sps:$4 sm:$0xff]  }
  0xb8   :  { %1445 = vmatprep.subr.bf16.mxu0 %v6415_v27  ;;  %v4886_v27 = vcombine.high %v77_v22, %v81_v23 }
  0xba   :  { %1407 = vmatmul.mubr.bf16.gmra.mrb[28].mxu0 %v4891_v30  ;;  %v85_v30 = vld [vmem:[%s8397_s0 + $0x1d0] sm:$0xff] }
  0xbb   :  { %1446 = vmatpush1.bf16.msra.mxu0 %v6413_v31  ;;  %1449 = vmatprep.mubr.bf16.mxu0 %v4838_v32  ;;  %v89_v31 = vld [vmem:[%s8397_s0 + $0x1f0] sm:$0xff]  ;;  %v6455_v32 = vld [vmem:[%s8396_s1 + $0x3c0] ss:$8 sps:$4 sm:$0xff]  }
  0xbc   :  { %1447 = vmatprep.subr.bf16.mxu0 %v6418_v33  ;;  %v4885_v33 = vcombine.low %v77_v22, %v81_v23  ;;  %v4893_v41 = vcombine.low %v85_v30, %v89_v31  ;;  %v6494_v22 = vld [vmem:[%s8398_s3 + $0x490] sm:$0xff]   ;;  %v6496_v23 = vld [vmem:[%s8398_s3 + $0x4d8] sm:$0xff]  }
  0xbf   :  { %1448 = vmatpush1.bf16.msra.mxu0 %v6416_v34  ;;  %v6460_v34 = vld [vmem:[%s8396_s1 + $0x3d4] ss:$8 sps:$4 sm:$0xff]  }
  0xc0   :  { %1530 = vmatprep.subr.bf16.mxu0 %v6421_v35  ;;  %v4894_v35 = vcombine.high %v85_v30, %v89_v31  ;;  %v6510_v30 = vld [vmem:[%s8398_s3 + $0x4b0] sm:$0xff]   ;;  %v6512_v31 = vld [vmem:[%s8398_s3 + $0x4f8] sm:$0xff]  }
  0xc2   :  { %1450 = vmatmul.mubr.bf16.vlgmr.msra.gmra.mrb[0].mxu0 %v4837_v42  ;;  %v6466_v42 = vld [vmem:[%s8396_s1 + $0x3f4] ss:$8 sps:$4 sm:$0xff]  }
  0xc3   :  { %1531 = vmatpush1.bf16.msra.mxu0 %v6419_v40  ;;  %1459 = vmatprep.mubr.bf16.mxu0 %v4846_v45  ;;  %v6461_v40 = vld [vmem:[%s8396_s1 + $0x3e0] ss:$8 sps:$4 sm:$0xff]   ;;  %v38_v45 = vld [vmem:[%s8397_s0 + $0x58] sm:$0xff] }
  0xc4   :  { %1532 = vmatprep.subr.bf16.mxu0 %v6424_v44  ;;  %v6464_v44 = vld [vmem:[%s8396_s1 + $0x3f0] ss:$8 sps:$4 sm:$0xff]   ;;  %v4847_v51 = vcombine.low %v38_v45, %v42_v46 }
  0xc7   :  { %1533 = vmatpush1.bf16.msra.mxu0 %v6422_v47  ;;  %v4839_v47 = vcombine.low %v30_v38, %v34_v39 }
  0xc8   :  { %1534 = vmatprep.subr.bf16.mxu0 %v6427_v48  ;;  %v4848_v48 = vcombine.high %v38_v45, %v42_v46 }
  0xca   :  { %1460 = vmatmul.mubr.bf16.gmra.mrb[4].mxu0 %v4845_v55  ;;  %v4855_v55 = vcombine.low %v46_v49, %v50_v50 }
  0xcb   :  { %1535 = vmatpush1.bf16.msra.mxu0 %v6425_v53  ;;  %1469 = vmatprep.mubr.bf16.mxu0 %v4854_v58  ;;  %v54_v53 = vld [vmem:[%s8397_s0 + $0xd8] sm:$0xff] }
  0xcc   :  { %1536 = vmatprep.subr.bf16.mxu0 %v6430_v56  ;;  %v4864_v56 = vcombine.high %v54_v53, %v58_v54  ;;  %v66_v58 = vld [vmem:[%s8397_s0 + $0x138] sm:$0xff]  ;;  %v4863_v59 = vcombine.low %v54_v53, %v58_v54 }
  0xcd   :  { %v4871_v63 = vcombine.low %v62_v57, %v66_v58 }
  0xcf   :  { %1537 = vmatpush1.bf16.msra.mxu0 %v6428_v60  ;;  %v4872_v60 = vcombine.high %v62_v57, %v66_v58 }
  0xd0   :  { %1538 = vmatprep.subr.bf16.mxu0 %v6433_v61  ;;  %v70_v61 = vld [vmem:[%s8397_s0 + $0x158] sm:$0xff] }
  0xd2   :  { %1470 = vmatmul.mubr.bf16.gmra.mrb[8].mxu0 %v4853_v1  ;;  %v78_v1 = vld [vmem:[%s8397_s0 + $0x198] sm:$0xff] }
  0xd3   :  { %1539 = vmatpush1.bf16.msra.mxu0 %v6431_v0  ;;  %1479 = vmatprep.mubr.bf16.mxu0 %v4862_v3  ;;  %v4880_v0 = vcombine.high %v70_v61, %v74_v62  ;;  %v4879_v3 = vcombine.low %v70_v61, %v74_v62 }
  0xd4   :  { %1540 = vmatprep.subr.bf16.mxu0 %v6436_v2  ;;  %v82_v2 = vld [vmem:[%s8397_s0 + $0x1b8] sm:$0xff] }
  0xd5   :  { %v4887_v7 = vcombine.low %v78_v1, %v82_v2 }
  0xd7   :  { %1541 = vmatpush1.bf16.msra.mxu0 %v6434_v4  ;;  %v4888_v4 = vcombine.high %v78_v1, %v82_v2 }
  0xd8   :  { %1542 = vmatprep.subr.bf16.mxu0 %v6439_v5  ;;  %v86_v5 = vld [vmem:[%s8397_s0 + $0x1d8] sm:$0xff] }
  0xda   :  { %1480 = vmatmul.mubr.bf16.gmra.mrb[12].mxu0 %v4861_v9  ;;  %v4895_v9 = vcombine.low %v86_v5, %v90_v6 }
  0xdb   :  { %1543 = vmatpush1.bf16.msra.mxu0 %v6437_v8  ;;  %1489 = vmatprep.mubr.bf16.mxu0 %v4870_v11  ;;  %v4896_v8 = vcombine.high %v86_v5, %v90_v6  ;;  %v6478_v11 = vld [vmem:[%s8398_s3 + $0xa8] sm:$0xff]  }
  0xdc   :  { %1544 = vmatprep.subr.bf16.mxu0 %v6442_v10  ;;  %v6477_v10 = vld [vmem:[%s8398_s3 + $0xe8] sm:$0xff]  }
  0xdd   :  { %5804 = vmatprep.subr.bf16.mxu1 %v6477_v10 }
  0xde   :  { %5805 = vmatpush3.bf16.msra.mxu1 %v6478_v11 }
  0xdf   :  { %1545 = vmatpush1.bf16.msra.mxu0 %v6440_v12  ;;  %v6479_v12 = vld [vmem:[%s8398_s3 + $0xf0] sm:$0xff]  }
  0xe0   :  { %1546 = vmatprep.subr.bf16.mxu0 %v6445_v13  ;;  %v6480_v13 = vld [vmem:[%s8398_s3 + $0xb0] sm:$0xff]   ;;  %5806 = vmatprep.subr.bf16.mxu1 %v6479_v12 }
  0xe2   :  { %1490 = vmatmul.mubr.bf16.gmra.mrb[16].mxu0 %v4869_v17  ;;  %5807 = vmatpush3.bf16.msra.mxu1 %v6480_v13  ;;  %v6484_v17 = vld [vmem:[%s8398_s3 + $0x4c0] sm:$0xff]   ;;  %v6489_v13 = vld [vmem:[%s8398_s3 + $0x8] sm:$0xff]  }
  0xe3   :  { %1547 = vmatpush1.bf16.msra.mxu0 %v6443_v16  ;;  %1499 = vmatprep.mubr.bf16.mxu0 %v4878_v19  ;;  %v6483_v16 = vld [vmem:[%s8398_s3 + $0x40] sm:$0xff]   ;;  %v6488_v19 = vld [vmem:[%s8398_s3 + $0x4c8] sm:$0xff]  }
  0xe4   :  { %1548 = vmatprep.subr.bf16.mxu0 %v6448_v18  ;;  %5808 = vmatprep.subr.bf16.mxu1 %v6481_v14  ;;  %v6486_v18 = vld [vmem:[%s8398_s3 + $0x480] sm:$0xff]  }
  0xe6   :  { %5809 = vmatpush3.bf16.msra.mxu1 %v6482_v15 }
  0xe7   :  { %1549 = vmatpush1.bf16.msra.mxu0 %v6446_v20  ;;  %5816 = vmatprep.subr.bf16.mxu1 %v6483_v16  ;;  %v6490_v20 = vld [vmem:[%s8398_s3 + $0x488] sm:$0xff]   ;;  %v6491_v16 = vld [vmem:[%s8398_s3 + $0x50] sm:$0xff]  }
  0xe8   :  { %1550 = vmatprep.subr.bf16.mxu0 %v6451_v21  ;;  %v6492_v21 = vld [vmem:[%s8398_s3 + $0x4d0] sm:$0xff]  }
  0xea   :  { %1500 = vmatmul.mubr.bf16.gmra.mrb[20].mxu0 %v4877_v25  ;;  %v6500_v25 = vld [vmem:[%s8398_s3 + $0x4e0] sm:$0xff]  }
  0xeb   :  { %1551 = vmatpush1.bf16.msra.mxu0 %v6449_v24  ;;  %1509 = vmatprep.mubr.bf16.mxu0 %v4886_v27  ;;  %v6498_v24 = vld [vmem:[%s8398_s3 + $0x498] sm:$0xff]   ;;  %v6504_v27 = vld [vmem:[%s8398_s3 + $0x4e8] sm:$0xff]  }
  0xec   :  { %1552 = vmatprep.subr.bf16.mxu0 %v6454_v26  ;;  %v6502_v26 = vld [vmem:[%s8398_s3 + $0x4a0] sm:$0xff]  }
  0xef   :  { %1553 = vmatpush1.bf16.msra.mxu0 %v6452_v28  ;;  %v6506_v28 = vld [vmem:[%s8398_s3 + $0x4a8] sm:$0xff]  }
  0xf0   :  { %1554 = vmatprep.subr.bf16.mxu0 %v6457_v29  ;;  %v6508_v29 = vld [vmem:[%s8398_s3 + $0x4f0] sm:$0xff]  }
  0xf2   :  { %1510 = vmatmul.mubr.bf16.gmra.mrb[24].mxu0 %v4885_v33  ;;  %v6516_v33 = vld [vmem:[%s8398_s3 + $0x5c0] sm:$0xff]  }
  0xf3   :  { %1555 = vmatpush1.bf16.msra.mxu0 %v6455_v32  ;;  %1519 = vmatprep.mubr.bf16.mxu0 %v4894_v35  ;;  %v6514_v32 = vld [vmem:[%s8398_s3 + $0x4b8] sm:$0xff]  }
  0xf4   :  { %1556 = vmatprep.subr.bf16.mxu0 %v6460_v34  ;;  %v221_v34 = vlaneseq }
  0xf6   :  { %v7490_v35 = vshrl.u32 %v221_v34, 7 }
  0xf7   :  { %1557 = vmatpush1.bf16.msra.mxu0 %v6458_v36 }
  0xf8   :  { %1558 = vmatprep.subr.bf16.mxu0 %v6463_v37  ;;  %v223_v36 = vsub.s32 0, %v7490_v35  ;;  %v219_v37 = vld [vmem:[%s8399_s2] sm:$0x3]  ;;  %v227_v38 = vsub.s32 1, %v7490_v35 }
  0xfa   :  { %1520 = vmatmul.mubr.bf16.gmra.mrb[28].mxu0 %v4893_v41  ;;  %v7499_v39 = vrot.slane %v219_v37, %v223_v36 }
  0xfb   :  { %1559 = vmatpush1.bf16.msra.mxu0 %v6461_v40  ;;  %1562 = vmatprep.mubr.bf16.mxu0 %v4840_v43  ;;  %v7503_v40 = vrot.slane %v219_v37, %v227_v38  ;;  %v6497_v37 = vld [vmem:[%s8398_s3 + $0x18] sm:$0xff]  }
  0xfc   :  { %1560 = vmatprep.subr.bf16.mxu0 %v6466_v42 }
  0xff   :  { %1561 = vmatpush1.bf16.msra.mxu0 %v6464_v44 }
 0x100   :  { %5992 = vmatprep.subr.bf16.mxu0 %v6484_v17 }
 0x102   :  { %1563 = vmatmul.mubr.bf16.vlgmr.msra.gmra.mrb[0].mxu0 %v4839_v47 }
 0x103   :  { %1572 = vmatprep.mubr.bf16.mxu0 %v4848_v48  ;;  %5993 = vmatpush3.bf16.msra.mxu0 %v6486_v18 }
 0x104   :  { %5994 = vmatprep.subr.bf16.mxu0 %v6488_v19 }
 0x107   :  { %5995 = vmatpush3.bf16.msra.mxu0 %v6490_v20 }
 0x108   :  { %5996 = vmatprep.subr.bf16.mxu0 %v6492_v21 }
 0x10a   :  { %1573 = vmatmul.mubr.bf16.gmra.mrb[4].mxu0 %v4847_v51 }
 0x10b   :  { %1582 = vmatprep.mubr.bf16.mxu0 %v4856_v52  ;;  %5997 = vmatpush3.bf16.msra.mxu0 %v6494_v22 }
 0x10c   :  { %5998 = vmatprep.subr.bf16.mxu0 %v6496_v23 }
 0x10f   :  { %5999 = vmatpush3.bf16.msra.mxu0 %v6498_v24 }
 0x110   :  { %6000 = vmatprep.subr.bf16.mxu0 %v6500_v25 }
 0x112   :  { %1583 = vmatmul.mubr.bf16.gmra.mrb[8].mxu0 %v4855_v55 }
 0x113   :  { %1592 = vmatprep.mubr.bf16.mxu0 %v4864_v56  ;;  %6001 = vmatpush3.bf16.msra.mxu0 %v6502_v26 }
 0x114   :  { %6002 = vmatprep.subr.bf16.mxu0 %v6504_v27  ;;  %v6493_v27 = vld [vmem:[%s8398_s3 + $0x10] sm:$0xff]  }
 0x117   :  { %6003 = vmatpush3.bf16.msra.mxu0 %v6506_v28 }
 0x118   :  { %6004 = vmatprep.subr.bf16.mxu0 %v6508_v29 }
 0x11a   :  { %1593 = vmatmul.mubr.bf16.gmra.mrb[12].mxu0 %v4863_v59 }
 0x11b   :  { %1602 = vmatprep.mubr.bf16.mxu0 %v4872_v60  ;;  %6005 = vmatpush3.bf16.msra.mxu0 %v6510_v30  ;;  %v6495_v30 = vld [vmem:[%s8398_s3 + $0x58] sm:$0xff]  }
 0x11c   :  { %6006 = vmatprep.subr.bf16.mxu0 %v6512_v31 }
 0x11f   :  { %6007 = vmatpush3.bf16.msra.mxu0 %v6514_v32 }
 0x120   :  { %6036 = vmatprep.subr.bf16.mxu0 %v6516_v33 }
 0x122   :  { %1603 = vmatmul.mubr.bf16.gmra.mrb[16].mxu0 %v4871_v63 }
 0x123   :  { %1612 = vmatprep.mubr.bf16.mxu0 %v4880_v0 }
 0x12a   :  { %1613 = vmatmul.mubr.bf16.gmra.mrb[20].mxu0 %v4879_v3 }
 0x12b   :  { %1622 = vmatprep.mubr.bf16.mxu0 %v4888_v4  ;;  %v6485_v4 = vld [vmem:[%s8398_s3] sm:$0xff]  }
 0x132   :  { %1623 = vmatmul.mubr.bf16.gmra.mrb[24].mxu0 %v4887_v7 }
 0x133   :  { %1632 = vmatprep.mubr.bf16.mxu0 %v4896_v8  ;;  %v6487_v8 = vld [vmem:[%s8398_s3 + $0x48] sm:$0xff]  }
 0x13a   :  { %1633 = vmatmul.mubr.bf16.gmra.mrb[28].mxu0 %v4895_v9 }
 0x1d5   :  { %v1564_v41 = vpop.f32.mrb[0].mxu0 }
 0x1d6   :  { %v6146_v42 = vadd.f32 %v1564_v41, %v7499_v39  ;;  %v1566_v43 = vpop.f32.mrb[1].mxu0 }
 0x1d7   :  { %v6147_v44 = vadd.f32 %v1566_v43, %v7503_v40  ;;  %v1568_v45 = vpop.f32.mrb[2].mxu0  ;;  %v6499_v43 = vld [vmem:[%s8398_s3 + $0x60] sm:$0xff]  }
 0x1d8   :  { %v1675_v46 = vmul.f32 0.005, %v6146_v42  ;;  %v6148_v47 = vadd.f32 %v1568_v45, %v7499_v39  ;;  %v1570_v48 = vpop.f32.mrb[3].mxu0  ;;  %vm1643_vm0 = vcmp.ge.f32.partialorder %v6146_v42, 0.0 }
 0x1d9   :  { %v1676_v49 = vmul.f32 0.005, %v6147_v44  ;;  %v6149_v50 = vadd.f32 %v1570_v48, %v7503_v40  ;;  %vm1644_vm1 = vcmp.ge.f32.partialorder %v6147_v44, 0.0 }
 0x1da   :  { %vm1645_vm2 = vcmp.ge.f32.partialorder %v6148_v47, 0.0  ;;  %v1677_v51 = vmul.f32 0.005, %v6148_v47  ;;  %v1707_v53 = vsel %vm1643_vm0, %v6146_v42, %v1675_v46 }
 0x1db   :  { %vm1646_vm3 = vcmp.ge.f32.partialorder %v6149_v50, 0.0  ;;  %v1678_v52 = vmul.f32 0.005, %v6149_v50  ;;  %v1708_v56 = vsel %vm1644_vm1, %v6147_v44, %v1676_v49 }
 0x1dc   :  { %v1709_v54 = vsel %vm1645_vm2, %v6148_v47, %v1677_v51 }
 0x1dd   :  { %v1574_v55 = vpop.f32.mrb[4].mxu0  ;;  %v1710_v57 = vsel %vm1646_vm3, %v6149_v50, %v1678_v52  ;;  %v7509_v58 = vpack.c.bf16 %v1709_v54, %v1707_v53  ;;  %v6501_v54 = vld [vmem:[%s8398_s3 + $0x20] sm:$0xff]  }
 0x1de   :  { %v6150_v59 = vadd.f32 %v1574_v55, %v7499_v39  ;;  %v1576_v60 = vpop.f32.mrb[5].mxu0  ;;  %v1740_v61 = vpack.c.bf16 %v1710_v57, %v1708_v56  ;;  %v6503_v57 = vld [vmem:[%s8398_s3 + $0x68] sm:$0xff]  }
 0x1df   :  { %v6151_v62 = vadd.f32 %v1576_v60, %v7503_v40  ;;  %v1578_v63 = vpop.f32.mrb[6].mxu0  ;;  %v1822_v7 = vrot.slane %v7509_v58, 4 }
 0x1e0   :  { %v1679_v0 = vmul.f32 0.005, %v6150_v59  ;;  %v6152_v1 = vadd.f32 %v1578_v63, %v7499_v39  ;;  %v1580_v2 = vpop.f32.mrb[7].mxu0  ;;  %v1823_v3 = vrot.slane %v1740_v61, 4  ;;  %vm1647_vm4 = vcmp.ge.f32.partialorder %v6150_v59, 0.0  ;;  %v6505_v63 = vld [vmem:[%s8398_s3 + $0x28] sm:$0xff]  }
 0x1e1   :  { %v1680_v5 = vmul.f32 0.005, %v6151_v62  ;;  %v6153_v6 = vadd.f32 %v1580_v2, %v7503_v40  ;;  %vm1648_vm5 = vcmp.ge.f32.partialorder %v6151_v62, 0.0  ;;  %v6507_v2 = vld [vmem:[%s8398_s3 + $0x70] sm:$0xff]  }
 0x1e2   :  { %vm1649_vm6 = vcmp.ge.f32.partialorder %v6152_v1, 0.0  ;;  %v1681_v9 = vmul.f32 0.005, %v6152_v1  ;;  %1954 = vmatprep.mubr.bf16.mxu1 %v1823_v3  ;;  %v1711_v11 = vsel %vm1647_vm4, %v6150_v59, %v1679_v0 }
 0x1e3   :  { %vm1650_vm7 = vcmp.ge.f32.partialorder %v6153_v6, 0.0  ;;  %v1682_v10 = vmul.f32 0.005, %v6153_v6  ;;  %1955 = vmatmul.mubr.bf16.vlgmr.msra.gmra.mrb[0].mxu1 %v1822_v7  ;;  %v1712_v17 = vsel %vm1648_vm5, %v6151_v62, %v1680_v5 }
 0x1e4   :  { %v1713_v12 = vsel %vm1649_vm6, %v6152_v1, %v1681_v9  ;;  %5817 = vmatpush3.bf16.msra.mxu1 %v6485_v4  ;;  %2090 = vmatprep.mubr.bf16.mxu1 %v1740_v61 }
 0x1e5   :  { %v7525_v14 = vpack.c.bf16 %v1713_v12, %v1711_v11  ;;  %v1584_v15 = vpop.f32.mrb[8].mxu0  ;;  %5818 = vmatprep.subr.bf16.mxu1 %v6487_v8  ;;  %v1714_v18 = vsel %vm1650_vm7, %v6153_v6, %v1682_v10 }
 0x1e6   :  { %v6154_v19 = vadd.f32 %v1584_v15, %v7499_v39  ;;  %v1586_v20 = vpop.f32.mrb[9].mxu0  ;;  %v7532_v21 = vpack.c.bf16 %v1714_v18, %v1712_v17  ;;  %v6511_v17 = vld [vmem:[%s8398_s3 + $0x78] sm:$0xff]  }
 0x1e7   :  { %v6155_v22 = vadd.f32 %v1586_v20, %v7503_v40  ;;  %v1588_v23 = vpop.f32.mrb[10].mxu0 }
 0x1e8   :  { %v1683_v24 = vmul.f32 0.005, %v6154_v19  ;;  %v6156_v25 = vadd.f32 %v1588_v23, %v7499_v39  ;;  %5819 = vmatpush3.bf16.msra.mxu1 %v6489_v13  ;;  %v1590_v26 = vpop.f32.mrb[11].mxu0  ;;  %vm1651_vm8 = vcmp.ge.f32.partialorder %v6154_v19, 0.0  ;;  %v6509_v13 = vld [vmem:[%s8398_s3 + $0x30] sm:$0xff]   ;;  %v6513_v23 = vld [vmem:[%s8398_s3 + $0x38] sm:$0xff]  }
 0x1e9   :  { %v1684_v28 = vmul.f32 0.005, %v6155_v22  ;;  %v6157_v29 = vadd.f32 %v1590_v26, %v7503_v40  ;;  %5820 = vmatprep.subr.bf16.mxu1 %v6491_v16  ;;  %vm1652_vm9 = vcmp.ge.f32.partialorder %v6155_v22, 0.0 }
 0x1ea   :  { %vm1653_vm10 = vcmp.ge.f32.partialorder %v6156_v25, 0.0  ;;  %v1685_v31 = vmul.f32 0.005, %v6156_v25  ;;  %v1715_v33 = vsel %vm1651_vm8, %v6154_v19, %v1683_v24 }
 0x1eb   :  { %vm1654_vm11 = vcmp.ge.f32.partialorder %v6157_v29, 0.0  ;;  %v1686_v32 = vmul.f32 0.005, %v6157_v29  ;;  %v1716_v44 = vsel %vm1652_vm9, %v6155_v22, %v1684_v28  ;;  %v6515_v28 = vld [vmem:[%s8398_s3 + $0x140] sm:$0xff]  }
 0x1ec   :  { %v1717_v34 = vsel %vm1653_vm10, %v6156_v25, %v1685_v31  ;;  %5821 = vmatpush3.bf16.msra.mxu1 %v6493_v27 }
 0x1ed   :  { %v7546_v41 = vpack.c.bf16 %v1717_v34, %v1715_v33  ;;  %v1594_v42 = vpop.f32.mrb[12].mxu0  ;;  %5822 = vmatprep.subr.bf16.mxu1 %v6495_v30  ;;  %v1718_v45 = vsel %vm1654_vm11, %v6157_v29, %v1686_v32 }
 0x1ee   :  { %v6158_v46 = vadd.f32 %v1594_v42, %v7499_v39  ;;  %v1596_v47 = vpop.f32.mrb[13].mxu0  ;;  %v7552_v48 = vpack.c.bf16 %v1718_v45, %v1716_v44  ;;  %v6517_v44 = vld [vmem:[%s8398_s3 + $0x100] sm:$0xff]  }
 0x1ef   :  { %v6159_v49 = vadd.f32 %v1596_v47, %v7503_v40  ;;  %v1598_v50 = vpop.f32.mrb[14].mxu0 }
 0x1f0   :  { %v1687_v51 = vmul.f32 0.005, %v6158_v46  ;;  %v6160_v52 = vadd.f32 %v1598_v50, %v7499_v39  ;;  %5823 = vmatpush3.bf16.msra.mxu1 %v6497_v37  ;;  %v1600_v53 = vpop.f32.mrb[15].mxu0  ;;  %vm1655_vm12 = vcmp.ge.f32.partialorder %v6158_v46, 0.0  ;;  %v6519_v50 = vld [vmem:[%s8398_s3 + $0x148] sm:$0xff]  }
 0x1f1   :  { %v1688_v55 = vmul.f32 0.005, %v6159_v49  ;;  %v6161_v56 = vadd.f32 %v1600_v53, %v7503_v40  ;;  %5824 = vmatprep.subr.bf16.mxu1 %v6499_v43  ;;  %vm1656_vm13 = vcmp.ge.f32.partialorder %v6159_v49, 0.0 }
 0x1f2   :  { %vm1657_vm14 = vcmp.ge.f32.partialorder %v6160_v52, 0.0  ;;  %v1689_v59 = vmul.f32 0.005, %v6160_v52  ;;  %v1719_v61 = vsel %vm1655_vm12, %v6158_v46, %v1687_v51 }
 0x1f3   :  { %vm1658_vm15 = vcmp.ge.f32.partialorder %v6161_v56, 0.0  ;;  %v1690_v60 = vmul.f32 0.005, %v6161_v56  ;;  %v1720_v3 = vsel %vm1656_vm13, %v6159_v49, %v1688_v55  ;;  %v6518_v49 = vld [vmem:[%s8398_s3 + $0x580] sm:$0xff]  }
 0x1f4   :  { %v1721_v62 = vsel %vm1657_vm14, %v6160_v52, %v1689_v59  ;;  %5825 = vmatpush3.bf16.msra.mxu1 %v6501_v54  ;;  %v6520_v52 = vld [vmem:[%s8398_s3 + $0x5c8] sm:$0xff]  }
 0x1f5   :  { %v7566_v0 = vpack.c.bf16 %v1721_v62, %v1719_v61  ;;  %v1604_v1 = vpop.f32.mrb[16].mxu0  ;;  %5826 = vmatprep.subr.bf16.mxu1 %v6503_v57  ;;  %v1722_v4 = vsel %vm1658_vm15, %v6161_v56, %v1690_v60  ;;  %v6521_v56 = vld [vmem:[%s8398_s3 + $0x108] sm:$0xff]   ;;  %v6523_v62 = vld [vmem:[%s8398_s3 + $0x150] sm:$0xff]  }
 0x1f6   :  { %v6162_v5 = vadd.f32 %v1604_v1, %v7499_v39  ;;  %v1606_v6 = vpop.f32.mrb[17].mxu0  ;;  %v7572_v7 = vpack.c.bf16 %v1722_v4, %v1720_v3 }
 0x1f7   :  { %v6163_v8 = vadd.f32 %v1606_v6, %v7503_v40  ;;  %v1608_v9 = vpop.f32.mrb[18].mxu0 }
 0x1f8   :  { %v1691_v10 = vmul.f32 0.005, %v6162_v5  ;;  %v6164_v11 = vadd.f32 %v1608_v9, %v7499_v39  ;;  %5827 = vmatpush3.bf16.msra.mxu1 %v6505_v63  ;;  %v1610_v12 = vpop.f32.mrb[19].mxu0  ;;  %vm1659_vm0 = vcmp.ge.f32.partialorder %v6162_v5, 0.0 }
 0x1f9   :  { %v1692_v15 = vmul.f32 0.005, %v6163_v8  ;;  %v6165_v16 = vadd.f32 %v1610_v12, %v7503_v40  ;;  %5828 = vmatprep.subr.bf16.mxu1 %v6507_v2  ;;  %vm1660_vm1 = vcmp.ge.f32.partialorder %v6163_v8, 0.0  ;;  %v6524_v2 = vld [vmem:[%s8398_s3 + $0x5d0] sm:$0xff]  }
 0x1fa   :  { %vm1661_vm2 = vcmp.ge.f32.partialorder %v6164_v11, 0.0  ;;  %v1693_v18 = vmul.f32 0.005, %v6164_v11  ;;  %v1723_v20 = vsel %vm1659_vm0, %v6162_v5, %v1691_v10 }
 0x1fb   :  { %vm1662_vm3 = vcmp.ge.f32.partialorder %v6165_v16, 0.0  ;;  %v1694_v19 = vmul.f32 0.005, %v6165_v16  ;;  %v1724_v24 = vsel %vm1660_vm1, %v6163_v8, %v1692_v15  ;;  %v6526_v15 = vld [vmem:[%s8398_s3 + $0x590] sm:$0xff]  }
 0x1fc   :  { %v1725_v22 = vsel %vm1661_vm2, %v6164_v11, %v1693_v18  ;;  %5829 = vmatpush3.bf16.msra.mxu1 %v6509_v13  ;;  %v6525_v11 = vld [vmem:[%s8398_s3 + $0x110] sm:$0xff]   ;;  %v6528_v18 = vld [vmem:[%s8398_s3 + $0x5d8] sm:$0xff]  }
 0x1fd   :  { %v7586_v25 = vpack.c.bf16 %v1725_v22, %v1723_v20  ;;  %v1726_v26 = vsel %vm1662_vm3, %v6165_v16, %v1694_v19  ;;  %v1614_v27 = vpop.f32.mrb[20].mxu0  ;;  %5830 = vmatprep.subr.bf16.mxu1 %v6511_v17  ;;  %v6527_v16 = vld [vmem:[%s8398_s3 + $0x158] sm:$0xff]  }
 0x1fe   :  { %v6166_v29 = vadd.f32 %v1614_v27, %v7499_v39  ;;  %v1616_v30 = vpop.f32.mrb[21].mxu0  ;;  %v7592_v31 = vpack.c.bf16 %v1726_v26, %v1724_v24 }
 0x1ff   :  { %v6167_v32 = vadd.f32 %v1616_v30, %v7503_v40  ;;  %v1618_v33 = vpop.f32.mrb[22].mxu0  ;;  %v3341_v45 = vrot.slane %v7586_v25, 4  ;;  %v6531_v30 = vld [vmem:[%s8398_s3 + $0x160] sm:$0xff]  }
 0x200   :  { %v1695_v34 = vmul.f32 0.005, %v6166_v29  ;;  %v6168_v37 = vadd.f32 %v1618_v33, %v7499_v39  ;;  %5831 = vmatpush3.bf16.msra.mxu1 %v6513_v23  ;;  %v1620_v42 = vpop.f32.mrb[23].mxu0  ;;  %v3342_v43 = vrot.slane %v7592_v31, 4  ;;  %vm1663_vm4 = vcmp.ge.f32.partialorder %v6166_v29, 0.0  ;;  %v6529_v23 = vld [vmem:[%s8398_s3 + $0x118] sm:$0xff]  }
 0x201   :  { %v1696_v46 = vmul.f32 0.005, %v6167_v32  ;;  %v6169_v47 = vadd.f32 %v1620_v42, %v7503_v40  ;;  %5838 = vmatprep.subr.bf16.mxu1 %v6515_v28  ;;  %vm1664_vm5 = vcmp.ge.f32.partialorder %v6167_v32, 0.0 }
 0x202   :  { %vm1665_vm6 = vcmp.ge.f32.partialorder %v6168_v37, 0.0  ;;  %v1697_v51 = vmul.f32 0.005, %v6168_v37  ;;  %3473 = vmatprep.mubr.bf16.mxu0 %v3342_v43  ;;  %v1727_v54 = vsel %vm1663_vm4, %v6166_v29, %v1695_v34  ;;  %v6530_v29 = vld [vmem:[%s8398_s3 + $0x598] sm:$0xff]   ;;  %v6532_v34 = vld [vmem:[%s8398_s3 + $0x5e0] sm:$0xff]  }
 0x203   :  { %vm1666_vm7 = vcmp.ge.f32.partialorder %v6169_v47, 0.0  ;;  %v1698_v53 = vmul.f32 0.005, %v6169_v47  ;;  %2091 = vmatmul.mubr.bf16.vlgmr.msra.gmra.mrb[4].mxu1 %v7509_v58  ;;  %3474 = vmatmul.mubr.bf16.vlgmr.msra.gmra.mrb[32].mxu0 %v3341_v45  ;;  %v1728_v57 = vsel %vm1664_vm5, %v6167_v32, %v1696_v46  ;;  %v6522_v58 = vld [vmem:[%s8398_s3 + $0x588] sm:$0xff]  }
 0x204   :  { %v1729_v55 = vsel %vm1665_vm6, %v6168_v37, %v1697_v51  ;;  %5839 = vmatpush3.bf16.msra.mxu1 %v6517_v44  ;;  %2259 = vmatprep.mubr.bf16.mxu1 %v7532_v21  ;;  %v6534_v51 = vld [vmem:[%s8398_s3 + $0x5a0] sm:$0xff]  }
 0x205   :  { %v7616_v59 = vpack.c.bf16 %v1729_v55, %v1727_v54  ;;  %v1730_v60 = vsel %vm1666_vm7, %v6169_v47, %v1698_v53  ;;  %6037 = vmatpush3.bf16.msra.mxu0 %v6518_v49  ;;  %v1624_v61 = vpop.f32.mrb[24].mxu0  ;;  %5840 = vmatprep.subr.bf16.mxu1 %v6519_v50  ;;  %v6533_v47 = vld [vmem:[%s8398_s3 + $0x120] sm:$0xff]   ;;  %v6536_v53 = vld [vmem:[%s8398_s3 + $0x5e8] sm:$0xff]  }
 0x206   :  { %v6170_v63 = vadd.f32 %v1624_v61, %v7499_v39  ;;  %v1626_v1 = vpop.f32.mrb[25].mxu0  ;;  %6038 = vmatprep.subr.bf16.mxu0 %v6520_v52  ;;  %v7628_v3 = vpack.c.bf16 %v1730_v60, %v1728_v57 }
 0x207   :  { %v6171_v4 = vadd.f32 %v1626_v1, %v7503_v40  ;;  %v1628_v5 = vpop.f32.mrb[26].mxu0 }
 0x208   :  { %v1699_v6 = vmul.f32 0.005, %v6170_v63  ;;  %v6172_v8 = vadd.f32 %v1628_v5, %v7499_v39  ;;  %5841 = vmatpush3.bf16.msra.mxu1 %v6521_v56  ;;  %v1630_v9 = vpop.f32.mrb[27].mxu0  ;;  %v3688_v10 = vrot.slane %v7628_v3, 4  ;;  %vm1667_vm8 = vcmp.ge.f32.partialorder %v6170_v63, 0.0  ;;  %v6537_v56 = vld [vmem:[%s8398_s3 + $0x128] sm:$0xff]  }
 0x209   :  { %v1700_v12 = vmul.f32 0.005, %v6171_v4  ;;  %6039 = vmatpush3.bf16.msra.mxu0 %v6522_v58  ;;  %v6173_v13 = vadd.f32 %v1630_v9, %v7503_v40  ;;  %5842 = vmatprep.subr.bf16.mxu1 %v6523_v62  ;;  %vm1668_vm9 = vcmp.ge.f32.partialorder %v6171_v4, 0.0  ;;  %v6538_v58 = vld [vmem:[%s8398_s3 + $0x5a8] sm:$0xff]   ;;  %v6539_v62 = vld [vmem:[%s8398_s3 + $0x170] sm:$0xff]   ;;  %v6543_v5 = vld [vmem:[%s8398_s3 + $0x178] sm:$0xff]  }
 0x20a   :  { %vm1669_vm10 = vcmp.ge.f32.partialorder %v6172_v8, 0.0  ;;  %v1701_v17 = vmul.f32 0.005, %v6172_v8  ;;  %6040 = vmatprep.subr.bf16.mxu0 %v6524_v2  ;;  %3819 = vmatprep.mubr.bf16.mxu0 %v3688_v10  ;;  %v1731_v20 = vsel %vm1667_vm8, %v6170_v63, %v1699_v6  ;;  %v6540_v63 = vld [vmem:[%s8398_s3 + $0x5f0] sm:$0xff]   ;;  %v6544_v6 = vld [vmem:[%s8398_s3 + $0x5f8] sm:$0xff]   ;;  %v6547_v10 = vld [vmem:[%s8398_s3 + $0x1c0] sm:$0xff]  }
 0x20b   :  { %vm1670_vm11 = vcmp.ge.f32.partialorder %v6173_v13, 0.0  ;;  %v1702_v19 = vmul.f32 0.005, %v6173_v13  ;;  %v1732_v24 = vsel %vm1668_vm9, %v6171_v4, %v1700_v12  ;;  %v6541_v2 = vld [vmem:[%s8398_s3 + $0x130] sm:$0xff]   ;;  %v6546_v9 = vld [vmem:[%s8398_s3 + $0x5b8] sm:$0xff]   ;;  %v6549_v12 = vld [vmem:[%s8398_s3 + $0x180] sm:$0xff]  }
 0x20c   :  { %v1733_v22 = vsel %vm1669_vm10, %v6172_v8, %v1701_v17  ;;  %5843 = vmatpush3.bf16.msra.mxu1 %v6525_v11  ;;  %v6542_v4 = vld [vmem:[%s8398_s3 + $0x5b0] sm:$0xff]   ;;  %v6545_v8 = vld [vmem:[%s8398_s3 + $0x138] sm:$0xff]   ;;  %v6548_v11 = vld [vmem:[%s8398_s3 + $0x6c0] sm:$0xff]   ;;  %v2304_v17 = vrot.slane %v7532_v21, 4 }
 0x20d   :  { %v7649_v26 = vpack.c.bf16 %v1733_v22, %v1731_v20  ;;  %v1734_v27 = vsel %vm1670_vm11, %v6173_v13, %v1702_v19  ;;  %6041 = vmatpush3.bf16.msra.mxu0 %v6526_v15  ;;  %v1634_v28 = vpop.f32.mrb[28].mxu0  ;;  %5844 = vmatprep.subr.bf16.mxu1 %v6527_v16  ;;  %v6550_v13 = vld [vmem:[%s8398_s3 + $0x680] sm:$0xff]   ;;  %v3687_v15 = vrot.slane %v7616_v59, 4  ;;  %v6551_v16 = vld [vmem:[%s8398_s3 + $0x1c8] sm:$0xff]   ;;  %v6555_v21 = vld [vmem:[%s8398_s3 + $0x1d0] sm:$0xff]  }
 0x20e   :  { %v6174_v32 = vadd.f32 %v1634_v28, %v7499_v39  ;;  %v1636_v33 = vpop.f32.mrb[29].mxu0  ;;  %6042 = vmatprep.subr.bf16.mxu0 %v6528_v18  ;;  %v7661_v37 = vpack.c.bf16 %v1734_v27, %v1732_v24  ;;  %v6552_v18 = vld [vmem:[%s8398_s3 + $0x6c8] sm:$0xff]   ;;  %v6557_v24 = vld [vmem:[%s8398_s3 + $0x190] sm:$0xff]   ;;  %v6559_v28 = vld [vmem:[%s8398_s3 + $0x1d8] sm:$0xff]  }
 0x20f   :  { %v6175_v42 = vadd.f32 %v1636_v33, %v7503_v40  ;;  %v1638_v43 = vpop.f32.mrb[30].mxu0  ;;  %v6553_v20 = vld [vmem:[%s8398_s3 + $0x188] sm:$0xff]   ;;  %v6558_v27 = vld [vmem:[%s8398_s3 + $0x690] sm:$0xff]   ;;  %v6563_v33 = vld [vmem:[%s8398_s3 + $0x1e0] sm:$0xff]  }
 0x210   :  { %v1703_v44 = vmul.f32 0.005, %v6174_v32  ;;  %v6176_v45 = vadd.f32 %v1638_v43, %v7499_v39  ;;  %5845 = vmatpush3.bf16.msra.mxu1 %v6529_v23  ;;  %v1640_v46 = vpop.f32.mrb[31].mxu0  ;;  %vm1671_vm12 = vcmp.ge.f32.partialorder %v6174_v32, 0.0  ;;  %v6535_v39 = vld [vmem:[%s8398_s3 + $0x168] sm:$0xff]   ;;  %v4034_v19 = vrot.slane %v7661_v37, 4 }
 0x211   :  { %v1704_v49 = vmul.f32 0.005, %v6175_v42  ;;  %6043 = vmatpush3.bf16.msra.mxu0 %v6530_v29  ;;  %v6177_v50 = vadd.f32 %v1640_v46, %v7503_v40  ;;  %5846 = vmatprep.subr.bf16.mxu1 %v6531_v30  ;;  %vm1672_vm13 = vcmp.ge.f32.partialorder %v6175_v42, 0.0  ;;  %v6554_v22 = vld [vmem:[%s8398_s3 + $0x688] sm:$0xff]   ;;  %v6556_v23 = vld [vmem:[%s8398_s3 + $0x6d0] sm:$0xff]   ;;  %v6560_v29 = vld [vmem:[%s8398_s3 + $0x6d8] sm:$0xff]  }
 0x212   :  { %vm1673_vm14 = vcmp.ge.f32.partialorder %v6176_v45, 0.0  ;;  %v1705_v52 = vmul.f32 0.005, %v6176_v45  ;;  %6044 = vmatprep.subr.bf16.mxu0 %v6532_v34  ;;  %v1735_v40 = vsel %vm1671_vm12, %v6174_v32, %v1703_v44  ;;  %v6561_v30 = vld [vmem:[%s8398_s3 + $0x198] sm:$0xff]   ;;  %v6564_v34 = vld [vmem:[%s8398_s3 + $0x6e0] sm:$0xff]   ;;  %v6567_v44 = vld [vmem:[%s8398_s3 + $0x1e8] sm:$0xff]  }
 0x213   :  { %vm1674_vm15 = vcmp.ge.f32.partialorder %v6177_v50, 0.0  ;;  %v1706_v54 = vmul.f32 0.005, %v6177_v50  ;;  %v1736_v57 = vsel %vm1672_vm13, %v6175_v42, %v1704_v49  ;;  %v6562_v32 = vld [vmem:[%s8398_s3 + $0x698] sm:$0xff]   ;;  %v6565_v42 = vld [vmem:[%s8398_s3 + $0x1a0] sm:$0xff]   ;;  %v6569_v46 = vld [vmem:[%s8398_s3 + $0x1a8] sm:$0xff]  }
 0x214   :  { %v1737_v55 = vsel %vm1673_vm14, %v6176_v45, %v1705_v52  ;;  %5847 = vmatpush3.bf16.msra.mxu1 %v6533_v47  ;;  %v6566_v43 = vld [vmem:[%s8398_s3 + $0x6a0] sm:$0xff]   ;;  %v6568_v45 = vld [vmem:[%s8398_s3 + $0x6e8] sm:$0xff]   ;;  %v6571_v49 = vld [vmem:[%s8398_s3 + $0x1f0] sm:$0xff]  }
 0x215   :  { %v7681_v60 = vpack.c.bf16 %v1737_v55, %v1735_v40  ;;  %v1738_v61 = vsel %vm1674_vm15, %v6177_v50, %v1706_v54  ;;  %6045 = vmatpush3.bf16.msra.mxu0 %v6534_v51  ;;  %5848 = vmatprep.subr.bf16.mxu1 %v6535_v39  ;;  %v6570_v47 = vld [vmem:[%s8398_s3 + $0x6a8] sm:$0xff]   ;;  %v6572_v50 = vld [vmem:[%s8398_s3 + $0x6f0] sm:$0xff]   ;;  %v6575_v52 = vld [vmem:[%s8398_s3 + $0x1f8] sm:$0xff]  }
 0x216   :  { %6046 = vmatprep.subr.bf16.mxu0 %v6536_v53  ;;  %v7692_v1 = vpack.c.bf16 %v1738_v61, %v1736_v57  ;;  %v6573_v51 = vld [vmem:[%s8398_s3 + $0x1b0] sm:$0xff]   ;;  %v6576_v53 = vld [vmem:[%s8398_s3 + $0x6f8] sm:$0xff]   ;;  %v6579_v55 = vld [vmem:[%s8398_s3 + $0x240] sm:$0xff]   ;;  %v2303_v61 = vrot.slane %v7525_v14, 4 }
 0x217   :  { %v6574_v39 = vld [vmem:[%s8398_s3 + $0x6b0] sm:$0xff]   ;;  %v6577_v54 = vld [vmem:[%s8398_s3 + $0x1b8] sm:$0xff]   ;;  %v6581_v57 = vld [vmem:[%s8398_s3 + $0x200] sm:$0xff]  }
 0x218   :  { %5849 = vmatpush3.bf16.msra.mxu1 %v6537_v56  ;;  %v6578_v40 = vld [vmem:[%s8398_s3 + $0x6b8] sm:$0xff]   ;;  %v6580_v56 = vld [vmem:[%s8398_s3 + $0x7c0] sm:$0xff]  }
 0x219   :  { %6047 = vmatpush3.bf16.msra.mxu0 %v6538_v58  ;;  %5850 = vmatprep.subr.bf16.mxu1 %v6539_v62  ;;  %v6582_v58 = vld [vmem:[%s8398_s3 + $0x780] sm:$0xff]   ;;  %v4033_v62 = vrot.slane %v7649_v26, 4 }
 0x21a   :  { %6048 = vmatprep.subr.bf16.mxu0 %v6540_v63  ;;  %v6583_v63 = vld [vmem:[%s8398_s3 + $0x248] sm:$0xff]  }
 0x21c   :  { %5851 = vmatpush3.bf16.msra.mxu1 %v6541_v2  ;;  %v6584_v2 = vld [vmem:[%s8398_s3 + $0x7c8] sm:$0xff]  }
 0x21d   :  { %6049 = vmatpush3.bf16.msra.mxu0 %v6542_v4  ;;  %5852 = vmatprep.subr.bf16.mxu1 %v6543_v5  ;;  %v6585_v4 = vld [vmem:[%s8398_s3 + $0x208] sm:$0xff]  }
 0x21e   :  { %6050 = vmatprep.subr.bf16.mxu0 %v6544_v6  ;;  %v6586_v5 = vld [vmem:[%s8398_s3 + $0x788] sm:$0xff]   ;;  %v6587_v6 = vld [vmem:[%s8398_s3 + $0x250] sm:$0xff]  }
 0x220   :  { %5853 = vmatpush3.bf16.msra.mxu1 %v6545_v8  ;;  %v6588_v8 = vld [vmem:[%s8398_s3 + $0x7d0] sm:$0xff]  }
 0x221   :  { %6051 = vmatpush3.bf16.msra.mxu0 %v6546_v9  ;;  %5860 = vmatprep.subr.bf16.mxu1 %v6547_v10  ;;  %v6589_v9 = vld [vmem:[%s8398_s3 + $0x210] sm:$0xff]  }
 0x222   :  { %6080 = vmatprep.subr.bf16.mxu0 %v6548_v11  ;;  %v6590_v10 = vld [vmem:[%s8398_s3 + $0x790] sm:$0xff]   ;;  %v6591_v11 = vld [vmem:[%s8398_s3 + $0x258] sm:$0xff]  }
 0x223   :  { %2260 = vmatmul.mubr.bf16.vlgmr.msra.gmra.mrb[8].mxu1 %v7525_v14  ;;  %v4380_v14 = vrot.slane %v7692_v1, 4 }
 0x224   :  { %3820 = vmatmul.mubr.bf16.vlgmr.msra.gmra.mrb[36].mxu0 %v3687_v15  ;;  %5861 = vmatpush3.bf16.msra.mxu1 %v6549_v12  ;;  %v6592_v12 = vld [vmem:[%s8398_s3 + $0x7d8] sm:$0xff]  }
 0x225   :  { %2435 = vmatprep.mubr.bf16.mxu1 %v2304_v17  ;;  %6081 = vmatpush3.bf16.msra.mxu0 %v6550_v13  ;;  %v6593_v13 = vld [vmem:[%s8398_s3 + $0x218] sm:$0xff]   ;;  %v6596_v17 = vld [vmem:[%s8398_s3 + $0x7e0] sm:$0xff]  }
 0x226   :  { %4165 = vmatprep.mubr.bf16.mxu0 %v4034_v19  ;;  %5862 = vmatprep.subr.bf16.mxu1 %v6551_v16  ;;  %v6594_v15 = vld [vmem:[%s8398_s3 + $0x798] sm:$0xff]   ;;  %v6595_v16 = vld [vmem:[%s8398_s3 + $0x260] sm:$0xff]  }
 0x227   :  { %6082 = vmatprep.subr.bf16.mxu0 %v6552_v18  ;;  %v6597_v18 = vld [vmem:[%s8398_s3 + $0x220] sm:$0xff]  }
 0x228   :  { %5863 = vmatpush3.bf16.msra.mxu1 %v6553_v20  ;;  %v6598_v19 = vld [vmem:[%s8398_s3 + $0x7a0] sm:$0xff]   ;;  %v6599_v20 = vld [vmem:[%s8398_s3 + $0x268] sm:$0xff]  }
 0x229   :  { %6083 = vmatpush3.bf16.msra.mxu0 %v6554_v22  ;;  %5864 = vmatprep.subr.bf16.mxu1 %v6555_v21  ;;  %v6600_v22 = vld [vmem:[%s8398_s3 + $0x7e8] sm:$0xff]  }
 0x22a   :  { %6084 = vmatprep.subr.bf16.mxu0 %v6556_v23  ;;  %v6601_v21 = vld [vmem:[%s8398_s3 + $0x228] sm:$0xff]  }
 0x22b   :  { %v6602_v23 = vld [vmem:[%s8398_s3 + $0x7a8] sm:$0xff]  }
 0x22c   :  { %5865 = vmatpush3.bf16.msra.mxu1 %v6557_v24  ;;  %v6603_v24 = vld [vmem:[%s8398_s3 + $0x270] sm:$0xff]  }
 0x22d   :  { %6085 = vmatpush3.bf16.msra.mxu0 %v6558_v27  ;;  %5866 = vmatprep.subr.bf16.mxu1 %v6559_v28  ;;  %v6604_v27 = vld [vmem:[%s8398_s3 + $0x7f0] sm:$0xff]  }
 0x22e   :  { %6086 = vmatprep.subr.bf16.mxu0 %v6560_v29  ;;  %v6605_v28 = vld [vmem:[%s8398_s3 + $0x230] sm:$0xff]  }
 0x22f   :  { %v6606_v29 = vld [vmem:[%s8398_s3 + $0x7b0] sm:$0xff]  }
 0x230   :  { %5867 = vmatpush3.bf16.msra.mxu1 %v6561_v30  ;;  %v6607_v30 = vld [vmem:[%s8398_s3 + $0x278] sm:$0xff]  }
 0x231   :  { %6087 = vmatpush3.bf16.msra.mxu0 %v6562_v32  ;;  %5868 = vmatprep.subr.bf16.mxu1 %v6563_v33  ;;  %v6608_v32 = vld [vmem:[%s8398_s3 + $0x7f8] sm:$0xff]  }
 0x232   :  { %6088 = vmatprep.subr.bf16.mxu0 %v6564_v34  ;;  %v6609_v33 = vld [vmem:[%s8398_s3 + $0x238] sm:$0xff]  }
 0x233   :  { %v6610_v34 = vld [vmem:[%s8398_s3 + $0x7b8] sm:$0xff]  }
 0x234   :  { %5869 = vmatpush3.bf16.msra.mxu1 %v6565_v42  ;;  %v6611_v42 = vld [vmem:[%s8398_s3 + $0x2c0] sm:$0xff]  }
 0x235   :  { %6089 = vmatpush3.bf16.msra.mxu0 %v6566_v43  ;;  %5870 = vmatprep.subr.bf16.mxu1 %v6567_v44  ;;  %v6612_v43 = vld [vmem:[%s8398_s3 + $0x280] sm:$0xff]   ;;  %v6613_v44 = vld [vmem:[%s8398_s3 + $0x2c8] sm:$0xff]  }
 0x236   :  { %6090 = vmatprep.subr.bf16.mxu0 %v6568_v45  ;;  %v4379_v45 = vrot.slane %v7681_v60, 4 }
 0x238   :  { %5871 = vmatpush3.bf16.msra.mxu1 %v6569_v46  ;;  %v2650_v46 = vrot.slane %v7552_v48, 4 }
 0x239   :  { %6091 = vmatpush3.bf16.msra.mxu0 %v6570_v47  ;;  %5872 = vmatprep.subr.bf16.mxu1 %v6571_v49  ;;  %v6614_v47 = vld [vmem:[%s8398_s3 + $0x288] sm:$0xff]   ;;  %v6615_v49 = vld [vmem:[%s8398_s3 + $0x2d0] sm:$0xff]  }
 0x23a   :  { %6092 = vmatprep.subr.bf16.mxu0 %v6572_v50  ;;  %v6616_v50 = vld [vmem:[%s8398_s3 + $0x290] sm:$0xff]  }
 0x23c   :  { %5873 = vmatpush3.bf16.msra.mxu1 %v6573_v51  ;;  %v6618_v51 = vld [vmem:[%s8398_s3 + $0x298] sm:$0xff]  }
 0x23d   :  { %6093 = vmatpush3.bf16.msra.mxu0 %v6574_v39  ;;  %5874 = vmatprep.subr.bf16.mxu1 %v6575_v52  ;;  %v6619_v39 = vld [vmem:[%s8398_s3 + $0x2e0] sm:$0xff]  }
 0x23e   :  { %6094 = vmatprep.subr.bf16.mxu0 %v6576_v53  ;;  %v6620_v52 = vld [vmem:[%s8398_s3 + $0x2a0] sm:$0xff]   ;;  %v6621_v53 = vld [vmem:[%s8398_s3 + $0x2e8] sm:$0xff]  }
 0x240   :  { %5875 = vmatpush3.bf16.msra.mxu1 %v6577_v54  ;;  %v6622_v54 = vld [vmem:[%s8398_s3 + $0x2a8] sm:$0xff]  }
 0x241   :  { %6095 = vmatpush3.bf16.msra.mxu0 %v6578_v40  ;;  %5882 = vmatprep.subr.bf16.mxu1 %v6579_v55  ;;  %v6623_v40 = vld [vmem:[%s8398_s3 + $0x2f0] sm:$0xff]  }
 0x242   :  { %6124 = vmatprep.subr.bf16.mxu0 %v6580_v56  ;;  %v6624_v55 = vld [vmem:[%s8398_s3 + $0x2b0] sm:$0xff]   ;;  %v6625_v56 = vld [vmem:[%s8398_s3 + $0x2f8] sm:$0xff]  }
 0x243   :  { %2436 = vmatmul.mubr.bf16.vlgmr.msra.gmra.mrb[12].mxu1 %v2303_v61  ;;  %v6627_v61 = vld [vmem:[%s8398_s3 + $0x340] sm:$0xff]  }
 0x244   :  { %4166 = vmatmul.mubr.bf16.vlgmr.msra.gmra.mrb[40].mxu0 %v4033_v62  ;;  %5883 = vmatpush3.bf16.msra.mxu1 %v6581_v57  ;;  %v6626_v57 = vld [vmem:[%s8398_s3 + $0x2b8] sm:$0xff]   ;;  %v2649_v62 = vrot.slane %v7546_v41, 4 }
 0x245   :  { %2605 = vmatprep.mubr.bf16.mxu1 %v7552_v48  ;;  %6125 = vmatpush3.bf16.msra.mxu0 %v6582_v58  ;;  %v6617_v48 = vld [vmem:[%s8398_s3 + $0x2d8] sm:$0xff]   ;;  %v6628_v58 = vld [vmem:[%s8398_s3 + $0x300] sm:$0xff]  }
 0x246   :  { %4511 = vmatprep.mubr.bf16.mxu0 %v4380_v14  ;;  %5884 = vmatprep.subr.bf16.mxu1 %v6583_v63  ;;  %v6629_v63 = vld [vmem:[%s8398_s3 + $0x348] sm:$0xff]   ;;  %v6631_v14 = vld [vmem:[%s8398_s3 + $0x350] sm:$0xff]  }
 0x247   :  { %6126 = vmatprep.subr.bf16.mxu0 %v6584_v2  ;;  %v6630_v2 = vld [vmem:[%s8398_s3 + $0x308] sm:$0xff]  }
 0x248   :  { %5885 = vmatpush3.bf16.msra.mxu1 %v6585_v4  ;;  %v6633_v4 = vld [vmem:[%s8398_s3 + $0x358] sm:$0xff]  }
 0x249   :  { %6127 = vmatpush3.bf16.msra.mxu0 %v6586_v5  ;;  %5886 = vmatprep.subr.bf16.mxu1 %v6587_v6  ;;  %v6634_v5 = vld [vmem:[%s8398_s3 + $0x318] sm:$0xff]   ;;  %v6635_v6 = vld [vmem:[%s8398_s3 + $0x360] sm:$0xff]  }
 0x24a   :  { %6128 = vmatprep.subr.bf16.mxu0 %v6588_v8  ;;  %v6636_v8 = vld [vmem:[%s8398_s3 + $0x320] sm:$0xff]  }
 0x24c   :  { %5887 = vmatpush3.bf16.msra.mxu1 %v6589_v9  ;;  %v6637_v9 = vld [vmem:[%s8398_s3 + $0x368] sm:$0xff]  }
 0x24d   :  { %6129 = vmatpush3.bf16.msra.mxu0 %v6590_v10  ;;  %5888 = vmatprep.subr.bf16.mxu1 %v6591_v11  ;;  %v6638_v10 = vld [vmem:[%s8398_s3 + $0x328] sm:$0xff]   ;;  %v6639_v11 = vld [vmem:[%s8398_s3 + $0x370] sm:$0xff]  }
 0x24e   :  { %6130 = vmatprep.subr.bf16.mxu0 %v6592_v12  ;;  %v6640_v12 = vld [vmem:[%s8398_s3 + $0x330] sm:$0xff]  }
 0x250   :  { %5889 = vmatpush3.bf16.msra.mxu1 %v6593_v13  ;;  %v6641_v13 = vld [vmem:[%s8398_s3 + $0x378] sm:$0xff]  }
 0x251   :  { %6131 = vmatpush3.bf16.msra.mxu0 %v6594_v15  ;;  %5890 = vmatprep.subr.bf16.mxu1 %v6595_v16  ;;  %v6642_v15 = vld [vmem:[%s8398_s3 + $0x338] sm:$0xff]   ;;  %v6643_v16 = vld [vmem:[%s8398_s3 + $0x3c0] sm:$0xff]  }
 0x252   :  { %6132 = vmatprep.subr.bf16.mxu0 %v6596_v17  ;;  %v6644_v17 = vld [vmem:[%s8398_s3 + $0x380] sm:$0xff]  }
 0x254   :  { %5891 = vmatpush3.bf16.msra.mxu1 %v6597_v18  ;;  %v6645_v18 = vld [vmem:[%s8398_s3 + $0x3c8] sm:$0xff]  }
 0x255   :  { %6133 = vmatpush3.bf16.msra.mxu0 %v6598_v19  ;;  %5892 = vmatprep.subr.bf16.mxu1 %v6599_v20  ;;  %v2996_v19 = vrot.slane %v7572_v7, 4  ;;  %v6646_v20 = vld [vmem:[%s8398_s3 + $0x388] sm:$0xff]  }
 0x256   :  { %6134 = vmatprep.subr.bf16.mxu0 %v6600_v22  ;;  %v6647_v22 = vld [vmem:[%s8398_s3 + $0x3d0] sm:$0xff]  }
 0x258   :  { %5893 = vmatpush3.bf16.msra.mxu1 %v6601_v21  ;;  %v6648_v21 = vld [vmem:[%s8398_s3 + $0x390] sm:$0xff]  }
 0x259   :  { %6135 = vmatpush3.bf16.msra.mxu0 %v6602_v23  ;;  %5894 = vmatprep.subr.bf16.mxu1 %v6603_v24  ;;  %v6650_v23 = vld [vmem:[%s8398_s3 + $0x398] sm:$0xff]   ;;  %v6651_v24 = vld [vmem:[%s8398_s3 + $0x3e0] sm:$0xff]  }
 0x25a   :  { %6136 = vmatprep.subr.bf16.mxu0 %v6604_v27  ;;  %v6652_v27 = vld [vmem:[%s8398_s3 + $0x3a0] sm:$0xff]  }
 0x25c   :  { %5895 = vmatpush3.bf16.msra.mxu1 %v6605_v28  ;;  %v6653_v28 = vld [vmem:[%s8398_s3 + $0x3e8] sm:$0xff]  }
 0x25d   :  { %6137 = vmatpush3.bf16.msra.mxu0 %v6606_v29  ;;  %5896 = vmatprep.subr.bf16.mxu1 %v6607_v30  ;;  %v6654_v29 = vld [vmem:[%s8398_s3 + $0x3a8] sm:$0xff]   ;;  %v6655_v30 = vld [vmem:[%s8398_s3 + $0x3f0] sm:$0xff]  }
 0x25e   :  { %6138 = vmatprep.subr.bf16.mxu0 %v6608_v32 }
 0x260   :  { %5897 = vmatpush3.bf16.msra.mxu1 %v6609_v33 }
 0x261   :  { %6139 = vmatpush3.bf16.msra.mxu0 %v6610_v34  ;;  %5904 = vmatprep.subr.bf16.mxu1 %v6611_v42 }
 0x263   :  { %2606 = vmatmul.mubr.bf16.vlgmr.msra.gmra.mrb[16].mxu1 %v7546_v41  ;;  %v6632_v41 = vld [vmem:[%s8398_s3 + $0x310] sm:$0xff]  }
 0x264   :  { %4512 = vmatmul.mubr.bf16.vlgmr.msra.gmra.mrb[44].mxu0 %v4379_v45  ;;  %5905 = vmatpush3.bf16.msra.mxu1 %v6612_v43  ;;  %v6656_v43 = vld [vmem:[%s8398_s3 + $0x3b0] sm:$0xff]   ;;  %v6657_v45 = vld [vmem:[%s8398_s3 + $0x3f8] sm:$0xff]  }
 0x265   :  { %2781 = vmatprep.mubr.bf16.mxu1 %v2650_v46  ;;  %5906 = vmatprep.subr.bf16.mxu1 %v6613_v44  ;;  %v6658_v46 = vld [vmem:[%s8398_s3 + $0x3b8] sm:$0xff]  }
 0x268   :  { %5907 = vmatpush3.bf16.msra.mxu1 %v6614_v47  ;;  %v6659_v47 = vld [vmem:[%s8398_s3 + $0x440] sm:$0xff]  }
 0x269   :  { %5908 = vmatprep.subr.bf16.mxu1 %v6615_v49  ;;  %v6660_v49 = vld [vmem:[%s8398_s3 + $0x400] sm:$0xff]  }
 0x26c   :  { %5909 = vmatpush3.bf16.msra.mxu1 %v6616_v50  ;;  %v2995_v50 = vrot.slane %v7566_v0, 4 }
 0x26d   :  { %5910 = vmatprep.subr.bf16.mxu1 %v6617_v48  ;;  %v6661_v48 = vld [vmem:[%s8398_s3 + $0x448] sm:$0xff]  }
 0x270   :  { %5911 = vmatpush3.bf16.msra.mxu1 %v6618_v51  ;;  %v6662_v51 = vld [vmem:[%s8398_s3 + $0x408] sm:$0xff]  }
 0x271   :  { %5912 = vmatprep.subr.bf16.mxu1 %v6619_v39  ;;  %v6663_v39 = vld [vmem:[%s8398_s3 + $0x450] sm:$0xff]  }
 0x274   :  { %5913 = vmatpush3.bf16.msra.mxu1 %v6620_v52  ;;  %v6665_v52 = vld [vmem:[%s8398_s3 + $0x458] sm:$0xff]  }
 0x275   :  { %5914 = vmatprep.subr.bf16.mxu1 %v6621_v53  ;;  %v6667_v53 = vld [vmem:[%s8398_s3 + $0x460] sm:$0xff]  }
 0x278   :  { %5915 = vmatpush3.bf16.msra.mxu1 %v6622_v54  ;;  %v6668_v54 = vld [vmem:[%s8398_s3 + $0x420] sm:$0xff]  }
 0x279   :  { %5916 = vmatprep.subr.bf16.mxu1 %v6623_v40  ;;  %v6669_v40 = vld [vmem:[%s8398_s3 + $0x468] sm:$0xff]  }
 0x27c   :  { %5917 = vmatpush3.bf16.msra.mxu1 %v6624_v55  ;;  %v6670_v55 = vld [vmem:[%s8398_s3 + $0x428] sm:$0xff]  }
 0x27d   :  { %5918 = vmatprep.subr.bf16.mxu1 %v6625_v56  ;;  %v6671_v56 = vld [vmem:[%s8398_s3 + $0x470] sm:$0xff]  }
 0x280   :  { %5919 = vmatpush3.bf16.msra.mxu1 %v6626_v57 }
 0x281   :  { %5926 = vmatprep.subr.bf16.mxu1 %v6627_v61 }
 0x283   :  { %2782 = vmatmul.mubr.bf16.vlgmr.msra.gmra.mrb[20].mxu1 %v2649_v62 }
 0x284   :  { %5927 = vmatpush3.bf16.msra.mxu1 %v6628_v58  ;;  %2951 = vmatprep.mubr.bf16.mxu1 %v7572_v7  ;;  %v6649_v7 = vld [vmem:[%s8398_s3 + $0x3d8] sm:$0xff]  }
 0x285   :  { %5928 = vmatprep.subr.bf16.mxu1 %v6629_v63 }
 0x288   :  { %5929 = vmatpush3.bf16.msra.mxu1 %v6630_v2 }
 0x289   :  { %5930 = vmatprep.subr.bf16.mxu1 %v6631_v14 }
 0x28c   :  { %5931 = vmatpush3.bf16.msra.mxu1 %v6632_v41 }
 0x28d   :  { %5932 = vmatprep.subr.bf16.mxu1 %v6633_v4  ;;  %v6672_v4 = vld [vmem:[%s8398_s3 + $0x430] sm:$0xff]  }
 0x290   :  { %5933 = vmatpush3.bf16.msra.mxu1 %v6634_v5 }
 0x291   :  { %5934 = vmatprep.subr.bf16.mxu1 %v6635_v6 }
 0x294   :  { %5935 = vmatpush3.bf16.msra.mxu1 %v6636_v8  ;;  %v6673_v8 = vld [vmem:[%s8398_s3 + $0x478] sm:$0xff]  }
 0x295   :  { %5936 = vmatprep.subr.bf16.mxu1 %v6637_v9 }
 0x298   :  { %5937 = vmatpush3.bf16.msra.mxu1 %v6638_v10  ;;  %v6674_v10 = vld [vmem:[%s8398_s3 + $0x438] sm:$0xff]  }
 0x299   :  { %5938 = vmatprep.subr.bf16.mxu1 %v6639_v11  ;;  %v6675_v11 = vld [vmem:[%s8398_s3 + $0x540] sm:$0xff]  }
 0x29c   :  { %5939 = vmatpush3.bf16.msra.mxu1 %v6640_v12  ;;  %v6676_v12 = vld [vmem:[%s8398_s3 + $0x500] sm:$0xff]  }
 0x29d   :  { %5940 = vmatprep.subr.bf16.mxu1 %v6641_v13  ;;  %v6677_v13 = vld [vmem:[%s8398_s3 + $0x548] sm:$0xff]  }
 0x2a0   :  { %5941 = vmatpush3.bf16.msra.mxu1 %v6642_v15  ;;  %v6678_v15 = vld [vmem:[%s8398_s3 + $0x508] sm:$0xff]  }
 0x2a1   :  { %5948 = vmatprep.subr.bf16.mxu1 %v6643_v16  ;;  %v6679_v16 = vld [vmem:[%s8398_s3 + $0x550] sm:$0xff]  }
 0x2a3   :  { %2952 = vmatmul.mubr.bf16.vlgmr.msra.gmra.mrb[24].mxu1 %v7566_v0  ;;  %v6664_v0 = vld [vmem:[%s8398_s3 + $0x410] sm:$0xff]  }
 0x2a4   :  { %5949 = vmatpush3.bf16.msra.mxu1 %v6644_v17  ;;  %3127 = vmatprep.mubr.bf16.mxu1 %v2996_v19  ;;  %v6680_v17 = vld [vmem:[%s8398_s3 + $0x510] sm:$0xff]   ;;  %v6684_v19 = vld [vmem:[%s8398_s3 + $0x520] sm:$0xff]  }
 0x2a5   :  { %5950 = vmatprep.subr.bf16.mxu1 %v6645_v18  ;;  %v6683_v18 = vld [vmem:[%s8398_s3 + $0x560] sm:$0xff]  }
 0x2a8   :  { %5951 = vmatpush3.bf16.msra.mxu1 %v6646_v20  ;;  %v6685_v20 = vld [vmem:[%s8398_s3 + $0x568] sm:$0xff]  }
 0x2a9   :  { %5952 = vmatprep.subr.bf16.mxu1 %v6647_v22  ;;  %v6686_v22 = vld [vmem:[%s8398_s3 + $0x528] sm:$0xff]  }
 0x2ac   :  { %5953 = vmatpush3.bf16.msra.mxu1 %v6648_v21  ;;  %v6687_v21 = vld [vmem:[%s8398_s3 + $0x570] sm:$0xff]  }
 0x2ad   :  { %5954 = vmatprep.subr.bf16.mxu1 %v6649_v7 }
 0x2b0   :  { %5955 = vmatpush3.bf16.msra.mxu1 %v6650_v23 }
 0x2b1   :  { %5956 = vmatprep.subr.bf16.mxu1 %v6651_v24 }
 0x2b4   :  { %5957 = vmatpush3.bf16.msra.mxu1 %v6652_v27 }
 0x2b5   :  { %5958 = vmatprep.subr.bf16.mxu1 %v6653_v28 }
 0x2b6   :  { %v5810_v32 = vpop.f32.mrb[0].mxu1 }
 0x2b7   :  { %v5811_v33 = vpop.f32.mrb[1].mxu1 }
 0x2b8   :  { %v5812_v34 = vadd.f32 %v5811_v33, %v5810_v32  ;;  %5959 = vmatpush3.bf16.msra.mxu1 %v6654_v29  ;;  %v5813_v42 = vpop.f32.mrb[2].mxu1 }
 0x2b9   :  { %v5814_v44 = vpop.f32.mrb[3].mxu1  ;;  %5960 = vmatprep.subr.bf16.mxu1 %v6655_v30  ;;  %v6688_v30 = vld [vmem:[%s8398_s3 + $0x530] sm:$0xff]   ;;  %v6689_v42 = vld [vmem:[%s8398_s3 + $0x578] sm:$0xff]  }
 0x2bc   :  { %5961 = vmatpush3.bf16.msra.mxu1 %v6656_v43 }
 0x2bd   :  { %5962 = vmatprep.subr.bf16.mxu1 %v6657_v45  ;;  %v6690_v45 = vld [vmem:[%s8398_s3 + $0x538] sm:$0xff]  }
 0x2c0   :  { %5963 = vmatpush3.bf16.msra.mxu1 %v6658_v46  ;;  %v6691_v46 = vld [vmem:[%s8398_s3 + $0x640] sm:$0xff]  }
 0x2c1   :  { %5970 = vmatprep.subr.bf16.mxu1 %v6659_v47  ;;  %v6692_v47 = vld [vmem:[%s8398_s3 + $0x600] sm:$0xff]  }
 0x2c3   :  { %3128 = vmatmul.mubr.bf16.vlgmr.msra.gmra.mrb[28].mxu1 %v2995_v50  ;;  %v6694_v50 = vld [vmem:[%s8398_s3 + $0x608] sm:$0xff]  }
 0x2c4   :  { %5971 = vmatpush3.bf16.msra.mxu1 %v6660_v49  ;;  %3297 = vmatprep.mubr.bf16.mxu1 %v7592_v31  ;;  %v6666_v31 = vld [vmem:[%s8398_s3 + $0x418] sm:$0xff]   ;;  %v6693_v49 = vld [vmem:[%s8398_s3 + $0x648] sm:$0xff]  }
 0x2c5   :  { %5972 = vmatprep.subr.bf16.mxu1 %v6661_v48  ;;  %v6695_v48 = vld [vmem:[%s8398_s3 + $0x650] sm:$0xff]  }
 0x2c8   :  { %5973 = vmatpush3.bf16.msra.mxu1 %v6662_v51  ;;  %v6696_v51 = vld [vmem:[%s8398_s3 + $0x610] sm:$0xff]  }
 0x2c9   :  { %5974 = vmatprep.subr.bf16.mxu1 %v6663_v39  ;;  %v6699_v39 = vld [vmem:[%s8398_s3 + $0x660] sm:$0xff]  }
 0x2cc   :  { %5975 = vmatpush3.bf16.msra.mxu1 %v6664_v0  ;;  %v6700_v0 = vld [vmem:[%s8398_s3 + $0x620] sm:$0xff]  }
 0x2cd   :  { %5976 = vmatprep.subr.bf16.mxu1 %v6665_v52  ;;  %v6701_v52 = vld [vmem:[%s8398_s3 + $0x668] sm:$0xff]  }
 0x2d0   :  { %5977 = vmatpush3.bf16.msra.mxu1 %v6666_v31  ;;  %v6702_v31 = vld [vmem:[%s8398_s3 + $0x628] sm:$0xff]  }
 0x2d1   :  { %5978 = vmatprep.subr.bf16.mxu1 %v6667_v53  ;;  %v6703_v53 = vld [vmem:[%s8398_s3 + $0x670] sm:$0xff]  }
 0x2d4   :  { %5979 = vmatpush3.bf16.msra.mxu1 %v6668_v54 }
 0x2d5   :  { %5980 = vmatprep.subr.bf16.mxu1 %v6669_v40 }
 0x2d6   :  { %v5832_v57 = vpop.f32.mrb[4].mxu1  ;;  %v6008_v61 = vpop.f32.mrb[32].mxu0 }
 0x2d7   :  { %v5833_v58 = vpop.f32.mrb[5].mxu1  ;;  %v6009_v62 = vpop.f32.mrb[33].mxu0 }
 0x2d8   :  { %v5834_v63 = vadd.f32 %v5833_v58, %v5832_v57  ;;  %v5835_v2 = vpop.f32.mrb[6].mxu1  ;;  %5981 = vmatpush3.bf16.msra.mxu1 %v6670_v55  ;;  %v8104_v14 = vadd.f32 %v6009_v62, %v6008_v61  ;;  %v6011_v41 = vpop.f32.mrb[34].mxu0  ;;  %v6704_v58 = vld [vmem:[%s8398_s3 + $0x630] sm:$0xff]  }
 0x2d9   :  { %v5836_v5 = vpop.f32.mrb[7].mxu1  ;;  %v6012_v6 = vpop.f32.mrb[35].mxu0  ;;  %5982 = vmatprep.subr.bf16.mxu1 %v6671_v56  ;;  %v6705_v41 = vld [vmem:[%s8398_s3 + $0x678] sm:$0xff]  }
 0x2da   :  { %v2093_v9 = vadd.f32 %v5834_v63, %v5812_v34  ;;  %v6706_v6 = vld [vmem:[%s8398_s3 + $0x638] sm:$0xff]  }
 0x2dc   :  { %5983 = vmatpush3.bf16.msra.mxu1 %v6672_v4 }
 0x2dd   :  { %5984 = vmatprep.subr.bf16.mxu1 %v6673_v8  ;;  %v6707_v8 = vld [vmem:[%s8398_s3 + $0x740] sm:$0xff]  }
 0x2e0   :  { %5985 = vmatpush3.bf16.msra.mxu1 %v6674_v10  ;;  %v6709_v10 = vld [vmem:[%s8398_s3 + $0x748] sm:$0xff]  }
 0x2e1   :  { %6014 = vmatprep.subr.bf16.mxu1 %v6675_v11  ;;  %v6710_v11 = vld [vmem:[%s8398_s3 + $0x708] sm:$0xff]  }
 0x2e3   :  { %3298 = vmatmul.mubr.bf16.vlgmr.msra.gmra.mrb[32].mxu1 %v7586_v25  ;;  %v6681_v25 = vld [vmem:[%s8398_s3 + $0x558] sm:$0xff]  }
 0x2e4   :  { %6015 = vmatpush3.bf16.msra.mxu1 %v6676_v12  ;;  %3643 = vmatprep.mubr.bf16.mxu1 %v7628_v3  ;;  %v6682_v3 = vld [vmem:[%s8398_s3 + $0x518] sm:$0xff]   ;;  %v6711_v12 = vld [vmem:[%s8398_s3 + $0x750] sm:$0xff]  }
 0x2e5   :  { %6016 = vmatprep.subr.bf16.mxu1 %v6677_v13  ;;  %v6712_v13 = vld [vmem:[%s8398_s3 + $0x710] sm:$0xff]  }
 0x2e8   :  { %6017 = vmatpush3.bf16.msra.mxu1 %v6678_v15  ;;  %v6715_v15 = vld [vmem:[%s8398_s3 + $0x760] sm:$0xff]  }
 0x2e9   :  { %6018 = vmatprep.subr.bf16.mxu1 %v6679_v16  ;;  %v6716_v16 = vld [vmem:[%s8398_s3 + $0x720] sm:$0xff]  }
 0x2ec   :  { %6019 = vmatpush3.bf16.msra.mxu1 %v6680_v17  ;;  %v6717_v17 = vld [vmem:[%s8398_s3 + $0x768] sm:$0xff]  }
 0x2ed   :  { %6020 = vmatprep.subr.bf16.mxu1 %v6681_v25  ;;  %v6718_v25 = vld [vmem:[%s8398_s3 + $0x728] sm:$0xff]  }
 0x2f0   :  { %6021 = vmatpush3.bf16.msra.mxu1 %v6682_v3  ;;  %v6719_v3 = vld [vmem:[%s8398_s3 + $0x770] sm:$0xff]  }
 0x2f1   :  { %6022 = vmatprep.subr.bf16.mxu1 %v6683_v18 }
 0x2f4   :  { %6023 = vmatpush3.bf16.msra.mxu1 %v6684_v19 }
 0x2f5   :  { %6024 = vmatprep.subr.bf16.mxu1 %v6685_v20 }
 0x2f6   :  { %v5854_v7 = vpop.f32.mrb[8].mxu1 }
 0x2f7   :  { %v6052_v23 = vpop.f32.mrb[36].mxu0  ;;  %v5855_v24 = vpop.f32.mrb[9].mxu1 }
 0x2f8   :  { %v5856_v27 = vadd.f32 %v5855_v24, %v5854_v7  ;;  %v6053_v28 = vpop.f32.mrb[37].mxu0  ;;  %v5857_v29 = vpop.f32.mrb[10].mxu1  ;;  %6025 = vmatpush3.bf16.msra.mxu1 %v6686_v22 }
 0x2f9   :  { %v8159_v32 = vadd.f32 %v6053_v28, %v6052_v23  ;;  %v6055_v33 = vpop.f32.mrb[38].mxu0  ;;  %v5858_v34 = vpop.f32.mrb[11].mxu1  ;;  %6026 = vmatprep.subr.bf16.mxu1 %v6687_v21  ;;  %v6720_v23 = vld [vmem:[%s8398_s3 + $0x730] sm:$0xff]   ;;  %v6721_v29 = vld [vmem:[%s8398_s3 + $0x778] sm:$0xff]  }
 0x2fa   :  { %v2267_v43 = vadd.f32 %v5856_v27, %v2093_v9  ;;  %v6056_v44 = vpop.f32.mrb[39].mxu0  ;;  %v6708_v9 = vld [vmem:[%s8398_s3 + $0x700] sm:$0xff]   ;;  %v6722_v34 = vld [vmem:[%s8398_s3 + $0x738] sm:$0xff]  }
 0x2fc   :  { %6027 = vmatpush3.bf16.msra.mxu1 %v6688_v30 }
 0x2fd   :  { %6028 = vmatprep.subr.bf16.mxu1 %v6689_v42 }
 0x300   :  { %6029 = vmatpush3.bf16.msra.mxu1 %v6690_v45 }
 0x301   :  { %6058 = vmatprep.subr.bf16.mxu1 %v6691_v46 }
 0x303   :  { %3644 = vmatmul.mubr.bf16.vlgmr.msra.gmra.mrb[36].mxu1 %v7616_v59  ;;  %v6697_v59 = vld [vmem:[%s8398_s3 + $0x658] sm:$0xff]  }
 0x304   :  { %6059 = vmatpush3.bf16.msra.mxu1 %v6692_v47  ;;  %3989 = vmatprep.mubr.bf16.mxu1 %v7661_v37  ;;  %v6698_v37 = vld [vmem:[%s8398_s3 + $0x618] sm:$0xff]  }
 0x305   :  { %6060 = vmatprep.subr.bf16.mxu1 %v6693_v49 }
 0x308   :  { %6061 = vmatpush3.bf16.msra.mxu1 %v6694_v50 }
 0x309   :  { %6062 = vmatprep.subr.bf16.mxu1 %v6695_v48 }
 0x30c   :  { %6063 = vmatpush3.bf16.msra.mxu1 %v6696_v51 }
 0x30d   :  { %6064 = vmatprep.subr.bf16.mxu1 %v6697_v59 }
 0x310   :  { %6065 = vmatpush3.bf16.msra.mxu1 %v6698_v37 }
 0x311   :  { %6066 = vmatprep.subr.bf16.mxu1 %v6699_v39  ;;  %v6723_v39 = vld [vmem:[%s8400_s5] ss:$16 sps:$4 sm:$0xff]  }
 0x314   :  { %6067 = vmatpush3.bf16.msra.mxu1 %v6700_v0  ;;  %v6726_v0 = vld [vmem:[%s8400_s5 + $0x8] ss:$16 sps:$4 sm:$0xff]  }
 0x315   :  { %6068 = vmatprep.subr.bf16.mxu1 %v6701_v52  ;;  %v6728_v52 = vld [vmem:[%s8400_s5 + $0xc] ss:$16 sps:$4 sm:$0xff]  }
 0x316   :  { %v5876_v54 = vpop.f32.mrb[12].mxu1  ;;  %4784 = vmatprep.subr.bf16.mxu0 %v6728_v52 }
 0x317   :  { %v6096_v40 = vpop.f32.mrb[40].mxu0  ;;  %v5877_v55 = vpop.f32.mrb[13].mxu1  ;;  %4785 = vmatpush1.bf16.msra.mxu0 %v6726_v0 }
 0x318   :  { %v5878_v56 = vadd.f32 %v5877_v55, %v5876_v54  ;;  %v6097_v57 = vpop.f32.mrb[41].mxu0  ;;  %v5879_v61 = vpop.f32.mrb[14].mxu1  ;;  %6069 = vmatpush3.bf16.msra.mxu1 %v6702_v31  ;;  %v6729_v31 = vld [vmem:[%s8400_s5 + $0x20] ss:$16 sps:$4 sm:$0xff]   ;;  %v6732_v54 = vld [vmem:[%s8400_s5 + $0x28] ss:$16 sps:$4 sm:$0xff]  }
 0x319   :  { %v8211_v62 = vadd.f32 %v6097_v57, %v6096_v40  ;;  %v6099_v63 = vpop.f32.mrb[42].mxu0  ;;  %v5880_v2 = vpop.f32.mrb[15].mxu1  ;;  %6070 = vmatprep.subr.bf16.mxu1 %v6703_v53  ;;  %v6731_v53 = vld [vmem:[%s8400_s5 + $0x24] ss:$16 sps:$4 sm:$0xff]   ;;  %v6734_v40 = vld [vmem:[%s8400_s5 + $0x2c] ss:$16 sps:$4 sm:$0xff]  }
 0x31a   :  { %v2443_v4 = vadd.f32 %v5878_v56, %v2267_v43  ;;  %v6100_v5 = vpop.f32.mrb[43].mxu0  ;;  %v6737_v55 = vld [vmem:[%s8400_s5 + $0x44] ss:$16 sps:$4 sm:$0xff]   ;;  %4786 = vmatprep.subr.bf16.mxu0 %v6734_v40  ;;  %v6735_v56 = vld [vmem:[%s8400_s5 + $0x40] ss:$16 sps:$4 sm:$0xff]  }
 0x31b   :  { %v6740_v57 = vld [vmem:[%s8400_s5 + $0x4c] ss:$16 sps:$4 sm:$0xff]   ;;  %v6738_v61 = vld [vmem:[%s8400_s5 + $0x48] ss:$16 sps:$4 sm:$0xff]   ;;  %4787 = vmatpush1.bf16.msra.mxu0 %v6732_v54  ;;  %v6741_v2 = vld [vmem:[%s8400_s5 + $0x60] ss:$16 sps:$4 sm:$0xff]  }
 0x31c   :  { %6071 = vmatpush3.bf16.msra.mxu1 %v6704_v58  ;;  %v6743_v58 = vld [vmem:[%s8400_s5 + $0x64] ss:$16 sps:$4 sm:$0xff]   ;;  %4788 = vmatprep.subr.bf16.mxu0 %v6740_v57  ;;  %v6746_v63 = vld [vmem:[%s8400_s5 + $0x6c] ss:$16 sps:$4 sm:$0xff]  }
 0x31d   :  { %6072 = vmatprep.subr.bf16.mxu1 %v6705_v41  ;;  %v6744_v41 = vld [vmem:[%s8400_s5 + $0x68] ss:$16 sps:$4 sm:$0xff]   ;;  %v6752_v5 = vld [vmem:[%s8400_s5 + $0x8c] ss:$16 sps:$4 sm:$0xff]  }
 0x31f   :  { %4789 = vmatpush1.bf16.msra.mxu0 %v6738_v61  ;;  %v4573_v61 = vsub.s32 2, %v7490_v35 }
 0x320   :  { %6073 = vmatpush3.bf16.msra.mxu1 %v6706_v6  ;;  %4790 = vmatprep.subr.bf16.mxu0 %v6746_v63  ;;  %v6747_v6 = vld [vmem:[%s8400_s5 + $0x80] ss:$16 sps:$4 sm:$0xff]  }
 0x321   :  { %6102 = vmatprep.subr.bf16.mxu1 %v6707_v8  ;;  %v6750_v8 = vld [vmem:[%s8400_s5 + $0x88] ss:$16 sps:$4 sm:$0xff]  }
 0x323   :  { %3990 = vmatmul.mubr.bf16.vlgmr.msra.gmra.mrb[40].mxu1 %v7649_v26  ;;  %v6713_v26 = vld [vmem:[%s8398_s3 + $0x758] sm:$0xff]   ;;  %4791 = vmatpush1.bf16.msra.mxu0 %v6744_v41 }
 0x324   :  { %6103 = vmatpush3.bf16.msra.mxu1 %v6708_v9  ;;  %4335 = vmatprep.mubr.bf16.mxu1 %v7692_v1  ;;  %v6714_v1 = vld [vmem:[%s8398_s3 + $0x718] sm:$0xff]  }
 0x325   :  { %6104 = vmatprep.subr.bf16.mxu1 %v6709_v10  ;;  %4792 = vmatprep.subr.bf16.mxu0 %v6752_v5  ;;  %v6753_v10 = vld [vmem:[%s8400_s5 + $0xa0] ss:$16 sps:$4 sm:$0xff]  }
 0x327   :  { %4793 = vmatpush1.bf16.msra.mxu0 %v6750_v8 }
 0x328   :  { %6105 = vmatpush3.bf16.msra.mxu1 %v6710_v11  ;;  %v6755_v11 = vld [vmem:[%s8400_s5 + $0xa4] ss:$16 sps:$4 sm:$0xff]  }
 0x329   :  { %6106 = vmatprep.subr.bf16.mxu1 %v6711_v12 }
 0x32c   :  { %6107 = vmatpush3.bf16.msra.mxu1 %v6712_v13  ;;  %v6756_v13 = vld [vmem:[%s8400_s5 + $0xa8] ss:$16 sps:$4 sm:$0xff]  }
 0x32d   :  { %6108 = vmatprep.subr.bf16.mxu1 %v6713_v26  ;;  %v6758_v26 = vld [vmem:[%s8400_s5 + $0xac] ss:$16 sps:$4 sm:$0xff]  }
 0x32e   :  { %4794 = vmatprep.subr.bf16.mxu0 %v6758_v26 }
 0x32f   :  { %4795 = vmatpush1.bf16.msra.mxu0 %v6756_v13 }
 0x330   :  { %6109 = vmatpush3.bf16.msra.mxu1 %v6714_v1 }
 0x331   :  { %6110 = vmatprep.subr.bf16.mxu1 %v6715_v15 }
 0x334   :  { %6111 = vmatpush3.bf16.msra.mxu1 %v6716_v16 }
 0x335   :  { %6112 = vmatprep.subr.bf16.mxu1 %v6717_v17 }
 0x336   :  { %v5898_v18 = vpop.f32.mrb[16].mxu1 }
 0x337   :  { %v6140_v19 = vpop.f32.mrb[44].mxu0  ;;  %v5899_v20 = vpop.f32.mrb[17].mxu1 }
 0x338   :  { %v5900_v22 = vadd.f32 %v5899_v20, %v5898_v18  ;;  %v6141_v21 = vpop.f32.mrb[45].mxu0  ;;  %v5901_v7 = vpop.f32.mrb[18].mxu1  ;;  %6113 = vmatpush3.bf16.msra.mxu1 %v6718_v25  ;;  %v6761_v25 = vld [vmem:[%s8400_s5 + $0xc4] ss:$16 sps:$4 sm:$0xff]   ;;  %v6759_v18 = vld [vmem:[%s8400_s5 + $0xc0] ss:$16 sps:$4 sm:$0xff]  }
 0x339   :  { %v8263_v24 = vadd.f32 %v6141_v21, %v6140_v19  ;;  %v6143_v27 = vpop.f32.mrb[46].mxu0  ;;  %v5902_v28 = vpop.f32.mrb[19].mxu1  ;;  %6114 = vmatprep.subr.bf16.mxu1 %v6719_v3  ;;  %v6764_v3 = vld [vmem:[%s8400_s5 + $0xcc] ss:$16 sps:$4 sm:$0xff]   ;;  %v6762_v19 = vld [vmem:[%s8400_s5 + $0xc8] ss:$16 sps:$4 sm:$0xff]  }
 0x33a   :  { %v2613_v30 = vadd.f32 %v5900_v22, %v2443_v4  ;;  %v6144_v33 = vpop.f32.mrb[47].mxu0  ;;  %v6749_v4 = vld [vmem:[%s8400_s5 + $0x84] ss:$16 sps:$4 sm:$0xff]   ;;  %4796 = vmatprep.subr.bf16.mxu0 %v6764_v3  ;;  %v6770_v22 = vld [vmem:[%s8400_s5 + $0xec] ss:$16 sps:$4 sm:$0xff]  }
 0x33b   :  { %4797 = vmatpush1.bf16.msra.mxu0 %v6762_v19  ;;  %v6767_v20 = vld [vmem:[%s8400_s5 + $0xe4] ss:$16 sps:$4 sm:$0xff]   ;;  %v6765_v21 = vld [vmem:[%s8400_s5 + $0xe0] ss:$16 sps:$4 sm:$0xff]   ;;  %v6768_v7 = vld [vmem:[%s8400_s5 + $0xe8] ss:$16 sps:$4 sm:$0xff]  }
 0x33c   :  { %6115 = vmatpush3.bf16.msra.mxu1 %v6720_v23  ;;  %4798 = vmatprep.subr.bf16.mxu0 %v6770_v22  ;;  %v6771_v23 = vmov 0  }
 0x33d   :  { %6116 = vmatprep.subr.bf16.mxu1 %v6721_v29  ;;  %4816 = vmatprep.mubr.bf16.mxu0 %v6771_v23 }
 0x33f   :  { %4799 = vmatpush1.bf16.msra.mxu0 %v6768_v7 }
 0x340   :  { %6117 = vmatpush3.bf16.msra.mxu1 %v6722_v34 }
 0x343   :  { %4336 = vmatmul.mubr.bf16.vlgmr.msra.gmra.mrb[44].mxu1 %v7681_v60  ;;  %v6725_v60 = vld [vmem:[%s8400_s5 + $0x4] ss:$16 sps:$4 sm:$0xff]  }
 0x344   :  { %4743 = vmatprep.subr.bf16.mxu1 %v6725_v60  ;;  %4775 = vmatprep.mubr.bf16.mxu1 %v6771_v23 }
 0x345   :  { %4744 = vmatpush1.bf16.msra.mxu1 %v6723_v39 }
 0x346   :  { %4745 = vmatprep.subr.bf16.mxu1 %v6731_v53 }
 0x349   :  { %4746 = vmatpush1.bf16.msra.mxu1 %v6729_v31 }
 0x34a   :  { %4747 = vmatprep.subr.bf16.mxu1 %v6737_v55  ;;  %v5761_v55 = vld [vmem:[%s8401_s4] ss:$0 sm:$0xff] }
 0x34d   :  { %4748 = vmatpush1.bf16.msra.mxu1 %v6735_v56 }
 0x34e   :  { %4749 = vmatprep.subr.bf16.mxu1 %v6743_v58  ;;  %v4577_v58 = vsub.s32 3, %v7490_v35 }
 0x351   :  { %4750 = vmatpush1.bf16.msra.mxu1 %v6741_v2 }
 0x352   :  { %4751 = vmatprep.subr.bf16.mxu1 %v6749_v4 }
 0x355   :  { %4752 = vmatpush1.bf16.msra.mxu1 %v6747_v6 }
 0x356   :  { %v5920_v42 = vpop.f32.mrb[20].mxu1  ;;  %4753 = vmatprep.subr.bf16.mxu1 %v6755_v11 }
 0x357   :  { %v5921_v43 = vpop.f32.mrb[21].mxu1 }
 0x358   :  { %v5922_v44 = vadd.f32 %v5921_v43, %v5920_v42  ;;  %v5923_v45 = vpop.f32.mrb[22].mxu1 }
 0x359   :  { %v5924_v46 = vpop.f32.mrb[23].mxu1  ;;  %4754 = vmatpush1.bf16.msra.mxu1 %v6753_v10 }
 0x35a   :  { %v2789_v47 = vadd.f32 %v5922_v44, %v2613_v30  ;;  %4755 = vmatprep.subr.bf16.mxu1 %v6761_v25 }
 0x35d   :  { %4756 = vmatpush1.bf16.msra.mxu1 %v6759_v18 }
 0x35e   :  { %4757 = vmatprep.subr.bf16.mxu1 %v6767_v20 }
 0x361   :  { %4758 = vmatpush1.bf16.msra.mxu1 %v6765_v21 }
 0x376   :  { %v5942_v49 = vpop.f32.mrb[24].mxu1 }
 0x377   :  { %v5943_v50 = vpop.f32.mrb[25].mxu1 }
 0x378   :  { %v5944_v48 = vadd.f32 %v5943_v50, %v5942_v49  ;;  %v5945_v51 = vpop.f32.mrb[26].mxu1 }
 0x379   :  { %v5946_v59 = vpop.f32.mrb[27].mxu1 }
 0x37a   :  { %v2959_v37 = vadd.f32 %v5944_v48, %v2789_v47 }
 0x396   :  { %v5964_v9 = vpop.f32.mrb[28].mxu1 }
 0x397   :  { %v5965_v12 = vpop.f32.mrb[29].mxu1 }
 0x398   :  { %v5966_v1 = vadd.f32 %v5965_v12, %v5964_v9  ;;  %v5967_v15 = vpop.f32.mrb[30].mxu1 }
 0x399   :  { %v5968_v16 = vpop.f32.mrb[31].mxu1 }
 0x39a   :  { %v3135_v17 = vadd.f32 %v5966_v1, %v2959_v37 }
 0x3b6   :  { %v5986_v27 = vpop.f32.mrb[32].mxu1 }
 0x3b7   :  { %v5987_v28 = vpop.f32.mrb[33].mxu1 }
 0x3b8   :  { %v5988_v29 = vadd.f32 %v5987_v28, %v5986_v27  ;;  %v5989_v30 = vpop.f32.mrb[34].mxu1 }
 0x3b9   :  { %v5990_v33 = vpop.f32.mrb[35].mxu1 }
 0x3ba   :  { %v3305_v34 = vadd.f32 %v5988_v29, %v3135_v17 }
 0x3bc   :  { %v3481_v42 = vadd.f32 %v8104_v14, %v3305_v34 }
 0x3d6   :  { %v6030_v43 = vpop.f32.mrb[36].mxu1 }
 0x3d7   :  { %v6031_v44 = vpop.f32.mrb[37].mxu1 }
 0x3d8   :  { %v6032_v45 = vadd.f32 %v6031_v44, %v6030_v43  ;;  %v6033_v46 = vpop.f32.mrb[38].mxu1 }
 0x3d9   :  { %v6034_v47 = vpop.f32.mrb[39].mxu1 }
 0x3da   :  { %v3651_v49 = vadd.f32 %v6032_v45, %v3481_v42 }
 0x3dc   :  { %v3827_v50 = vadd.f32 %v8159_v32, %v3651_v49 }
 0x3f6   :  { %v6074_v48 = vpop.f32.mrb[40].mxu1 }
 0x3f7   :  { %v6075_v51 = vpop.f32.mrb[41].mxu1 }
 0x3f8   :  { %v6076_v59 = vadd.f32 %v6075_v51, %v6074_v48  ;;  %v6077_v37 = vpop.f32.mrb[42].mxu1 }
 0x3f9   :  { %v6078_v39 = vpop.f32.mrb[43].mxu1 }
 0x3fa   :  { %v3997_v60 = vadd.f32 %v6076_v59, %v3827_v50 }
 0x3fc   :  { %v4173_v0 = vadd.f32 %v8211_v62, %v3997_v60  ;;  %v4561_v62 = vld [vmem:[%s8402_s6] sm:$0xf] }
 0x3fd   :  { %v4566_v63 = vrot.slane %v4561_v62, %v223_v36  ;;  %v4574_v2 = vrot.slane %v4561_v62, %v4573_v61  ;;  %v4570_v41 = vrot.slane %v4561_v62, %v227_v38 }
 0x416   :  { %v6118_v52 = vpop.f32.mrb[44].mxu1 }
 0x417   :  { %v6119_v31 = vpop.f32.mrb[45].mxu1 }
 0x418   :  { %v6120_v53 = vadd.f32 %v6119_v31, %v6118_v52  ;;  %v6121_v14 = vpop.f32.mrb[46].mxu1 }
 0x419   :  { %v6122_v54 = vpop.f32.mrb[47].mxu1 }
 0x41a   :  { %v4343_v40 = vadd.f32 %v6120_v53, %v4173_v0 }
 0x41c   :  { %v4519_v32 = vadd.f32 %v8263_v24, %v4343_v40  ;;  %v4578_v24 = vrot.slane %v4561_v62, %v4577_v58 }
 0x41e   :  { %v4527_v56 = vadd.f32 %v5761_v55, %v4519_v32 }
 0x420   :  { %v4528_v57 = vpack.c.bf16 %v4527_v56, %v4527_v56 }
 0x422   :  { %4776 = vmatmul.mubr.bf16.vlgmr.msra.gmra.mrb[48].mxu1 %v4528_v57  ;;  %4817 = vmatmul.mubr.bf16.vlgmr.msra.gmra.mrb[48].mxu0 %v4528_v57 }
 0x4f5   :  { %v4777_v4 = vpop.f32.mrb[48].mxu1  ;;  %v4818_v5 = vpop.f32.mrb[48].mxu0 }
 0x4f6   :  { %v4778_v6 = vadd.f32 %v4777_v4, %v4566_v63  ;;  %v4819_v8 = vadd.f32 %v4818_v5, %v4574_v2  ;;  %v4779_v9 = vpop.f32.mrb[49].mxu1  ;;  %v4820_v10 = vpop.f32.mrb[49].mxu0 }
 0x4f7   :  { %v4780_v11 = vadd.f32 %v4779_v9, %v4570_v41  ;;  %v4821_v12 = vadd.f32 %v4820_v10, %v4578_v24  ;;  %v4781_v13 = vpop.f32.mrb[50].mxu1  ;;  %v4822_v26 = vpop.f32.mrb[50].mxu0 }
 0x4f8   :  { %4825 = vst [vmem:[%s8403_s7] sm:$0xff] %v4778_v6  ;;  %4827 = vst [vmem:[%s8403_s7 + $0x10] sm:$0xff] %v4819_v8  ;;  %v4782_v35 = vpop.f32.mrb[51].mxu1  ;;  %v4823_v36 = vpop.f32.mrb[51].mxu0 }
 0x4f9   :  { %4826 = vst [vmem:[%s8403_s7 + $0x8] sm:$0xff] %v4780_v11  ;;  %4828 = vst [vmem:[%s8403_s7 + $0x18] sm:$0xff] %v4821_v12 }

// kernel: teacher33_forward.4
= control target key start
LH: loop header
LB: loop body
LE: loop exit
PB: predicated region body
PF: predicated region fallthrough
CT: control target
= control target key end

     0   :  { %s15564_s1 = inlined_call_operand.vmem [shape: bf16[3200,256], index: 1, kind: input, shape index: {}]   ;;  %s15565_s0 = inlined_call_operand.vmem [shape: bf16[4,56,3200], index: 0, kind: input, shape index: {}]   ;;  %s15566_s2 = inlined_call_operand.vmem [shape: f32[1,256], index: 2, kind: input, shape index: {}]   ;;  %s15567_s3 = inlined_call_operand.vmem [shape: bf16[56,256], index: 3, kind: output, shape index: {}]  }
   0x1   :  { %v10359_v0 = vld [vmem:[%s15564_s1 + $0x4] ss:$8 sps:$4 sm:$0xff]   ;;  %v10361_v1 = vld [vmem:[%s15564_s1] ss:$8 sps:$4 sm:$0xff]   ;;  %v10362_v2 = vld [vmem:[%s15564_s1 + $0x14] ss:$8 sps:$4 sm:$0xff]  }
   0x2   :  { %2972 = vmatprep.subr.bf16.mxu0 %v10359_v0  ;;  %4453 = vmatprep.subr.bf16.mxu1 %v10359_v0  ;;  %v10364_v3 = vld [vmem:[%s15564_s1 + $0x10] ss:$8 sps:$4 sm:$0xff]   ;;  %v10365_v4 = vld [vmem:[%s15564_s1 + $0x24] ss:$8 sps:$4 sm:$0xff]   ;;  %v10367_v5 = vld [vmem:[%s15564_s1 + $0x20] ss:$8 sps:$4 sm:$0xff]  }
   0x3   :  { %2973 = vmatpush1.bf16.msra.mxu0 %v10361_v1  ;;  %4454 = vmatpush1.bf16.msra.mxu1 %v10361_v1  ;;  %v10368_v6 = vld [vmem:[%s15564_s1 + $0x34] ss:$8 sps:$4 sm:$0xff]   ;;  %v10370_v7 = vld [vmem:[%s15564_s1 + $0x30] ss:$8 sps:$4 sm:$0xff]   ;;  %v10371_v8 = vld [vmem:[%s15564_s1 + $0x44] ss:$8 sps:$4 sm:$0xff]  }
   0x4   :  { %2974 = vmatprep.subr.bf16.mxu0 %v10362_v2  ;;  %4455 = vmatprep.subr.bf16.mxu1 %v10362_v2  ;;  %v10373_v9 = vld [vmem:[%s15564_s1 + $0x40] ss:$8 sps:$4 sm:$0xff]   ;;  %v10374_v10 = vld [vmem:[%s15564_s1 + $0x54] ss:$8 sps:$4 sm:$0xff]   ;;  %v10376_v11 = vld [vmem:[%s15564_s1 + $0x50] ss:$8 sps:$4 sm:$0xff]  }
   0x5   :  { %v10377_v12 = vld [vmem:[%s15564_s1 + $0x64] ss:$8 sps:$4 sm:$0xff]   ;;  %v10379_v14 = vld [vmem:[%s15564_s1 + $0x60] ss:$8 sps:$4 sm:$0xff]   ;;  %v10380_v15 = vld [vmem:[%s15564_s1 + $0x74] ss:$8 sps:$4 sm:$0xff]  }
   0x6   :  { %v10409_v13 = vld [vmem:[%s15565_s0 + $0x4] ss:$100 sps:$4 sm:$0xff]   ;;  %v10382_v17 = vld [vmem:[%s15564_s1 + $0x70] ss:$8 sps:$4 sm:$0xff]   ;;  %v10386_v20 = vld [vmem:[%s15564_s1 + $0x94] ss:$8 sps:$4 sm:$0xff]  }
   0x7   :  { %2975 = vmatpush1.bf16.msra.mxu0 %v10364_v3  ;;  %4456 = vmatpush1.bf16.msra.mxu1 %v10364_v3  ;;  %v10414_v16 = vld [vmem:[%s15565_s0 + $0x2c0] ss:$100 sps:$4 sm:$0xff]   ;;  %v10388_v21 = vld [vmem:[%s15564_s1 + $0x90] ss:$8 sps:$4 sm:$0xff]   ;;  %v10392_v24 = vld [vmem:[%s15564_s1 + $0xb4] ss:$8 sps:$4 sm:$0xff]  }
   0x8   :  { %2976 = vmatprep.subr.bf16.mxu0 %v10365_v4  ;;  %4457 = vmatprep.subr.bf16.mxu1 %v10365_v4  ;;  %v10383_v18 = vld [vmem:[%s15564_s1 + $0x84] ss:$8 sps:$4 sm:$0xff]   ;;  %v10385_v19 = vld [vmem:[%s15564_s1 + $0x80] ss:$8 sps:$4 sm:$0xff]   ;;  %v10394_v25 = vld [vmem:[%s15564_s1 + $0xb0] ss:$8 sps:$4 sm:$0xff]  }
   0x9   :  { %3004 = vmatprep.mubr.bf16.mxu0 %v10409_v13  ;;  %4485 = vmatprep.mubr.bf16.mxu1 %v10414_v16  ;;  %v10389_v22 = vld [vmem:[%s15564_s1 + $0xa4] ss:$8 sps:$4 sm:$0xff]   ;;  %v10391_v23 = vld [vmem:[%s15564_s1 + $0xa0] ss:$8 sps:$4 sm:$0xff]   ;;  %v10398_v28 = vld [vmem:[%s15564_s1 + $0xd4] ss:$8 sps:$4 sm:$0xff]  }
   0xa   :  { %v10395_v26 = vld [vmem:[%s15564_s1 + $0xc4] ss:$8 sps:$4 sm:$0xff]   ;;  %v10397_v27 = vld [vmem:[%s15564_s1 + $0xc0] ss:$8 sps:$4 sm:$0xff]   ;;  %v10400_v29 = vld [vmem:[%s15564_s1 + $0xd0] ss:$8 sps:$4 sm:$0xff]  }
   0xb   :  { %2977 = vmatpush1.bf16.msra.mxu0 %v10367_v5  ;;  %4458 = vmatpush1.bf16.msra.mxu1 %v10367_v5  ;;  %v10401_v30 = vld [vmem:[%s15564_s1 + $0xe4] ss:$8 sps:$4 sm:$0xff]   ;;  %v10403_v31 = vld [vmem:[%s15564_s1 + $0xe0] ss:$8 sps:$4 sm:$0xff]   ;;  %v10404_v32 = vld [vmem:[%s15564_s1 + $0xf4] ss:$8 sps:$4 sm:$0xff]  }
   0xc   :  { %2978 = vmatprep.subr.bf16.mxu0 %v10368_v6  ;;  %4459 = vmatprep.subr.bf16.mxu1 %v10368_v6  ;;  %v10406_v33 = vld [vmem:[%s15564_s1 + $0xf0] ss:$8 sps:$4 sm:$0xff]   ;;  %v10410_v34 = vld [vmem:[%s15564_s1 + $0x104] ss:$8 sps:$4 sm:$0xff]   ;;  %v10412_v36 = vld [vmem:[%s15565_s0 + $0x2bc] ss:$100 sps:$4 sm:$0xff]  }
   0xd   :  { %v10407_v35 = vld [vmem:[%s15565_s0] ss:$100 sps:$4 sm:$0xff]   ;;  %v10416_v38 = vld [vmem:[%s15564_s1 + $0x114] ss:$8 sps:$4 sm:$0xff]   ;;  %v10443_v39 = vld [vmem:[%s15565_s0 + $0xcc] ss:$100 sps:$4 sm:$0xff]  }
   0xe   :  { %v10415_v37 = vld [vmem:[%s15564_s1 + $0x100] ss:$8 sps:$4 sm:$0xff]   ;;  %v10418_v41 = vld [vmem:[%s15564_s1 + $0x110] ss:$8 sps:$4 sm:$0xff]   ;;  %v10419_v42 = vld [vmem:[%s15564_s1 + $0x124] ss:$8 sps:$4 sm:$0xff]  }
   0xf   :  { %2979 = vmatpush1.bf16.msra.mxu0 %v10370_v7  ;;  %4460 = vmatpush1.bf16.msra.mxu1 %v10370_v7  ;;  %v10447_v40 = vld [vmem:[%s15565_s0 + $0x388] ss:$100 sps:$4 sm:$0xff]   ;;  %v10422_v46 = vld [vmem:[%s15564_s1 + $0x134] ss:$8 sps:$4 sm:$0xff]   ;;  %v10424_v49 = vld [vmem:[%s15564_s1 + $0x130] ss:$8 sps:$4 sm:$0xff]  }
  0x10   :  { %2980 = vmatprep.subr.bf16.mxu0 %v10371_v8  ;;  %4461 = vmatprep.subr.bf16.mxu1 %v10371_v8  ;;  %v10449_v43 = vld [vmem:[%s15565_s0 + $0xc8] ss:$100 sps:$4 sm:$0xff]   ;;  %v10455_v47 = vld [vmem:[%s15565_s0 + $0x194] ss:$100 sps:$4 sm:$0xff]  }
  0x11   :  { %v10451_v44 = vld [vmem:[%s15565_s0 + $0x384] ss:$100 sps:$4 sm:$0xff]   ;;  %v10459_v48 = vld [vmem:[%s15565_s0 + $0x450] ss:$100 sps:$4 sm:$0xff]   ;;  %v493_v53 = vld [vmem:[%s15565_s0 + $0x258] sm:$0xff] }
  0x12   :  { %v10421_v45 = vld [vmem:[%s15564_s1 + $0x120] ss:$8 sps:$4 sm:$0xff]   ;;  %v10425_v50 = vld [vmem:[%s15564_s1 + $0x144] ss:$8 sps:$4 sm:$0xff]   ;;  %v10461_v51 = vld [vmem:[%s15565_s0 + $0x190] ss:$100 sps:$4 sm:$0xff]   ;;  %v8579_v57 = vcombine.high %v493_v53, %v493_v53  ;;  %v8578_v61 = vcombine.low %v493_v53, %v493_v53 }
  0x13   :  { %2981 = vmatpush1.bf16.msra.mxu0 %v10373_v9  ;;  %4462 = vmatpush1.bf16.msra.mxu1 %v10373_v9  ;;  %v10463_v52 = vld [vmem:[%s15565_s0 + $0x44c] ss:$100 sps:$4 sm:$0xff]   ;;  %v9081_v54 = vld [vmem:[%s15565_s0 + $0x514] sm:$0xff]  ;;  %v10427_v55 = vld [vmem:[%s15564_s1 + $0x140] ss:$8 sps:$4 sm:$0xff]  }
  0x14   :  { %2982 = vmatprep.subr.bf16.mxu0 %v10374_v10  ;;  %4463 = vmatprep.subr.bf16.mxu1 %v10374_v10  ;;  %v10428_v56 = vld [vmem:[%s15564_s1 + $0x154] ss:$8 sps:$4 sm:$0xff]   ;;  %v9170_v58 = vcombine.high %v9081_v54, %v9081_v54  ;;  %v10430_v59 = vld [vmem:[%s15564_s1 + $0x150] ss:$8 sps:$4 sm:$0xff]   ;;  %v10431_v60 = vld [vmem:[%s15564_s1 + $0x164] ss:$8 sps:$4 sm:$0xff]   ;;  %v9169_v62 = vcombine.low %v9081_v54, %v9081_v54 }
  0x15   :  { %v10433_v63 = vld [vmem:[%s15564_s1 + $0x160] ss:$8 sps:$4 sm:$0xff]   ;;  %v10434_v0 = vld [vmem:[%s15564_s1 + $0x174] ss:$8 sps:$4 sm:$0xff]   ;;  %v10479_v1 = vld [vmem:[%s15565_s0 + $0xc] ss:$100 sps:$4 sm:$0xff]  }
  0x16   :  { %v10484_v2 = vld [vmem:[%s15565_s0 + $0x2c8] ss:$100 sps:$4 sm:$0xff]   ;;  %v10436_v3 = vld [vmem:[%s15564_s1 + $0x170] ss:$8 sps:$4 sm:$0xff]   ;;  %v10440_v6 = vld [vmem:[%s15564_s1 + $0x194] ss:$8 sps:$4 sm:$0xff]  }
  0x17   :  { %2983 = vmatpush1.bf16.msra.mxu0 %v10376_v11  ;;  %4464 = vmatpush1.bf16.msra.mxu1 %v10376_v11  ;;  %v10437_v4 = vld [vmem:[%s15564_s1 + $0x184] ss:$8 sps:$4 sm:$0xff]   ;;  %v10439_v5 = vld [vmem:[%s15564_s1 + $0x180] ss:$8 sps:$4 sm:$0xff]   ;;  %v10442_v7 = vld [vmem:[%s15564_s1 + $0x190] ss:$8 sps:$4 sm:$0xff]  }
  0x18   :  { %2984 = vmatprep.subr.bf16.mxu0 %v10377_v12  ;;  %4465 = vmatprep.subr.bf16.mxu1 %v10377_v12  ;;  %v10445_v8 = vld [vmem:[%s15564_s1 + $0x1a4] ss:$8 sps:$4 sm:$0xff]   ;;  %v10450_v9 = vld [vmem:[%s15564_s1 + $0x1a0] ss:$8 sps:$4 sm:$0xff]   ;;  %v10452_v10 = vld [vmem:[%s15564_s1 + $0x1b4] ss:$8 sps:$4 sm:$0xff]  }
  0x19   :  { %v10454_v11 = vld [vmem:[%s15564_s1 + $0x1b0] ss:$8 sps:$4 sm:$0xff]   ;;  %v10457_v12 = vld [vmem:[%s15564_s1 + $0x1c4] ss:$8 sps:$4 sm:$0xff]   ;;  %v10462_v13 = vld [vmem:[%s15564_s1 + $0x1c0] ss:$8 sps:$4 sm:$0xff]  }
  0x1a   :  { %v10468_v16 = vld [vmem:[%s15564_s1 + $0x1e4] ss:$8 sps:$4 sm:$0xff]   ;;  %v10506_v53 = vld [vmem:[%s15564_s1 + $0x270] ss:$8 sps:$4 sm:$0xff]  }
  0x1b   :  { %2985 = vmatpush1.bf16.msra.mxu0 %v10379_v14  ;;  %4466 = vmatpush1.bf16.msra.mxu1 %v10379_v14  ;;  %v10464_v14 = vld [vmem:[%s15564_s1 + $0x1d4] ss:$8 sps:$4 sm:$0xff]   ;;  %v10507_v54 = vld [vmem:[%s15564_s1 + $0x284] ss:$8 sps:$4 sm:$0xff]  }
  0x1c   :  { %2986 = vmatprep.subr.bf16.mxu0 %v10380_v15  ;;  %4467 = vmatprep.subr.bf16.mxu1 %v10380_v15  ;;  %v10466_v15 = vld [vmem:[%s15564_s1 + $0x1d0] ss:$8 sps:$4 sm:$0xff]  }
  0x1f   :  { %2987 = vmatpush1.bf16.msra.mxu0 %v10382_v17  ;;  %4468 = vmatpush1.bf16.msra.mxu1 %v10382_v17  ;;  %v10472_v17 = vld [vmem:[%s15564_s1 + $0x1e0] ss:$8 sps:$4 sm:$0xff]  }
  0x20   :  { %2988 = vmatprep.subr.bf16.mxu0 %v10383_v18  ;;  %4469 = vmatprep.subr.bf16.mxu1 %v10383_v18  ;;  %v10474_v18 = vld [vmem:[%s15564_s1 + $0x1f4] ss:$8 sps:$4 sm:$0xff]  }
  0x23   :  { %2989 = vmatpush1.bf16.msra.mxu0 %v10385_v19  ;;  %4470 = vmatpush1.bf16.msra.mxu1 %v10385_v19  ;;  %v10476_v19 = vld [vmem:[%s15564_s1 + $0x1f0] ss:$8 sps:$4 sm:$0xff]  }
  0x24   :  { %2990 = vmatprep.subr.bf16.mxu0 %v10386_v20  ;;  %4471 = vmatprep.subr.bf16.mxu1 %v10386_v20  ;;  %v10480_v20 = vld [vmem:[%s15564_s1 + $0x204] ss:$8 sps:$4 sm:$0xff]  }
  0x27   :  { %2991 = vmatpush1.bf16.msra.mxu0 %v10388_v21  ;;  %4472 = vmatpush1.bf16.msra.mxu1 %v10388_v21  ;;  %v10477_v21 = vld [vmem:[%s15565_s0 + $0x8] ss:$100 sps:$4 sm:$0xff]  }
  0x28   :  { %2992 = vmatprep.subr.bf16.mxu0 %v10389_v22  ;;  %4473 = vmatprep.subr.bf16.mxu1 %v10389_v22  ;;  %v10482_v22 = vld [vmem:[%s15565_s0 + $0x2c4] ss:$100 sps:$4 sm:$0xff]  }
  0x2b   :  { %2993 = vmatpush1.bf16.msra.mxu0 %v10391_v23  ;;  %4474 = vmatpush1.bf16.msra.mxu1 %v10391_v23  ;;  %v10485_v23 = vld [vmem:[%s15564_s1 + $0x200] ss:$8 sps:$4 sm:$0xff]  }
  0x2c   :  { %2994 = vmatprep.subr.bf16.mxu0 %v10392_v24  ;;  %4475 = vmatprep.subr.bf16.mxu1 %v10392_v24  ;;  %v10486_v24 = vld [vmem:[%s15564_s1 + $0x214] ss:$8 sps:$4 sm:$0xff]  }
  0x2f   :  { %2995 = vmatpush1.bf16.msra.mxu0 %v10394_v25  ;;  %4476 = vmatpush1.bf16.msra.mxu1 %v10394_v25  ;;  %v10513_v25 = vld [vmem:[%s15565_s0 + $0xd4] ss:$100 sps:$4 sm:$0xff]  }
  0x30   :  { %2996 = vmatprep.subr.bf16.mxu0 %v10395_v26  ;;  %4477 = vmatprep.subr.bf16.mxu1 %v10395_v26  ;;  %v10488_v26 = vld [vmem:[%s15564_s1 + $0x210] ss:$8 sps:$4 sm:$0xff]  }
  0x33   :  { %2997 = vmatpush1.bf16.msra.mxu0 %v10397_v27  ;;  %4478 = vmatpush1.bf16.msra.mxu1 %v10397_v27  ;;  %v10517_v27 = vld [vmem:[%s15565_s0 + $0x390] ss:$100 sps:$4 sm:$0xff]  }
  0x34   :  { %2998 = vmatprep.subr.bf16.mxu0 %v10398_v28  ;;  %4479 = vmatprep.subr.bf16.mxu1 %v10398_v28  ;;  %v10489_v28 = vld [vmem:[%s15564_s1 + $0x224] ss:$8 sps:$4 sm:$0xff]  }
  0x37   :  { %2999 = vmatpush1.bf16.msra.mxu0 %v10400_v29  ;;  %4480 = vmatpush1.bf16.msra.mxu1 %v10400_v29  ;;  %v10519_v29 = vld [vmem:[%s15565_s0 + $0xd0] ss:$100 sps:$4 sm:$0xff]  }
  0x38   :  { %3000 = vmatprep.subr.bf16.mxu0 %v10401_v30  ;;  %4481 = vmatprep.subr.bf16.mxu1 %v10401_v30  ;;  %v10521_v30 = vld [vmem:[%s15565_s0 + $0x38c] ss:$100 sps:$4 sm:$0xff]  }
  0x3b   :  { %3001 = vmatpush1.bf16.msra.mxu0 %v10403_v31  ;;  %4482 = vmatpush1.bf16.msra.mxu1 %v10403_v31  ;;  %v10491_v31 = vld [vmem:[%s15564_s1 + $0x220] ss:$8 sps:$4 sm:$0xff]  }
  0x3c   :  { %3002 = vmatprep.subr.bf16.mxu0 %v10404_v32  ;;  %4483 = vmatprep.subr.bf16.mxu1 %v10404_v32  ;;  %v10492_v32 = vld [vmem:[%s15564_s1 + $0x234] ss:$8 sps:$4 sm:$0xff]  }
  0x3f   :  { %3003 = vmatpush1.bf16.msra.mxu0 %v10406_v33  ;;  %4484 = vmatpush1.bf16.msra.mxu1 %v10406_v33  ;;  %v10525_v33 = vld [vmem:[%s15565_s0 + $0x19c] ss:$100 sps:$4 sm:$0xff]  }
  0x40   :  { %3043 = vmatprep.subr.bf16.mxu0 %v10410_v34  ;;  %4524 = vmatprep.subr.bf16.mxu1 %v10410_v34  ;;  %v10529_v34 = vld [vmem:[%s15565_s0 + $0x458] ss:$100 sps:$4 sm:$0xff]  }
  0x42   :  { %3005 = vmatmul.mubr.bf16.vlgmr.msra.gmra.mrb[0].mxu0 %v10407_v35  ;;  %4486 = vmatmul.mubr.bf16.vlgmr.msra.gmra.mrb[0].mxu1 %v10412_v36  ;;  %v10494_v35 = vld [vmem:[%s15564_s1 + $0x230] ss:$8 sps:$4 sm:$0xff]   ;;  %v10495_v36 = vld [vmem:[%s15564_s1 + $0x244] ss:$8 sps:$4 sm:$0xff]  }
  0x43   :  { %3044 = vmatpush1.bf16.msra.mxu0 %v10415_v37  ;;  %4525 = vmatpush1.bf16.msra.mxu1 %v10415_v37  ;;  %v10531_v37 = vld [vmem:[%s15565_s0 + $0x198] ss:$100 sps:$4 sm:$0xff]  }
  0x44   :  { %3045 = vmatprep.subr.bf16.mxu0 %v10416_v38  ;;  %4526 = vmatprep.subr.bf16.mxu1 %v10416_v38  ;;  %v10533_v38 = vld [vmem:[%s15565_s0 + $0x454] ss:$100 sps:$4 sm:$0xff]  }
  0x45   :  { %3014 = vmatprep.mubr.bf16.mxu0 %v10443_v39  ;;  %4495 = vmatprep.mubr.bf16.mxu1 %v10447_v40  ;;  %v494_v39 = vld [vmem:[%s15565_s0 + $0x260] sm:$0xff] }
  0x46   :  { %v9082_v40 = vld [vmem:[%s15565_s0 + $0x51c] sm:$0xff] }
  0x47   :  { %3046 = vmatpush1.bf16.msra.mxu0 %v10418_v41  ;;  %4527 = vmatpush1.bf16.msra.mxu1 %v10418_v41  ;;  %v10497_v41 = vld [vmem:[%s15564_s1 + $0x240] ss:$8 sps:$4 sm:$0xff]  }
  0x48   :  { %3047 = vmatprep.subr.bf16.mxu0 %v10419_v42  ;;  %4528 = vmatprep.subr.bf16.mxu1 %v10419_v42  ;;  %v10498_v42 = vld [vmem:[%s15564_s1 + $0x254] ss:$8 sps:$4 sm:$0xff]  }
  0x4a   :  { %3015 = vmatmul.mubr.bf16.gmra.mrb[4].mxu0 %v10449_v43  ;;  %4496 = vmatmul.mubr.bf16.gmra.mrb[4].mxu1 %v10451_v44  ;;  %v8581_v43 = vcombine.high %v494_v39, %v494_v39  ;;  %v9172_v44 = vcombine.high %v9082_v40, %v9082_v40 }
  0x4b   :  { %3048 = vmatpush1.bf16.msra.mxu0 %v10421_v45  ;;  %4529 = vmatpush1.bf16.msra.mxu1 %v10421_v45  ;;  %v10500_v45 = vld [vmem:[%s15564_s1 + $0x250] ss:$8 sps:$4 sm:$0xff]  }
  0x4c   :  { %3049 = vmatprep.subr.bf16.mxu0 %v10422_v46  ;;  %4530 = vmatprep.subr.bf16.mxu1 %v10422_v46  ;;  %v10501_v46 = vld [vmem:[%s15564_s1 + $0x264] ss:$8 sps:$4 sm:$0xff]  }
  0x4d   :  { %3024 = vmatprep.mubr.bf16.mxu0 %v10455_v47  ;;  %4505 = vmatprep.mubr.bf16.mxu1 %v10459_v48  ;;  %v10503_v47 = vld [vmem:[%s15564_s1 + $0x260] ss:$8 sps:$4 sm:$0xff]   ;;  %v10504_v48 = vld [vmem:[%s15564_s1 + $0x274] ss:$8 sps:$4 sm:$0xff]  }
  0x4f   :  { %3050 = vmatpush1.bf16.msra.mxu0 %v10424_v49  ;;  %4531 = vmatpush1.bf16.msra.mxu1 %v10424_v49  ;;  %v8580_v49 = vcombine.low %v494_v39, %v494_v39  ;;  %v10576_v39 = vld [vmem:[%s15564_s1 + $0x370] ss:$8 sps:$4 sm:$0xff]  }
  0x50   :  { %3051 = vmatprep.subr.bf16.mxu0 %v10425_v50  ;;  %4532 = vmatprep.subr.bf16.mxu1 %v10425_v50  ;;  %v9171_v50 = vcombine.low %v9082_v40, %v9082_v40  ;;  %v10577_v40 = vld [vmem:[%s15564_s1 + $0x384] ss:$8 sps:$4 sm:$0xff]  }
  0x52   :  { %3025 = vmatmul.mubr.bf16.gmra.mrb[8].mxu0 %v10461_v51  ;;  %4506 = vmatmul.mubr.bf16.gmra.mrb[8].mxu1 %v10463_v52  ;;  %v10549_v51 = vld [vmem:[%s15565_s0 + $0x14] ss:$100 sps:$4 sm:$0xff]  }
  0x53   :  { %3052 = vmatpush1.bf16.msra.mxu0 %v10427_v55  ;;  %4533 = vmatpush1.bf16.msra.mxu1 %v10427_v55  ;;  %v10554_v52 = vld [vmem:[%s15565_s0 + $0x2d0] ss:$100 sps:$4 sm:$0xff]   ;;  %v10509_v55 = vld [vmem:[%s15564_s1 + $0x280] ss:$8 sps:$4 sm:$0xff]  }
  0x54   :  { %3053 = vmatprep.subr.bf16.mxu0 %v10428_v56  ;;  %4534 = vmatprep.subr.bf16.mxu1 %v10428_v56  ;;  %v10510_v56 = vld [vmem:[%s15564_s1 + $0x294] ss:$8 sps:$4 sm:$0xff]  }
  0x55   :  { %3034 = vmatprep.mubr.bf16.mxu0 %v8579_v57  ;;  %4515 = vmatprep.mubr.bf16.mxu1 %v9170_v58  ;;  %v10512_v57 = vld [vmem:[%s15564_s1 + $0x290] ss:$8 sps:$4 sm:$0xff]   ;;  %v10515_v58 = vld [vmem:[%s15564_s1 + $0x2a4] ss:$8 sps:$4 sm:$0xff]  }
  0x57   :  { %3054 = vmatpush1.bf16.msra.mxu0 %v10430_v59  ;;  %4535 = vmatpush1.bf16.msra.mxu1 %v10430_v59  ;;  %v10520_v59 = vld [vmem:[%s15564_s1 + $0x2a0] ss:$8 sps:$4 sm:$0xff]  }
  0x58   :  { %3055 = vmatprep.subr.bf16.mxu0 %v10431_v60  ;;  %4536 = vmatprep.subr.bf16.mxu1 %v10431_v60  ;;  %v10522_v60 = vld [vmem:[%s15564_s1 + $0x2b4] ss:$8 sps:$4 sm:$0xff]  }
  0x5a   :  { %3035 = vmatmul.mubr.bf16.gmra.mrb[12].mxu0 %v8578_v61  ;;  %4516 = vmatmul.mubr.bf16.gmra.mrb[12].mxu1 %v9169_v62  ;;  %v10524_v61 = vld [vmem:[%s15564_s1 + $0x2b0] ss:$8 sps:$4 sm:$0xff]   ;;  %v10527_v62 = vld [vmem:[%s15564_s1 + $0x2c4] ss:$8 sps:$4 sm:$0xff]  }
  0x5b   :  { %3056 = vmatpush1.bf16.msra.mxu0 %v10433_v63  ;;  %4537 = vmatpush1.bf16.msra.mxu1 %v10433_v63  ;;  %v10532_v63 = vld [vmem:[%s15564_s1 + $0x2c0] ss:$8 sps:$4 sm:$0xff]  }
  0x5c   :  { %3057 = vmatprep.subr.bf16.mxu0 %v10434_v0  ;;  %4538 = vmatprep.subr.bf16.mxu1 %v10434_v0  ;;  %v10534_v0 = vld [vmem:[%s15564_s1 + $0x2d4] ss:$8 sps:$4 sm:$0xff]  }
  0x5d   :  { %3075 = vmatprep.mubr.bf16.mxu0 %v10479_v1  ;;  %4556 = vmatprep.mubr.bf16.mxu1 %v10484_v2  ;;  %v10536_v1 = vld [vmem:[%s15564_s1 + $0x2d0] ss:$8 sps:$4 sm:$0xff]   ;;  %v10538_v2 = vld [vmem:[%s15564_s1 + $0x2e4] ss:$8 sps:$4 sm:$0xff]  }
  0x5f   :  { %3058 = vmatpush1.bf16.msra.mxu0 %v10436_v3  ;;  %4539 = vmatpush1.bf16.msra.mxu1 %v10436_v3  ;;  %v10542_v3 = vld [vmem:[%s15564_s1 + $0x2e0] ss:$8 sps:$4 sm:$0xff]  }
  0x60   :  { %3059 = vmatprep.subr.bf16.mxu0 %v10437_v4  ;;  %4540 = vmatprep.subr.bf16.mxu1 %v10437_v4  ;;  %v10544_v4 = vld [vmem:[%s15564_s1 + $0x2f4] ss:$8 sps:$4 sm:$0xff]  }
  0x63   :  { %3060 = vmatpush1.bf16.msra.mxu0 %v10439_v5  ;;  %4541 = vmatpush1.bf16.msra.mxu1 %v10439_v5  ;;  %v10546_v5 = vld [vmem:[%s15564_s1 + $0x2f0] ss:$8 sps:$4 sm:$0xff]  }
  0x64   :  { %3061 = vmatprep.subr.bf16.mxu0 %v10440_v6  ;;  %4542 = vmatprep.subr.bf16.mxu1 %v10440_v6  ;;  %v10550_v6 = vld [vmem:[%s15564_s1 + $0x304] ss:$8 sps:$4 sm:$0xff]  }
  0x67   :  { %3062 = vmatpush1.bf16.msra.mxu0 %v10442_v7  ;;  %4543 = vmatpush1.bf16.msra.mxu1 %v10442_v7  ;;  %v10547_v7 = vld [vmem:[%s15565_s0 + $0x10] ss:$100 sps:$4 sm:$0xff]  }
  0x68   :  { %3063 = vmatprep.subr.bf16.mxu0 %v10445_v8  ;;  %4544 = vmatprep.subr.bf16.mxu1 %v10445_v8  ;;  %v10552_v8 = vld [vmem:[%s15565_s0 + $0x2cc] ss:$100 sps:$4 sm:$0xff]  }
  0x6b   :  { %3064 = vmatpush1.bf16.msra.mxu0 %v10450_v9  ;;  %4545 = vmatpush1.bf16.msra.mxu1 %v10450_v9  ;;  %v10555_v9 = vld [vmem:[%s15564_s1 + $0x300] ss:$8 sps:$4 sm:$0xff]  }
  0x6c   :  { %3065 = vmatprep.subr.bf16.mxu0 %v10452_v10  ;;  %4546 = vmatprep.subr.bf16.mxu1 %v10452_v10  ;;  %v10556_v10 = vld [vmem:[%s15564_s1 + $0x314] ss:$8 sps:$4 sm:$0xff]  }
  0x6f   :  { %3066 = vmatpush1.bf16.msra.mxu0 %v10454_v11  ;;  %4547 = vmatpush1.bf16.msra.mxu1 %v10454_v11  ;;  %v10583_v11 = vld [vmem:[%s15565_s0 + $0xdc] ss:$100 sps:$4 sm:$0xff]  }
  0x70   :  { %3067 = vmatprep.subr.bf16.mxu0 %v10457_v12  ;;  %4548 = vmatprep.subr.bf16.mxu1 %v10457_v12  ;;  %v10558_v12 = vld [vmem:[%s15564_s1 + $0x310] ss:$8 sps:$4 sm:$0xff]  }
  0x73   :  { %3068 = vmatpush1.bf16.msra.mxu0 %v10462_v13  ;;  %4549 = vmatpush1.bf16.msra.mxu1 %v10462_v13  ;;  %v10587_v13 = vld [vmem:[%s15565_s0 + $0x398] ss:$100 sps:$4 sm:$0xff]  }
  0x74   :  { %3069 = vmatprep.subr.bf16.mxu0 %v10464_v14  ;;  %4550 = vmatprep.subr.bf16.mxu1 %v10464_v14  ;;  %v10559_v14 = vld [vmem:[%s15564_s1 + $0x324] ss:$8 sps:$4 sm:$0xff]  }
  0x77   :  { %3070 = vmatpush1.bf16.msra.mxu0 %v10466_v15  ;;  %4551 = vmatpush1.bf16.msra.mxu1 %v10466_v15  ;;  %v10589_v15 = vld [vmem:[%s15565_s0 + $0xd8] ss:$100 sps:$4 sm:$0xff]  }
  0x78   :  { %3071 = vmatprep.subr.bf16.mxu0 %v10468_v16  ;;  %4552 = vmatprep.subr.bf16.mxu1 %v10468_v16  ;;  %v10591_v16 = vld [vmem:[%s15565_s0 + $0x394] ss:$100 sps:$4 sm:$0xff]  }
  0x7b   :  { %3072 = vmatpush1.bf16.msra.mxu0 %v10472_v17  ;;  %4553 = vmatpush1.bf16.msra.mxu1 %v10472_v17  ;;  %v10561_v17 = vld [vmem:[%s15564_s1 + $0x320] ss:$8 sps:$4 sm:$0xff]  }
  0x7c   :  { %3073 = vmatprep.subr.bf16.mxu0 %v10474_v18  ;;  %4554 = vmatprep.subr.bf16.mxu1 %v10474_v18  ;;  %v10562_v18 = vld [vmem:[%s15564_s1 + $0x334] ss:$8 sps:$4 sm:$0xff]  }
  0x7f   :  { %3074 = vmatpush1.bf16.msra.mxu0 %v10476_v19  ;;  %4555 = vmatpush1.bf16.msra.mxu1 %v10476_v19  ;;  %v10595_v19 = vld [vmem:[%s15565_s0 + $0x1a4] ss:$100 sps:$4 sm:$0xff]  }
  0x80   :  { %3114 = vmatprep.subr.bf16.mxu0 %v10480_v20  ;;  %4595 = vmatprep.subr.bf16.mxu1 %v10480_v20  ;;  %v10599_v20 = vld [vmem:[%s15565_s0 + $0x460] ss:$100 sps:$4 sm:$0xff]  }
  0x82   :  { %3076 = vmatmul.mubr.bf16.vlgmr.msra.gmra.mrb[0].mxu0 %v10477_v21  ;;  %4557 = vmatmul.mubr.bf16.vlgmr.msra.gmra.mrb[0].mxu1 %v10482_v22  ;;  %v10564_v21 = vld [vmem:[%s15564_s1 + $0x330] ss:$8 sps:$4 sm:$0xff]   ;;  %v10565_v22 = vld [vmem:[%s15564_s1 + $0x344] ss:$8 sps:$4 sm:$0xff]  }
  0x83   :  { %3115 = vmatpush1.bf16.msra.mxu0 %v10485_v23  ;;  %4596 = vmatpush1.bf16.msra.mxu1 %v10485_v23  ;;  %v10601_v23 = vld [vmem:[%s15565_s0 + $0x1a0] ss:$100 sps:$4 sm:$0xff]  }
  0x84   :  { %3116 = vmatprep.subr.bf16.mxu0 %v10486_v24  ;;  %4597 = vmatprep.subr.bf16.mxu1 %v10486_v24  ;;  %v10603_v24 = vld [vmem:[%s15565_s0 + $0x45c] ss:$100 sps:$4 sm:$0xff]  }
  0x85   :  { %3085 = vmatprep.mubr.bf16.mxu0 %v10513_v25  ;;  %4566 = vmatprep.mubr.bf16.mxu1 %v10517_v27  ;;  %v495_v25 = vld [vmem:[%s15565_s0 + $0x268] sm:$0xff] }
  0x86   :  { %v10567_v27 = vld [vmem:[%s15564_s1 + $0x340] ss:$8 sps:$4 sm:$0xff]  }
  0x87   :  { %3117 = vmatpush1.bf16.msra.mxu0 %v10488_v26  ;;  %4598 = vmatpush1.bf16.msra.mxu1 %v10488_v26  ;;  %v9083_v26 = vld [vmem:[%s15565_s0 + $0x524] sm:$0xff] }
  0x88   :  { %3118 = vmatprep.subr.bf16.mxu0 %v10489_v28  ;;  %4599 = vmatprep.subr.bf16.mxu1 %v10489_v28  ;;  %v10568_v28 = vld [vmem:[%s15564_s1 + $0x354] ss:$8 sps:$4 sm:$0xff]  }
  0x8a   :  { %3086 = vmatmul.mubr.bf16.gmra.mrb[4].mxu0 %v10519_v29  ;;  %4567 = vmatmul.mubr.bf16.gmra.mrb[4].mxu1 %v10521_v30  ;;  %v8583_v29 = vcombine.high %v495_v25, %v495_v25  ;;  %v9174_v30 = vcombine.high %v9083_v26, %v9083_v26 }
  0x8b   :  { %3119 = vmatpush1.bf16.msra.mxu0 %v10491_v31  ;;  %4600 = vmatpush1.bf16.msra.mxu1 %v10491_v31  ;;  %v10570_v31 = vld [vmem:[%s15564_s1 + $0x350] ss:$8 sps:$4 sm:$0xff]  }
  0x8c   :  { %3120 = vmatprep.subr.bf16.mxu0 %v10492_v32  ;;  %4601 = vmatprep.subr.bf16.mxu1 %v10492_v32  ;;  %v10571_v32 = vld [vmem:[%s15564_s1 + $0x364] ss:$8 sps:$4 sm:$0xff]  }
  0x8d   :  { %3095 = vmatprep.mubr.bf16.mxu0 %v10525_v33  ;;  %4576 = vmatprep.mubr.bf16.mxu1 %v10529_v34  ;;  %v10573_v33 = vld [vmem:[%s15564_s1 + $0x360] ss:$8 sps:$4 sm:$0xff]   ;;  %v10574_v34 = vld [vmem:[%s15564_s1 + $0x374] ss:$8 sps:$4 sm:$0xff]  }
  0x8f   :  { %3121 = vmatpush1.bf16.msra.mxu0 %v10494_v35  ;;  %4602 = vmatpush1.bf16.msra.mxu1 %v10494_v35  ;;  %v8582_v35 = vcombine.low %v495_v25, %v495_v25  ;;  %v10646_v25 = vld [vmem:[%s15564_s1 + $0x470] ss:$8 sps:$4 sm:$0xff]  }
  0x90   :  { %3122 = vmatprep.subr.bf16.mxu0 %v10495_v36  ;;  %4603 = vmatprep.subr.bf16.mxu1 %v10495_v36  ;;  %v9173_v36 = vcombine.low %v9083_v26, %v9083_v26  ;;  %v10647_v26 = vld [vmem:[%s15564_s1 + $0x484] ss:$8 sps:$4 sm:$0xff]  }
  0x92   :  { %3096 = vmatmul.mubr.bf16.gmra.mrb[8].mxu0 %v10531_v37  ;;  %4577 = vmatmul.mubr.bf16.gmra.mrb[8].mxu1 %v10533_v38  ;;  %v10619_v37 = vld [vmem:[%s15565_s0 + $0x1c] ss:$100 sps:$4 sm:$0xff]  }
  0x93   :  { %3123 = vmatpush1.bf16.msra.mxu0 %v10497_v41  ;;  %4604 = vmatpush1.bf16.msra.mxu1 %v10497_v41  ;;  %v10624_v38 = vld [vmem:[%s15565_s0 + $0x2d8] ss:$100 sps:$4 sm:$0xff]   ;;  %v10579_v41 = vld [vmem:[%s15564_s1 + $0x380] ss:$8 sps:$4 sm:$0xff]  }
  0x94   :  { %3124 = vmatprep.subr.bf16.mxu0 %v10498_v42  ;;  %4605 = vmatprep.subr.bf16.mxu1 %v10498_v42  ;;  %v10580_v42 = vld [vmem:[%s15564_s1 + $0x394] ss:$8 sps:$4 sm:$0xff]  }
  0x95   :  { %3105 = vmatprep.mubr.bf16.mxu0 %v8581_v43  ;;  %4586 = vmatprep.mubr.bf16.mxu1 %v9172_v44  ;;  %v10582_v43 = vld [vmem:[%s15564_s1 + $0x390] ss:$8 sps:$4 sm:$0xff]   ;;  %v10585_v44 = vld [vmem:[%s15564_s1 + $0x3a4] ss:$8 sps:$4 sm:$0xff]  }
  0x97   :  { %3125 = vmatpush1.bf16.msra.mxu0 %v10500_v45  ;;  %4606 = vmatpush1.bf16.msra.mxu1 %v10500_v45  ;;  %v10590_v45 = vld [vmem:[%s15564_s1 + $0x3a0] ss:$8 sps:$4 sm:$0xff]  }
  0x98   :  { %3126 = vmatprep.subr.bf16.mxu0 %v10501_v46  ;;  %4607 = vmatprep.subr.bf16.mxu1 %v10501_v46  ;;  %v10592_v46 = vld [vmem:[%s15564_s1 + $0x3b4] ss:$8 sps:$4 sm:$0xff]  }
  0x9a   :  { %3106 = vmatmul.mubr.bf16.gmra.mrb[12].mxu0 %v8580_v49  ;;  %4587 = vmatmul.mubr.bf16.gmra.mrb[12].mxu1 %v9171_v50  ;;  %v10602_v49 = vld [vmem:[%s15564_s1 + $0x3c0] ss:$8 sps:$4 sm:$0xff]   ;;  %v10604_v50 = vld [vmem:[%s15564_s1 + $0x3d4] ss:$8 sps:$4 sm:$0xff]  }
  0x9b   :  { %3127 = vmatpush1.bf16.msra.mxu0 %v10503_v47  ;;  %4608 = vmatpush1.bf16.msra.mxu1 %v10503_v47  ;;  %v10594_v47 = vld [vmem:[%s15564_s1 + $0x3b0] ss:$8 sps:$4 sm:$0xff]  }
  0x9c   :  { %3128 = vmatprep.subr.bf16.mxu0 %v10504_v48  ;;  %4609 = vmatprep.subr.bf16.mxu1 %v10504_v48  ;;  %v10597_v48 = vld [vmem:[%s15564_s1 + $0x3c4] ss:$8 sps:$4 sm:$0xff]  }
  0x9d   :  { %3146 = vmatprep.mubr.bf16.mxu0 %v10549_v51  ;;  %4627 = vmatprep.mubr.bf16.mxu1 %v10554_v52  ;;  %v10606_v51 = vld [vmem:[%s15564_s1 + $0x3d0] ss:$8 sps:$4 sm:$0xff]   ;;  %v10608_v52 = vld [vmem:[%s15564_s1 + $0x3e4] ss:$8 sps:$4 sm:$0xff]  }
  0x9f   :  { %3129 = vmatpush1.bf16.msra.mxu0 %v10506_v53  ;;  %4610 = vmatpush1.bf16.msra.mxu1 %v10506_v53  ;;  %v10612_v53 = vld [vmem:[%s15564_s1 + $0x3e0] ss:$8 sps:$4 sm:$0xff]  }
  0xa0   :  { %3130 = vmatprep.subr.bf16.mxu0 %v10507_v54  ;;  %4611 = vmatprep.subr.bf16.mxu1 %v10507_v54  ;;  %v10614_v54 = vld [vmem:[%s15564_s1 + $0x3f4] ss:$8 sps:$4 sm:$0xff]  }
  0xa3   :  { %3131 = vmatpush1.bf16.msra.mxu0 %v10509_v55  ;;  %4612 = vmatpush1.bf16.msra.mxu1 %v10509_v55  ;;  %v10616_v55 = vld [vmem:[%s15564_s1 + $0x3f0] ss:$8 sps:$4 sm:$0xff]  }
  0xa4   :  { %3132 = vmatprep.subr.bf16.mxu0 %v10510_v56  ;;  %4613 = vmatprep.subr.bf16.mxu1 %v10510_v56  ;;  %v10620_v56 = vld [vmem:[%s15564_s1 + $0x404] ss:$8 sps:$4 sm:$0xff]  }
  0xa7   :  { %3133 = vmatpush1.bf16.msra.mxu0 %v10512_v57  ;;  %4614 = vmatpush1.bf16.msra.mxu1 %v10512_v57  ;;  %v10617_v57 = vld [vmem:[%s15565_s0 + $0x18] ss:$100 sps:$4 sm:$0xff]  }
  0xa8   :  { %3134 = vmatprep.subr.bf16.mxu0 %v10515_v58  ;;  %4615 = vmatprep.subr.bf16.mxu1 %v10515_v58  ;;  %v10622_v58 = vld [vmem:[%s15565_s0 + $0x2d4] ss:$100 sps:$4 sm:$0xff]  }
  0xab   :  { %3135 = vmatpush1.bf16.msra.mxu0 %v10520_v59  ;;  %4616 = vmatpush1.bf16.msra.mxu1 %v10520_v59  ;;  %v10625_v59 = vld [vmem:[%s15564_s1 + $0x400] ss:$8 sps:$4 sm:$0xff]  }
  0xac   :  { %3136 = vmatprep.subr.bf16.mxu0 %v10522_v60  ;;  %4617 = vmatprep.subr.bf16.mxu1 %v10522_v60  ;;  %v10626_v60 = vld [vmem:[%s15564_s1 + $0x414] ss:$8 sps:$4 sm:$0xff]  }
  0xaf   :  { %3137 = vmatpush1.bf16.msra.mxu0 %v10524_v61  ;;  %4618 = vmatpush1.bf16.msra.mxu1 %v10524_v61  ;;  %v10653_v61 = vld [vmem:[%s15565_s0 + $0xe4] ss:$100 sps:$4 sm:$0xff]  }
  0xb0   :  { %3138 = vmatprep.subr.bf16.mxu0 %v10527_v62  ;;  %4619 = vmatprep.subr.bf16.mxu1 %v10527_v62  ;;  %v10628_v62 = vld [vmem:[%s15564_s1 + $0x410] ss:$8 sps:$4 sm:$0xff]  }
  0xb3   :  { %3139 = vmatpush1.bf16.msra.mxu0 %v10532_v63  ;;  %4620 = vmatpush1.bf16.msra.mxu1 %v10532_v63  ;;  %v10657_v63 = vld [vmem:[%s15565_s0 + $0x3a0] ss:$100 sps:$4 sm:$0xff]  }
  0xb4   :  { %3140 = vmatprep.subr.bf16.mxu0 %v10534_v0  ;;  %4621 = vmatprep.subr.bf16.mxu1 %v10534_v0  ;;  %v10629_v0 = vld [vmem:[%s15564_s1 + $0x424] ss:$8 sps:$4 sm:$0xff]  }
  0xb7   :  { %3141 = vmatpush1.bf16.msra.mxu0 %v10536_v1  ;;  %4622 = vmatpush1.bf16.msra.mxu1 %v10536_v1  ;;  %v10659_v1 = vld [vmem:[%s15565_s0 + $0xe0] ss:$100 sps:$4 sm:$0xff]  }
  0xb8   :  { %3142 = vmatprep.subr.bf16.mxu0 %v10538_v2  ;;  %4623 = vmatprep.subr.bf16.mxu1 %v10538_v2  ;;  %v10661_v2 = vld [vmem:[%s15565_s0 + $0x39c] ss:$100 sps:$4 sm:$0xff]  }
  0xbb   :  { %3143 = vmatpush1.bf16.msra.mxu0 %v10542_v3  ;;  %4624 = vmatpush1.bf16.msra.mxu1 %v10542_v3  ;;  %v10631_v3 = vld [vmem:[%s15564_s1 + $0x420] ss:$8 sps:$4 sm:$0xff]  }
  0xbc   :  { %3144 = vmatprep.subr.bf16.mxu0 %v10544_v4  ;;  %4625 = vmatprep.subr.bf16.mxu1 %v10544_v4  ;;  %v10632_v4 = vld [vmem:[%s15564_s1 + $0x434] ss:$8 sps:$4 sm:$0xff]  }
  0xbf   :  { %3145 = vmatpush1.bf16.msra.mxu0 %v10546_v5  ;;  %4626 = vmatpush1.bf16.msra.mxu1 %v10546_v5  ;;  %v10665_v5 = vld [vmem:[%s15565_s0 + $0x1ac] ss:$100 sps:$4 sm:$0xff]  }
  0xc0   :  { %3185 = vmatprep.subr.bf16.mxu0 %v10550_v6  ;;  %4666 = vmatprep.subr.bf16.mxu1 %v10550_v6  ;;  %v10669_v6 = vld [vmem:[%s15565_s0 + $0x468] ss:$100 sps:$4 sm:$0xff]  }
  0xc2   :  { %3147 = vmatmul.mubr.bf16.vlgmr.msra.gmra.mrb[0].mxu0 %v10547_v7  ;;  %4628 = vmatmul.mubr.bf16.vlgmr.msra.gmra.mrb[0].mxu1 %v10552_v8  ;;  %v10634_v7 = vld [vmem:[%s15564_s1 + $0x430] ss:$8 sps:$4 sm:$0xff]   ;;  %v10635_v8 = vld [vmem:[%s15564_s1 + $0x444] ss:$8 sps:$4 sm:$0xff]  }
  0xc3   :  { %3186 = vmatpush1.bf16.msra.mxu0 %v10555_v9  ;;  %4667 = vmatpush1.bf16.msra.mxu1 %v10555_v9  ;;  %v10671_v9 = vld [vmem:[%s15565_s0 + $0x1a8] ss:$100 sps:$4 sm:$0xff]  }
  0xc4   :  { %3187 = vmatprep.subr.bf16.mxu0 %v10556_v10  ;;  %4668 = vmatprep.subr.bf16.mxu1 %v10556_v10  ;;  %v10673_v10 = vld [vmem:[%s15565_s0 + $0x464] ss:$100 sps:$4 sm:$0xff]  }
  0xc5   :  { %3156 = vmatprep.mubr.bf16.mxu0 %v10583_v11  ;;  %4637 = vmatprep.mubr.bf16.mxu1 %v10587_v13  ;;  %v496_v11 = vld [vmem:[%s15565_s0 + $0x270] sm:$0xff]  ;;  %v10637_v13 = vld [vmem:[%s15564_s1 + $0x440] ss:$8 sps:$4 sm:$0xff]  }
  0xc7   :  { %3188 = vmatpush1.bf16.msra.mxu0 %v10558_v12  ;;  %4669 = vmatpush1.bf16.msra.mxu1 %v10558_v12  ;;  %v9084_v12 = vld [vmem:[%s15565_s0 + $0x52c] sm:$0xff] }
  0xc8   :  { %3189 = vmatprep.subr.bf16.mxu0 %v10559_v14  ;;  %4670 = vmatprep.subr.bf16.mxu1 %v10559_v14  ;;  %v10638_v14 = vld [vmem:[%s15564_s1 + $0x454] ss:$8 sps:$4 sm:$0xff]  }
  0xca   :  { %3157 = vmatmul.mubr.bf16.gmra.mrb[4].mxu0 %v10589_v15  ;;  %4638 = vmatmul.mubr.bf16.gmra.mrb[4].mxu1 %v10591_v16  ;;  %v8585_v15 = vcombine.high %v496_v11, %v496_v11  ;;  %v9176_v16 = vcombine.high %v9084_v12, %v9084_v12 }
  0xcb   :  { %3190 = vmatpush1.bf16.msra.mxu0 %v10561_v17  ;;  %4671 = vmatpush1.bf16.msra.mxu1 %v10561_v17  ;;  %v10640_v17 = vld [vmem:[%s15564_s1 + $0x450] ss:$8 sps:$4 sm:$0xff]  }
  0xcc   :  { %3191 = vmatprep.subr.bf16.mxu0 %v10562_v18  ;;  %4672 = vmatprep.subr.bf16.mxu1 %v10562_v18  ;;  %v10641_v18 = vld [vmem:[%s15564_s1 + $0x464] ss:$8 sps:$4 sm:$0xff]  }
  0xcd   :  { %3166 = vmatprep.mubr.bf16.mxu0 %v10595_v19  ;;  %4647 = vmatprep.mubr.bf16.mxu1 %v10599_v20  ;;  %v10643_v19 = vld [vmem:[%s15564_s1 + $0x460] ss:$8 sps:$4 sm:$0xff]   ;;  %v10644_v20 = vld [vmem:[%s15564_s1 + $0x474] ss:$8 sps:$4 sm:$0xff]  }
  0xcf   :  { %3192 = vmatpush1.bf16.msra.mxu0 %v10564_v21  ;;  %4673 = vmatpush1.bf16.msra.mxu1 %v10564_v21  ;;  %v8584_v21 = vcombine.low %v496_v11, %v496_v11  ;;  %v10716_v11 = vld [vmem:[%s15564_s1 + $0x570] ss:$8 sps:$4 sm:$0xff]  }
  0xd0   :  { %3193 = vmatprep.subr.bf16.mxu0 %v10565_v22  ;;  %4674 = vmatprep.subr.bf16.mxu1 %v10565_v22  ;;  %v9175_v22 = vcombine.low %v9084_v12, %v9084_v12  ;;  %v10717_v12 = vld [vmem:[%s15564_s1 + $0x584] ss:$8 sps:$4 sm:$0xff]  }
  0xd2   :  { %3167 = vmatmul.mubr.bf16.gmra.mrb[8].mxu0 %v10601_v23  ;;  %4648 = vmatmul.mubr.bf16.gmra.mrb[8].mxu1 %v10603_v24  ;;  %v10689_v23 = vld [vmem:[%s15565_s0 + $0x24] ss:$100 sps:$4 sm:$0xff]  }
  0xd3   :  { %3194 = vmatpush1.bf16.msra.mxu0 %v10567_v27  ;;  %4675 = vmatpush1.bf16.msra.mxu1 %v10567_v27  ;;  %v10694_v24 = vld [vmem:[%s15565_s0 + $0x2e0] ss:$100 sps:$4 sm:$0xff]  }
  0xd4   :  { %3195 = vmatprep.subr.bf16.mxu0 %v10568_v28  ;;  %4676 = vmatprep.subr.bf16.mxu1 %v10568_v28  ;;  %v10649_v27 = vld [vmem:[%s15564_s1 + $0x480] ss:$8 sps:$4 sm:$0xff]   ;;  %v10650_v28 = vld [vmem:[%s15564_s1 + $0x494] ss:$8 sps:$4 sm:$0xff]  }
  0xd5   :  { %3176 = vmatprep.mubr.bf16.mxu0 %v8583_v29  ;;  %4657 = vmatprep.mubr.bf16.mxu1 %v9174_v30  ;;  %v10652_v29 = vld [vmem:[%s15564_s1 + $0x490] ss:$8 sps:$4 sm:$0xff]   ;;  %v10655_v30 = vld [vmem:[%s15564_s1 + $0x4a4] ss:$8 sps:$4 sm:$0xff]  }
  0xd7   :  { %3196 = vmatpush1.bf16.msra.mxu0 %v10570_v31  ;;  %4677 = vmatpush1.bf16.msra.mxu1 %v10570_v31  ;;  %v10660_v31 = vld [vmem:[%s15564_s1 + $0x4a0] ss:$8 sps:$4 sm:$0xff]  }
  0xd8   :  { %3197 = vmatprep.subr.bf16.mxu0 %v10571_v32  ;;  %4678 = vmatprep.subr.bf16.mxu1 %v10571_v32  ;;  %v10662_v32 = vld [vmem:[%s15564_s1 + $0x4b4] ss:$8 sps:$4 sm:$0xff]  }
  0xda   :  { %3177 = vmatmul.mubr.bf16.gmra.mrb[12].mxu0 %v8582_v35  ;;  %4658 = vmatmul.mubr.bf16.gmra.mrb[12].mxu1 %v9173_v36  ;;  %v10672_v35 = vld [vmem:[%s15564_s1 + $0x4c0] ss:$8 sps:$4 sm:$0xff]   ;;  %v10674_v36 = vld [vmem:[%s15564_s1 + $0x4d4] ss:$8 sps:$4 sm:$0xff]  }
  0xdb   :  { %3198 = vmatpush1.bf16.msra.mxu0 %v10573_v33  ;;  %4679 = vmatpush1.bf16.msra.mxu1 %v10573_v33  ;;  %v10664_v33 = vld [vmem:[%s15564_s1 + $0x4b0] ss:$8 sps:$4 sm:$0xff]  }
  0xdc   :  { %3199 = vmatprep.subr.bf16.mxu0 %v10574_v34  ;;  %4680 = vmatprep.subr.bf16.mxu1 %v10574_v34  ;;  %v10667_v34 = vld [vmem:[%s15564_s1 + $0x4c4] ss:$8 sps:$4 sm:$0xff]  }
  0xdd   :  { %3217 = vmatprep.mubr.bf16.mxu0 %v10619_v37  ;;  %4698 = vmatprep.mubr.bf16.mxu1 %v10624_v38  ;;  %v10676_v37 = vld [vmem:[%s15564_s1 + $0x4d0] ss:$8 sps:$4 sm:$0xff]   ;;  %v10678_v38 = vld [vmem:[%s15564_s1 + $0x4e4] ss:$8 sps:$4 sm:$0xff]  }
  0xdf   :  { %3200 = vmatpush1.bf16.msra.mxu0 %v10576_v39  ;;  %4681 = vmatpush1.bf16.msra.mxu1 %v10576_v39  ;;  %v10682_v39 = vld [vmem:[%s15564_s1 + $0x4e0] ss:$8 sps:$4 sm:$0xff]  }
  0xe0   :  { %3201 = vmatprep.subr.bf16.mxu0 %v10577_v40  ;;  %4682 = vmatprep.subr.bf16.mxu1 %v10577_v40  ;;  %v10684_v40 = vld [vmem:[%s15564_s1 + $0x4f4] ss:$8 sps:$4 sm:$0xff]  }
  0xe3   :  { %3202 = vmatpush1.bf16.msra.mxu0 %v10579_v41  ;;  %4683 = vmatpush1.bf16.msra.mxu1 %v10579_v41  ;;  %v10686_v41 = vld [vmem:[%s15564_s1 + $0x4f0] ss:$8 sps:$4 sm:$0xff]  }
  0xe4   :  { %3203 = vmatprep.subr.bf16.mxu0 %v10580_v42  ;;  %4684 = vmatprep.subr.bf16.mxu1 %v10580_v42  ;;  %v10690_v42 = vld [vmem:[%s15564_s1 + $0x504] ss:$8 sps:$4 sm:$0xff]  }
  0xe7   :  { %3204 = vmatpush1.bf16.msra.mxu0 %v10582_v43  ;;  %4685 = vmatpush1.bf16.msra.mxu1 %v10582_v43  ;;  %v10687_v43 = vld [vmem:[%s15565_s0 + $0x20] ss:$100 sps:$4 sm:$0xff]  }
  0xe8   :  { %3205 = vmatprep.subr.bf16.mxu0 %v10585_v44  ;;  %4686 = vmatprep.subr.bf16.mxu1 %v10585_v44  ;;  %v10692_v44 = vld [vmem:[%s15565_s0 + $0x2dc] ss:$100 sps:$4 sm:$0xff]  }
  0xeb   :  { %3206 = vmatpush1.bf16.msra.mxu0 %v10590_v45  ;;  %4687 = vmatpush1.bf16.msra.mxu1 %v10590_v45  ;;  %v10695_v45 = vld [vmem:[%s15564_s1 + $0x500] ss:$8 sps:$4 sm:$0xff]  }
  0xec   :  { %3207 = vmatprep.subr.bf16.mxu0 %v10592_v46  ;;  %4688 = vmatprep.subr.bf16.mxu1 %v10592_v46  ;;  %v10696_v46 = vld [vmem:[%s15564_s1 + $0x514] ss:$8 sps:$4 sm:$0xff]  }
  0xef   :  { %3208 = vmatpush1.bf16.msra.mxu0 %v10594_v47  ;;  %4689 = vmatpush1.bf16.msra.mxu1 %v10594_v47  ;;  %v10723_v47 = vld [vmem:[%s15565_s0 + $0xec] ss:$100 sps:$4 sm:$0xff]  }
  0xf0   :  { %3209 = vmatprep.subr.bf16.mxu0 %v10597_v48  ;;  %4690 = vmatprep.subr.bf16.mxu1 %v10597_v48  ;;  %v10698_v48 = vld [vmem:[%s15564_s1 + $0x510] ss:$8 sps:$4 sm:$0xff]  }
  0xf3   :  { %3210 = vmatpush1.bf16.msra.mxu0 %v10602_v49  ;;  %4691 = vmatpush1.bf16.msra.mxu1 %v10602_v49  ;;  %v10727_v49 = vld [vmem:[%s15565_s0 + $0x3a8] ss:$100 sps:$4 sm:$0xff]  }
  0xf4   :  { %3211 = vmatprep.subr.bf16.mxu0 %v10604_v50  ;;  %4692 = vmatprep.subr.bf16.mxu1 %v10604_v50  ;;  %v10699_v50 = vld [vmem:[%s15564_s1 + $0x524] ss:$8 sps:$4 sm:$0xff]  }
  0xf7   :  { %3212 = vmatpush1.bf16.msra.mxu0 %v10606_v51  ;;  %4693 = vmatpush1.bf16.msra.mxu1 %v10606_v51  ;;  %v10729_v51 = vld [vmem:[%s15565_s0 + $0xe8] ss:$100 sps:$4 sm:$0xff]  }
  0xf8   :  { %3213 = vmatprep.subr.bf16.mxu0 %v10608_v52  ;;  %4694 = vmatprep.subr.bf16.mxu1 %v10608_v52  ;;  %v10731_v52 = vld [vmem:[%s15565_s0 + $0x3a4] ss:$100 sps:$4 sm:$0xff]  }
  0xfb   :  { %3214 = vmatpush1.bf16.msra.mxu0 %v10612_v53  ;;  %4695 = vmatpush1.bf16.msra.mxu1 %v10612_v53  ;;  %v10701_v53 = vld [vmem:[%s15564_s1 + $0x520] ss:$8 sps:$4 sm:$0xff]  }
  0xfc   :  { %3215 = vmatprep.subr.bf16.mxu0 %v10614_v54  ;;  %4696 = vmatprep.subr.bf16.mxu1 %v10614_v54  ;;  %v10702_v54 = vld [vmem:[%s15564_s1 + $0x534] ss:$8 sps:$4 sm:$0xff]  }
  0xff   :  { %3216 = vmatpush1.bf16.msra.mxu0 %v10616_v55  ;;  %4697 = vmatpush1.bf16.msra.mxu1 %v10616_v55  ;;  %v10735_v55 = vld [vmem:[%s15565_s0 + $0x1b4] ss:$100 sps:$4 sm:$0xff]  }
 0x100   :  { %3256 = vmatprep.subr.bf16.mxu0 %v10620_v56  ;;  %4737 = vmatprep.subr.bf16.mxu1 %v10620_v56  ;;  %v10739_v56 = vld [vmem:[%s15565_s0 + $0x470] ss:$100 sps:$4 sm:$0xff]  }
 0x102   :  { %3218 = vmatmul.mubr.bf16.vlgmr.msra.gmra.mrb[0].mxu0 %v10617_v57  ;;  %4699 = vmatmul.mubr.bf16.vlgmr.msra.gmra.mrb[0].mxu1 %v10622_v58  ;;  %v10704_v57 = vld [vmem:[%s15564_s1 + $0x530] ss:$8 sps:$4 sm:$0xff]   ;;  %v10705_v58 = vld [vmem:[%s15564_s1 + $0x544] ss:$8 sps:$4 sm:$0xff]  }
 0x103   :  { %3257 = vmatpush1.bf16.msra.mxu0 %v10625_v59  ;;  %4738 = vmatpush1.bf16.msra.mxu1 %v10625_v59  ;;  %v10741_v59 = vld [vmem:[%s15565_s0 + $0x1b0] ss:$100 sps:$4 sm:$0xff]  }
 0x104   :  { %3258 = vmatprep.subr.bf16.mxu0 %v10626_v60  ;;  %4739 = vmatprep.subr.bf16.mxu1 %v10626_v60  ;;  %v10743_v60 = vld [vmem:[%s15565_s0 + $0x46c] ss:$100 sps:$4 sm:$0xff]  }
 0x105   :  { %3227 = vmatprep.mubr.bf16.mxu0 %v10653_v61  ;;  %4708 = vmatprep.mubr.bf16.mxu1 %v10657_v63  ;;  %v497_v61 = vld [vmem:[%s15565_s0 + $0x278] sm:$0xff]  ;;  %v10707_v63 = vld [vmem:[%s15564_s1 + $0x540] ss:$8 sps:$4 sm:$0xff]  }
 0x107   :  { %3259 = vmatpush1.bf16.msra.mxu0 %v10628_v62  ;;  %4740 = vmatpush1.bf16.msra.mxu1 %v10628_v62  ;;  %v9085_v62 = vld [vmem:[%s15565_s0 + $0x534] sm:$0xff] }
 0x108   :  { %3260 = vmatprep.subr.bf16.mxu0 %v10629_v0  ;;  %4741 = vmatprep.subr.bf16.mxu1 %v10629_v0  ;;  %v10708_v0 = vld [vmem:[%s15564_s1 + $0x554] ss:$8 sps:$4 sm:$0xff]  }
 0x10a   :  { %3228 = vmatmul.mubr.bf16.gmra.mrb[4].mxu0 %v10659_v1  ;;  %4709 = vmatmul.mubr.bf16.gmra.mrb[4].mxu1 %v10661_v2  ;;  %v8587_v1 = vcombine.high %v497_v61, %v497_v61  ;;  %v9178_v2 = vcombine.high %v9085_v62, %v9085_v62 }
 0x10b   :  { %3261 = vmatpush1.bf16.msra.mxu0 %v10631_v3  ;;  %4742 = vmatpush1.bf16.msra.mxu1 %v10631_v3  ;;  %v10710_v3 = vld [vmem:[%s15564_s1 + $0x550] ss:$8 sps:$4 sm:$0xff]  }
 0x10c   :  { %3262 = vmatprep.subr.bf16.mxu0 %v10632_v4  ;;  %4743 = vmatprep.subr.bf16.mxu1 %v10632_v4  ;;  %v10711_v4 = vld [vmem:[%s15564_s1 + $0x564] ss:$8 sps:$4 sm:$0xff]  }
 0x10d   :  { %3237 = vmatprep.mubr.bf16.mxu0 %v10665_v5  ;;  %4718 = vmatprep.mubr.bf16.mxu1 %v10669_v6  ;;  %v10713_v5 = vld [vmem:[%s15564_s1 + $0x560] ss:$8 sps:$4 sm:$0xff]   ;;  %v10714_v6 = vld [vmem:[%s15564_s1 + $0x574] ss:$8 sps:$4 sm:$0xff]  }
 0x10f   :  { %3263 = vmatpush1.bf16.msra.mxu0 %v10634_v7  ;;  %4744 = vmatpush1.bf16.msra.mxu1 %v10634_v7  ;;  %v8586_v7 = vcombine.low %v497_v61, %v497_v61  ;;  %v10786_v61 = vld [vmem:[%s15564_s1 + $0x670] ss:$8 sps:$4 sm:$0xff]  }
 0x110   :  { %3264 = vmatprep.subr.bf16.mxu0 %v10635_v8  ;;  %4745 = vmatprep.subr.bf16.mxu1 %v10635_v8  ;;  %v9177_v8 = vcombine.low %v9085_v62, %v9085_v62  ;;  %v10787_v62 = vld [vmem:[%s15564_s1 + $0x684] ss:$8 sps:$4 sm:$0xff]  }
 0x112   :  { %3238 = vmatmul.mubr.bf16.gmra.mrb[8].mxu0 %v10671_v9  ;;  %4719 = vmatmul.mubr.bf16.gmra.mrb[8].mxu1 %v10673_v10  ;;  %v10759_v9 = vld [vmem:[%s15565_s0 + $0x2c] ss:$100 sps:$4 sm:$0xff]  }
 0x113   :  { %3265 = vmatpush1.bf16.msra.mxu0 %v10637_v13  ;;  %4746 = vmatpush1.bf16.msra.mxu1 %v10637_v13  ;;  %v10764_v10 = vld [vmem:[%s15565_s0 + $0x2e8] ss:$100 sps:$4 sm:$0xff]  }
 0x114   :  { %3266 = vmatprep.subr.bf16.mxu0 %v10638_v14  ;;  %4747 = vmatprep.subr.bf16.mxu1 %v10638_v14  ;;  %v10719_v13 = vld [vmem:[%s15564_s1 + $0x580] ss:$8 sps:$4 sm:$0xff]   ;;  %v10720_v14 = vld [vmem:[%s15564_s1 + $0x594] ss:$8 sps:$4 sm:$0xff]  }
 0x115   :  { %3247 = vmatprep.mubr.bf16.mxu0 %v8585_v15  ;;  %4728 = vmatprep.mubr.bf16.mxu1 %v9176_v16  ;;  %v10722_v15 = vld [vmem:[%s15564_s1 + $0x590] ss:$8 sps:$4 sm:$0xff]   ;;  %v10725_v16 = vld [vmem:[%s15564_s1 + $0x5a4] ss:$8 sps:$4 sm:$0xff]  }
 0x117   :  { %3267 = vmatpush1.bf16.msra.mxu0 %v10640_v17  ;;  %4748 = vmatpush1.bf16.msra.mxu1 %v10640_v17  ;;  %v10730_v17 = vld [vmem:[%s15564_s1 + $0x5a0] ss:$8 sps:$4 sm:$0xff]  }
 0x118   :  { %3268 = vmatprep.subr.bf16.mxu0 %v10641_v18  ;;  %4749 = vmatprep.subr.bf16.mxu1 %v10641_v18  ;;  %v10732_v18 = vld [vmem:[%s15564_s1 + $0x5b4] ss:$8 sps:$4 sm:$0xff]  }
 0x11a   :  { %3248 = vmatmul.mubr.bf16.gmra.mrb[12].mxu0 %v8584_v21  ;;  %4729 = vmatmul.mubr.bf16.gmra.mrb[12].mxu1 %v9175_v22  ;;  %v10742_v21 = vld [vmem:[%s15564_s1 + $0x5c0] ss:$8 sps:$4 sm:$0xff]   ;;  %v10744_v22 = vld [vmem:[%s15564_s1 + $0x5d4] ss:$8 sps:$4 sm:$0xff]  }
 0x11b   :  { %3269 = vmatpush1.bf16.msra.mxu0 %v10643_v19  ;;  %4750 = vmatpush1.bf16.msra.mxu1 %v10643_v19  ;;  %v10734_v19 = vld [vmem:[%s15564_s1 + $0x5b0] ss:$8 sps:$4 sm:$0xff]  }
 0x11c   :  { %3270 = vmatprep.subr.bf16.mxu0 %v10644_v20  ;;  %4751 = vmatprep.subr.bf16.mxu1 %v10644_v20  ;;  %v10737_v20 = vld [vmem:[%s15564_s1 + $0x5c4] ss:$8 sps:$4 sm:$0xff]  }
 0x11d   :  { %3288 = vmatprep.mubr.bf16.mxu0 %v10689_v23  ;;  %4769 = vmatprep.mubr.bf16.mxu1 %v10694_v24  ;;  %v10746_v23 = vld [vmem:[%s15564_s1 + $0x5d0] ss:$8 sps:$4 sm:$0xff]   ;;  %v10748_v24 = vld [vmem:[%s15564_s1 + $0x5e4] ss:$8 sps:$4 sm:$0xff]  }
 0x11f   :  { %3271 = vmatpush1.bf16.msra.mxu0 %v10646_v25  ;;  %4752 = vmatpush1.bf16.msra.mxu1 %v10646_v25  ;;  %v10752_v25 = vld [vmem:[%s15564_s1 + $0x5e0] ss:$8 sps:$4 sm:$0xff]  }
 0x120   :  { %3272 = vmatprep.subr.bf16.mxu0 %v10647_v26  ;;  %4753 = vmatprep.subr.bf16.mxu1 %v10647_v26  ;;  %v10754_v26 = vld [vmem:[%s15564_s1 + $0x5f4] ss:$8 sps:$4 sm:$0xff]  }
 0x123   :  { %3273 = vmatpush1.bf16.msra.mxu0 %v10649_v27  ;;  %4754 = vmatpush1.bf16.msra.mxu1 %v10649_v27  ;;  %v10756_v27 = vld [vmem:[%s15564_s1 + $0x5f0] ss:$8 sps:$4 sm:$0xff]  }
 0x124   :  { %3274 = vmatprep.subr.bf16.mxu0 %v10650_v28  ;;  %4755 = vmatprep.subr.bf16.mxu1 %v10650_v28  ;;  %v10760_v28 = vld [vmem:[%s15564_s1 + $0x604] ss:$8 sps:$4 sm:$0xff]  }
 0x127   :  { %3275 = vmatpush1.bf16.msra.mxu0 %v10652_v29  ;;  %4756 = vmatpush1.bf16.msra.mxu1 %v10652_v29  ;;  %v10757_v29 = vld [vmem:[%s15565_s0 + $0x28] ss:$100 sps:$4 sm:$0xff]  }
 0x128   :  { %3276 = vmatprep.subr.bf16.mxu0 %v10655_v30  ;;  %4757 = vmatprep.subr.bf16.mxu1 %v10655_v30  ;;  %v10762_v30 = vld [vmem:[%s15565_s0 + $0x2e4] ss:$100 sps:$4 sm:$0xff]  }
 0x12b   :  { %3277 = vmatpush1.bf16.msra.mxu0 %v10660_v31  ;;  %4758 = vmatpush1.bf16.msra.mxu1 %v10660_v31  ;;  %v10765_v31 = vld [vmem:[%s15564_s1 + $0x600] ss:$8 sps:$4 sm:$0xff]  }
 0x12c   :  { %3278 = vmatprep.subr.bf16.mxu0 %v10662_v32  ;;  %4759 = vmatprep.subr.bf16.mxu1 %v10662_v32  ;;  %v10766_v32 = vld [vmem:[%s15564_s1 + $0x614] ss:$8 sps:$4 sm:$0xff]  }
 0x12f   :  { %3279 = vmatpush1.bf16.msra.mxu0 %v10664_v33  ;;  %4760 = vmatpush1.bf16.msra.mxu1 %v10664_v33  ;;  %v10793_v33 = vld [vmem:[%s15565_s0 + $0xf4] ss:$100 sps:$4 sm:$0xff]  }
 0x130   :  { %3280 = vmatprep.subr.bf16.mxu0 %v10667_v34  ;;  %4761 = vmatprep.subr.bf16.mxu1 %v10667_v34  ;;  %v10797_v34 = vld [vmem:[%s15565_s0 + $0x3b0] ss:$100 sps:$4 sm:$0xff]  }
 0x133   :  { %3281 = vmatpush1.bf16.msra.mxu0 %v10672_v35  ;;  %4762 = vmatpush1.bf16.msra.mxu1 %v10672_v35  ;;  %v10768_v35 = vld [vmem:[%s15564_s1 + $0x610] ss:$8 sps:$4 sm:$0xff]  }
 0x134   :  { %3282 = vmatprep.subr.bf16.mxu0 %v10674_v36  ;;  %4763 = vmatprep.subr.bf16.mxu1 %v10674_v36  ;;  %v10769_v36 = vld [vmem:[%s15564_s1 + $0x624] ss:$8 sps:$4 sm:$0xff]  }
 0x137   :  { %3283 = vmatpush1.bf16.msra.mxu0 %v10676_v37  ;;  %4764 = vmatpush1.bf16.msra.mxu1 %v10676_v37  ;;  %v10799_v37 = vld [vmem:[%s15565_s0 + $0xf0] ss:$100 sps:$4 sm:$0xff]  }
 0x138   :  { %3284 = vmatprep.subr.bf16.mxu0 %v10678_v38  ;;  %4765 = vmatprep.subr.bf16.mxu1 %v10678_v38  ;;  %v10801_v38 = vld [vmem:[%s15565_s0 + $0x3ac] ss:$100 sps:$4 sm:$0xff]  }
 0x13b   :  { %3285 = vmatpush1.bf16.msra.mxu0 %v10682_v39  ;;  %4766 = vmatpush1.bf16.msra.mxu1 %v10682_v39  ;;  %v10771_v39 = vld [vmem:[%s15564_s1 + $0x620] ss:$8 sps:$4 sm:$0xff]  }
 0x13c   :  { %3286 = vmatprep.subr.bf16.mxu0 %v10684_v40  ;;  %4767 = vmatprep.subr.bf16.mxu1 %v10684_v40  ;;  %v10772_v40 = vld [vmem:[%s15564_s1 + $0x634] ss:$8 sps:$4 sm:$0xff]  }
 0x13f   :  { %3287 = vmatpush1.bf16.msra.mxu0 %v10686_v41  ;;  %4768 = vmatpush1.bf16.msra.mxu1 %v10686_v41  ;;  %v10805_v41 = vld [vmem:[%s15565_s0 + $0x1bc] ss:$100 sps:$4 sm:$0xff]  }
 0x140   :  { %3327 = vmatprep.subr.bf16.mxu0 %v10690_v42  ;;  %4808 = vmatprep.subr.bf16.mxu1 %v10690_v42  ;;  %v10809_v42 = vld [vmem:[%s15565_s0 + $0x478] ss:$100 sps:$4 sm:$0xff]  }
 0x142   :  { %3289 = vmatmul.mubr.bf16.vlgmr.msra.gmra.mrb[0].mxu0 %v10687_v43  ;;  %4770 = vmatmul.mubr.bf16.vlgmr.msra.gmra.mrb[0].mxu1 %v10692_v44  ;;  %v10774_v43 = vld [vmem:[%s15564_s1 + $0x630] ss:$8 sps:$4 sm:$0xff]   ;;  %v10775_v44 = vld [vmem:[%s15564_s1 + $0x644] ss:$8 sps:$4 sm:$0xff]  }
 0x143   :  { %3328 = vmatpush1.bf16.msra.mxu0 %v10695_v45  ;;  %4809 = vmatpush1.bf16.msra.mxu1 %v10695_v45  ;;  %v10811_v45 = vld [vmem:[%s15565_s0 + $0x1b8] ss:$100 sps:$4 sm:$0xff]  }
 0x144   :  { %3329 = vmatprep.subr.bf16.mxu0 %v10696_v46  ;;  %4810 = vmatprep.subr.bf16.mxu1 %v10696_v46  ;;  %v10813_v46 = vld [vmem:[%s15565_s0 + $0x474] ss:$100 sps:$4 sm:$0xff]  }
 0x145   :  { %3298 = vmatprep.mubr.bf16.mxu0 %v10723_v47  ;;  %4779 = vmatprep.mubr.bf16.mxu1 %v10727_v49  ;;  %v498_v47 = vld [vmem:[%s15565_s0 + $0x280] sm:$0xff] }
 0x146   :  { %v10777_v49 = vld [vmem:[%s15564_s1 + $0x640] ss:$8 sps:$4 sm:$0xff]  }
 0x147   :  { %3330 = vmatpush1.bf16.msra.mxu0 %v10698_v48  ;;  %4811 = vmatpush1.bf16.msra.mxu1 %v10698_v48  ;;  %v9086_v48 = vld [vmem:[%s15565_s0 + $0x53c] sm:$0xff] }
 0x148   :  { %3331 = vmatprep.subr.bf16.mxu0 %v10699_v50  ;;  %4812 = vmatprep.subr.bf16.mxu1 %v10699_v50  ;;  %v10778_v50 = vld [vmem:[%s15564_s1 + $0x654] ss:$8 sps:$4 sm:$0xff]  }
 0x14a   :  { %3299 = vmatmul.mubr.bf16.gmra.mrb[4].mxu0 %v10729_v51  ;;  %4780 = vmatmul.mubr.bf16.gmra.mrb[4].mxu1 %v10731_v52  ;;  %v8589_v51 = vcombine.high %v498_v47, %v498_v47  ;;  %v9180_v52 = vcombine.high %v9086_v48, %v9086_v48 }
 0x14b   :  { %3332 = vmatpush1.bf16.msra.mxu0 %v10701_v53  ;;  %4813 = vmatpush1.bf16.msra.mxu1 %v10701_v53  ;;  %v10780_v53 = vld [vmem:[%s15564_s1 + $0x650] ss:$8 sps:$4 sm:$0xff]  }
 0x14c   :  { %3333 = vmatprep.subr.bf16.mxu0 %v10702_v54  ;;  %4814 = vmatprep.subr.bf16.mxu1 %v10702_v54  ;;  %v10781_v54 = vld [vmem:[%s15564_s1 + $0x664] ss:$8 sps:$4 sm:$0xff]  }
 0x14d   :  { %3308 = vmatprep.mubr.bf16.mxu0 %v10735_v55  ;;  %4789 = vmatprep.mubr.bf16.mxu1 %v10739_v56  ;;  %v8588_v55 = vcombine.low %v498_v47, %v498_v47  ;;  %v9179_v56 = vcombine.low %v9086_v48, %v9086_v48  ;;  %v10856_v47 = vld [vmem:[%s15564_s1 + $0x770] ss:$8 sps:$4 sm:$0xff]   ;;  %v10857_v48 = vld [vmem:[%s15564_s1 + $0x784] ss:$8 sps:$4 sm:$0xff]  }
 0x14f   :  { %3334 = vmatpush1.bf16.msra.mxu0 %v10704_v57  ;;  %4815 = vmatpush1.bf16.msra.mxu1 %v10704_v57  ;;  %v10783_v57 = vld [vmem:[%s15564_s1 + $0x660] ss:$8 sps:$4 sm:$0xff]  }
 0x150   :  { %3335 = vmatprep.subr.bf16.mxu0 %v10705_v58  ;;  %4816 = vmatprep.subr.bf16.mxu1 %v10705_v58  ;;  %v10784_v58 = vld [vmem:[%s15564_s1 + $0x674] ss:$8 sps:$4 sm:$0xff]  }
 0x152   :  { %3309 = vmatmul.mubr.bf16.gmra.mrb[8].mxu0 %v10741_v59  ;;  %4790 = vmatmul.mubr.bf16.gmra.mrb[8].mxu1 %v10743_v60  ;;  %v10829_v59 = vld [vmem:[%s15565_s0 + $0x34] ss:$100 sps:$4 sm:$0xff]  }
 0x153   :  { %3336 = vmatpush1.bf16.msra.mxu0 %v10707_v63  ;;  %4817 = vmatpush1.bf16.msra.mxu1 %v10707_v63  ;;  %v10834_v60 = vld [vmem:[%s15565_s0 + $0x2f0] ss:$100 sps:$4 sm:$0xff]   ;;  %v10789_v63 = vld [vmem:[%s15564_s1 + $0x680] ss:$8 sps:$4 sm:$0xff]  }
 0x154   :  { %3337 = vmatprep.subr.bf16.mxu0 %v10708_v0  ;;  %4818 = vmatprep.subr.bf16.mxu1 %v10708_v0  ;;  %v10790_v0 = vld [vmem:[%s15564_s1 + $0x694] ss:$8 sps:$4 sm:$0xff]  }
 0x155   :  { %3318 = vmatprep.mubr.bf16.mxu0 %v8587_v1  ;;  %4799 = vmatprep.mubr.bf16.mxu1 %v9178_v2  ;;  %v10792_v1 = vld [vmem:[%s15564_s1 + $0x690] ss:$8 sps:$4 sm:$0xff]   ;;  %v10795_v2 = vld [vmem:[%s15564_s1 + $0x6a4] ss:$8 sps:$4 sm:$0xff]  }
 0x157   :  { %3338 = vmatpush1.bf16.msra.mxu0 %v10710_v3  ;;  %4819 = vmatpush1.bf16.msra.mxu1 %v10710_v3  ;;  %v10800_v3 = vld [vmem:[%s15564_s1 + $0x6a0] ss:$8 sps:$4 sm:$0xff]  }
 0x158   :  { %3339 = vmatprep.subr.bf16.mxu0 %v10711_v4  ;;  %4820 = vmatprep.subr.bf16.mxu1 %v10711_v4  ;;  %v10802_v4 = vld [vmem:[%s15564_s1 + $0x6b4] ss:$8 sps:$4 sm:$0xff]  }
 0x15a   :  { %3319 = vmatmul.mubr.bf16.gmra.mrb[12].mxu0 %v8586_v7  ;;  %4800 = vmatmul.mubr.bf16.gmra.mrb[12].mxu1 %v9177_v8  ;;  %v10812_v7 = vld [vmem:[%s15564_s1 + $0x6c0] ss:$8 sps:$4 sm:$0xff]   ;;  %v10814_v8 = vld [vmem:[%s15564_s1 + $0x6d4] ss:$8 sps:$4 sm:$0xff]  }
 0x15b   :  { %3340 = vmatpush1.bf16.msra.mxu0 %v10713_v5  ;;  %4821 = vmatpush1.bf16.msra.mxu1 %v10713_v5  ;;  %v10804_v5 = vld [vmem:[%s15564_s1 + $0x6b0] ss:$8 sps:$4 sm:$0xff]  }
 0x15c   :  { %3341 = vmatprep.subr.bf16.mxu0 %v10714_v6  ;;  %4822 = vmatprep.subr.bf16.mxu1 %v10714_v6  ;;  %v10807_v6 = vld [vmem:[%s15564_s1 + $0x6c4] ss:$8 sps:$4 sm:$0xff]  }
 0x15d   :  { %3359 = vmatprep.mubr.bf16.mxu0 %v10759_v9  ;;  %4840 = vmatprep.mubr.bf16.mxu1 %v10764_v10  ;;  %v10816_v9 = vld [vmem:[%s15564_s1 + $0x6d0] ss:$8 sps:$4 sm:$0xff]   ;;  %v10818_v10 = vld [vmem:[%s15564_s1 + $0x6e4] ss:$8 sps:$4 sm:$0xff]  }
 0x15f   :  { %3342 = vmatpush1.bf16.msra.mxu0 %v10716_v11  ;;  %4823 = vmatpush1.bf16.msra.mxu1 %v10716_v11  ;;  %v10822_v11 = vld [vmem:[%s15564_s1 + $0x6e0] ss:$8 sps:$4 sm:$0xff]  }
 0x160   :  { %3343 = vmatprep.subr.bf16.mxu0 %v10717_v12  ;;  %4824 = vmatprep.subr.bf16.mxu1 %v10717_v12  ;;  %v10824_v12 = vld [vmem:[%s15564_s1 + $0x6f4] ss:$8 sps:$4 sm:$0xff]  }
 0x163   :  { %3344 = vmatpush1.bf16.msra.mxu0 %v10719_v13  ;;  %4825 = vmatpush1.bf16.msra.mxu1 %v10719_v13  ;;  %v10826_v13 = vld [vmem:[%s15564_s1 + $0x6f0] ss:$8 sps:$4 sm:$0xff]  }
 0x164   :  { %3345 = vmatprep.subr.bf16.mxu0 %v10720_v14  ;;  %4826 = vmatprep.subr.bf16.mxu1 %v10720_v14  ;;  %v10830_v14 = vld [vmem:[%s15564_s1 + $0x704] ss:$8 sps:$4 sm:$0xff]  }
 0x167   :  { %3346 = vmatpush1.bf16.msra.mxu0 %v10722_v15  ;;  %4827 = vmatpush1.bf16.msra.mxu1 %v10722_v15  ;;  %v10827_v15 = vld [vmem:[%s15565_s0 + $0x30] ss:$100 sps:$4 sm:$0xff]  }
 0x168   :  { %3347 = vmatprep.subr.bf16.mxu0 %v10725_v16  ;;  %4828 = vmatprep.subr.bf16.mxu1 %v10725_v16  ;;  %v10832_v16 = vld [vmem:[%s15565_s0 + $0x2ec] ss:$100 sps:$4 sm:$0xff]  }
 0x16b   :  { %3348 = vmatpush1.bf16.msra.mxu0 %v10730_v17  ;;  %4829 = vmatpush1.bf16.msra.mxu1 %v10730_v17  ;;  %v10835_v17 = vld [vmem:[%s15564_s1 + $0x700] ss:$8 sps:$4 sm:$0xff]  }
 0x16c   :  { %3349 = vmatprep.subr.bf16.mxu0 %v10732_v18  ;;  %4830 = vmatprep.subr.bf16.mxu1 %v10732_v18  ;;  %v10836_v18 = vld [vmem:[%s15564_s1 + $0x714] ss:$8 sps:$4 sm:$0xff]  }
 0x16f   :  { %3350 = vmatpush1.bf16.msra.mxu0 %v10734_v19  ;;  %4831 = vmatpush1.bf16.msra.mxu1 %v10734_v19  ;;  %v10863_v19 = vld [vmem:[%s15565_s0 + $0xfc] ss:$100 sps:$4 sm:$0xff]  }
 0x170   :  { %3351 = vmatprep.subr.bf16.mxu0 %v10737_v20  ;;  %4832 = vmatprep.subr.bf16.mxu1 %v10737_v20  ;;  %v10867_v20 = vld [vmem:[%s15565_s0 + $0x3b8] ss:$100 sps:$4 sm:$0xff]  }
 0x173   :  { %3352 = vmatpush1.bf16.msra.mxu0 %v10742_v21  ;;  %4833 = vmatpush1.bf16.msra.mxu1 %v10742_v21  ;;  %v10838_v21 = vld [vmem:[%s15564_s1 + $0x710] ss:$8 sps:$4 sm:$0xff]  }
 0x174   :  { %3353 = vmatprep.subr.bf16.mxu0 %v10744_v22  ;;  %4834 = vmatprep.subr.bf16.mxu1 %v10744_v22  ;;  %v10839_v22 = vld [vmem:[%s15564_s1 + $0x724] ss:$8 sps:$4 sm:$0xff]  }
 0x177   :  { %3354 = vmatpush1.bf16.msra.mxu0 %v10746_v23  ;;  %4835 = vmatpush1.bf16.msra.mxu1 %v10746_v23  ;;  %v10869_v23 = vld [vmem:[%s15565_s0 + $0xf8] ss:$100 sps:$4 sm:$0xff]  }
 0x178   :  { %3355 = vmatprep.subr.bf16.mxu0 %v10748_v24  ;;  %4836 = vmatprep.subr.bf16.mxu1 %v10748_v24  ;;  %v10871_v24 = vld [vmem:[%s15565_s0 + $0x3b4] ss:$100 sps:$4 sm:$0xff]  }
 0x17b   :  { %3356 = vmatpush1.bf16.msra.mxu0 %v10752_v25  ;;  %4837 = vmatpush1.bf16.msra.mxu1 %v10752_v25  ;;  %v10841_v25 = vld [vmem:[%s15564_s1 + $0x720] ss:$8 sps:$4 sm:$0xff]  }
 0x17c   :  { %3357 = vmatprep.subr.bf16.mxu0 %v10754_v26  ;;  %4838 = vmatprep.subr.bf16.mxu1 %v10754_v26  ;;  %v10842_v26 = vld [vmem:[%s15564_s1 + $0x734] ss:$8 sps:$4 sm:$0xff]  }
 0x17f   :  { %3358 = vmatpush1.bf16.msra.mxu0 %v10756_v27  ;;  %4839 = vmatpush1.bf16.msra.mxu1 %v10756_v27  ;;  %v10875_v27 = vld [vmem:[%s15565_s0 + $0x1c4] ss:$100 sps:$4 sm:$0xff]  }
 0x180   :  { %3398 = vmatprep.subr.bf16.mxu0 %v10760_v28  ;;  %4879 = vmatprep.subr.bf16.mxu1 %v10760_v28  ;;  %v10879_v28 = vld [vmem:[%s15565_s0 + $0x480] ss:$100 sps:$4 sm:$0xff]  }
 0x182   :  { %3360 = vmatmul.mubr.bf16.vlgmr.msra.gmra.mrb[0].mxu0 %v10757_v29  ;;  %4841 = vmatmul.mubr.bf16.vlgmr.msra.gmra.mrb[0].mxu1 %v10762_v30  ;;  %v10844_v29 = vld [vmem:[%s15564_s1 + $0x730] ss:$8 sps:$4 sm:$0xff]   ;;  %v10845_v30 = vld [vmem:[%s15564_s1 + $0x744] ss:$8 sps:$4 sm:$0xff]  }
 0x183   :  { %3399 = vmatpush1.bf16.msra.mxu0 %v10765_v31  ;;  %4880 = vmatpush1.bf16.msra.mxu1 %v10765_v31  ;;  %v10881_v31 = vld [vmem:[%s15565_s0 + $0x1c0] ss:$100 sps:$4 sm:$0xff]  }
 0x184   :  { %3400 = vmatprep.subr.bf16.mxu0 %v10766_v32  ;;  %4881 = vmatprep.subr.bf16.mxu1 %v10766_v32  ;;  %v10883_v32 = vld [vmem:[%s15565_s0 + $0x47c] ss:$100 sps:$4 sm:$0xff]  }
 0x185   :  { %3369 = vmatprep.mubr.bf16.mxu0 %v10793_v33  ;;  %4850 = vmatprep.mubr.bf16.mxu1 %v10797_v34  ;;  %v499_v33 = vld [vmem:[%s15565_s0 + $0x288] sm:$0xff] }
 0x186   :  { %v9087_v34 = vld [vmem:[%s15565_s0 + $0x544] sm:$0xff] }
 0x187   :  { %3401 = vmatpush1.bf16.msra.mxu0 %v10768_v35  ;;  %4882 = vmatpush1.bf16.msra.mxu1 %v10768_v35  ;;  %v10847_v35 = vld [vmem:[%s15564_s1 + $0x740] ss:$8 sps:$4 sm:$0xff]  }
 0x188   :  { %3402 = vmatprep.subr.bf16.mxu0 %v10769_v36  ;;  %4883 = vmatprep.subr.bf16.mxu1 %v10769_v36  ;;  %v10848_v36 = vld [vmem:[%s15564_s1 + $0x754] ss:$8 sps:$4 sm:$0xff]  }
 0x18a   :  { %3370 = vmatmul.mubr.bf16.gmra.mrb[4].mxu0 %v10799_v37  ;;  %4851 = vmatmul.mubr.bf16.gmra.mrb[4].mxu1 %v10801_v38  ;;  %v8591_v37 = vcombine.high %v499_v33, %v499_v33  ;;  %v9182_v38 = vcombine.high %v9087_v34, %v9087_v34 }
 0x18b   :  { %3403 = vmatpush1.bf16.msra.mxu0 %v10771_v39  ;;  %4884 = vmatpush1.bf16.msra.mxu1 %v10771_v39  ;;  %v10850_v39 = vld [vmem:[%s15564_s1 + $0x750] ss:$8 sps:$4 sm:$0xff]  }
 0x18c   :  { %3404 = vmatprep.subr.bf16.mxu0 %v10772_v40  ;;  %4885 = vmatprep.subr.bf16.mxu1 %v10772_v40  ;;  %v10851_v40 = vld [vmem:[%s15564_s1 + $0x764] ss:$8 sps:$4 sm:$0xff]  }
 0x18d   :  { %3379 = vmatprep.mubr.bf16.mxu0 %v10805_v41  ;;  %4860 = vmatprep.mubr.bf16.mxu1 %v10809_v42  ;;  %v8590_v41 = vcombine.low %v499_v33, %v499_v33  ;;  %v9181_v42 = vcombine.low %v9087_v34, %v9087_v34  ;;  %v10926_v33 = vld [vmem:[%s15564_s1 + $0x870] ss:$8 sps:$4 sm:$0xff]   ;;  %v10927_v34 = vld [vmem:[%s15564_s1 + $0x884] ss:$8 sps:$4 sm:$0xff]  }
 0x18f   :  { %3405 = vmatpush1.bf16.msra.mxu0 %v10774_v43  ;;  %4886 = vmatpush1.bf16.msra.mxu1 %v10774_v43  ;;  %v10853_v43 = vld [vmem:[%s15564_s1 + $0x760] ss:$8 sps:$4 sm:$0xff]  }
 0x190   :  { %3406 = vmatprep.subr.bf16.mxu0 %v10775_v44  ;;  %4887 = vmatprep.subr.bf16.mxu1 %v10775_v44  ;;  %v10854_v44 = vld [vmem:[%s15564_s1 + $0x774] ss:$8 sps:$4 sm:$0xff]  }
 0x192   :  { %3380 = vmatmul.mubr.bf16.gmra.mrb[8].mxu0 %v10811_v45  ;;  %4861 = vmatmul.mubr.bf16.gmra.mrb[8].mxu1 %v10813_v46  ;;  %v10899_v45 = vld [vmem:[%s15565_s0 + $0x3c] ss:$100 sps:$4 sm:$0xff]  }
 0x193   :  { %3407 = vmatpush1.bf16.msra.mxu0 %v10777_v49  ;;  %4888 = vmatpush1.bf16.msra.mxu1 %v10777_v49  ;;  %v10904_v46 = vld [vmem:[%s15565_s0 + $0x2f8] ss:$100 sps:$4 sm:$0xff]   ;;  %v10859_v49 = vld [vmem:[%s15564_s1 + $0x780] ss:$8 sps:$4 sm:$0xff]  }
 0x194   :  { %3408 = vmatprep.subr.bf16.mxu0 %v10778_v50  ;;  %4889 = vmatprep.subr.bf16.mxu1 %v10778_v50  ;;  %v10860_v50 = vld [vmem:[%s15564_s1 + $0x794] ss:$8 sps:$4 sm:$0xff]  }
 0x195   :  { %3389 = vmatprep.mubr.bf16.mxu0 %v8589_v51  ;;  %4870 = vmatprep.mubr.bf16.mxu1 %v9180_v52  ;;  %v10862_v51 = vld [vmem:[%s15564_s1 + $0x790] ss:$8 sps:$4 sm:$0xff]   ;;  %v10865_v52 = vld [vmem:[%s15564_s1 + $0x7a4] ss:$8 sps:$4 sm:$0xff]  }
 0x197   :  { %3409 = vmatpush1.bf16.msra.mxu0 %v10780_v53  ;;  %4890 = vmatpush1.bf16.msra.mxu1 %v10780_v53  ;;  %v10870_v53 = vld [vmem:[%s15564_s1 + $0x7a0] ss:$8 sps:$4 sm:$0xff]  }
 0x198   :  { %3410 = vmatprep.subr.bf16.mxu0 %v10781_v54  ;;  %4891 = vmatprep.subr.bf16.mxu1 %v10781_v54  ;;  %v10872_v54 = vld [vmem:[%s15564_s1 + $0x7b4] ss:$8 sps:$4 sm:$0xff]  }
 0x19a   :  { %3390 = vmatmul.mubr.bf16.gmra.mrb[12].mxu0 %v8588_v55  ;;  %4871 = vmatmul.mubr.bf16.gmra.mrb[12].mxu1 %v9179_v56  ;;  %v10874_v55 = vld [vmem:[%s15564_s1 + $0x7b0] ss:$8 sps:$4 sm:$0xff]   ;;  %v10877_v56 = vld [vmem:[%s15564_s1 + $0x7c4] ss:$8 sps:$4 sm:$0xff]  }
 0x19b   :  { %3411 = vmatpush1.bf16.msra.mxu0 %v10783_v57  ;;  %4892 = vmatpush1.bf16.msra.mxu1 %v10783_v57  ;;  %v10882_v57 = vld [vmem:[%s15564_s1 + $0x7c0] ss:$8 sps:$4 sm:$0xff]  }
 0x19c   :  { %3412 = vmatprep.subr.bf16.mxu0 %v10784_v58  ;;  %4893 = vmatprep.subr.bf16.mxu1 %v10784_v58  ;;  %v10884_v58 = vld [vmem:[%s15564_s1 + $0x7d4] ss:$8 sps:$4 sm:$0xff]  }
 0x19d   :  { %3430 = vmatprep.mubr.bf16.mxu0 %v10829_v59  ;;  %4911 = vmatprep.mubr.bf16.mxu1 %v10834_v60  ;;  %v10886_v59 = vld [vmem:[%s15564_s1 + $0x7d0] ss:$8 sps:$4 sm:$0xff]   ;;  %v10888_v60 = vld [vmem:[%s15564_s1 + $0x7e4] ss:$8 sps:$4 sm:$0xff]  }
 0x19f   :  { %3413 = vmatpush1.bf16.msra.mxu0 %v10786_v61  ;;  %4894 = vmatpush1.bf16.msra.mxu1 %v10786_v61  ;;  %v10892_v61 = vld [vmem:[%s15564_s1 + $0x7e0] ss:$8 sps:$4 sm:$0xff]  }
 0x1a0   :  { %3414 = vmatprep.subr.bf16.mxu0 %v10787_v62  ;;  %4895 = vmatprep.subr.bf16.mxu1 %v10787_v62  ;;  %v10894_v62 = vld [vmem:[%s15564_s1 + $0x7f4] ss:$8 sps:$4 sm:$0xff]  }
 0x1a3   :  { %3415 = vmatpush1.bf16.msra.mxu0 %v10789_v63  ;;  %4896 = vmatpush1.bf16.msra.mxu1 %v10789_v63  ;;  %v10896_v63 = vld [vmem:[%s15564_s1 + $0x7f0] ss:$8 sps:$4 sm:$0xff]  }
 0x1a4   :  { %3416 = vmatprep.subr.bf16.mxu0 %v10790_v0  ;;  %4897 = vmatprep.subr.bf16.mxu1 %v10790_v0  ;;  %v10900_v0 = vld [vmem:[%s15564_s1 + $0x804] ss:$8 sps:$4 sm:$0xff]  }
 0x1a7   :  { %3417 = vmatpush1.bf16.msra.mxu0 %v10792_v1  ;;  %4898 = vmatpush1.bf16.msra.mxu1 %v10792_v1  ;;  %v10897_v1 = vld [vmem:[%s15565_s0 + $0x38] ss:$100 sps:$4 sm:$0xff]  }
 0x1a8   :  { %3418 = vmatprep.subr.bf16.mxu0 %v10795_v2  ;;  %4899 = vmatprep.subr.bf16.mxu1 %v10795_v2  ;;  %v10902_v2 = vld [vmem:[%s15565_s0 + $0x2f4] ss:$100 sps:$4 sm:$0xff]  }
 0x1ab   :  { %3419 = vmatpush1.bf16.msra.mxu0 %v10800_v3  ;;  %4900 = vmatpush1.bf16.msra.mxu1 %v10800_v3  ;;  %v10905_v3 = vld [vmem:[%s15564_s1 + $0x800] ss:$8 sps:$4 sm:$0xff]  }
 0x1ac   :  { %3420 = vmatprep.subr.bf16.mxu0 %v10802_v4  ;;  %4901 = vmatprep.subr.bf16.mxu1 %v10802_v4  ;;  %v10906_v4 = vld [vmem:[%s15564_s1 + $0x814] ss:$8 sps:$4 sm:$0xff]  }
 0x1af   :  { %3421 = vmatpush1.bf16.msra.mxu0 %v10804_v5  ;;  %4902 = vmatpush1.bf16.msra.mxu1 %v10804_v5  ;;  %v10933_v5 = vld [vmem:[%s15565_s0 + $0x104] ss:$100 sps:$4 sm:$0xff]  }
 0x1b0   :  { %3422 = vmatprep.subr.bf16.mxu0 %v10807_v6  ;;  %4903 = vmatprep.subr.bf16.mxu1 %v10807_v6  ;;  %v10937_v6 = vld [vmem:[%s15565_s0 + $0x3c0] ss:$100 sps:$4 sm:$0xff]  }
 0x1b3   :  { %3423 = vmatpush1.bf16.msra.mxu0 %v10812_v7  ;;  %4904 = vmatpush1.bf16.msra.mxu1 %v10812_v7  ;;  %v10908_v7 = vld [vmem:[%s15564_s1 + $0x810] ss:$8 sps:$4 sm:$0xff]  }
 0x1b4   :  { %3424 = vmatprep.subr.bf16.mxu0 %v10814_v8  ;;  %4905 = vmatprep.subr.bf16.mxu1 %v10814_v8  ;;  %v10909_v8 = vld [vmem:[%s15564_s1 + $0x824] ss:$8 sps:$4 sm:$0xff]  }
 0x1b7   :  { %3425 = vmatpush1.bf16.msra.mxu0 %v10816_v9  ;;  %4906 = vmatpush1.bf16.msra.mxu1 %v10816_v9  ;;  %v10939_v9 = vld [vmem:[%s15565_s0 + $0x100] ss:$100 sps:$4 sm:$0xff]  }
 0x1b8   :  { %3426 = vmatprep.subr.bf16.mxu0 %v10818_v10  ;;  %4907 = vmatprep.subr.bf16.mxu1 %v10818_v10  ;;  %v10941_v10 = vld [vmem:[%s15565_s0 + $0x3bc] ss:$100 sps:$4 sm:$0xff]  }
 0x1bb   :  { %3427 = vmatpush1.bf16.msra.mxu0 %v10822_v11  ;;  %4908 = vmatpush1.bf16.msra.mxu1 %v10822_v11  ;;  %v10911_v11 = vld [vmem:[%s15564_s1 + $0x820] ss:$8 sps:$4 sm:$0xff]  }
 0x1bc   :  { %3428 = vmatprep.subr.bf16.mxu0 %v10824_v12  ;;  %4909 = vmatprep.subr.bf16.mxu1 %v10824_v12  ;;  %v10912_v12 = vld [vmem:[%s15564_s1 + $0x834] ss:$8 sps:$4 sm:$0xff]  }
 0x1bf   :  { %3429 = vmatpush1.bf16.msra.mxu0 %v10826_v13  ;;  %4910 = vmatpush1.bf16.msra.mxu1 %v10826_v13  ;;  %v10945_v13 = vld [vmem:[%s15565_s0 + $0x1cc] ss:$100 sps:$4 sm:$0xff]  }
 0x1c0   :  { %3469 = vmatprep.subr.bf16.mxu0 %v10830_v14  ;;  %4950 = vmatprep.subr.bf16.mxu1 %v10830_v14  ;;  %v10949_v14 = vld [vmem:[%s15565_s0 + $0x488] ss:$100 sps:$4 sm:$0xff]  }
 0x1c2   :  { %3431 = vmatmul.mubr.bf16.vlgmr.msra.gmra.mrb[0].mxu0 %v10827_v15  ;;  %4912 = vmatmul.mubr.bf16.vlgmr.msra.gmra.mrb[0].mxu1 %v10832_v16  ;;  %v10914_v15 = vld [vmem:[%s15564_s1 + $0x830] ss:$8 sps:$4 sm:$0xff]   ;;  %v10915_v16 = vld [vmem:[%s15564_s1 + $0x844] ss:$8 sps:$4 sm:$0xff]  }
 0x1c3   :  { %3470 = vmatpush1.bf16.msra.mxu0 %v10835_v17  ;;  %4951 = vmatpush1.bf16.msra.mxu1 %v10835_v17  ;;  %v10951_v17 = vld [vmem:[%s15565_s0 + $0x1c8] ss:$100 sps:$4 sm:$0xff]  }
 0x1c4   :  { %3471 = vmatprep.subr.bf16.mxu0 %v10836_v18  ;;  %4952 = vmatprep.subr.bf16.mxu1 %v10836_v18  ;;  %v10953_v18 = vld [vmem:[%s15565_s0 + $0x484] ss:$100 sps:$4 sm:$0xff]  }
 0x1c5   :  { %3440 = vmatprep.mubr.bf16.mxu0 %v10863_v19  ;;  %4921 = vmatprep.mubr.bf16.mxu1 %v10867_v20  ;;  %v500_v19 = vld [vmem:[%s15565_s0 + $0x290] sm:$0xff] }
 0x1c6   :  { %v9088_v20 = vld [vmem:[%s15565_s0 + $0x54c] sm:$0xff] }
 0x1c7   :  { %3472 = vmatpush1.bf16.msra.mxu0 %v10838_v21  ;;  %4953 = vmatpush1.bf16.msra.mxu1 %v10838_v21  ;;  %v10917_v21 = vld [vmem:[%s15564_s1 + $0x840] ss:$8 sps:$4 sm:$0xff]  }
 0x1c8   :  { %3473 = vmatprep.subr.bf16.mxu0 %v10839_v22  ;;  %4954 = vmatprep.subr.bf16.mxu1 %v10839_v22  ;;  %v10918_v22 = vld [vmem:[%s15564_s1 + $0x854] ss:$8 sps:$4 sm:$0xff]  }
 0x1ca   :  { %3441 = vmatmul.mubr.bf16.gmra.mrb[4].mxu0 %v10869_v23  ;;  %4922 = vmatmul.mubr.bf16.gmra.mrb[4].mxu1 %v10871_v24  ;;  %v8593_v23 = vcombine.high %v500_v19, %v500_v19  ;;  %v9184_v24 = vcombine.high %v9088_v20, %v9088_v20 }
 0x1cb   :  { %3474 = vmatpush1.bf16.msra.mxu0 %v10841_v25  ;;  %4955 = vmatpush1.bf16.msra.mxu1 %v10841_v25  ;;  %v10920_v25 = vld [vmem:[%s15564_s1 + $0x850] ss:$8 sps:$4 sm:$0xff]  }
 0x1cc   :  { %3475 = vmatprep.subr.bf16.mxu0 %v10842_v26  ;;  %4956 = vmatprep.subr.bf16.mxu1 %v10842_v26  ;;  %v10921_v26 = vld [vmem:[%s15564_s1 + $0x864] ss:$8 sps:$4 sm:$0xff]  }
 0x1cd   :  { %3450 = vmatprep.mubr.bf16.mxu0 %v10875_v27  ;;  %4931 = vmatprep.mubr.bf16.mxu1 %v10879_v28  ;;  %v8592_v27 = vcombine.low %v500_v19, %v500_v19  ;;  %v9183_v28 = vcombine.low %v9088_v20, %v9088_v20  ;;  %v10996_v19 = vld [vmem:[%s15564_s1 + $0x970] ss:$8 sps:$4 sm:$0xff]   ;;  %v10997_v20 = vld [vmem:[%s15564_s1 + $0x984] ss:$8 sps:$4 sm:$0xff]  }
 0x1cf   :  { %3476 = vmatpush1.bf16.msra.mxu0 %v10844_v29  ;;  %4957 = vmatpush1.bf16.msra.mxu1 %v10844_v29  ;;  %v10923_v29 = vld [vmem:[%s15564_s1 + $0x860] ss:$8 sps:$4 sm:$0xff]  }
 0x1d0   :  { %3477 = vmatprep.subr.bf16.mxu0 %v10845_v30  ;;  %4958 = vmatprep.subr.bf16.mxu1 %v10845_v30  ;;  %v10924_v30 = vld [vmem:[%s15564_s1 + $0x874] ss:$8 sps:$4 sm:$0xff]  }
 0x1d2   :  { %3451 = vmatmul.mubr.bf16.gmra.mrb[8].mxu0 %v10881_v31  ;;  %4932 = vmatmul.mubr.bf16.gmra.mrb[8].mxu1 %v10883_v32  ;;  %v10969_v31 = vld [vmem:[%s15565_s0 + $0x44] ss:$100 sps:$4 sm:$0xff]  }
 0x1d3   :  { %3478 = vmatpush1.bf16.msra.mxu0 %v10847_v35  ;;  %4959 = vmatpush1.bf16.msra.mxu1 %v10847_v35  ;;  %v10974_v32 = vld [vmem:[%s15565_s0 + $0x300] ss:$100 sps:$4 sm:$0xff]  }
 0x1d4   :  { %3479 = vmatprep.subr.bf16.mxu0 %v10848_v36  ;;  %4960 = vmatprep.subr.bf16.mxu1 %v10848_v36  ;;  %v10929_v35 = vld [vmem:[%s15564_s1 + $0x880] ss:$8 sps:$4 sm:$0xff]   ;;  %v10930_v36 = vld [vmem:[%s15564_s1 + $0x894] ss:$8 sps:$4 sm:$0xff]  }
 0x1d5   :  { %3460 = vmatprep.mubr.bf16.mxu0 %v8591_v37  ;;  %4941 = vmatprep.mubr.bf16.mxu1 %v9182_v38  ;;  %v10932_v37 = vld [vmem:[%s15564_s1 + $0x890] ss:$8 sps:$4 sm:$0xff]   ;;  %v10935_v38 = vld [vmem:[%s15564_s1 + $0x8a4] ss:$8 sps:$4 sm:$0xff]  }
 0x1d7   :  { %3480 = vmatpush1.bf16.msra.mxu0 %v10850_v39  ;;  %4961 = vmatpush1.bf16.msra.mxu1 %v10850_v39  ;;  %v10940_v39 = vld [vmem:[%s15564_s1 + $0x8a0] ss:$8 sps:$4 sm:$0xff]  }
 0x1d8   :  { %3481 = vmatprep.subr.bf16.mxu0 %v10851_v40  ;;  %4962 = vmatprep.subr.bf16.mxu1 %v10851_v40  ;;  %v10942_v40 = vld [vmem:[%s15564_s1 + $0x8b4] ss:$8 sps:$4 sm:$0xff]  }
 0x1da   :  { %3461 = vmatmul.mubr.bf16.gmra.mrb[12].mxu0 %v8590_v41  ;;  %4942 = vmatmul.mubr.bf16.gmra.mrb[12].mxu1 %v9181_v42  ;;  %v10944_v41 = vld [vmem:[%s15564_s1 + $0x8b0] ss:$8 sps:$4 sm:$0xff]   ;;  %v10947_v42 = vld [vmem:[%s15564_s1 + $0x8c4] ss:$8 sps:$4 sm:$0xff]  }
 0x1db   :  { %3482 = vmatpush1.bf16.msra.mxu0 %v10853_v43  ;;  %4963 = vmatpush1.bf16.msra.mxu1 %v10853_v43  ;;  %v10952_v43 = vld [vmem:[%s15564_s1 + $0x8c0] ss:$8 sps:$4 sm:$0xff]  }
 0x1dc   :  { %3483 = vmatprep.subr.bf16.mxu0 %v10854_v44  ;;  %4964 = vmatprep.subr.bf16.mxu1 %v10854_v44  ;;  %v10954_v44 = vld [vmem:[%s15564_s1 + $0x8d4] ss:$8 sps:$4 sm:$0xff]  }
 0x1dd   :  { %3501 = vmatprep.mubr.bf16.mxu0 %v10899_v45  ;;  %4982 = vmatprep.mubr.bf16.mxu1 %v10904_v46  ;;  %v10956_v45 = vld [vmem:[%s15564_s1 + $0x8d0] ss:$8 sps:$4 sm:$0xff]   ;;  %v10958_v46 = vld [vmem:[%s15564_s1 + $0x8e4] ss:$8 sps:$4 sm:$0xff]  }
 0x1df   :  { %3484 = vmatpush1.bf16.msra.mxu0 %v10856_v47  ;;  %4965 = vmatpush1.bf16.msra.mxu1 %v10856_v47  ;;  %v10962_v47 = vld [vmem:[%s15564_s1 + $0x8e0] ss:$8 sps:$4 sm:$0xff]  }
 0x1e0   :  { %3485 = vmatprep.subr.bf16.mxu0 %v10857_v48  ;;  %4966 = vmatprep.subr.bf16.mxu1 %v10857_v48  ;;  %v10964_v48 = vld [vmem:[%s15564_s1 + $0x8f4] ss:$8 sps:$4 sm:$0xff]  }
 0x1e3   :  { %3486 = vmatpush1.bf16.msra.mxu0 %v10859_v49  ;;  %4967 = vmatpush1.bf16.msra.mxu1 %v10859_v49  ;;  %v10966_v49 = vld [vmem:[%s15564_s1 + $0x8f0] ss:$8 sps:$4 sm:$0xff]  }
 0x1e4   :  { %3487 = vmatprep.subr.bf16.mxu0 %v10860_v50  ;;  %4968 = vmatprep.subr.bf16.mxu1 %v10860_v50  ;;  %v10970_v50 = vld [vmem:[%s15564_s1 + $0x904] ss:$8 sps:$4 sm:$0xff]  }
 0x1e7   :  { %3488 = vmatpush1.bf16.msra.mxu0 %v10862_v51  ;;  %4969 = vmatpush1.bf16.msra.mxu1 %v10862_v51  ;;  %v10967_v51 = vld [vmem:[%s15565_s0 + $0x40] ss:$100 sps:$4 sm:$0xff]  }
 0x1e8   :  { %3489 = vmatprep.subr.bf16.mxu0 %v10865_v52  ;;  %4970 = vmatprep.subr.bf16.mxu1 %v10865_v52  ;;  %v10972_v52 = vld [vmem:[%s15565_s0 + $0x2fc] ss:$100 sps:$4 sm:$0xff]  }
 0x1eb   :  { %3490 = vmatpush1.bf16.msra.mxu0 %v10870_v53  ;;  %4971 = vmatpush1.bf16.msra.mxu1 %v10870_v53  ;;  %v10975_v53 = vld [vmem:[%s15564_s1 + $0x900] ss:$8 sps:$4 sm:$0xff]  }
 0x1ec   :  { %3491 = vmatprep.subr.bf16.mxu0 %v10872_v54  ;;  %4972 = vmatprep.subr.bf16.mxu1 %v10872_v54  ;;  %v10976_v54 = vld [vmem:[%s15564_s1 + $0x914] ss:$8 sps:$4 sm:$0xff]  }
 0x1ef   :  { %3492 = vmatpush1.bf16.msra.mxu0 %v10874_v55  ;;  %4973 = vmatpush1.bf16.msra.mxu1 %v10874_v55  ;;  %v11003_v55 = vld [vmem:[%s15565_s0 + $0x10c] ss:$100 sps:$4 sm:$0xff]  }
 0x1f0   :  { %3493 = vmatprep.subr.bf16.mxu0 %v10877_v56  ;;  %4974 = vmatprep.subr.bf16.mxu1 %v10877_v56  ;;  %v11007_v56 = vld [vmem:[%s15565_s0 + $0x3c8] ss:$100 sps:$4 sm:$0xff]  }
 0x1f3   :  { %3494 = vmatpush1.bf16.msra.mxu0 %v10882_v57  ;;  %4975 = vmatpush1.bf16.msra.mxu1 %v10882_v57  ;;  %v10978_v57 = vld [vmem:[%s15564_s1 + $0x910] ss:$8 sps:$4 sm:$0xff]  }
 0x1f4   :  { %3495 = vmatprep.subr.bf16.mxu0 %v10884_v58  ;;  %4976 = vmatprep.subr.bf16.mxu1 %v10884_v58  ;;  %v10979_v58 = vld [vmem:[%s15564_s1 + $0x924] ss:$8 sps:$4 sm:$0xff]  }
 0x1f7   :  { %3496 = vmatpush1.bf16.msra.mxu0 %v10886_v59  ;;  %4977 = vmatpush1.bf16.msra.mxu1 %v10886_v59  ;;  %v11009_v59 = vld [vmem:[%s15565_s0 + $0x108] ss:$100 sps:$4 sm:$0xff]  }
 0x1f8   :  { %3497 = vmatprep.subr.bf16.mxu0 %v10888_v60  ;;  %4978 = vmatprep.subr.bf16.mxu1 %v10888_v60  ;;  %v11011_v60 = vld [vmem:[%s15565_s0 + $0x3c4] ss:$100 sps:$4 sm:$0xff]  }
 0x1fb   :  { %3498 = vmatpush1.bf16.msra.mxu0 %v10892_v61  ;;  %4979 = vmatpush1.bf16.msra.mxu1 %v10892_v61  ;;  %v10981_v61 = vld [vmem:[%s15564_s1 + $0x920] ss:$8 sps:$4 sm:$0xff]  }
 0x1fc   :  { %3499 = vmatprep.subr.bf16.mxu0 %v10894_v62  ;;  %4980 = vmatprep.subr.bf16.mxu1 %v10894_v62  ;;  %v10982_v62 = vld [vmem:[%s15564_s1 + $0x934] ss:$8 sps:$4 sm:$0xff]  }
 0x1ff   :  { %3500 = vmatpush1.bf16.msra.mxu0 %v10896_v63  ;;  %4981 = vmatpush1.bf16.msra.mxu1 %v10896_v63  ;;  %v11015_v63 = vld [vmem:[%s15565_s0 + $0x1d4] ss:$100 sps:$4 sm:$0xff]  }
 0x200   :  { %3540 = vmatprep.subr.bf16.mxu0 %v10900_v0  ;;  %5021 = vmatprep.subr.bf16.mxu1 %v10900_v0  ;;  %v11019_v0 = vld [vmem:[%s15565_s0 + $0x490] ss:$100 sps:$4 sm:$0xff]  }
 0x202   :  { %3502 = vmatmul.mubr.bf16.vlgmr.msra.gmra.mrb[0].mxu0 %v10897_v1  ;;  %4983 = vmatmul.mubr.bf16.vlgmr.msra.gmra.mrb[0].mxu1 %v10902_v2  ;;  %v10984_v1 = vld [vmem:[%s15564_s1 + $0x930] ss:$8 sps:$4 sm:$0xff]   ;;  %v10985_v2 = vld [vmem:[%s15564_s1 + $0x944] ss:$8 sps:$4 sm:$0xff]  }
 0x203   :  { %3541 = vmatpush1.bf16.msra.mxu0 %v10905_v3  ;;  %5022 = vmatpush1.bf16.msra.mxu1 %v10905_v3  ;;  %v11021_v3 = vld [vmem:[%s15565_s0 + $0x1d0] ss:$100 sps:$4 sm:$0xff]  }
 0x204   :  { %3542 = vmatprep.subr.bf16.mxu0 %v10906_v4  ;;  %5023 = vmatprep.subr.bf16.mxu1 %v10906_v4  ;;  %v11023_v4 = vld [vmem:[%s15565_s0 + $0x48c] ss:$100 sps:$4 sm:$0xff]  }
 0x205   :  { %3511 = vmatprep.mubr.bf16.mxu0 %v10933_v5  ;;  %4992 = vmatprep.mubr.bf16.mxu1 %v10937_v6  ;;  %v501_v5 = vld [vmem:[%s15565_s0 + $0x298] sm:$0xff] }
 0x206   :  { %v9089_v6 = vld [vmem:[%s15565_s0 + $0x554] sm:$0xff] }
 0x207   :  { %3543 = vmatpush1.bf16.msra.mxu0 %v10908_v7  ;;  %5024 = vmatpush1.bf16.msra.mxu1 %v10908_v7  ;;  %v10987_v7 = vld [vmem:[%s15564_s1 + $0x940] ss:$8 sps:$4 sm:$0xff]  }
 0x208   :  { %3544 = vmatprep.subr.bf16.mxu0 %v10909_v8  ;;  %5025 = vmatprep.subr.bf16.mxu1 %v10909_v8  ;;  %v10988_v8 = vld [vmem:[%s15564_s1 + $0x954] ss:$8 sps:$4 sm:$0xff]  }
 0x20a   :  { %3512 = vmatmul.mubr.bf16.gmra.mrb[4].mxu0 %v10939_v9  ;;  %4993 = vmatmul.mubr.bf16.gmra.mrb[4].mxu1 %v10941_v10  ;;  %v8595_v9 = vcombine.high %v501_v5, %v501_v5  ;;  %v9186_v10 = vcombine.high %v9089_v6, %v9089_v6 }
 0x20b   :  { %3545 = vmatpush1.bf16.msra.mxu0 %v10911_v11  ;;  %5026 = vmatpush1.bf16.msra.mxu1 %v10911_v11  ;;  %v10990_v11 = vld [vmem:[%s15564_s1 + $0x950] ss:$8 sps:$4 sm:$0xff]  }
 0x20c   :  { %3546 = vmatprep.subr.bf16.mxu0 %v10912_v12  ;;  %5027 = vmatprep.subr.bf16.mxu1 %v10912_v12  ;;  %v10991_v12 = vld [vmem:[%s15564_s1 + $0x964] ss:$8 sps:$4 sm:$0xff]  }
 0x20d   :  { %3521 = vmatprep.mubr.bf16.mxu0 %v10945_v13  ;;  %5002 = vmatprep.mubr.bf16.mxu1 %v10949_v14  ;;  %v8594_v13 = vcombine.low %v501_v5, %v501_v5  ;;  %v9185_v14 = vcombine.low %v9089_v6, %v9089_v6  ;;  %v11066_v5 = vld [vmem:[%s15564_s1 + $0xa70] ss:$8 sps:$4 sm:$0xff]   ;;  %v11067_v6 = vld [vmem:[%s15564_s1 + $0xa84] ss:$8 sps:$4 sm:$0xff]  }
 0x20f   :  { %3547 = vmatpush1.bf16.msra.mxu0 %v10914_v15  ;;  %5028 = vmatpush1.bf16.msra.mxu1 %v10914_v15  ;;  %v10993_v15 = vld [vmem:[%s15564_s1 + $0x960] ss:$8 sps:$4 sm:$0xff]  }
 0x210   :  { %3548 = vmatprep.subr.bf16.mxu0 %v10915_v16  ;;  %5029 = vmatprep.subr.bf16.mxu1 %v10915_v16  ;;  %v10994_v16 = vld [vmem:[%s15564_s1 + $0x974] ss:$8 sps:$4 sm:$0xff]  }
 0x212   :  { %3522 = vmatmul.mubr.bf16.gmra.mrb[8].mxu0 %v10951_v17  ;;  %5003 = vmatmul.mubr.bf16.gmra.mrb[8].mxu1 %v10953_v18  ;;  %v11039_v17 = vld [vmem:[%s15565_s0 + $0x4c] ss:$100 sps:$4 sm:$0xff]  }
 0x213   :  { %3549 = vmatpush1.bf16.msra.mxu0 %v10917_v21  ;;  %5030 = vmatpush1.bf16.msra.mxu1 %v10917_v21  ;;  %v11044_v18 = vld [vmem:[%s15565_s0 + $0x308] ss:$100 sps:$4 sm:$0xff]  }
 0x214   :  { %3550 = vmatprep.subr.bf16.mxu0 %v10918_v22  ;;  %5031 = vmatprep.subr.bf16.mxu1 %v10918_v22  ;;  %v10999_v21 = vld [vmem:[%s15564_s1 + $0x980] ss:$8 sps:$4 sm:$0xff]   ;;  %v11000_v22 = vld [vmem:[%s15564_s1 + $0x994] ss:$8 sps:$4 sm:$0xff]  }
 0x215   :  { %3531 = vmatprep.mubr.bf16.mxu0 %v8593_v23  ;;  %5012 = vmatprep.mubr.bf16.mxu1 %v9184_v24  ;;  %v11002_v23 = vld [vmem:[%s15564_s1 + $0x990] ss:$8 sps:$4 sm:$0xff]   ;;  %v11005_v24 = vld [vmem:[%s15564_s1 + $0x9a4] ss:$8 sps:$4 sm:$0xff]  }
 0x217   :  { %3551 = vmatpush1.bf16.msra.mxu0 %v10920_v25  ;;  %5032 = vmatpush1.bf16.msra.mxu1 %v10920_v25  ;;  %v11010_v25 = vld [vmem:[%s15564_s1 + $0x9a0] ss:$8 sps:$4 sm:$0xff]  }
 0x218   :  { %3552 = vmatprep.subr.bf16.mxu0 %v10921_v26  ;;  %5033 = vmatprep.subr.bf16.mxu1 %v10921_v26  ;;  %v11012_v26 = vld [vmem:[%s15564_s1 + $0x9b4] ss:$8 sps:$4 sm:$0xff]  }
 0x21a   :  { %3532 = vmatmul.mubr.bf16.gmra.mrb[12].mxu0 %v8592_v27  ;;  %5013 = vmatmul.mubr.bf16.gmra.mrb[12].mxu1 %v9183_v28  ;;  %v11014_v27 = vld [vmem:[%s15564_s1 + $0x9b0] ss:$8 sps:$4 sm:$0xff]   ;;  %v11017_v28 = vld [vmem:[%s15564_s1 + $0x9c4] ss:$8 sps:$4 sm:$0xff]  }
 0x21b   :  { %3553 = vmatpush1.bf16.msra.mxu0 %v10923_v29  ;;  %5034 = vmatpush1.bf16.msra.mxu1 %v10923_v29  ;;  %v11022_v29 = vld [vmem:[%s15564_s1 + $0x9c0] ss:$8 sps:$4 sm:$0xff]  }
 0x21c   :  { %3554 = vmatprep.subr.bf16.mxu0 %v10924_v30  ;;  %5035 = vmatprep.subr.bf16.mxu1 %v10924_v30  ;;  %v11024_v30 = vld [vmem:[%s15564_s1 + $0x9d4] ss:$8 sps:$4 sm:$0xff]  }
 0x21d   :  { %3572 = vmatprep.mubr.bf16.mxu0 %v10969_v31  ;;  %5053 = vmatprep.mubr.bf16.mxu1 %v10974_v32  ;;  %v11026_v31 = vld [vmem:[%s15564_s1 + $0x9d0] ss:$8 sps:$4 sm:$0xff]   ;;  %v11028_v32 = vld [vmem:[%s15564_s1 + $0x9e4] ss:$8 sps:$4 sm:$0xff]  }
 0x21f   :  { %3555 = vmatpush1.bf16.msra.mxu0 %v10926_v33  ;;  %5036 = vmatpush1.bf16.msra.mxu1 %v10926_v33  ;;  %v11032_v33 = vld [vmem:[%s15564_s1 + $0x9e0] ss:$8 sps:$4 sm:$0xff]  }
 0x220   :  { %3556 = vmatprep.subr.bf16.mxu0 %v10927_v34  ;;  %5037 = vmatprep.subr.bf16.mxu1 %v10927_v34  ;;  %v11034_v34 = vld [vmem:[%s15564_s1 + $0x9f4] ss:$8 sps:$4 sm:$0xff]  }
 0x223   :  { %3557 = vmatpush1.bf16.msra.mxu0 %v10929_v35  ;;  %5038 = vmatpush1.bf16.msra.mxu1 %v10929_v35  ;;  %v11036_v35 = vld [vmem:[%s15564_s1 + $0x9f0] ss:$8 sps:$4 sm:$0xff]  }
 0x224   :  { %3558 = vmatprep.subr.bf16.mxu0 %v10930_v36  ;;  %5039 = vmatprep.subr.bf16.mxu1 %v10930_v36  ;;  %v11040_v36 = vld [vmem:[%s15564_s1 + $0xa04] ss:$8 sps:$4 sm:$0xff]  }
 0x227   :  { %3559 = vmatpush1.bf16.msra.mxu0 %v10932_v37  ;;  %5040 = vmatpush1.bf16.msra.mxu1 %v10932_v37  ;;  %v11037_v37 = vld [vmem:[%s15565_s0 + $0x48] ss:$100 sps:$4 sm:$0xff]  }
 0x228   :  { %3560 = vmatprep.subr.bf16.mxu0 %v10935_v38  ;;  %5041 = vmatprep.subr.bf16.mxu1 %v10935_v38  ;;  %v11042_v38 = vld [vmem:[%s15565_s0 + $0x304] ss:$100 sps:$4 sm:$0xff]  }
 0x22b   :  { %3561 = vmatpush1.bf16.msra.mxu0 %v10940_v39  ;;  %5042 = vmatpush1.bf16.msra.mxu1 %v10940_v39  ;;  %v11045_v39 = vld [vmem:[%s15564_s1 + $0xa00] ss:$8 sps:$4 sm:$0xff]  }
 0x22c   :  { %3562 = vmatprep.subr.bf16.mxu0 %v10942_v40  ;;  %5043 = vmatprep.subr.bf16.mxu1 %v10942_v40  ;;  %v11046_v40 = vld [vmem:[%s15564_s1 + $0xa14] ss:$8 sps:$4 sm:$0xff]  }
 0x22f   :  { %3563 = vmatpush1.bf16.msra.mxu0 %v10944_v41  ;;  %5044 = vmatpush1.bf16.msra.mxu1 %v10944_v41  ;;  %v11073_v41 = vld [vmem:[%s15565_s0 + $0x114] ss:$100 sps:$4 sm:$0xff]  }
 0x230   :  { %3564 = vmatprep.subr.bf16.mxu0 %v10947_v42  ;;  %5045 = vmatprep.subr.bf16.mxu1 %v10947_v42  ;;  %v11077_v42 = vld [vmem:[%s15565_s0 + $0x3d0] ss:$100 sps:$4 sm:$0xff]  }
 0x233   :  { %3565 = vmatpush1.bf16.msra.mxu0 %v10952_v43  ;;  %5046 = vmatpush1.bf16.msra.mxu1 %v10952_v43  ;;  %v11048_v43 = vld [vmem:[%s15564_s1 + $0xa10] ss:$8 sps:$4 sm:$0xff]  }
 0x234   :  { %3566 = vmatprep.subr.bf16.mxu0 %v10954_v44  ;;  %5047 = vmatprep.subr.bf16.mxu1 %v10954_v44  ;;  %v11049_v44 = vld [vmem:[%s15564_s1 + $0xa24] ss:$8 sps:$4 sm:$0xff]  }
 0x237   :  { %3567 = vmatpush1.bf16.msra.mxu0 %v10956_v45  ;;  %5048 = vmatpush1.bf16.msra.mxu1 %v10956_v45  ;;  %v11079_v45 = vld [vmem:[%s15565_s0 + $0x110] ss:$100 sps:$4 sm:$0xff]  }
 0x238   :  { %3568 = vmatprep.subr.bf16.mxu0 %v10958_v46  ;;  %5049 = vmatprep.subr.bf16.mxu1 %v10958_v46  ;;  %v11081_v46 = vld [vmem:[%s15565_s0 + $0x3cc] ss:$100 sps:$4 sm:$0xff]  }
 0x23b   :  { %3569 = vmatpush1.bf16.msra.mxu0 %v10962_v47  ;;  %5050 = vmatpush1.bf16.msra.mxu1 %v10962_v47  ;;  %v11051_v47 = vld [vmem:[%s15564_s1 + $0xa20] ss:$8 sps:$4 sm:$0xff]  }
 0x23c   :  { %3570 = vmatprep.subr.bf16.mxu0 %v10964_v48  ;;  %5051 = vmatprep.subr.bf16.mxu1 %v10964_v48  ;;  %v11052_v48 = vld [vmem:[%s15564_s1 + $0xa34] ss:$8 sps:$4 sm:$0xff]  }
 0x23f   :  { %3571 = vmatpush1.bf16.msra.mxu0 %v10966_v49  ;;  %5052 = vmatpush1.bf16.msra.mxu1 %v10966_v49  ;;  %v11085_v49 = vld [vmem:[%s15565_s0 + $0x1dc] ss:$100 sps:$4 sm:$0xff]  }
 0x240   :  { %3611 = vmatprep.subr.bf16.mxu0 %v10970_v50  ;;  %5092 = vmatprep.subr.bf16.mxu1 %v10970_v50  ;;  %v11089_v50 = vld [vmem:[%s15565_s0 + $0x498] ss:$100 sps:$4 sm:$0xff]  }
 0x242   :  { %3573 = vmatmul.mubr.bf16.vlgmr.msra.gmra.mrb[0].mxu0 %v10967_v51  ;;  %5054 = vmatmul.mubr.bf16.vlgmr.msra.gmra.mrb[0].mxu1 %v10972_v52  ;;  %v11054_v51 = vld [vmem:[%s15564_s1 + $0xa30] ss:$8 sps:$4 sm:$0xff]   ;;  %v11055_v52 = vld [vmem:[%s15564_s1 + $0xa44] ss:$8 sps:$4 sm:$0xff]  }
 0x243   :  { %3612 = vmatpush1.bf16.msra.mxu0 %v10975_v53  ;;  %5093 = vmatpush1.bf16.msra.mxu1 %v10975_v53  ;;  %v11091_v53 = vld [vmem:[%s15565_s0 + $0x1d8] ss:$100 sps:$4 sm:$0xff]  }
 0x244   :  { %3613 = vmatprep.subr.bf16.mxu0 %v10976_v54  ;;  %5094 = vmatprep.subr.bf16.mxu1 %v10976_v54  ;;  %v11093_v54 = vld [vmem:[%s15565_s0 + $0x494] ss:$100 sps:$4 sm:$0xff]  }
 0x245   :  { %3582 = vmatprep.mubr.bf16.mxu0 %v11003_v55  ;;  %5063 = vmatprep.mubr.bf16.mxu1 %v11007_v56  ;;  %v502_v55 = vld [vmem:[%s15565_s0 + $0x2a0] sm:$0xff] }
 0x246   :  { %v9090_v56 = vld [vmem:[%s15565_s0 + $0x55c] sm:$0xff] }
 0x247   :  { %3614 = vmatpush1.bf16.msra.mxu0 %v10978_v57  ;;  %5095 = vmatpush1.bf16.msra.mxu1 %v10978_v57  ;;  %v11057_v57 = vld [vmem:[%s15564_s1 + $0xa40] ss:$8 sps:$4 sm:$0xff]  }
 0x248   :  { %3615 = vmatprep.subr.bf16.mxu0 %v10979_v58  ;;  %5096 = vmatprep.subr.bf16.mxu1 %v10979_v58  ;;  %v11058_v58 = vld [vmem:[%s15564_s1 + $0xa54] ss:$8 sps:$4 sm:$0xff]  }
 0x24a   :  { %3583 = vmatmul.mubr.bf16.gmra.mrb[4].mxu0 %v11009_v59  ;;  %5064 = vmatmul.mubr.bf16.gmra.mrb[4].mxu1 %v11011_v60  ;;  %v8597_v59 = vcombine.high %v502_v55, %v502_v55  ;;  %v9188_v60 = vcombine.high %v9090_v56, %v9090_v56 }
 0x24b   :  { %3616 = vmatpush1.bf16.msra.mxu0 %v10981_v61  ;;  %5097 = vmatpush1.bf16.msra.mxu1 %v10981_v61  ;;  %v11060_v61 = vld [vmem:[%s15564_s1 + $0xa50] ss:$8 sps:$4 sm:$0xff]  }
 0x24c   :  { %3617 = vmatprep.subr.bf16.mxu0 %v10982_v62  ;;  %5098 = vmatprep.subr.bf16.mxu1 %v10982_v62  ;;  %v11061_v62 = vld [vmem:[%s15564_s1 + $0xa64] ss:$8 sps:$4 sm:$0xff]  }
 0x24d   :  { %3592 = vmatprep.mubr.bf16.mxu0 %v11015_v63  ;;  %5073 = vmatprep.mubr.bf16.mxu1 %v11019_v0  ;;  %v8596_v63 = vcombine.low %v502_v55, %v502_v55  ;;  %v9187_v0 = vcombine.low %v9090_v56, %v9090_v56  ;;  %v11136_v55 = vld [vmem:[%s15564_s1 + $0xb70] ss:$8 sps:$4 sm:$0xff]   ;;  %v11137_v56 = vld [vmem:[%s15564_s1 + $0xb84] ss:$8 sps:$4 sm:$0xff]  }
 0x24f   :  { %3618 = vmatpush1.bf16.msra.mxu0 %v10984_v1  ;;  %5099 = vmatpush1.bf16.msra.mxu1 %v10984_v1  ;;  %v11063_v1 = vld [vmem:[%s15564_s1 + $0xa60] ss:$8 sps:$4 sm:$0xff]  }
 0x250   :  { %3619 = vmatprep.subr.bf16.mxu0 %v10985_v2  ;;  %5100 = vmatprep.subr.bf16.mxu1 %v10985_v2  ;;  %v11064_v2 = vld [vmem:[%s15564_s1 + $0xa74] ss:$8 sps:$4 sm:$0xff]  }
 0x252   :  { %3593 = vmatmul.mubr.bf16.gmra.mrb[8].mxu0 %v11021_v3  ;;  %5074 = vmatmul.mubr.bf16.gmra.mrb[8].mxu1 %v11023_v4  ;;  %v11109_v3 = vld [vmem:[%s15565_s0 + $0x54] ss:$100 sps:$4 sm:$0xff]  }
 0x253   :  { %3620 = vmatpush1.bf16.msra.mxu0 %v10987_v7  ;;  %5101 = vmatpush1.bf16.msra.mxu1 %v10987_v7  ;;  %v11114_v4 = vld [vmem:[%s15565_s0 + $0x310] ss:$100 sps:$4 sm:$0xff]   ;;  %v11069_v7 = vld [vmem:[%s15564_s1 + $0xa80] ss:$8 sps:$4 sm:$0xff]  }
 0x254   :  { %3621 = vmatprep.subr.bf16.mxu0 %v10988_v8  ;;  %5102 = vmatprep.subr.bf16.mxu1 %v10988_v8  ;;  %v11070_v8 = vld [vmem:[%s15564_s1 + $0xa94] ss:$8 sps:$4 sm:$0xff]  }
 0x255   :  { %3602 = vmatprep.mubr.bf16.mxu0 %v8595_v9  ;;  %5083 = vmatprep.mubr.bf16.mxu1 %v9186_v10  ;;  %v11072_v9 = vld [vmem:[%s15564_s1 + $0xa90] ss:$8 sps:$4 sm:$0xff]   ;;  %v11075_v10 = vld [vmem:[%s15564_s1 + $0xaa4] ss:$8 sps:$4 sm:$0xff]  }
 0x257   :  { %3622 = vmatpush1.bf16.msra.mxu0 %v10990_v11  ;;  %5103 = vmatpush1.bf16.msra.mxu1 %v10990_v11  ;;  %v11080_v11 = vld [vmem:[%s15564_s1 + $0xaa0] ss:$8 sps:$4 sm:$0xff]  }
 0x258   :  { %3623 = vmatprep.subr.bf16.mxu0 %v10991_v12  ;;  %5104 = vmatprep.subr.bf16.mxu1 %v10991_v12  ;;  %v11082_v12 = vld [vmem:[%s15564_s1 + $0xab4] ss:$8 sps:$4 sm:$0xff]  }
 0x25a   :  { %3603 = vmatmul.mubr.bf16.gmra.mrb[12].mxu0 %v8594_v13  ;;  %5084 = vmatmul.mubr.bf16.gmra.mrb[12].mxu1 %v9185_v14  ;;  %v11084_v13 = vld [vmem:[%s15564_s1 + $0xab0] ss:$8 sps:$4 sm:$0xff]   ;;  %v11087_v14 = vld [vmem:[%s15564_s1 + $0xac4] ss:$8 sps:$4 sm:$0xff]  }
 0x25b   :  { %3624 = vmatpush1.bf16.msra.mxu0 %v10993_v15  ;;  %5105 = vmatpush1.bf16.msra.mxu1 %v10993_v15  ;;  %v11092_v15 = vld [vmem:[%s15564_s1 + $0xac0] ss:$8 sps:$4 sm:$0xff]  }
 0x25c   :  { %3625 = vmatprep.subr.bf16.mxu0 %v10994_v16  ;;  %5106 = vmatprep.subr.bf16.mxu1 %v10994_v16  ;;  %v11094_v16 = vld [vmem:[%s15564_s1 + $0xad4] ss:$8 sps:$4 sm:$0xff]  }
 0x25d   :  { %3643 = vmatprep.mubr.bf16.mxu0 %v11039_v17  ;;  %5124 = vmatprep.mubr.bf16.mxu1 %v11044_v18  ;;  %v11096_v17 = vld [vmem:[%s15564_s1 + $0xad0] ss:$8 sps:$4 sm:$0xff]   ;;  %v11098_v18 = vld [vmem:[%s15564_s1 + $0xae4] ss:$8 sps:$4 sm:$0xff]  }
 0x25f   :  { %3626 = vmatpush1.bf16.msra.mxu0 %v10996_v19  ;;  %5107 = vmatpush1.bf16.msra.mxu1 %v10996_v19  ;;  %v11102_v19 = vld [vmem:[%s15564_s1 + $0xae0] ss:$8 sps:$4 sm:$0xff]  }
 0x260   :  { %3627 = vmatprep.subr.bf16.mxu0 %v10997_v20  ;;  %5108 = vmatprep.subr.bf16.mxu1 %v10997_v20  ;;  %v11104_v20 = vld [vmem:[%s15564_s1 + $0xaf4] ss:$8 sps:$4 sm:$0xff]  }
 0x263   :  { %3628 = vmatpush1.bf16.msra.mxu0 %v10999_v21  ;;  %5109 = vmatpush1.bf16.msra.mxu1 %v10999_v21  ;;  %v11106_v21 = vld [vmem:[%s15564_s1 + $0xaf0] ss:$8 sps:$4 sm:$0xff]  }
 0x264   :  { %3629 = vmatprep.subr.bf16.mxu0 %v11000_v22  ;;  %5110 = vmatprep.subr.bf16.mxu1 %v11000_v22  ;;  %v11110_v22 = vld [vmem:[%s15564_s1 + $0xb04] ss:$8 sps:$4 sm:$0xff]  }
 0x267   :  { %3630 = vmatpush1.bf16.msra.mxu0 %v11002_v23  ;;  %5111 = vmatpush1.bf16.msra.mxu1 %v11002_v23  ;;  %v11107_v23 = vld [vmem:[%s15565_s0 + $0x50] ss:$100 sps:$4 sm:$0xff]  }
 0x268   :  { %3631 = vmatprep.subr.bf16.mxu0 %v11005_v24  ;;  %5112 = vmatprep.subr.bf16.mxu1 %v11005_v24  ;;  %v11112_v24 = vld [vmem:[%s15565_s0 + $0x30c] ss:$100 sps:$4 sm:$0xff]  }
 0x26b   :  { %3632 = vmatpush1.bf16.msra.mxu0 %v11010_v25  ;;  %5113 = vmatpush1.bf16.msra.mxu1 %v11010_v25  ;;  %v11115_v25 = vld [vmem:[%s15564_s1 + $0xb00] ss:$8 sps:$4 sm:$0xff]  }
 0x26c   :  { %3633 = vmatprep.subr.bf16.mxu0 %v11012_v26  ;;  %5114 = vmatprep.subr.bf16.mxu1 %v11012_v26  ;;  %v11116_v26 = vld [vmem:[%s15564_s1 + $0xb14] ss:$8 sps:$4 sm:$0xff]  }
 0x26f   :  { %3634 = vmatpush1.bf16.msra.mxu0 %v11014_v27  ;;  %5115 = vmatpush1.bf16.msra.mxu1 %v11014_v27  ;;  %v11143_v27 = vld [vmem:[%s15565_s0 + $0x11c] ss:$100 sps:$4 sm:$0xff]  }
 0x270   :  { %3635 = vmatprep.subr.bf16.mxu0 %v11017_v28  ;;  %5116 = vmatprep.subr.bf16.mxu1 %v11017_v28  ;;  %v11145_v28 = vld [vmem:[%s15565_s0 + $0x3d8] ss:$100 sps:$4 sm:$0xff]  }
 0x273   :  { %3636 = vmatpush1.bf16.msra.mxu0 %v11022_v29  ;;  %5117 = vmatpush1.bf16.msra.mxu1 %v11022_v29  ;;  %v11118_v29 = vld [vmem:[%s15564_s1 + $0xb10] ss:$8 sps:$4 sm:$0xff]  }
 0x274   :  { %3637 = vmatprep.subr.bf16.mxu0 %v11024_v30  ;;  %5118 = vmatprep.subr.bf16.mxu1 %v11024_v30  ;;  %v11119_v30 = vld [vmem:[%s15564_s1 + $0xb24] ss:$8 sps:$4 sm:$0xff]  }
 0x277   :  { %3638 = vmatpush1.bf16.msra.mxu0 %v11026_v31  ;;  %5119 = vmatpush1.bf16.msra.mxu1 %v11026_v31  ;;  %v11147_v31 = vld [vmem:[%s15565_s0 + $0x118] ss:$100 sps:$4 sm:$0xff]  }
 0x278   :  { %3639 = vmatprep.subr.bf16.mxu0 %v11028_v32  ;;  %5120 = vmatprep.subr.bf16.mxu1 %v11028_v32  ;;  %v11150_v32 = vld [vmem:[%s15565_s0 + $0x3d4] ss:$100 sps:$4 sm:$0xff]  }
 0x27b   :  { %3640 = vmatpush1.bf16.msra.mxu0 %v11032_v33  ;;  %5121 = vmatpush1.bf16.msra.mxu1 %v11032_v33  ;;  %v11121_v33 = vld [vmem:[%s15564_s1 + $0xb20] ss:$8 sps:$4 sm:$0xff]  }
 0x27c   :  { %3641 = vmatprep.subr.bf16.mxu0 %v11034_v34  ;;  %5122 = vmatprep.subr.bf16.mxu1 %v11034_v34  ;;  %v11122_v34 = vld [vmem:[%s15564_s1 + $0xb34] ss:$8 sps:$4 sm:$0xff]  }
 0x27f   :  { %3642 = vmatpush1.bf16.msra.mxu0 %v11036_v35  ;;  %5123 = vmatpush1.bf16.msra.mxu1 %v11036_v35  ;;  %v11155_v35 = vld [vmem:[%s15565_s0 + $0x1e4] ss:$100 sps:$4 sm:$0xff]  }
 0x280   :  { %3682 = vmatprep.subr.bf16.mxu0 %v11040_v36  ;;  %5163 = vmatprep.subr.bf16.mxu1 %v11040_v36  ;;  %v11157_v36 = vld [vmem:[%s15565_s0 + $0x4a0] ss:$100 sps:$4 sm:$0xff]  }
 0x282   :  { %3644 = vmatmul.mubr.bf16.vlgmr.msra.gmra.mrb[0].mxu0 %v11037_v37  ;;  %5125 = vmatmul.mubr.bf16.vlgmr.msra.gmra.mrb[0].mxu1 %v11042_v38  ;;  %v11124_v37 = vld [vmem:[%s15564_s1 + $0xb30] ss:$8 sps:$4 sm:$0xff]   ;;  %v11125_v38 = vld [vmem:[%s15564_s1 + $0xb44] ss:$8 sps:$4 sm:$0xff]  }
 0x283   :  { %3683 = vmatpush1.bf16.msra.mxu0 %v11045_v39  ;;  %5164 = vmatpush1.bf16.msra.mxu1 %v11045_v39  ;;  %v11159_v39 = vld [vmem:[%s15565_s0 + $0x1e0] ss:$100 sps:$4 sm:$0xff]  }
 0x284   :  { %3684 = vmatprep.subr.bf16.mxu0 %v11046_v40  ;;  %5165 = vmatprep.subr.bf16.mxu1 %v11046_v40  ;;  %v11162_v40 = vld [vmem:[%s15565_s0 + $0x49c] ss:$100 sps:$4 sm:$0xff]  }
 0x285   :  { %3653 = vmatprep.mubr.bf16.mxu0 %v11073_v41  ;;  %5134 = vmatprep.mubr.bf16.mxu1 %v11077_v42  ;;  %v503_v41 = vld [vmem:[%s15565_s0 + $0x2a8] sm:$0xff] }
 0x286   :  { %v9091_v42 = vld [vmem:[%s15565_s0 + $0x564] sm:$0xff] }
 0x287   :  { %3685 = vmatpush1.bf16.msra.mxu0 %v11048_v43  ;;  %5166 = vmatpush1.bf16.msra.mxu1 %v11048_v43  ;;  %v11127_v43 = vld [vmem:[%s15564_s1 + $0xb40] ss:$8 sps:$4 sm:$0xff]  }
 0x288   :  { %3686 = vmatprep.subr.bf16.mxu0 %v11049_v44  ;;  %5167 = vmatprep.subr.bf16.mxu1 %v11049_v44  ;;  %v11128_v44 = vld [vmem:[%s15564_s1 + $0xb54] ss:$8 sps:$4 sm:$0xff]  }
 0x28a   :  { %3654 = vmatmul.mubr.bf16.gmra.mrb[4].mxu0 %v11079_v45  ;;  %5135 = vmatmul.mubr.bf16.gmra.mrb[4].mxu1 %v11081_v46  ;;  %v8599_v45 = vcombine.high %v503_v41, %v503_v41  ;;  %v9190_v46 = vcombine.high %v9091_v42, %v9091_v42 }
 0x28b   :  { %3687 = vmatpush1.bf16.msra.mxu0 %v11051_v47  ;;  %5168 = vmatpush1.bf16.msra.mxu1 %v11051_v47  ;;  %v11130_v47 = vld [vmem:[%s15564_s1 + $0xb50] ss:$8 sps:$4 sm:$0xff]  }
 0x28c   :  { %3688 = vmatprep.subr.bf16.mxu0 %v11052_v48  ;;  %5169 = vmatprep.subr.bf16.mxu1 %v11052_v48  ;;  %v11131_v48 = vld [vmem:[%s15564_s1 + $0xb64] ss:$8 sps:$4 sm:$0xff]  }
 0x28d   :  { %3663 = vmatprep.mubr.bf16.mxu0 %v11085_v49  ;;  %5144 = vmatprep.mubr.bf16.mxu1 %v11089_v50  ;;  %v8598_v49 = vcombine.low %v503_v41, %v503_v41  ;;  %v9189_v50 = vcombine.low %v9091_v42, %v9091_v42  ;;  %v11223_v41 = vld [vmem:[%s15565_s0 + $0x60] ss:$100 sps:$4 sm:$0xff]  }
 0x28e   :  { %v11224_v42 = vld [vmem:[%s15565_s0 + $0x31c] ss:$100 sps:$4 sm:$0xff]  }
 0x28f   :  { %3689 = vmatpush1.bf16.msra.mxu0 %v11054_v51  ;;  %5170 = vmatpush1.bf16.msra.mxu1 %v11054_v51  ;;  %v11133_v51 = vld [vmem:[%s15564_s1 + $0xb60] ss:$8 sps:$4 sm:$0xff]  }
 0x290   :  { %3690 = vmatprep.subr.bf16.mxu0 %v11055_v52  ;;  %5171 = vmatprep.subr.bf16.mxu1 %v11055_v52  ;;  %v11134_v52 = vld [vmem:[%s15564_s1 + $0xb74] ss:$8 sps:$4 sm:$0xff]  }
 0x292   :  { %3664 = vmatmul.mubr.bf16.gmra.mrb[8].mxu0 %v11091_v53  ;;  %5145 = vmatmul.mubr.bf16.gmra.mrb[8].mxu1 %v11093_v54  ;;  %v11179_v53 = vld [vmem:[%s15565_s0 + $0x5c] ss:$100 sps:$4 sm:$0xff]  }
 0x293   :  { %3691 = vmatpush1.bf16.msra.mxu0 %v11057_v57  ;;  %5172 = vmatpush1.bf16.msra.mxu1 %v11057_v57  ;;  %v11182_v54 = vld [vmem:[%s15565_s0 + $0x318] ss:$100 sps:$4 sm:$0xff]   ;;  %v11139_v57 = vld [vmem:[%s15564_s1 + $0xb80] ss:$8 sps:$4 sm:$0xff]  }
 0x294   :  { %3692 = vmatprep.subr.bf16.mxu0 %v11058_v58  ;;  %5173 = vmatprep.subr.bf16.mxu1 %v11058_v58  ;;  %v11140_v58 = vld [vmem:[%s15564_s1 + $0xb94] ss:$8 sps:$4 sm:$0xff]  }
 0x295   :  { %3673 = vmatprep.mubr.bf16.mxu0 %v8597_v59  ;;  %5154 = vmatprep.mubr.bf16.mxu1 %v9188_v60  ;;  %v11142_v59 = vld [vmem:[%s15564_s1 + $0xb90] ss:$8 sps:$4 sm:$0xff]   ;;  %v11148_v60 = vld [vmem:[%s15564_s1 + $0xba4] ss:$8 sps:$4 sm:$0xff]  }
 0x297   :  { %3693 = vmatpush1.bf16.msra.mxu0 %v11060_v61  ;;  %5174 = vmatpush1.bf16.msra.mxu1 %v11060_v61  ;;  %v11151_v61 = vld [vmem:[%s15564_s1 + $0xba0] ss:$8 sps:$4 sm:$0xff]  }
 0x298   :  { %3694 = vmatprep.subr.bf16.mxu0 %v11061_v62  ;;  %5175 = vmatprep.subr.bf16.mxu1 %v11061_v62  ;;  %v11152_v62 = vld [vmem:[%s15564_s1 + $0xbb4] ss:$8 sps:$4 sm:$0xff]  }
 0x29a   :  { %3674 = vmatmul.mubr.bf16.gmra.mrb[12].mxu0 %v8596_v63  ;;  %5155 = vmatmul.mubr.bf16.gmra.mrb[12].mxu1 %v9187_v0  ;;  %v11154_v63 = vld [vmem:[%s15564_s1 + $0xbb0] ss:$8 sps:$4 sm:$0xff]   ;;  %v11160_v0 = vld [vmem:[%s15564_s1 + $0xbc4] ss:$8 sps:$4 sm:$0xff]  }
 0x29b   :  { %3695 = vmatpush1.bf16.msra.mxu0 %v11063_v1  ;;  %5176 = vmatpush1.bf16.msra.mxu1 %v11063_v1  ;;  %v11163_v1 = vld [vmem:[%s15564_s1 + $0xbc0] ss:$8 sps:$4 sm:$0xff]  }
 0x29c   :  { %3696 = vmatprep.subr.bf16.mxu0 %v11064_v2  ;;  %5177 = vmatprep.subr.bf16.mxu1 %v11064_v2  ;;  %v11164_v2 = vld [vmem:[%s15564_s1 + $0xbd4] ss:$8 sps:$4 sm:$0xff]  }
 0x29d   :  { %3714 = vmatprep.mubr.bf16.mxu0 %v11109_v3  ;;  %5195 = vmatprep.mubr.bf16.mxu1 %v11114_v4  ;;  %v11166_v3 = vld [vmem:[%s15564_s1 + $0xbd0] ss:$8 sps:$4 sm:$0xff]   ;;  %v11170_v4 = vld [vmem:[%s15564_s1 + $0xbe4] ss:$8 sps:$4 sm:$0xff]  }
 0x29f   :  { %3697 = vmatpush1.bf16.msra.mxu0 %v11066_v5  ;;  %5178 = vmatpush1.bf16.msra.mxu1 %v11066_v5  ;;  %v11173_v5 = vld [vmem:[%s15564_s1 + $0xbe0] ss:$8 sps:$4 sm:$0xff]  }
 0x2a0   :  { %3698 = vmatprep.subr.bf16.mxu0 %v11067_v6  ;;  %5179 = vmatprep.subr.bf16.mxu1 %v11067_v6  ;;  %v11174_v6 = vld [vmem:[%s15564_s1 + $0xbf4] ss:$8 sps:$4 sm:$0xff]  }
 0x2a3   :  { %3699 = vmatpush1.bf16.msra.mxu0 %v11069_v7  ;;  %5180 = vmatpush1.bf16.msra.mxu1 %v11069_v7  ;;  %v11176_v7 = vld [vmem:[%s15564_s1 + $0xbf0] ss:$8 sps:$4 sm:$0xff]  }
 0x2a4   :  { %3700 = vmatprep.subr.bf16.mxu0 %v11070_v8  ;;  %5181 = vmatprep.subr.bf16.mxu1 %v11070_v8  ;;  %v11183_v8 = vld [vmem:[%s15564_s1 + $0xc04] ss:$8 sps:$4 sm:$0xff]  }
 0x2a7   :  { %3701 = vmatpush1.bf16.msra.mxu0 %v11072_v9  ;;  %5182 = vmatpush1.bf16.msra.mxu1 %v11072_v9  ;;  %v11177_v9 = vld [vmem:[%s15565_s0 + $0x58] ss:$100 sps:$4 sm:$0xff]  }
 0x2a8   :  { %3702 = vmatprep.subr.bf16.mxu0 %v11075_v10  ;;  %5183 = vmatprep.subr.bf16.mxu1 %v11075_v10  ;;  %v11180_v10 = vld [vmem:[%s15565_s0 + $0x314] ss:$100 sps:$4 sm:$0xff]  }
 0x2ab   :  { %3703 = vmatpush1.bf16.msra.mxu0 %v11080_v11  ;;  %5184 = vmatpush1.bf16.msra.mxu1 %v11080_v11  ;;  %v11185_v11 = vld [vmem:[%s15564_s1 + $0xc00] ss:$8 sps:$4 sm:$0xff]  }
 0x2ac   :  { %3704 = vmatprep.subr.bf16.mxu0 %v11082_v12  ;;  %5185 = vmatprep.subr.bf16.mxu1 %v11082_v12  ;;  %v11186_v12 = vld [vmem:[%s15564_s1 + $0xc14] ss:$8 sps:$4 sm:$0xff]  }
 0x2af   :  { %3705 = vmatpush1.bf16.msra.mxu0 %v11084_v13  ;;  %5186 = vmatpush1.bf16.msra.mxu1 %v11084_v13  ;;  %v11189_v13 = vld [vmem:[%s15565_s0 + $0x124] ss:$100 sps:$4 sm:$0xff]  }
 0x2b0   :  { %3706 = vmatprep.subr.bf16.mxu0 %v11087_v14  ;;  %5187 = vmatprep.subr.bf16.mxu1 %v11087_v14  ;;  %v11191_v14 = vld [vmem:[%s15565_s0 + $0x3e0] ss:$100 sps:$4 sm:$0xff]  }
 0x2b3   :  { %3707 = vmatpush1.bf16.msra.mxu0 %v11092_v15  ;;  %5188 = vmatpush1.bf16.msra.mxu1 %v11092_v15  ;;  %v11188_v15 = vld [vmem:[%s15564_s1 + $0xc10] ss:$8 sps:$4 sm:$0xff]  }
 0x2b4   :  { %3708 = vmatprep.subr.bf16.mxu0 %v11094_v16  ;;  %5189 = vmatprep.subr.bf16.mxu1 %v11094_v16  ;;  %v11194_v16 = vld [vmem:[%s15564_s1 + $0xc24] ss:$8 sps:$4 sm:$0xff]  }
 0x2b7   :  { %3709 = vmatpush1.bf16.msra.mxu0 %v11096_v17  ;;  %5190 = vmatpush1.bf16.msra.mxu1 %v11096_v17  ;;  %v11193_v17 = vld [vmem:[%s15565_s0 + $0x120] ss:$100 sps:$4 sm:$0xff]  }
 0x2b8   :  { %3710 = vmatprep.subr.bf16.mxu0 %v11098_v18  ;;  %5191 = vmatprep.subr.bf16.mxu1 %v11098_v18  ;;  %v11196_v18 = vld [vmem:[%s15565_s0 + $0x3dc] ss:$100 sps:$4 sm:$0xff]  }
 0x2bb   :  { %3711 = vmatpush1.bf16.msra.mxu0 %v11102_v19  ;;  %5192 = vmatpush1.bf16.msra.mxu1 %v11102_v19  ;;  %v11197_v19 = vld [vmem:[%s15564_s1 + $0xc20] ss:$8 sps:$4 sm:$0xff]  }
 0x2bc   :  { %3712 = vmatprep.subr.bf16.mxu0 %v11104_v20  ;;  %5193 = vmatprep.subr.bf16.mxu1 %v11104_v20  ;;  %v11198_v20 = vld [vmem:[%s15564_s1 + $0xc34] ss:$8 sps:$4 sm:$0xff]  }
 0x2bf   :  { %3713 = vmatpush1.bf16.msra.mxu0 %v11106_v21  ;;  %5194 = vmatpush1.bf16.msra.mxu1 %v11106_v21  ;;  %v11201_v21 = vld [vmem:[%s15565_s0 + $0x1ec] ss:$100 sps:$4 sm:$0xff]  }
 0x2c0   :  { %3753 = vmatprep.subr.bf16.mxu0 %v11110_v22  ;;  %5234 = vmatprep.subr.bf16.mxu1 %v11110_v22  ;;  %v11203_v22 = vld [vmem:[%s15565_s0 + $0x4a8] ss:$100 sps:$4 sm:$0xff]  }
 0x2c2   :  { %3715 = vmatmul.mubr.bf16.vlgmr.msra.gmra.mrb[0].mxu0 %v11107_v23  ;;  %5196 = vmatmul.mubr.bf16.vlgmr.msra.gmra.mrb[0].mxu1 %v11112_v24  ;;  %v11200_v23 = vld [vmem:[%s15564_s1 + $0xc30] ss:$8 sps:$4 sm:$0xff]   ;;  %v11206_v24 = vld [vmem:[%s15564_s1 + $0xc44] ss:$8 sps:$4 sm:$0xff]  }
 0x2c3   :  { %3754 = vmatpush1.bf16.msra.mxu0 %v11115_v25  ;;  %5235 = vmatpush1.bf16.msra.mxu1 %v11115_v25  ;;  %v11205_v25 = vld [vmem:[%s15565_s0 + $0x1e8] ss:$100 sps:$4 sm:$0xff]  }
 0x2c4   :  { %3755 = vmatprep.subr.bf16.mxu0 %v11116_v26  ;;  %5236 = vmatprep.subr.bf16.mxu1 %v11116_v26  ;;  %v11208_v26 = vld [vmem:[%s15565_s0 + $0x4a4] ss:$100 sps:$4 sm:$0xff]  }
 0x2c5   :  { %3724 = vmatprep.mubr.bf16.mxu0 %v11143_v27  ;;  %5205 = vmatprep.mubr.bf16.mxu1 %v11145_v28  ;;  %v504_v27 = vld [vmem:[%s15565_s0 + $0x2b0] sm:$0xff] }
 0x2c6   :  { %v9092_v28 = vld [vmem:[%s15565_s0 + $0x56c] sm:$0xff] }
 0x2c7   :  { %3756 = vmatpush1.bf16.msra.mxu0 %v11118_v29  ;;  %5237 = vmatpush1.bf16.msra.mxu1 %v11118_v29  ;;  %v11209_v29 = vld [vmem:[%s15564_s1 + $0xc40] ss:$8 sps:$4 sm:$0xff]  }
 0x2c8   :  { %3757 = vmatprep.subr.bf16.mxu0 %v11119_v30  ;;  %5238 = vmatprep.subr.bf16.mxu1 %v11119_v30  ;;  %v11210_v30 = vld [vmem:[%s15564_s1 + $0xc54] ss:$8 sps:$4 sm:$0xff]  }
 0x2ca   :  { %3725 = vmatmul.mubr.bf16.gmra.mrb[4].mxu0 %v11147_v31  ;;  %5206 = vmatmul.mubr.bf16.gmra.mrb[4].mxu1 %v11150_v32  ;;  %v8601_v31 = vcombine.high %v504_v27, %v504_v27  ;;  %v9192_v32 = vcombine.high %v9092_v28, %v9092_v28 }
 0x2cb   :  { %3758 = vmatpush1.bf16.msra.mxu0 %v11121_v33  ;;  %5239 = vmatpush1.bf16.msra.mxu1 %v11121_v33  ;;  %v11212_v33 = vld [vmem:[%s15564_s1 + $0xc50] ss:$8 sps:$4 sm:$0xff]  }
 0x2cc   :  { %3759 = vmatprep.subr.bf16.mxu0 %v11122_v34  ;;  %5240 = vmatprep.subr.bf16.mxu1 %v11122_v34  ;;  %v11216_v34 = vld [vmem:[%s15564_s1 + $0xc64] ss:$8 sps:$4 sm:$0xff]  }
 0x2cd   :  { %3734 = vmatprep.mubr.bf16.mxu0 %v11155_v35  ;;  %5215 = vmatprep.mubr.bf16.mxu1 %v11157_v36  ;;  %v8600_v35 = vcombine.low %v504_v27, %v504_v27  ;;  %v9191_v36 = vcombine.low %v9092_v28, %v9092_v28  ;;  %v11242_v27 = vld [vmem:[%s15565_s0 + $0x8fc] ss:$100 sps:$4 sm:$0xff]   ;;  %v11538_v28 = vld [vmem:[%s15564_s1 + $0x110] ss:$8 sps:$4 sm:$0xff]  }
 0x2cf   :  { %3760 = vmatpush1.bf16.msra.mxu0 %v11124_v37  ;;  %5241 = vmatpush1.bf16.msra.mxu1 %v11124_v37  ;;  %v11219_v37 = vld [vmem:[%s15564_s1 + $0xc60] ss:$8 sps:$4 sm:$0xff]  }
 0x2d0   :  { %3761 = vmatprep.subr.bf16.mxu0 %v11125_v38  ;;  %5242 = vmatprep.subr.bf16.mxu1 %v11125_v38  ;;  %v11220_v38 = vld [vmem:[%s15564_s1 + $0xc74] ss:$8 sps:$4 sm:$0xff]  }
 0x2d2   :  { %3735 = vmatmul.mubr.bf16.gmra.mrb[8].mxu0 %v11159_v39  ;;  %5216 = vmatmul.mubr.bf16.gmra.mrb[8].mxu1 %v11162_v40  ;;  %v11222_v39 = vld [vmem:[%s15564_s1 + $0xc70] ss:$8 sps:$4 sm:$0xff]   ;;  %v11903_v40 = vmov 0  }
 0x2d3   :  { %3762 = vmatpush1.bf16.msra.mxu0 %v11127_v43  ;;  %5243 = vmatpush1.bf16.msra.mxu1 %v11127_v43  ;;  %v11503_v43 = vld [vmem:[%s15564_s1 + $0x4] ss:$8 sps:$4 sm:$0xff]  }
 0x2d4   :  { %3763 = vmatprep.subr.bf16.mxu0 %v11128_v44  ;;  %5244 = vmatprep.subr.bf16.mxu1 %v11128_v44  ;;  %v11504_v44 = vld [vmem:[%s15564_s1] ss:$8 sps:$4 sm:$0xff]  }
 0x2d5   :  { %3744 = vmatprep.mubr.bf16.mxu0 %v8599_v45  ;;  %5225 = vmatprep.mubr.bf16.mxu1 %v9190_v46  ;;  %v11505_v45 = vld [vmem:[%s15564_s1 + $0x14] ss:$8 sps:$4 sm:$0xff]   ;;  %v11225_v46 = vld [vmem:[%s15565_s0 + $0x128] ss:$100 sps:$4 sm:$0xff]  }
 0x2d7   :  { %3764 = vmatpush1.bf16.msra.mxu0 %v11130_v47  ;;  %5245 = vmatpush1.bf16.msra.mxu1 %v11130_v47  ;;  %v11226_v47 = vld [vmem:[%s15565_s0 + $0x3e4] ss:$100 sps:$4 sm:$0xff]  }
 0x2d8   :  { %3765 = vmatprep.subr.bf16.mxu0 %v11131_v48  ;;  %5246 = vmatprep.subr.bf16.mxu1 %v11131_v48  ;;  %v11506_v48 = vld [vmem:[%s15564_s1 + $0x10] ss:$8 sps:$4 sm:$0xff]  }
 0x2da   :  { %3745 = vmatmul.mubr.bf16.gmra.mrb[12].mxu0 %v8598_v49  ;;  %5226 = vmatmul.mubr.bf16.gmra.mrb[12].mxu1 %v9189_v50  ;;  %v11507_v49 = vld [vmem:[%s15564_s1 + $0x24] ss:$8 sps:$4 sm:$0xff]   ;;  %v11508_v50 = vld [vmem:[%s15564_s1 + $0x20] ss:$8 sps:$4 sm:$0xff]  }
 0x2db   :  { %3766 = vmatpush1.bf16.msra.mxu0 %v11133_v51  ;;  %5247 = vmatpush1.bf16.msra.mxu1 %v11133_v51  ;;  %v11509_v51 = vld [vmem:[%s15564_s1 + $0x34] ss:$8 sps:$4 sm:$0xff]  }
 0x2dc   :  { %3767 = vmatprep.subr.bf16.mxu0 %v11134_v52  ;;  %5248 = vmatprep.subr.bf16.mxu1 %v11134_v52  ;;  %v11227_v52 = vld [vmem:[%s15565_s0 + $0x1f0] ss:$100 sps:$4 sm:$0xff]  }
 0x2dd   :  { %3785 = vmatprep.mubr.bf16.mxu0 %v11179_v53  ;;  %5266 = vmatprep.mubr.bf16.mxu1 %v11182_v54  ;;  %v11228_v53 = vld [vmem:[%s15565_s0 + $0x4ac] ss:$100 sps:$4 sm:$0xff]  }
 0x2de   :  { %v11510_v54 = vld [vmem:[%s15564_s1 + $0x30] ss:$8 sps:$4 sm:$0xff]  }
 0x2df   :  { %3768 = vmatpush1.bf16.msra.mxu0 %v11136_v55  ;;  %5249 = vmatpush1.bf16.msra.mxu1 %v11136_v55  ;;  %v11511_v55 = vld [vmem:[%s15564_s1 + $0x44] ss:$8 sps:$4 sm:$0xff]  }
 0x2e0   :  { %3769 = vmatprep.subr.bf16.mxu0 %v11137_v56  ;;  %5250 = vmatprep.subr.bf16.mxu1 %v11137_v56  ;;  %v11512_v56 = vld [vmem:[%s15564_s1 + $0x40] ss:$8 sps:$4 sm:$0xff]  }
 0x2e3   :  { %3770 = vmatpush1.bf16.msra.mxu0 %v11139_v57  ;;  %5251 = vmatpush1.bf16.msra.mxu1 %v11139_v57  ;;  %v11513_v57 = vld [vmem:[%s15564_s1 + $0x54] ss:$8 sps:$4 sm:$0xff]  }
 0x2e4   :  { %3771 = vmatprep.subr.bf16.mxu0 %v11140_v58  ;;  %5252 = vmatprep.subr.bf16.mxu1 %v11140_v58  ;;  %v11229_v58 = vld [vmem:[%s15565_s0 + $0x2b8] ss:$0 sps:$4 sm:$0xff]  }
 0x2e7   :  { %3772 = vmatpush1.bf16.msra.mxu0 %v11142_v59  ;;  %5253 = vmatpush1.bf16.msra.mxu1 %v11142_v59  ;;  %v11230_v59 = vld [vmem:[%s15565_s0 + $0x574] ss:$0 sps:$4 sm:$0xff]  }
 0x2e8   :  { %3773 = vmatprep.subr.bf16.mxu0 %v11148_v60  ;;  %5254 = vmatprep.subr.bf16.mxu1 %v11148_v60  ;;  %v11514_v60 = vld [vmem:[%s15564_s1 + $0x50] ss:$8 sps:$4 sm:$0xff]  }
 0x2eb   :  { %3774 = vmatpush1.bf16.msra.mxu0 %v11151_v61  ;;  %5255 = vmatpush1.bf16.msra.mxu1 %v11151_v61  ;;  %v11515_v61 = vld [vmem:[%s15564_s1 + $0x64] ss:$8 sps:$4 sm:$0xff]  }
 0x2ec   :  { %3775 = vmatprep.subr.bf16.mxu0 %v11152_v62  ;;  %5256 = vmatprep.subr.bf16.mxu1 %v11152_v62  ;;  %v11233_v62 = vld [vmem:[%s15565_s0 + $0x57c] ss:$100 sps:$4 sm:$0xff]  }
 0x2ef   :  { %3776 = vmatpush1.bf16.msra.mxu0 %v11154_v63  ;;  %5257 = vmatpush1.bf16.msra.mxu1 %v11154_v63  ;;  %v11236_v63 = vld [vmem:[%s15565_s0 + $0x838] ss:$100 sps:$4 sm:$0xff]  }
 0x2f0   :  { %3777 = vmatprep.subr.bf16.mxu0 %v11160_v0  ;;  %5258 = vmatprep.subr.bf16.mxu1 %v11160_v0  ;;  %v11516_v0 = vld [vmem:[%s15564_s1 + $0x60] ss:$8 sps:$4 sm:$0xff]  }
 0x2f3   :  { %3778 = vmatpush1.bf16.msra.mxu0 %v11163_v1  ;;  %5259 = vmatpush1.bf16.msra.mxu1 %v11163_v1  ;;  %v11517_v1 = vld [vmem:[%s15564_s1 + $0x74] ss:$8 sps:$4 sm:$0xff]  }
 0x2f4   :  { %3779 = vmatprep.subr.bf16.mxu0 %v11164_v2  ;;  %5260 = vmatprep.subr.bf16.mxu1 %v11164_v2  ;;  %v11518_v2 = vld [vmem:[%s15564_s1 + $0x70] ss:$8 sps:$4 sm:$0xff]  }
 0x2f7   :  { %3780 = vmatpush1.bf16.msra.mxu0 %v11166_v3  ;;  %5261 = vmatpush1.bf16.msra.mxu1 %v11166_v3  ;;  %v11519_v3 = vld [vmem:[%s15564_s1 + $0x84] ss:$8 sps:$4 sm:$0xff]  }
 0x2f8   :  { %3781 = vmatprep.subr.bf16.mxu0 %v11170_v4  ;;  %5262 = vmatprep.subr.bf16.mxu1 %v11170_v4  ;;  %v11520_v4 = vld [vmem:[%s15564_s1 + $0x80] ss:$8 sps:$4 sm:$0xff]  }
 0x2fb   :  { %3782 = vmatpush1.bf16.msra.mxu0 %v11173_v5  ;;  %5263 = vmatpush1.bf16.msra.mxu1 %v11173_v5  ;;  %v11521_v5 = vld [vmem:[%s15564_s1 + $0x94] ss:$8 sps:$4 sm:$0xff]  }
 0x2fc   :  { %3783 = vmatprep.subr.bf16.mxu0 %v11174_v6  ;;  %5264 = vmatprep.subr.bf16.mxu1 %v11174_v6  ;;  %v11522_v6 = vld [vmem:[%s15564_s1 + $0x90] ss:$8 sps:$4 sm:$0xff]  }
 0x2ff   :  { %3784 = vmatpush1.bf16.msra.mxu0 %v11176_v7  ;;  %5265 = vmatpush1.bf16.msra.mxu1 %v11176_v7  ;;  %v11523_v7 = vld [vmem:[%s15564_s1 + $0xa4] ss:$8 sps:$4 sm:$0xff]  }
 0x300   :  { %3824 = vmatprep.subr.bf16.mxu0 %v11183_v8  ;;  %5305 = vmatprep.subr.bf16.mxu1 %v11183_v8  ;;  %v11524_v8 = vld [vmem:[%s15564_s1 + $0xa0] ss:$8 sps:$4 sm:$0xff]  }
 0x302   :  { %3786 = vmatmul.mubr.bf16.vlgmr.msra.gmra.mrb[0].mxu0 %v11177_v9  ;;  %5267 = vmatmul.mubr.bf16.vlgmr.msra.gmra.mrb[0].mxu1 %v11180_v10  ;;  %v11525_v9 = vld [vmem:[%s15564_s1 + $0xb4] ss:$8 sps:$4 sm:$0xff]   ;;  %v11526_v10 = vld [vmem:[%s15564_s1 + $0xb0] ss:$8 sps:$4 sm:$0xff]  }
 0x303   :  { %3825 = vmatpush1.bf16.msra.mxu0 %v11185_v11  ;;  %5306 = vmatpush1.bf16.msra.mxu1 %v11185_v11  ;;  %v11527_v11 = vld [vmem:[%s15564_s1 + $0xc4] ss:$8 sps:$4 sm:$0xff]  }
 0x304   :  { %3826 = vmatprep.subr.bf16.mxu0 %v11186_v12  ;;  %5307 = vmatprep.subr.bf16.mxu1 %v11186_v12  ;;  %v11528_v12 = vld [vmem:[%s15564_s1 + $0xc0] ss:$8 sps:$4 sm:$0xff]  }
 0x305   :  { %3795 = vmatprep.mubr.bf16.mxu0 %v11189_v13  ;;  %5276 = vmatprep.mubr.bf16.mxu1 %v11191_v14  ;;  %v11529_v13 = vld [vmem:[%s15564_s1 + $0xd4] ss:$8 sps:$4 sm:$0xff]   ;;  %v11530_v14 = vld [vmem:[%s15564_s1 + $0xd0] ss:$8 sps:$4 sm:$0xff]  }
 0x307   :  { %3827 = vmatpush1.bf16.msra.mxu0 %v11188_v15  ;;  %5308 = vmatpush1.bf16.msra.mxu1 %v11188_v15  ;;  %v11531_v15 = vld [vmem:[%s15564_s1 + $0xe4] ss:$8 sps:$4 sm:$0xff]  }
 0x308   :  { %3828 = vmatprep.subr.bf16.mxu0 %v11194_v16  ;;  %5309 = vmatprep.subr.bf16.mxu1 %v11194_v16  ;;  %v11532_v16 = vld [vmem:[%s15564_s1 + $0xe0] ss:$8 sps:$4 sm:$0xff]  }
 0x30a   :  { %3796 = vmatmul.mubr.bf16.gmra.mrb[4].mxu0 %v11193_v17  ;;  %5277 = vmatmul.mubr.bf16.gmra.mrb[4].mxu1 %v11196_v18  ;;  %v11533_v17 = vld [vmem:[%s15564_s1 + $0xf4] ss:$8 sps:$4 sm:$0xff]  }
 0x30b   :  { %3829 = vmatpush1.bf16.msra.mxu0 %v11197_v19  ;;  %5310 = vmatpush1.bf16.msra.mxu1 %v11197_v19  ;;  %v11231_v18 = vld [vmem:[%s15565_s0 + $0x578] ss:$100 sps:$4 sm:$0xff]  }
 0x30c   :  { %3830 = vmatprep.subr.bf16.mxu0 %v11198_v20  ;;  %5311 = vmatprep.subr.bf16.mxu1 %v11198_v20  ;;  %v11234_v19 = vld [vmem:[%s15565_s0 + $0x834] ss:$100 sps:$4 sm:$0xff]  }
 0x30d   :  { %3805 = vmatprep.mubr.bf16.mxu0 %v11201_v21  ;;  %5286 = vmatprep.mubr.bf16.mxu1 %v11203_v22  ;;  %v11534_v20 = vld [vmem:[%s15564_s1 + $0xf0] ss:$8 sps:$4 sm:$0xff]   ;;  %v11535_v21 = vld [vmem:[%s15564_s1 + $0x104] ss:$8 sps:$4 sm:$0xff]  }
 0x30e   :  { %v11237_v22 = vld [vmem:[%s15565_s0 + $0x644] ss:$100 sps:$4 sm:$0xff]  }
 0x30f   :  { %3831 = vmatpush1.bf16.msra.mxu0 %v11200_v23  ;;  %5312 = vmatpush1.bf16.msra.mxu1 %v11200_v23  ;;  %v11239_v23 = vld [vmem:[%s15565_s0 + $0x900] ss:$100 sps:$4 sm:$0xff]  }
 0x310   :  { %3832 = vmatprep.subr.bf16.mxu0 %v11206_v24  ;;  %5313 = vmatprep.subr.bf16.mxu1 %v11206_v24  ;;  %v11536_v24 = vld [vmem:[%s15564_s1 + $0x100] ss:$8 sps:$4 sm:$0xff]  }
 0x312   :  { %3806 = vmatmul.mubr.bf16.gmra.mrb[8].mxu0 %v11205_v25  ;;  %5287 = vmatmul.mubr.bf16.gmra.mrb[8].mxu1 %v11208_v26  ;;  %v11537_v25 = vld [vmem:[%s15564_s1 + $0x114] ss:$8 sps:$4 sm:$0xff]   ;;  %v11241_v26 = vld [vmem:[%s15565_s0 + $0x640] ss:$100 sps:$4 sm:$0xff]  }
 0x313   :  { %3833 = vmatpush1.bf16.msra.mxu0 %v11209_v29  ;;  %5314 = vmatpush1.bf16.msra.mxu1 %v11209_v29  ;;  %v11539_v29 = vld [vmem:[%s15564_s1 + $0x124] ss:$8 sps:$4 sm:$0xff]  }
 0x314   :  { %3834 = vmatprep.subr.bf16.mxu0 %v11210_v30  ;;  %5315 = vmatprep.subr.bf16.mxu1 %v11210_v30  ;;  %v11243_v30 = vld [vmem:[%s15565_s0 + $0x70c] ss:$100 sps:$4 sm:$0xff]  }
 0x315   :  { %3815 = vmatprep.mubr.bf16.mxu0 %v8601_v31  ;;  %5296 = vmatprep.mubr.bf16.mxu1 %v9192_v32  ;;  %v11245_v31 = vld [vmem:[%s15565_s0 + $0x9c8] ss:$100 sps:$4 sm:$0xff]  }
 0x316   :  { %v11540_v32 = vld [vmem:[%s15564_s1 + $0x120] ss:$8 sps:$4 sm:$0xff]  }
 0x317   :  { %3835 = vmatpush1.bf16.msra.mxu0 %v11212_v33  ;;  %5316 = vmatpush1.bf16.msra.mxu1 %v11212_v33  ;;  %v11541_v33 = vld [vmem:[%s15564_s1 + $0x134] ss:$8 sps:$4 sm:$0xff]  }
 0x318   :  { %3836 = vmatprep.subr.bf16.mxu0 %v11216_v34  ;;  %5317 = vmatprep.subr.bf16.mxu1 %v11216_v34  ;;  %v11247_v34 = vld [vmem:[%s15565_s0 + $0x708] ss:$100 sps:$4 sm:$0xff]  }
 0x31a   :  { %3816 = vmatmul.mubr.bf16.gmra.mrb[12].mxu0 %v8600_v35  ;;  %5297 = vmatmul.mubr.bf16.gmra.mrb[12].mxu1 %v9191_v36  ;;  %v11248_v35 = vld [vmem:[%s15565_s0 + $0x9c4] ss:$100 sps:$4 sm:$0xff]   ;;  %v9272_v36 = vld [vmem:[%s15565_s0 + $0x7d0] sm:$0xff] }
 0x31b   :  { %3837 = vmatpush1.bf16.msra.mxu0 %v11219_v37  ;;  %5318 = vmatpush1.bf16.msra.mxu1 %v11219_v37  ;;  %v9463_v37 = vld [vmem:[%s15565_s0 + $0xa8c] sm:$0xff] }
 0x31c   :  { %3838 = vmatprep.subr.bf16.mxu0 %v11220_v38  ;;  %5319 = vmatprep.subr.bf16.mxu1 %v11220_v38  ;;  %v11542_v38 = vld [vmem:[%s15564_s1 + $0x130] ss:$8 sps:$4 sm:$0xff]  }
 0x31d   :  { %3856 = vmatprep.mubr.bf16.mxu0 %v11903_v40  ;;  %5337 = vmatprep.mubr.bf16.mxu1 %v11903_v40 }
 0x31f   :  { %3839 = vmatpush1.bf16.msra.mxu0 %v11222_v39  ;;  %5320 = vmatpush1.bf16.msra.mxu1 %v11222_v39  ;;  %v11543_v39 = vld [vmem:[%s15564_s1 + $0x144] ss:$8 sps:$4 sm:$0xff]  }
 0x320   :  { %5948 = vmatprep.subr.bf16.mxu0 %v11503_v43  ;;  %7443 = vmatprep.subr.bf16.mxu1 %v11503_v43  ;;  %v11544_v43 = vld [vmem:[%s15564_s1 + $0x140] ss:$8 sps:$4 sm:$0xff]  }
 0x322   :  { %3857 = vmatmul.mubr.bf16.vlgmr.msra.gmra.mrb[0].mxu0 %v11223_v41  ;;  %5338 = vmatmul.mubr.bf16.vlgmr.msra.gmra.mrb[0].mxu1 %v11224_v42  ;;  %v9361_v41 = vcombine.high %v9272_v36, %v9272_v36  ;;  %v9552_v42 = vcombine.high %v9463_v37, %v9463_v37 }
 0x323   :  { %5949 = vmatpush1.bf16.msra.mxu0 %v11504_v44  ;;  %7444 = vmatpush1.bf16.msra.mxu1 %v11504_v44  ;;  %v11545_v44 = vld [vmem:[%s15564_s1 + $0x154] ss:$8 sps:$4 sm:$0xff]  }
 0x324   :  { %5950 = vmatprep.subr.bf16.mxu0 %v11505_v45  ;;  %7445 = vmatprep.subr.bf16.mxu1 %v11505_v45  ;;  %v9360_v45 = vcombine.low %v9272_v36, %v9272_v36  ;;  %v11280_v36 = vld [vmem:[%s15565_s0 + $0x848] ss:$100 sps:$4 sm:$0xff]  }
 0x325   :  { %3866 = vmatprep.mubr.bf16.mxu0 %v11903_v40  ;;  %5347 = vmatprep.mubr.bf16.mxu1 %v11903_v40 }
 0x327   :  { %5951 = vmatpush1.bf16.msra.mxu0 %v11506_v48  ;;  %7446 = vmatpush1.bf16.msra.mxu1 %v11506_v48  ;;  %v11547_v48 = vld [vmem:[%s15564_s1 + $0x164] ss:$8 sps:$4 sm:$0xff]  }
 0x328   :  { %5952 = vmatprep.subr.bf16.mxu0 %v11507_v49  ;;  %7447 = vmatprep.subr.bf16.mxu1 %v11507_v49  ;;  %v11255_v49 = vld [vmem:[%s15565_s0 + $0x584] ss:$100 sps:$4 sm:$0xff]  }
 0x32a   :  { %3867 = vmatmul.mubr.bf16.gmra.mrb[4].mxu0 %v11225_v46  ;;  %5348 = vmatmul.mubr.bf16.gmra.mrb[4].mxu1 %v11226_v47  ;;  %v9551_v46 = vcombine.low %v9463_v37, %v9463_v37  ;;  %v11546_v47 = vld [vmem:[%s15564_s1 + $0x150] ss:$8 sps:$4 sm:$0xff]   ;;  %v11580_v37 = vld [vmem:[%s15564_s1 + $0x260] ss:$8 sps:$4 sm:$0xff]  }
 0x32b   :  { %5953 = vmatpush1.bf16.msra.mxu0 %v11508_v50  ;;  %7448 = vmatpush1.bf16.msra.mxu1 %v11508_v50  ;;  %v11258_v50 = vld [vmem:[%s15565_s0 + $0x840] ss:$100 sps:$4 sm:$0xff]  }
 0x32c   :  { %5954 = vmatprep.subr.bf16.mxu0 %v11509_v51  ;;  %7449 = vmatprep.subr.bf16.mxu1 %v11509_v51  ;;  %v11548_v51 = vld [vmem:[%s15564_s1 + $0x160] ss:$8 sps:$4 sm:$0xff]  }
 0x32d   :  { %3876 = vmatprep.mubr.bf16.mxu0 %v11903_v40  ;;  %5357 = vmatprep.mubr.bf16.mxu1 %v11903_v40 }
 0x32f   :  { %5955 = vmatpush1.bf16.msra.mxu0 %v11510_v54  ;;  %7450 = vmatpush1.bf16.msra.mxu1 %v11510_v54  ;;  %v11551_v54 = vld [vmem:[%s15564_s1 + $0x184] ss:$8 sps:$4 sm:$0xff]  }
 0x330   :  { %5956 = vmatprep.subr.bf16.mxu0 %v11511_v55  ;;  %7451 = vmatprep.subr.bf16.mxu1 %v11511_v55  ;;  %v11552_v55 = vld [vmem:[%s15564_s1 + $0x180] ss:$8 sps:$4 sm:$0xff]  }
 0x332   :  { %3877 = vmatmul.mubr.bf16.gmra.mrb[8].mxu0 %v11227_v52  ;;  %5358 = vmatmul.mubr.bf16.gmra.mrb[8].mxu1 %v11228_v53  ;;  %v11549_v52 = vld [vmem:[%s15564_s1 + $0x174] ss:$8 sps:$4 sm:$0xff]   ;;  %v11550_v53 = vld [vmem:[%s15564_s1 + $0x170] ss:$8 sps:$4 sm:$0xff]  }
 0x333   :  { %5957 = vmatpush1.bf16.msra.mxu0 %v11512_v56  ;;  %7452 = vmatpush1.bf16.msra.mxu1 %v11512_v56  ;;  %v11553_v56 = vld [vmem:[%s15564_s1 + $0x194] ss:$8 sps:$4 sm:$0xff]  }
 0x334   :  { %5958 = vmatprep.subr.bf16.mxu0 %v11513_v57  ;;  %7453 = vmatprep.subr.bf16.mxu1 %v11513_v57  ;;  %v11554_v57 = vld [vmem:[%s15564_s1 + $0x190] ss:$8 sps:$4 sm:$0xff]  }
 0x335   :  { %3886 = vmatprep.mubr.bf16.mxu0 %v11903_v40  ;;  %5367 = vmatprep.mubr.bf16.mxu1 %v11903_v40 }
 0x337   :  { %5959 = vmatpush1.bf16.msra.mxu0 %v11514_v60  ;;  %7454 = vmatpush1.bf16.msra.mxu1 %v11514_v60  ;;  %v11557_v60 = vld [vmem:[%s15564_s1 + $0x1b4] ss:$8 sps:$4 sm:$0xff]  }
 0x338   :  { %5960 = vmatprep.subr.bf16.mxu0 %v11515_v61  ;;  %7455 = vmatprep.subr.bf16.mxu1 %v11515_v61  ;;  %v11558_v61 = vld [vmem:[%s15564_s1 + $0x1b0] ss:$8 sps:$4 sm:$0xff]  }
 0x33a   :  { %3887 = vmatmul.mubr.bf16.gmra.mrb[12].mxu0 %v11229_v58  ;;  %5368 = vmatmul.mubr.bf16.gmra.mrb[12].mxu1 %v11230_v59  ;;  %v11555_v58 = vld [vmem:[%s15564_s1 + $0x1a4] ss:$8 sps:$4 sm:$0xff]   ;;  %v11556_v59 = vld [vmem:[%s15564_s1 + $0x1a0] ss:$8 sps:$4 sm:$0xff]  }
 0x33b   :  { %5961 = vmatpush1.bf16.msra.mxu0 %v11516_v0  ;;  %7456 = vmatpush1.bf16.msra.mxu1 %v11516_v0  ;;  %v11561_v0 = vld [vmem:[%s15564_s1 + $0x1d4] ss:$8 sps:$4 sm:$0xff]  }
 0x33c   :  { %5962 = vmatprep.subr.bf16.mxu0 %v11517_v1  ;;  %7457 = vmatprep.subr.bf16.mxu1 %v11517_v1  ;;  %v11562_v1 = vld [vmem:[%s15564_s1 + $0x1d0] ss:$8 sps:$4 sm:$0xff]  }
 0x33d   :  { %5980 = vmatprep.mubr.bf16.mxu0 %v11233_v62  ;;  %7475 = vmatprep.mubr.bf16.mxu1 %v11236_v63  ;;  %v11559_v62 = vld [vmem:[%s15564_s1 + $0x1c4] ss:$8 sps:$4 sm:$0xff]   ;;  %v11560_v63 = vld [vmem:[%s15564_s1 + $0x1c0] ss:$8 sps:$4 sm:$0xff]  }
 0x33f   :  { %5963 = vmatpush1.bf16.msra.mxu0 %v11518_v2  ;;  %7458 = vmatpush1.bf16.msra.mxu1 %v11518_v2  ;;  %v11563_v2 = vld [vmem:[%s15564_s1 + $0x1e4] ss:$8 sps:$4 sm:$0xff]  }
 0x340   :  { %5964 = vmatprep.subr.bf16.mxu0 %v11519_v3  ;;  %7459 = vmatprep.subr.bf16.mxu1 %v11519_v3  ;;  %v11564_v3 = vld [vmem:[%s15564_s1 + $0x1e0] ss:$8 sps:$4 sm:$0xff]  }
 0x343   :  { %5965 = vmatpush1.bf16.msra.mxu0 %v11520_v4  ;;  %7460 = vmatpush1.bf16.msra.mxu1 %v11520_v4  ;;  %v11565_v4 = vld [vmem:[%s15564_s1 + $0x1f4] ss:$8 sps:$4 sm:$0xff]  }
 0x344   :  { %5966 = vmatprep.subr.bf16.mxu0 %v11521_v5  ;;  %7461 = vmatprep.subr.bf16.mxu1 %v11521_v5  ;;  %v11253_v5 = vld [vmem:[%s15565_s0 + $0x580] ss:$100 sps:$4 sm:$0xff]  }
 0x347   :  { %5967 = vmatpush1.bf16.msra.mxu0 %v11522_v6  ;;  %7462 = vmatpush1.bf16.msra.mxu1 %v11522_v6  ;;  %v11256_v6 = vld [vmem:[%s15565_s0 + $0x83c] ss:$100 sps:$4 sm:$0xff]  }
 0x348   :  { %5968 = vmatprep.subr.bf16.mxu0 %v11523_v7  ;;  %7463 = vmatprep.subr.bf16.mxu1 %v11523_v7  ;;  %v11566_v7 = vld [vmem:[%s15564_s1 + $0x1f0] ss:$8 sps:$4 sm:$0xff]  }
 0x34b   :  { %5969 = vmatpush1.bf16.msra.mxu0 %v11524_v8  ;;  %7464 = vmatpush1.bf16.msra.mxu1 %v11524_v8  ;;  %v11567_v8 = vld [vmem:[%s15564_s1 + $0x204] ss:$8 sps:$4 sm:$0xff]  }
 0x34c   :  { %5970 = vmatprep.subr.bf16.mxu0 %v11525_v9  ;;  %7465 = vmatprep.subr.bf16.mxu1 %v11525_v9  ;;  %v11259_v9 = vld [vmem:[%s15565_s0 + $0x64c] ss:$100 sps:$4 sm:$0xff]  }
 0x34f   :  { %5971 = vmatpush1.bf16.msra.mxu0 %v11526_v10  ;;  %7466 = vmatpush1.bf16.msra.mxu1 %v11526_v10  ;;  %v11261_v10 = vld [vmem:[%s15565_s0 + $0x908] ss:$100 sps:$4 sm:$0xff]  }
 0x350   :  { %5972 = vmatprep.subr.bf16.mxu0 %v11527_v11  ;;  %7467 = vmatprep.subr.bf16.mxu1 %v11527_v11  ;;  %v11568_v11 = vld [vmem:[%s15564_s1 + $0x200] ss:$8 sps:$4 sm:$0xff]  }
 0x353   :  { %5973 = vmatpush1.bf16.msra.mxu0 %v11528_v12  ;;  %7468 = vmatpush1.bf16.msra.mxu1 %v11528_v12  ;;  %v11569_v12 = vld [vmem:[%s15564_s1 + $0x214] ss:$8 sps:$4 sm:$0xff]  }
 0x354   :  { %5974 = vmatprep.subr.bf16.mxu0 %v11529_v13  ;;  %7469 = vmatprep.subr.bf16.mxu1 %v11529_v13  ;;  %v11263_v13 = vld [vmem:[%s15565_s0 + $0x648] ss:$100 sps:$4 sm:$0xff]  }
 0x357   :  { %5975 = vmatpush1.bf16.msra.mxu0 %v11530_v14  ;;  %7470 = vmatpush1.bf16.msra.mxu1 %v11530_v14  ;;  %v11264_v14 = vld [vmem:[%s15565_s0 + $0x904] ss:$100 sps:$4 sm:$0xff]  }
 0x358   :  { %5976 = vmatprep.subr.bf16.mxu0 %v11531_v15  ;;  %7471 = vmatprep.subr.bf16.mxu1 %v11531_v15  ;;  %v11570_v15 = vld [vmem:[%s15564_s1 + $0x210] ss:$8 sps:$4 sm:$0xff]  }
 0x35b   :  { %5977 = vmatpush1.bf16.msra.mxu0 %v11532_v16  ;;  %7472 = vmatpush1.bf16.msra.mxu1 %v11532_v16  ;;  %v11571_v16 = vld [vmem:[%s15564_s1 + $0x224] ss:$8 sps:$4 sm:$0xff]  }
 0x35c   :  { %5978 = vmatprep.subr.bf16.mxu0 %v11533_v17  ;;  %7473 = vmatprep.subr.bf16.mxu1 %v11533_v17  ;;  %v11265_v17 = vld [vmem:[%s15565_s0 + $0x714] ss:$100 sps:$4 sm:$0xff]  }
 0x35f   :  { %5979 = vmatpush1.bf16.msra.mxu0 %v11534_v20  ;;  %7474 = vmatpush1.bf16.msra.mxu1 %v11534_v20  ;;  %v11573_v20 = vld [vmem:[%s15564_s1 + $0x234] ss:$8 sps:$4 sm:$0xff]  }
 0x360   :  { %6019 = vmatprep.subr.bf16.mxu0 %v11535_v21  ;;  %7514 = vmatprep.subr.bf16.mxu1 %v11535_v21  ;;  %v11269_v21 = vld [vmem:[%s15565_s0 + $0x710] ss:$100 sps:$4 sm:$0xff]  }
 0x362   :  { %5981 = vmatmul.mubr.bf16.vlgmr.msra.gmra.mrb[16].mxu0 %v11231_v18  ;;  %7476 = vmatmul.mubr.bf16.vlgmr.msra.gmra.mrb[16].mxu1 %v11234_v19  ;;  %v11267_v18 = vld [vmem:[%s15565_s0 + $0x9d0] ss:$100 sps:$4 sm:$0xff]   ;;  %v11572_v19 = vld [vmem:[%s15564_s1 + $0x220] ss:$8 sps:$4 sm:$0xff]  }
 0x363   :  { %6020 = vmatpush1.bf16.msra.mxu0 %v11536_v24  ;;  %7515 = vmatpush1.bf16.msra.mxu1 %v11536_v24  ;;  %v9464_v24 = vld [vmem:[%s15565_s0 + $0xa94] sm:$0xff] }
 0x364   :  { %6021 = vmatprep.subr.bf16.mxu0 %v11537_v25  ;;  %7516 = vmatprep.subr.bf16.mxu1 %v11537_v25  ;;  %v11574_v25 = vld [vmem:[%s15564_s1 + $0x230] ss:$8 sps:$4 sm:$0xff]  }
 0x365   :  { %5990 = vmatprep.mubr.bf16.mxu0 %v11237_v22  ;;  %7485 = vmatprep.mubr.bf16.mxu1 %v11239_v23  ;;  %v11270_v22 = vld [vmem:[%s15565_s0 + $0x9cc] ss:$100 sps:$4 sm:$0xff]   ;;  %v9273_v23 = vld [vmem:[%s15565_s0 + $0x7d8] sm:$0xff] }
 0x367   :  { %6022 = vmatpush1.bf16.msra.mxu0 %v11538_v28  ;;  %7517 = vmatpush1.bf16.msra.mxu1 %v11538_v28  ;;  %v9554_v28 = vcombine.high %v9464_v24, %v9464_v24 }
 0x368   :  { %6023 = vmatprep.subr.bf16.mxu0 %v11539_v29  ;;  %7518 = vmatprep.subr.bf16.mxu1 %v11539_v29  ;;  %v11576_v29 = vld [vmem:[%s15564_s1 + $0x240] ss:$8 sps:$4 sm:$0xff]  }
 0x36a   :  { %5991 = vmatmul.mubr.bf16.gmra.mrb[20].mxu0 %v11241_v26  ;;  %7486 = vmatmul.mubr.bf16.gmra.mrb[20].mxu1 %v11242_v27  ;;  %v11575_v26 = vld [vmem:[%s15564_s1 + $0x244] ss:$8 sps:$4 sm:$0xff]   ;;  %v9363_v27 = vcombine.high %v9273_v23, %v9273_v23 }
 0x36b   :  { %6024 = vmatpush1.bf16.msra.mxu0 %v11540_v32  ;;  %7519 = vmatpush1.bf16.msra.mxu1 %v11540_v32  ;;  %v9553_v32 = vcombine.low %v9464_v24, %v9464_v24 }
 0x36c   :  { %6025 = vmatprep.subr.bf16.mxu0 %v11541_v33  ;;  %7520 = vmatprep.subr.bf16.mxu1 %v11541_v33  ;;  %v11578_v33 = vld [vmem:[%s15564_s1 + $0x250] ss:$8 sps:$4 sm:$0xff]  }
 0x36d   :  { %6000 = vmatprep.mubr.bf16.mxu0 %v11243_v30  ;;  %7495 = vmatprep.mubr.bf16.mxu1 %v11245_v31  ;;  %v11577_v30 = vld [vmem:[%s15564_s1 + $0x254] ss:$8 sps:$4 sm:$0xff]   ;;  %v9362_v31 = vcombine.low %v9273_v23, %v9273_v23 }
 0x36f   :  { %6026 = vmatpush1.bf16.msra.mxu0 %v11542_v38  ;;  %7521 = vmatpush1.bf16.msra.mxu1 %v11542_v38  ;;  %v11581_v38 = vld [vmem:[%s15564_s1 + $0x274] ss:$8 sps:$4 sm:$0xff]  }
 0x370   :  { %6027 = vmatprep.subr.bf16.mxu0 %v11543_v39  ;;  %7522 = vmatprep.subr.bf16.mxu1 %v11543_v39  ;;  %v11582_v39 = vld [vmem:[%s15564_s1 + $0x270] ss:$8 sps:$4 sm:$0xff]  }
 0x372   :  { %6001 = vmatmul.mubr.bf16.gmra.mrb[24].mxu0 %v11247_v34  ;;  %7496 = vmatmul.mubr.bf16.gmra.mrb[24].mxu1 %v11248_v35  ;;  %v11579_v34 = vld [vmem:[%s15564_s1 + $0x264] ss:$8 sps:$4 sm:$0xff]  }
 0x373   :  { %6028 = vmatpush1.bf16.msra.mxu0 %v11544_v43  ;;  %7523 = vmatpush1.bf16.msra.mxu1 %v11544_v43  ;;  %v11277_v35 = vld [vmem:[%s15565_s0 + $0x58c] ss:$100 sps:$4 sm:$0xff]   ;;  %v11585_v43 = vld [vmem:[%s15564_s1 + $0x294] ss:$8 sps:$4 sm:$0xff]  }
 0x374   :  { %6029 = vmatprep.subr.bf16.mxu0 %v11545_v44  ;;  %7524 = vmatprep.subr.bf16.mxu1 %v11545_v44  ;;  %v11586_v44 = vld [vmem:[%s15564_s1 + $0x290] ss:$8 sps:$4 sm:$0xff]  }
 0x375   :  { %6010 = vmatprep.mubr.bf16.mxu0 %v9361_v41  ;;  %7505 = vmatprep.mubr.bf16.mxu1 %v9552_v42  ;;  %v11583_v41 = vld [vmem:[%s15564_s1 + $0x284] ss:$8 sps:$4 sm:$0xff]   ;;  %v11584_v42 = vld [vmem:[%s15564_s1 + $0x280] ss:$8 sps:$4 sm:$0xff]  }
 0x377   :  { %6030 = vmatpush1.bf16.msra.mxu0 %v11546_v47  ;;  %7525 = vmatpush1.bf16.msra.mxu1 %v11546_v47  ;;  %v11589_v47 = vld [vmem:[%s15564_s1 + $0x2b4] ss:$8 sps:$4 sm:$0xff]  }
 0x378   :  { %6031 = vmatprep.subr.bf16.mxu0 %v11547_v48  ;;  %7526 = vmatprep.subr.bf16.mxu1 %v11547_v48  ;;  %v11590_v48 = vld [vmem:[%s15564_s1 + $0x2b0] ss:$8 sps:$4 sm:$0xff]  }
 0x37a   :  { %6011 = vmatmul.mubr.bf16.gmra.mrb[28].mxu0 %v9360_v45  ;;  %7506 = vmatmul.mubr.bf16.gmra.mrb[28].mxu1 %v9551_v46  ;;  %v11587_v45 = vld [vmem:[%s15564_s1 + $0x2a4] ss:$8 sps:$4 sm:$0xff]   ;;  %v11588_v46 = vld [vmem:[%s15564_s1 + $0x2a0] ss:$8 sps:$4 sm:$0xff]  }
 0x37b   :  { %6032 = vmatpush1.bf16.msra.mxu0 %v11548_v51  ;;  %7527 = vmatpush1.bf16.msra.mxu1 %v11548_v51  ;;  %v11593_v51 = vld [vmem:[%s15564_s1 + $0x2d4] ss:$8 sps:$4 sm:$0xff]  }
 0x37c   :  { %6033 = vmatprep.subr.bf16.mxu0 %v11549_v52  ;;  %7528 = vmatprep.subr.bf16.mxu1 %v11549_v52  ;;  %v11594_v52 = vld [vmem:[%s15564_s1 + $0x2d0] ss:$8 sps:$4 sm:$0xff]  }
 0x37d   :  { %6051 = vmatprep.mubr.bf16.mxu0 %v11255_v49  ;;  %7546 = vmatprep.mubr.bf16.mxu1 %v11258_v50  ;;  %v11591_v49 = vld [vmem:[%s15564_s1 + $0x2c4] ss:$8 sps:$4 sm:$0xff]   ;;  %v11592_v50 = vld [vmem:[%s15564_s1 + $0x2c0] ss:$8 sps:$4 sm:$0xff]  }
 0x37f   :  { %6034 = vmatpush1.bf16.msra.mxu0 %v11550_v53  ;;  %7529 = vmatpush1.bf16.msra.mxu1 %v11550_v53  ;;  %v11595_v53 = vld [vmem:[%s15564_s1 + $0x2e4] ss:$8 sps:$4 sm:$0xff]  }
 0x380   :  { %6035 = vmatprep.subr.bf16.mxu0 %v11551_v54  ;;  %7530 = vmatprep.subr.bf16.mxu1 %v11551_v54  ;;  %v11596_v54 = vld [vmem:[%s15564_s1 + $0x2e0] ss:$8 sps:$4 sm:$0xff]  }
 0x383   :  { %6036 = vmatpush1.bf16.msra.mxu0 %v11552_v55  ;;  %7531 = vmatpush1.bf16.msra.mxu1 %v11552_v55  ;;  %v11597_v55 = vld [vmem:[%s15564_s1 + $0x2f4] ss:$8 sps:$4 sm:$0xff]  }
 0x384   :  { %6037 = vmatprep.subr.bf16.mxu0 %v11553_v56  ;;  %7532 = vmatprep.subr.bf16.mxu1 %v11553_v56  ;;  %v11275_v56 = vld [vmem:[%s15565_s0 + $0x588] ss:$100 sps:$4 sm:$0xff]  }
 0x387   :  { %6038 = vmatpush1.bf16.msra.mxu0 %v11554_v57  ;;  %7533 = vmatpush1.bf16.msra.mxu1 %v11554_v57  ;;  %v11278_v57 = vld [vmem:[%s15565_s0 + $0x844] ss:$100 sps:$4 sm:$0xff]  }
 0x388   :  { %6039 = vmatprep.subr.bf16.mxu0 %v11555_v58  ;;  %7534 = vmatprep.subr.bf16.mxu1 %v11555_v58  ;;  %v11598_v58 = vld [vmem:[%s15564_s1 + $0x2f0] ss:$8 sps:$4 sm:$0xff]  }
 0x38b   :  { %6040 = vmatpush1.bf16.msra.mxu0 %v11556_v59  ;;  %7535 = vmatpush1.bf16.msra.mxu1 %v11556_v59  ;;  %v11599_v59 = vld [vmem:[%s15564_s1 + $0x304] ss:$8 sps:$4 sm:$0xff]  }
 0x38c   :  { %6041 = vmatprep.subr.bf16.mxu0 %v11557_v60  ;;  %7536 = vmatprep.subr.bf16.mxu1 %v11557_v60  ;;  %v11281_v60 = vld [vmem:[%s15565_s0 + $0x654] ss:$100 sps:$4 sm:$0xff]  }
 0x38f   :  { %6042 = vmatpush1.bf16.msra.mxu0 %v11558_v61  ;;  %7537 = vmatpush1.bf16.msra.mxu1 %v11558_v61  ;;  %v11283_v61 = vld [vmem:[%s15565_s0 + $0x910] ss:$100 sps:$4 sm:$0xff]  }
 0x390   :  { %6043 = vmatprep.subr.bf16.mxu0 %v11559_v62  ;;  %7538 = vmatprep.subr.bf16.mxu1 %v11559_v62  ;;  %v11600_v62 = vld [vmem:[%s15564_s1 + $0x300] ss:$8 sps:$4 sm:$0xff]  }
 0x393   :  { %6044 = vmatpush1.bf16.msra.mxu0 %v11560_v63  ;;  %7539 = vmatpush1.bf16.msra.mxu1 %v11560_v63  ;;  %v11601_v63 = vld [vmem:[%s15564_s1 + $0x314] ss:$8 sps:$4 sm:$0xff]  }
 0x394   :  { %6045 = vmatprep.subr.bf16.mxu0 %v11561_v0  ;;  %7540 = vmatprep.subr.bf16.mxu1 %v11561_v0  ;;  %v11285_v0 = vld [vmem:[%s15565_s0 + $0x650] ss:$100 sps:$4 sm:$0xff]  }
 0x397   :  { %6046 = vmatpush1.bf16.msra.mxu0 %v11562_v1  ;;  %7541 = vmatpush1.bf16.msra.mxu1 %v11562_v1  ;;  %v11286_v1 = vld [vmem:[%s15565_s0 + $0x90c] ss:$100 sps:$4 sm:$0xff]  }
 0x398   :  { %6047 = vmatprep.subr.bf16.mxu0 %v11563_v2  ;;  %7542 = vmatprep.subr.bf16.mxu1 %v11563_v2  ;;  %v11602_v2 = vld [vmem:[%s15564_s1 + $0x310] ss:$8 sps:$4 sm:$0xff]  }
 0x39b   :  { %6048 = vmatpush1.bf16.msra.mxu0 %v11564_v3  ;;  %7543 = vmatpush1.bf16.msra.mxu1 %v11564_v3  ;;  %v11603_v3 = vld [vmem:[%s15564_s1 + $0x324] ss:$8 sps:$4 sm:$0xff]  }
 0x39c   :  { %6049 = vmatprep.subr.bf16.mxu0 %v11565_v4  ;;  %7544 = vmatprep.subr.bf16.mxu1 %v11565_v4  ;;  %v11287_v4 = vld [vmem:[%s15565_s0 + $0x71c] ss:$100 sps:$4 sm:$0xff]  }
 0x39f   :  { %6050 = vmatpush1.bf16.msra.mxu0 %v11566_v7  ;;  %7545 = vmatpush1.bf16.msra.mxu1 %v11566_v7  ;;  %v11605_v7 = vld [vmem:[%s15564_s1 + $0x334] ss:$8 sps:$4 sm:$0xff]  }
 0x3a0   :  { %6090 = vmatprep.subr.bf16.mxu0 %v11567_v8  ;;  %7585 = vmatprep.subr.bf16.mxu1 %v11567_v8  ;;  %v11291_v8 = vld [vmem:[%s15565_s0 + $0x718] ss:$100 sps:$4 sm:$0xff]  }
 0x3a2   :  { %6052 = vmatmul.mubr.bf16.vlgmr.msra.gmra.mrb[16].mxu0 %v11253_v5  ;;  %7547 = vmatmul.mubr.bf16.vlgmr.msra.gmra.mrb[16].mxu1 %v11256_v6  ;;  %v11289_v5 = vld [vmem:[%s15565_s0 + $0x9d8] ss:$100 sps:$4 sm:$0xff]   ;;  %v11604_v6 = vld [vmem:[%s15564_s1 + $0x320] ss:$8 sps:$4 sm:$0xff]  }
 0x3a3   :  { %6091 = vmatpush1.bf16.msra.mxu0 %v11568_v11  ;;  %7586 = vmatpush1.bf16.msra.mxu1 %v11568_v11  ;;  %v9465_v11 = vld [vmem:[%s15565_s0 + $0xa9c] sm:$0xff] }
 0x3a4   :  { %6092 = vmatprep.subr.bf16.mxu0 %v11569_v12  ;;  %7587 = vmatprep.subr.bf16.mxu1 %v11569_v12  ;;  %v11606_v12 = vld [vmem:[%s15564_s1 + $0x330] ss:$8 sps:$4 sm:$0xff]   ;;  %v9555_v24 = vcombine.low %v9465_v11, %v9465_v11 }
 0x3a5   :  { %6061 = vmatprep.mubr.bf16.mxu0 %v11259_v9  ;;  %7556 = vmatprep.mubr.bf16.mxu1 %v11261_v10  ;;  %v11292_v9 = vld [vmem:[%s15565_s0 + $0x9d4] ss:$100 sps:$4 sm:$0xff]   ;;  %v9274_v10 = vld [vmem:[%s15565_s0 + $0x7e0] sm:$0xff] }
 0x3a6   :  { %v9364_v23 = vcombine.low %v9274_v10, %v9274_v10 }
 0x3a7   :  { %6093 = vmatpush1.bf16.msra.mxu0 %v11570_v15  ;;  %7588 = vmatpush1.bf16.msra.mxu1 %v11570_v15  ;;  %v9556_v15 = vcombine.high %v9465_v11, %v9465_v11 }
 0x3a8   :  { %6094 = vmatprep.subr.bf16.mxu0 %v11571_v16  ;;  %7589 = vmatprep.subr.bf16.mxu1 %v11571_v16  ;;  %v11608_v16 = vld [vmem:[%s15564_s1 + $0x340] ss:$8 sps:$4 sm:$0xff]  }
 0x3aa   :  { %6062 = vmatmul.mubr.bf16.gmra.mrb[20].mxu0 %v11263_v13  ;;  %7557 = vmatmul.mubr.bf16.gmra.mrb[20].mxu1 %v11264_v14  ;;  %v11607_v13 = vld [vmem:[%s15564_s1 + $0x344] ss:$8 sps:$4 sm:$0xff]   ;;  %v9365_v14 = vcombine.high %v9274_v10, %v9274_v10 }
 0x3ab   :  { %6095 = vmatpush1.bf16.msra.mxu0 %v11572_v19  ;;  %7590 = vmatpush1.bf16.msra.mxu1 %v11572_v19 }
 0x3ac   :  { %6096 = vmatprep.subr.bf16.mxu0 %v11573_v20  ;;  %7591 = vmatprep.subr.bf16.mxu1 %v11573_v20 }
 0x3ad   :  { %6071 = vmatprep.mubr.bf16.mxu0 %v11265_v17  ;;  %7566 = vmatprep.mubr.bf16.mxu1 %v11267_v18  ;;  %v11609_v17 = vld [vmem:[%s15564_s1 + $0x354] ss:$8 sps:$4 sm:$0xff]  }
 0x3af   :  { %6097 = vmatpush1.bf16.msra.mxu0 %v11574_v25  ;;  %7592 = vmatpush1.bf16.msra.mxu1 %v11574_v25 }
 0x3b0   :  { %6098 = vmatprep.subr.bf16.mxu0 %v11575_v26  ;;  %7593 = vmatprep.subr.bf16.mxu1 %v11575_v26 }
 0x3b2   :  { %6072 = vmatmul.mubr.bf16.gmra.mrb[24].mxu0 %v11269_v21  ;;  %7567 = vmatmul.mubr.bf16.gmra.mrb[24].mxu1 %v11270_v22 }
 0x3b3   :  { %6099 = vmatpush1.bf16.msra.mxu0 %v11576_v29  ;;  %7594 = vmatpush1.bf16.msra.mxu1 %v11576_v29 }
 0x3b4   :  { %6100 = vmatprep.subr.bf16.mxu0 %v11577_v30  ;;  %7595 = vmatprep.subr.bf16.mxu1 %v11577_v30 }
 0x3b5   :  { %6081 = vmatprep.mubr.bf16.mxu0 %v9363_v27  ;;  %7576 = vmatprep.mubr.bf16.mxu1 %v9554_v28  ;;  %v11610_v28 = vld [vmem:[%s15564_s1 + $0x350] ss:$8 sps:$4 sm:$0xff]  }
 0x3b7   :  { %6101 = vmatpush1.bf16.msra.mxu0 %v11578_v33  ;;  %7596 = vmatpush1.bf16.msra.mxu1 %v11578_v33 }
 0x3b8   :  { %6102 = vmatprep.subr.bf16.mxu0 %v11579_v34  ;;  %7597 = vmatprep.subr.bf16.mxu1 %v11579_v34  ;;  %v11299_v34 = vld [vmem:[%s15565_s0 + $0x594] ss:$100 sps:$4 sm:$0xff]  }
 0x3ba   :  { %6082 = vmatmul.mubr.bf16.gmra.mrb[28].mxu0 %v9362_v31  ;;  %7577 = vmatmul.mubr.bf16.gmra.mrb[28].mxu1 %v9553_v32  ;;  %v11611_v32 = vld [vmem:[%s15564_s1 + $0x364] ss:$8 sps:$4 sm:$0xff]  }
 0x3bb   :  { %6103 = vmatpush1.bf16.msra.mxu0 %v11580_v37  ;;  %7598 = vmatpush1.bf16.msra.mxu1 %v11580_v37  ;;  %v11613_v37 = vld [vmem:[%s15564_s1 + $0x374] ss:$8 sps:$4 sm:$0xff]  }
 0x3bc   :  { %6104 = vmatprep.subr.bf16.mxu0 %v11581_v38  ;;  %7599 = vmatprep.subr.bf16.mxu1 %v11581_v38 }
 0x3bd   :  { %6122 = vmatprep.mubr.bf16.mxu0 %v11277_v35  ;;  %7617 = vmatprep.mubr.bf16.mxu1 %v11280_v36  ;;  %v11302_v35 = vld [vmem:[%s15565_s0 + $0x850] ss:$100 sps:$4 sm:$0xff]   ;;  %v11612_v36 = vld [vmem:[%s15564_s1 + $0x360] ss:$8 sps:$4 sm:$0xff]  }
 0x3bf   :  { %6105 = vmatpush1.bf16.msra.mxu0 %v11582_v39  ;;  %7600 = vmatpush1.bf16.msra.mxu1 %v11582_v39 }
 0x3c0   :  { %6106 = vmatprep.subr.bf16.mxu0 %v11583_v41  ;;  %7601 = vmatprep.subr.bf16.mxu1 %v11583_v41 }
 0x3c3   :  { %6107 = vmatpush1.bf16.msra.mxu0 %v11584_v42  ;;  %7602 = vmatpush1.bf16.msra.mxu1 %v11584_v42 }
 0x3c4   :  { %6108 = vmatprep.subr.bf16.mxu0 %v11585_v43  ;;  %7603 = vmatprep.subr.bf16.mxu1 %v11585_v43 }
 0x3c7   :  { %6109 = vmatpush1.bf16.msra.mxu0 %v11586_v44  ;;  %7604 = vmatpush1.bf16.msra.mxu1 %v11586_v44 }
 0x3c8   :  { %6110 = vmatprep.subr.bf16.mxu0 %v11587_v45  ;;  %7605 = vmatprep.subr.bf16.mxu1 %v11587_v45 }
 0x3cb   :  { %6111 = vmatpush1.bf16.msra.mxu0 %v11588_v46  ;;  %7606 = vmatpush1.bf16.msra.mxu1 %v11588_v46 }
 0x3cc   :  { %6112 = vmatprep.subr.bf16.mxu0 %v11589_v47  ;;  %7607 = vmatprep.subr.bf16.mxu1 %v11589_v47  ;;  %v11614_v47 = vld [vmem:[%s15564_s1 + $0x370] ss:$8 sps:$4 sm:$0xff]  }
 0x3cf   :  { %6113 = vmatpush1.bf16.msra.mxu0 %v11590_v48  ;;  %7608 = vmatpush1.bf16.msra.mxu1 %v11590_v48 }
 0x3d0   :  { %6114 = vmatprep.subr.bf16.mxu0 %v11591_v49  ;;  %7609 = vmatprep.subr.bf16.mxu1 %v11591_v49 }
 0x3d3   :  { %6115 = vmatpush1.bf16.msra.mxu0 %v11592_v50  ;;  %7610 = vmatpush1.bf16.msra.mxu1 %v11592_v50 }
 0x3d4   :  { %6116 = vmatprep.subr.bf16.mxu0 %v11593_v51  ;;  %7611 = vmatprep.subr.bf16.mxu1 %v11593_v51  ;;  %v11615_v51 = vld [vmem:[%s15564_s1 + $0x384] ss:$8 sps:$4 sm:$0xff]  }
 0x3d7   :  { %6117 = vmatpush1.bf16.msra.mxu0 %v11594_v52  ;;  %7612 = vmatpush1.bf16.msra.mxu1 %v11594_v52 }
 0x3d8   :  { %6118 = vmatprep.subr.bf16.mxu0 %v11595_v53  ;;  %7613 = vmatprep.subr.bf16.mxu1 %v11595_v53  ;;  %v11616_v53 = vld [vmem:[%s15564_s1 + $0x380] ss:$8 sps:$4 sm:$0xff]  }
 0x3db   :  { %6119 = vmatpush1.bf16.msra.mxu0 %v11596_v54  ;;  %7614 = vmatpush1.bf16.msra.mxu1 %v11596_v54  ;;  %v11617_v54 = vld [vmem:[%s15564_s1 + $0x394] ss:$8 sps:$4 sm:$0xff]  }
 0x3dc   :  { %6120 = vmatprep.subr.bf16.mxu0 %v11597_v55  ;;  %7615 = vmatprep.subr.bf16.mxu1 %v11597_v55 }
 0x3df   :  { %6121 = vmatpush1.bf16.msra.mxu0 %v11598_v58  ;;  %7616 = vmatpush1.bf16.msra.mxu1 %v11598_v58 }
 0x3e0   :  { %6161 = vmatprep.subr.bf16.mxu0 %v11599_v59  ;;  %7656 = vmatprep.subr.bf16.mxu1 %v11599_v59 }
 0x3e2   :  { %6123 = vmatmul.mubr.bf16.vlgmr.msra.gmra.mrb[16].mxu0 %v11275_v56  ;;  %7618 = vmatmul.mubr.bf16.vlgmr.msra.gmra.mrb[16].mxu1 %v11278_v57 }
 0x3e3   :  { %6162 = vmatpush1.bf16.msra.mxu0 %v11600_v62  ;;  %7657 = vmatpush1.bf16.msra.mxu1 %v11600_v62 }
 0x3e4   :  { %6163 = vmatprep.subr.bf16.mxu0 %v11601_v63  ;;  %7658 = vmatprep.subr.bf16.mxu1 %v11601_v63  ;;  %v11618_v63 = vld [vmem:[%s15564_s1 + $0x390] ss:$8 sps:$4 sm:$0xff]  }
 0x3e5   :  { %6132 = vmatprep.mubr.bf16.mxu0 %v11281_v60  ;;  %7627 = vmatprep.mubr.bf16.mxu1 %v11283_v61 }
 0x3e7   :  { %6164 = vmatpush1.bf16.msra.mxu0 %v11602_v2  ;;  %7659 = vmatpush1.bf16.msra.mxu1 %v11602_v2 }
 0x3e8   :  { %6165 = vmatprep.subr.bf16.mxu0 %v11603_v3  ;;  %7660 = vmatprep.subr.bf16.mxu1 %v11603_v3  ;;  %v11619_v3 = vld [vmem:[%s15564_s1 + $0x3a4] ss:$8 sps:$4 sm:$0xff]  }
 0x3ea   :  { %6133 = vmatmul.mubr.bf16.gmra.mrb[20].mxu0 %v11285_v0  ;;  %7628 = vmatmul.mubr.bf16.gmra.mrb[20].mxu1 %v11286_v1 }
 0x3eb   :  { %6166 = vmatpush1.bf16.msra.mxu0 %v11604_v6  ;;  %7661 = vmatpush1.bf16.msra.mxu1 %v11604_v6  ;;  %v11621_v6 = vld [vmem:[%s15564_s1 + $0x3b4] ss:$8 sps:$4 sm:$0xff]  }
 0x3ec   :  { %6167 = vmatprep.subr.bf16.mxu0 %v11605_v7  ;;  %7662 = vmatprep.subr.bf16.mxu1 %v11605_v7 }
 0x3ed   :  { %6142 = vmatprep.mubr.bf16.mxu0 %v11287_v4  ;;  %7637 = vmatprep.mubr.bf16.mxu1 %v11289_v5  ;;  %v11620_v5 = vld [vmem:[%s15564_s1 + $0x3a0] ss:$8 sps:$4 sm:$0xff]  }
 0x3ef   :  { %6168 = vmatpush1.bf16.msra.mxu0 %v11606_v12  ;;  %7663 = vmatpush1.bf16.msra.mxu1 %v11606_v12 }
 0x3f0   :  { %6169 = vmatprep.subr.bf16.mxu0 %v11607_v13  ;;  %7664 = vmatprep.subr.bf16.mxu1 %v11607_v13 }
 0x3f2   :  { %6143 = vmatmul.mubr.bf16.gmra.mrb[24].mxu0 %v11291_v8  ;;  %7638 = vmatmul.mubr.bf16.gmra.mrb[24].mxu1 %v11292_v9 }
 0x3f3   :  { %6170 = vmatpush1.bf16.msra.mxu0 %v11608_v16  ;;  %7665 = vmatpush1.bf16.msra.mxu1 %v11608_v16 }
 0x3f4   :  { %6171 = vmatprep.subr.bf16.mxu0 %v11609_v17  ;;  %7666 = vmatprep.subr.bf16.mxu1 %v11609_v17 }
 0x3f5   :  { %v14107_v18 = vpop.f32.mrb[0].mxu0  ;;  %v14109_v19 = vpop.f32.mrb[0].mxu1  ;;  %6152 = vmatprep.mubr.bf16.mxu0 %v9365_v14  ;;  %7647 = vmatprep.mubr.bf16.mxu1 %v9556_v15  ;;  %v11622_v15 = vld [vmem:[%s15564_s1 + $0x3b0] ss:$8 sps:$4 sm:$0xff]  }
 0x3f6   :  { %v5376_v20 = vmax.f32 %v14107_v18, %v14109_v19  ;;  %v14113_v21 = vpop.f32.mrb[1].mxu0  ;;  %v14115_v22 = vpop.f32.mrb[1].mxu1 }
 0x3f7   :  { %v5377_v25 = vmax.f32 %v14113_v21, %v14115_v22  ;;  %v14119_v26 = vpop.f32.mrb[2].mxu0  ;;  %v14121_v27 = vpop.f32.mrb[2].mxu1  ;;  %6172 = vmatpush1.bf16.msra.mxu0 %v11610_v28  ;;  %7667 = vmatpush1.bf16.msra.mxu1 %v11610_v28  ;;  %v11625_v28 = vld [vmem:[%s15564_s1 + $0x3d4] ss:$8 sps:$4 sm:$0xff]  }
 0x3f8   :  { %v5378_v29 = vmax.f32 %v14119_v26, %v14121_v27  ;;  %v14128_v30 = vpop.f32.mrb[3].mxu0  ;;  %v14130_v31 = vpop.f32.mrb[3].mxu1  ;;  %6173 = vmatprep.subr.bf16.mxu0 %v11611_v32  ;;  %7668 = vmatprep.subr.bf16.mxu1 %v11611_v32  ;;  %v11626_v32 = vld [vmem:[%s15564_s1 + $0x3d0] ss:$8 sps:$4 sm:$0xff]  }
 0x3f9   :  { %v5379_v33 = vmax.f32 %v14128_v30, %v14130_v31 }
 0x3fa   :  { %6153 = vmatmul.mubr.bf16.gmra.mrb[28].mxu0 %v9364_v23  ;;  %7648 = vmatmul.mubr.bf16.gmra.mrb[28].mxu1 %v9555_v24  ;;  %v11623_v23 = vld [vmem:[%s15564_s1 + $0x3c4] ss:$8 sps:$4 sm:$0xff]   ;;  %v11624_v24 = vld [vmem:[%s15564_s1 + $0x3c0] ss:$8 sps:$4 sm:$0xff]  }
 0x3fb   :  { %6174 = vmatpush1.bf16.msra.mxu0 %v11612_v36  ;;  %7669 = vmatpush1.bf16.msra.mxu1 %v11612_v36  ;;  %v11629_v36 = vld [vmem:[%s15564_s1 + $0x3f4] ss:$8 sps:$4 sm:$0xff]  }
 0x3fc   :  { %6175 = vmatprep.subr.bf16.mxu0 %v11613_v37  ;;  %7670 = vmatprep.subr.bf16.mxu1 %v11613_v37  ;;  %v11297_v37 = vld [vmem:[%s15565_s0 + $0x590] ss:$100 sps:$4 sm:$0xff]  }
 0x3fd   :  { %v14149_v38 = vpop.f32.mrb[4].mxu0  ;;  %v14151_v39 = vpop.f32.mrb[4].mxu1  ;;  %6193 = vmatprep.mubr.bf16.mxu0 %v11299_v34  ;;  %7688 = vmatprep.mubr.bf16.mxu1 %v11302_v35  ;;  %v11627_v34 = vld [vmem:[%s15564_s1 + $0x3e4] ss:$8 sps:$4 sm:$0xff]   ;;  %v11628_v35 = vld [vmem:[%s15564_s1 + $0x3e0] ss:$8 sps:$4 sm:$0xff]  }
 0x3fe   :  { %v5380_v41 = vmax.f32 %v14149_v38, %v14151_v39  ;;  %v14155_v42 = vpop.f32.mrb[5].mxu0  ;;  %v14157_v43 = vpop.f32.mrb[5].mxu1 }
 0x3ff   :  { %v5381_v44 = vmax.f32 %v14155_v42, %v14157_v43  ;;  %v14161_v45 = vpop.f32.mrb[6].mxu0  ;;  %v14163_v46 = vpop.f32.mrb[6].mxu1  ;;  %6176 = vmatpush1.bf16.msra.mxu0 %v11614_v47  ;;  %7671 = vmatpush1.bf16.msra.mxu1 %v11614_v47  ;;  %v11300_v47 = vld [vmem:[%s15565_s0 + $0x84c] ss:$100 sps:$4 sm:$0xff]  }
 0x400   :  { %v5382_v48 = vmax.f32 %v14161_v45, %v14163_v46  ;;  %v14170_v49 = vpop.f32.mrb[7].mxu0  ;;  %v14172_v50 = vpop.f32.mrb[7].mxu1  ;;  %6177 = vmatprep.subr.bf16.mxu0 %v11615_v51  ;;  %7672 = vmatprep.subr.bf16.mxu1 %v11615_v51  ;;  %v11630_v51 = vld [vmem:[%s15564_s1 + $0x3f0] ss:$8 sps:$4 sm:$0xff]  }
 0x401   :  { %v5383_v52 = vmax.f32 %v14170_v49, %v14172_v50 }
 0x403   :  { %6178 = vmatpush1.bf16.msra.mxu0 %v11616_v53  ;;  %7673 = vmatpush1.bf16.msra.mxu1 %v11616_v53  ;;  %v11631_v53 = vld [vmem:[%s15564_s1 + $0x404] ss:$8 sps:$4 sm:$0xff]  }
 0x404   :  { %6179 = vmatprep.subr.bf16.mxu0 %v11617_v54  ;;  %7674 = vmatprep.subr.bf16.mxu1 %v11617_v54  ;;  %v11303_v54 = vld [vmem:[%s15565_s0 + $0x65c] ss:$100 sps:$4 sm:$0xff]  }
 0x405   :  { %v14185_v55 = vpop.f32.mrb[8].mxu0  ;;  %v14187_v56 = vpop.f32.mrb[8].mxu1 }
 0x406   :  { %v5384_v57 = vmax.f32 %v14185_v55, %v14187_v56  ;;  %v14191_v58 = vpop.f32.mrb[9].mxu0  ;;  %v14193_v59 = vpop.f32.mrb[9].mxu1 }
 0x407   :  { %v5385_v60 = vmax.f32 %v14191_v58, %v14193_v59  ;;  %v14197_v61 = vpop.f32.mrb[10].mxu0  ;;  %v14199_v62 = vpop.f32.mrb[10].mxu1  ;;  %6180 = vmatpush1.bf16.msra.mxu0 %v11618_v63  ;;  %7675 = vmatpush1.bf16.msra.mxu1 %v11618_v63  ;;  %v11305_v63 = vld [vmem:[%s15565_s0 + $0x918] ss:$100 sps:$4 sm:$0xff]  }
 0x408   :  { %v5386_v0 = vmax.f32 %v14197_v61, %v14199_v62  ;;  %v14206_v1 = vpop.f32.mrb[11].mxu0  ;;  %v14208_v2 = vpop.f32.mrb[11].mxu1  ;;  %6181 = vmatprep.subr.bf16.mxu0 %v11619_v3  ;;  %7676 = vmatprep.subr.bf16.mxu1 %v11619_v3  ;;  %v11632_v3 = vld [vmem:[%s15564_s1 + $0x400] ss:$8 sps:$4 sm:$0xff]  }
 0x409   :  { %v5387_v4 = vmax.f32 %v14206_v1, %v14208_v2 }
 0x40b   :  { %6182 = vmatpush1.bf16.msra.mxu0 %v11620_v5  ;;  %7677 = vmatpush1.bf16.msra.mxu1 %v11620_v5  ;;  %v11633_v5 = vld [vmem:[%s15564_s1 + $0x414] ss:$8 sps:$4 sm:$0xff]  }
 0x40c   :  { %6183 = vmatprep.subr.bf16.mxu0 %v11621_v6  ;;  %7678 = vmatprep.subr.bf16.mxu1 %v11621_v6  ;;  %v11307_v6 = vld [vmem:[%s15565_s0 + $0x658] ss:$100 sps:$4 sm:$0xff]  }
 0x40d   :  { %v14221_v7 = vpop.f32.mrb[12].mxu0  ;;  %v14223_v8 = vpop.f32.mrb[12].mxu1 }
 0x40e   :  { %v5388_v9 = vmax.f32 %v14221_v7, %v14223_v8  ;;  %v14227_v10 = vpop.f32.mrb[13].mxu0  ;;  %v14229_v11 = vpop.f32.mrb[13].mxu1 }
 0x40f   :  { %v5389_v12 = vmax.f32 %v14227_v10, %v14229_v11  ;;  %v3892_v13 = vpop.f32.mrb[14].mxu0  ;;  %v5373_v14 = vpop.f32.mrb[14].mxu1  ;;  %6184 = vmatpush1.bf16.msra.mxu0 %v11622_v15  ;;  %7679 = vmatpush1.bf16.msra.mxu1 %v11622_v15  ;;  %v11635_v15 = vld [vmem:[%s15564_s1 + $0x424] ss:$8 sps:$4 sm:$0xff]  }
 0x410   :  { %v3893_v16 = vpop.f32.mrb[15].mxu0  ;;  %v5374_v17 = vpop.f32.mrb[15].mxu1  ;;  %6185 = vmatprep.subr.bf16.mxu0 %v11623_v23  ;;  %7680 = vmatprep.subr.bf16.mxu1 %v11623_v23  ;;  %v11308_v13 = vld [vmem:[%s15565_s0 + $0x914] ss:$100 sps:$4 sm:$0xff]   ;;  %v11636_v23 = vld [vmem:[%s15564_s1 + $0x420] ss:$8 sps:$4 sm:$0xff]  }
 0x411   :  { %v11634_v14 = vld [vmem:[%s15564_s1 + $0x410] ss:$8 sps:$4 sm:$0xff]   ;;  %v11309_v16 = vld [vmem:[%s15565_s0 + $0x724] ss:$100 sps:$4 sm:$0xff]  }
 0x412   :  { %v11311_v17 = vld [vmem:[%s15565_s0 + $0x9e0] ss:$100 sps:$4 sm:$0xff]  }
 0x413   :  { %6186 = vmatpush1.bf16.msra.mxu0 %v11624_v24  ;;  %7681 = vmatpush1.bf16.msra.mxu1 %v11624_v24  ;;  %v11637_v24 = vld [vmem:[%s15564_s1 + $0x434] ss:$8 sps:$4 sm:$0xff]  }
 0x414   :  { %6187 = vmatprep.subr.bf16.mxu0 %v11625_v28  ;;  %7682 = vmatprep.subr.bf16.mxu1 %v11625_v28  ;;  %v11313_v28 = vld [vmem:[%s15565_s0 + $0x720] ss:$100 sps:$4 sm:$0xff]  }
 0x417   :  { %6188 = vmatpush1.bf16.msra.mxu0 %v11626_v32  ;;  %7683 = vmatpush1.bf16.msra.mxu1 %v11626_v32  ;;  %v11314_v32 = vld [vmem:[%s15565_s0 + $0x9dc] ss:$100 sps:$4 sm:$0xff]  }
 0x418   :  { %6189 = vmatprep.subr.bf16.mxu0 %v11627_v34  ;;  %7684 = vmatprep.subr.bf16.mxu1 %v11627_v34  ;;  %v9275_v34 = vld [vmem:[%s15565_s0 + $0x7e8] sm:$0xff] }
 0x41b   :  { %6190 = vmatpush1.bf16.msra.mxu0 %v11628_v35  ;;  %7685 = vmatpush1.bf16.msra.mxu1 %v11628_v35  ;;  %v9466_v35 = vld [vmem:[%s15565_s0 + $0xaa4] sm:$0xff] }
 0x41c   :  { %6191 = vmatprep.subr.bf16.mxu0 %v11629_v36  ;;  %7686 = vmatprep.subr.bf16.mxu1 %v11629_v36  ;;  %v11638_v36 = vld [vmem:[%s15564_s1 + $0x430] ss:$8 sps:$4 sm:$0xff]  }
 0x41f   :  { %6192 = vmatpush1.bf16.msra.mxu0 %v11630_v51  ;;  %7687 = vmatpush1.bf16.msra.mxu1 %v11630_v51  ;;  %v9558_v51 = vcombine.high %v9466_v35, %v9466_v35 }
 0x420   :  { %6232 = vmatprep.subr.bf16.mxu0 %v11631_v53  ;;  %7727 = vmatprep.subr.bf16.mxu1 %v11631_v53  ;;  %v11640_v53 = vld [vmem:[%s15564_s1 + $0x440] ss:$8 sps:$4 sm:$0xff]  }
 0x422   :  { %6194 = vmatmul.mubr.bf16.vlgmr.msra.gmra.mrb[16].mxu0 %v11297_v37  ;;  %7689 = vmatmul.mubr.bf16.vlgmr.msra.gmra.mrb[16].mxu1 %v11300_v47  ;;  %v11639_v37 = vld [vmem:[%s15564_s1 + $0x444] ss:$8 sps:$4 sm:$0xff]   ;;  %v9367_v47 = vcombine.high %v9275_v34, %v9275_v34 }
 0x423   :  { %6233 = vmatpush1.bf16.msra.mxu0 %v11632_v3  ;;  %7728 = vmatpush1.bf16.msra.mxu1 %v11632_v3  ;;  %v9557_v3 = vcombine.low %v9466_v35, %v9466_v35  ;;  %v11652_v35 = vld [vmem:[%s15564_s1 + $0x4a0] ss:$8 sps:$4 sm:$0xff]  }
 0x424   :  { %6234 = vmatprep.subr.bf16.mxu0 %v11633_v5  ;;  %7729 = vmatprep.subr.bf16.mxu1 %v11633_v5  ;;  %v11642_v5 = vld [vmem:[%s15564_s1 + $0x450] ss:$8 sps:$4 sm:$0xff]  }
 0x425   :  { %6203 = vmatprep.mubr.bf16.mxu0 %v11303_v54  ;;  %7698 = vmatprep.mubr.bf16.mxu1 %v11305_v63  ;;  %v11641_v54 = vld [vmem:[%s15564_s1 + $0x454] ss:$8 sps:$4 sm:$0xff]   ;;  %v9366_v63 = vcombine.low %v9275_v34, %v9275_v34  ;;  %v11651_v34 = vld [vmem:[%s15564_s1 + $0x4a4] ss:$8 sps:$4 sm:$0xff]  }
 0x427   :  { %6235 = vmatpush1.bf16.msra.mxu0 %v11634_v14  ;;  %7730 = vmatpush1.bf16.msra.mxu1 %v11634_v14  ;;  %v11324_v14 = vld [vmem:[%s15565_s0 + $0x858] ss:$100 sps:$4 sm:$0xff]  }
 0x428   :  { %6236 = vmatprep.subr.bf16.mxu0 %v11635_v15  ;;  %7731 = vmatprep.subr.bf16.mxu1 %v11635_v15  ;;  %v11644_v15 = vld [vmem:[%s15564_s1 + $0x460] ss:$8 sps:$4 sm:$0xff]  }
 0x42a   :  { %6204 = vmatmul.mubr.bf16.gmra.mrb[20].mxu0 %v11307_v6  ;;  %7699 = vmatmul.mubr.bf16.gmra.mrb[20].mxu1 %v11308_v13  ;;  %v11643_v6 = vld [vmem:[%s15564_s1 + $0x464] ss:$8 sps:$4 sm:$0xff]   ;;  %v11321_v13 = vld [vmem:[%s15565_s0 + $0x59c] ss:$100 sps:$4 sm:$0xff]  }
 0x42b   :  { %6237 = vmatpush1.bf16.msra.mxu0 %v11636_v23  ;;  %7732 = vmatpush1.bf16.msra.mxu1 %v11636_v23  ;;  %v11647_v23 = vld [vmem:[%s15564_s1 + $0x484] ss:$8 sps:$4 sm:$0xff]  }
 0x42c   :  { %6238 = vmatprep.subr.bf16.mxu0 %v11637_v24  ;;  %7733 = vmatprep.subr.bf16.mxu1 %v11637_v24  ;;  %v11648_v24 = vld [vmem:[%s15564_s1 + $0x480] ss:$8 sps:$4 sm:$0xff]  }
 0x42d   :  { %6213 = vmatprep.mubr.bf16.mxu0 %v11309_v16  ;;  %7708 = vmatprep.mubr.bf16.mxu1 %v11311_v17  ;;  %v11645_v16 = vld [vmem:[%s15564_s1 + $0x474] ss:$8 sps:$4 sm:$0xff]   ;;  %v11646_v17 = vld [vmem:[%s15564_s1 + $0x470] ss:$8 sps:$4 sm:$0xff]  }
 0x42f   :  { %6239 = vmatpush1.bf16.msra.mxu0 %v11638_v36  ;;  %7734 = vmatpush1.bf16.msra.mxu1 %v11638_v36  ;;  %v11653_v36 = vld [vmem:[%s15564_s1 + $0x4b4] ss:$8 sps:$4 sm:$0xff]  }
 0x430   :  { %6240 = vmatprep.subr.bf16.mxu0 %v11639_v37  ;;  %7735 = vmatprep.subr.bf16.mxu1 %v11639_v37  ;;  %v11654_v37 = vld [vmem:[%s15564_s1 + $0x4b0] ss:$8 sps:$4 sm:$0xff]  }
 0x432   :  { %6214 = vmatmul.mubr.bf16.gmra.mrb[24].mxu0 %v11313_v28  ;;  %7709 = vmatmul.mubr.bf16.gmra.mrb[24].mxu1 %v11314_v32  ;;  %v11649_v28 = vld [vmem:[%s15564_s1 + $0x494] ss:$8 sps:$4 sm:$0xff]   ;;  %v11650_v32 = vld [vmem:[%s15564_s1 + $0x490] ss:$8 sps:$4 sm:$0xff]  }
 0x433   :  { %6241 = vmatpush1.bf16.msra.mxu0 %v11640_v53  ;;  %7736 = vmatpush1.bf16.msra.mxu1 %v11640_v53  ;;  %v11657_v53 = vld [vmem:[%s15564_s1 + $0x4d4] ss:$8 sps:$4 sm:$0xff]  }
 0x434   :  { %6242 = vmatprep.subr.bf16.mxu0 %v11641_v54  ;;  %7737 = vmatprep.subr.bf16.mxu1 %v11641_v54  ;;  %v11658_v54 = vld [vmem:[%s15564_s1 + $0x4d0] ss:$8 sps:$4 sm:$0xff]  }
 0x435   :  { %6223 = vmatprep.mubr.bf16.mxu0 %v9367_v47  ;;  %7718 = vmatprep.mubr.bf16.mxu1 %v9558_v51  ;;  %v11655_v47 = vld [vmem:[%s15564_s1 + $0x4c4] ss:$8 sps:$4 sm:$0xff]   ;;  %v11656_v51 = vld [vmem:[%s15564_s1 + $0x4c0] ss:$8 sps:$4 sm:$0xff]  }
 0x437   :  { %6243 = vmatpush1.bf16.msra.mxu0 %v11642_v5  ;;  %7738 = vmatpush1.bf16.msra.mxu1 %v11642_v5  ;;  %v11661_v5 = vld [vmem:[%s15564_s1 + $0x4f4] ss:$8 sps:$4 sm:$0xff]  }
 0x438   :  { %6244 = vmatprep.subr.bf16.mxu0 %v11643_v6  ;;  %7739 = vmatprep.subr.bf16.mxu1 %v11643_v6  ;;  %v11319_v6 = vld [vmem:[%s15565_s0 + $0x598] ss:$100 sps:$4 sm:$0xff]  }
 0x43a   :  { %6224 = vmatmul.mubr.bf16.gmra.mrb[28].mxu0 %v9366_v63  ;;  %7719 = vmatmul.mubr.bf16.gmra.mrb[28].mxu1 %v9557_v3  ;;  %v11659_v63 = vld [vmem:[%s15564_s1 + $0x4e4] ss:$8 sps:$4 sm:$0xff]   ;;  %v11660_v3 = vld [vmem:[%s15564_s1 + $0x4e0] ss:$8 sps:$4 sm:$0xff]  }
 0x43b   :  { %6245 = vmatpush1.bf16.msra.mxu0 %v11644_v15  ;;  %7740 = vmatpush1.bf16.msra.mxu1 %v11644_v15  ;;  %v11663_v15 = vld [vmem:[%s15564_s1 + $0x504] ss:$8 sps:$4 sm:$0xff]  }
 0x43c   :  { %6246 = vmatprep.subr.bf16.mxu0 %v11645_v16  ;;  %7741 = vmatprep.subr.bf16.mxu1 %v11645_v16  ;;  %v11325_v16 = vld [vmem:[%s15565_s0 + $0x664] ss:$100 sps:$4 sm:$0xff]  }
 0x43d   :  { %6264 = vmatprep.mubr.bf16.mxu0 %v11321_v13  ;;  %7759 = vmatprep.mubr.bf16.mxu1 %v11324_v14  ;;  %v11322_v13 = vld [vmem:[%s15565_s0 + $0x854] ss:$100 sps:$4 sm:$0xff]  }
 0x43e   :  { %v11662_v14 = vld [vmem:[%s15564_s1 + $0x4f0] ss:$8 sps:$4 sm:$0xff]  }
 0x43f   :  { %6247 = vmatpush1.bf16.msra.mxu0 %v11646_v17  ;;  %7742 = vmatpush1.bf16.msra.mxu1 %v11646_v17  ;;  %v11327_v17 = vld [vmem:[%s15565_s0 + $0x920] ss:$100 sps:$4 sm:$0xff]  }
 0x440   :  { %6248 = vmatprep.subr.bf16.mxu0 %v11647_v23  ;;  %7743 = vmatprep.subr.bf16.mxu1 %v11647_v23  ;;  %v11664_v23 = vld [vmem:[%s15564_s1 + $0x500] ss:$8 sps:$4 sm:$0xff]  }
 0x443   :  { %6249 = vmatpush1.bf16.msra.mxu0 %v11648_v24  ;;  %7744 = vmatpush1.bf16.msra.mxu1 %v11648_v24  ;;  %v11665_v24 = vld [vmem:[%s15564_s1 + $0x514] ss:$8 sps:$4 sm:$0xff]  }
 0x444   :  { %6250 = vmatprep.subr.bf16.mxu0 %v11649_v28  ;;  %7745 = vmatprep.subr.bf16.mxu1 %v11649_v28  ;;  %v11329_v28 = vld [vmem:[%s15565_s0 + $0x660] ss:$100 sps:$4 sm:$0xff]  }
 0x447   :  { %6251 = vmatpush1.bf16.msra.mxu0 %v11650_v32  ;;  %7746 = vmatpush1.bf16.msra.mxu1 %v11650_v32  ;;  %v11330_v32 = vld [vmem:[%s15565_s0 + $0x91c] ss:$100 sps:$4 sm:$0xff]  }
 0x448   :  { %6252 = vmatprep.subr.bf16.mxu0 %v11651_v34  ;;  %7747 = vmatprep.subr.bf16.mxu1 %v11651_v34  ;;  %v11666_v34 = vld [vmem:[%s15564_s1 + $0x510] ss:$8 sps:$4 sm:$0xff]  }
 0x44b   :  { %6253 = vmatpush1.bf16.msra.mxu0 %v11652_v35  ;;  %7748 = vmatpush1.bf16.msra.mxu1 %v11652_v35  ;;  %v11667_v35 = vld [vmem:[%s15564_s1 + $0x524] ss:$8 sps:$4 sm:$0xff]  }
 0x44c   :  { %6254 = vmatprep.subr.bf16.mxu0 %v11653_v36  ;;  %7749 = vmatprep.subr.bf16.mxu1 %v11653_v36  ;;  %v11331_v36 = vld [vmem:[%s15565_s0 + $0x72c] ss:$100 sps:$4 sm:$0xff]  }
 0x44f   :  { %6255 = vmatpush1.bf16.msra.mxu0 %v11654_v37  ;;  %7750 = vmatpush1.bf16.msra.mxu1 %v11654_v37  ;;  %v11333_v37 = vld [vmem:[%s15565_s0 + $0x9e8] ss:$100 sps:$4 sm:$0xff]  }
 0x450   :  { %6256 = vmatprep.subr.bf16.mxu0 %v11655_v47  ;;  %7751 = vmatprep.subr.bf16.mxu1 %v11655_v47  ;;  %v11668_v47 = vld [vmem:[%s15564_s1 + $0x520] ss:$8 sps:$4 sm:$0xff]  }
 0x453   :  { %6257 = vmatpush1.bf16.msra.mxu0 %v11656_v51  ;;  %7752 = vmatpush1.bf16.msra.mxu1 %v11656_v51  ;;  %v11669_v51 = vld [vmem:[%s15564_s1 + $0x534] ss:$8 sps:$4 sm:$0xff]  }
 0x454   :  { %6258 = vmatprep.subr.bf16.mxu0 %v11657_v53  ;;  %7753 = vmatprep.subr.bf16.mxu1 %v11657_v53  ;;  %v11335_v53 = vld [vmem:[%s15565_s0 + $0x728] ss:$100 sps:$4 sm:$0xff]  }
 0x457   :  { %6259 = vmatpush1.bf16.msra.mxu0 %v11658_v54  ;;  %7754 = vmatpush1.bf16.msra.mxu1 %v11658_v54  ;;  %v11336_v54 = vld [vmem:[%s15565_s0 + $0x9e4] ss:$100 sps:$4 sm:$0xff]  }
 0x458   :  { %6260 = vmatprep.subr.bf16.mxu0 %v11659_v63  ;;  %7755 = vmatprep.subr.bf16.mxu1 %v11659_v63  ;;  %v9276_v63 = vld [vmem:[%s15565_s0 + $0x7f0] sm:$0xff] }
 0x45b   :  { %6261 = vmatpush1.bf16.msra.mxu0 %v11660_v3  ;;  %7756 = vmatpush1.bf16.msra.mxu1 %v11660_v3  ;;  %v9467_v3 = vld [vmem:[%s15565_s0 + $0xaac] sm:$0xff] }
 0x45c   :  { %6262 = vmatprep.subr.bf16.mxu0 %v11661_v5  ;;  %7757 = vmatprep.subr.bf16.mxu1 %v11661_v5  ;;  %v11670_v5 = vld [vmem:[%s15564_s1 + $0x530] ss:$8 sps:$4 sm:$0xff]  }
 0x45f   :  { %6263 = vmatpush1.bf16.msra.mxu0 %v11662_v14  ;;  %7758 = vmatpush1.bf16.msra.mxu1 %v11662_v14  ;;  %v9560_v14 = vcombine.high %v9467_v3, %v9467_v3 }
 0x460   :  { %6303 = vmatprep.subr.bf16.mxu0 %v11663_v15  ;;  %7798 = vmatprep.subr.bf16.mxu1 %v11663_v15  ;;  %v11672_v15 = vld [vmem:[%s15564_s1 + $0x540] ss:$8 sps:$4 sm:$0xff]  }
 0x462   :  { %6265 = vmatmul.mubr.bf16.vlgmr.msra.gmra.mrb[16].mxu0 %v11319_v6  ;;  %7760 = vmatmul.mubr.bf16.vlgmr.msra.gmra.mrb[16].mxu1 %v11322_v13  ;;  %v11671_v6 = vld [vmem:[%s15564_s1 + $0x544] ss:$8 sps:$4 sm:$0xff]   ;;  %v9369_v13 = vcombine.high %v9276_v63, %v9276_v63 }
 0x463   :  { %6304 = vmatpush1.bf16.msra.mxu0 %v11664_v23  ;;  %7799 = vmatpush1.bf16.msra.mxu1 %v11664_v23  ;;  %v9559_v23 = vcombine.low %v9467_v3, %v9467_v3  ;;  %v11684_v3 = vld [vmem:[%s15564_s1 + $0x5a0] ss:$8 sps:$4 sm:$0xff]  }
 0x464   :  { %6305 = vmatprep.subr.bf16.mxu0 %v11665_v24  ;;  %7800 = vmatprep.subr.bf16.mxu1 %v11665_v24  ;;  %v11674_v24 = vld [vmem:[%s15564_s1 + $0x550] ss:$8 sps:$4 sm:$0xff]  }
 0x465   :  { %6274 = vmatprep.mubr.bf16.mxu0 %v11325_v16  ;;  %7769 = vmatprep.mubr.bf16.mxu1 %v11327_v17  ;;  %v11673_v16 = vld [vmem:[%s15564_s1 + $0x554] ss:$8 sps:$4 sm:$0xff]   ;;  %v9368_v17 = vcombine.low %v9276_v63, %v9276_v63  ;;  %v11683_v63 = vld [vmem:[%s15564_s1 + $0x5a4] ss:$8 sps:$4 sm:$0xff]  }
 0x467   :  { %6306 = vmatpush1.bf16.msra.mxu0 %v11666_v34  ;;  %7801 = vmatpush1.bf16.msra.mxu1 %v11666_v34  ;;  %v11346_v34 = vld [vmem:[%s15565_s0 + $0x860] ss:$100 sps:$4 sm:$0xff]  }
 0x468   :  { %6307 = vmatprep.subr.bf16.mxu0 %v11667_v35  ;;  %7802 = vmatprep.subr.bf16.mxu1 %v11667_v35  ;;  %v11676_v35 = vld [vmem:[%s15564_s1 + $0x560] ss:$8 sps:$4 sm:$0xff]  }
 0x46a   :  { %6275 = vmatmul.mubr.bf16.gmra.mrb[20].mxu0 %v11329_v28  ;;  %7770 = vmatmul.mubr.bf16.gmra.mrb[20].mxu1 %v11330_v32  ;;  %v11675_v28 = vld [vmem:[%s15564_s1 + $0x564] ss:$8 sps:$4 sm:$0xff]  }
 0x46b   :  { %6308 = vmatpush1.bf16.msra.mxu0 %v11668_v47  ;;  %7803 = vmatpush1.bf16.msra.mxu1 %v11668_v47  ;;  %v11343_v32 = vld [vmem:[%s15565_s0 + $0x5a4] ss:$100 sps:$4 sm:$0xff]  }
 0x46c   :  { %6309 = vmatprep.subr.bf16.mxu0 %v11669_v51  ;;  %7804 = vmatprep.subr.bf16.mxu1 %v11669_v51  ;;  %v11679_v47 = vld [vmem:[%s15564_s1 + $0x584] ss:$8 sps:$4 sm:$0xff]   ;;  %v11680_v51 = vld [vmem:[%s15564_s1 + $0x580] ss:$8 sps:$4 sm:$0xff]  }
 0x46d   :  { %6284 = vmatprep.mubr.bf16.mxu0 %v11331_v36  ;;  %7779 = vmatprep.mubr.bf16.mxu1 %v11333_v37  ;;  %v11677_v36 = vld [vmem:[%s15564_s1 + $0x574] ss:$8 sps:$4 sm:$0xff]   ;;  %v11678_v37 = vld [vmem:[%s15564_s1 + $0x570] ss:$8 sps:$4 sm:$0xff]  }
 0x46f   :  { %6310 = vmatpush1.bf16.msra.mxu0 %v11670_v5  ;;  %7805 = vmatpush1.bf16.msra.mxu1 %v11670_v5  ;;  %v11685_v5 = vld [vmem:[%s15564_s1 + $0x5b4] ss:$8 sps:$4 sm:$0xff]  }
 0x470   :  { %6311 = vmatprep.subr.bf16.mxu0 %v11671_v6  ;;  %7806 = vmatprep.subr.bf16.mxu1 %v11671_v6  ;;  %v11686_v6 = vld [vmem:[%s15564_s1 + $0x5b0] ss:$8 sps:$4 sm:$0xff]  }
 0x472   :  { %6285 = vmatmul.mubr.bf16.gmra.mrb[24].mxu0 %v11335_v53  ;;  %7780 = vmatmul.mubr.bf16.gmra.mrb[24].mxu1 %v11336_v54  ;;  %v11681_v53 = vld [vmem:[%s15564_s1 + $0x594] ss:$8 sps:$4 sm:$0xff]   ;;  %v11682_v54 = vld [vmem:[%s15564_s1 + $0x590] ss:$8 sps:$4 sm:$0xff]  }
 0x473   :  { %6312 = vmatpush1.bf16.msra.mxu0 %v11672_v15  ;;  %7807 = vmatpush1.bf16.msra.mxu1 %v11672_v15  ;;  %v11689_v15 = vld [vmem:[%s15564_s1 + $0x5d4] ss:$8 sps:$4 sm:$0xff]  }
 0x474   :  { %6313 = vmatprep.subr.bf16.mxu0 %v11673_v16  ;;  %7808 = vmatprep.subr.bf16.mxu1 %v11673_v16  ;;  %v11690_v16 = vld [vmem:[%s15564_s1 + $0x5d0] ss:$8 sps:$4 sm:$0xff]  }
 0x475   :  { %6294 = vmatprep.mubr.bf16.mxu0 %v9369_v13  ;;  %7789 = vmatprep.mubr.bf16.mxu1 %v9560_v14  ;;  %v11687_v13 = vld [vmem:[%s15564_s1 + $0x5c4] ss:$8 sps:$4 sm:$0xff]   ;;  %v11688_v14 = vld [vmem:[%s15564_s1 + $0x5c0] ss:$8 sps:$4 sm:$0xff]  }
 0x477   :  { %6314 = vmatpush1.bf16.msra.mxu0 %v11674_v24  ;;  %7809 = vmatpush1.bf16.msra.mxu1 %v11674_v24  ;;  %v11693_v24 = vld [vmem:[%s15564_s1 + $0x5f4] ss:$8 sps:$4 sm:$0xff]  }
 0x478   :  { %6315 = vmatprep.subr.bf16.mxu0 %v11675_v28  ;;  %7810 = vmatprep.subr.bf16.mxu1 %v11675_v28  ;;  %v11341_v28 = vld [vmem:[%s15565_s0 + $0x5a0] ss:$100 sps:$4 sm:$0xff]  }
 0x47a   :  { %6295 = vmatmul.mubr.bf16.gmra.mrb[28].mxu0 %v9368_v17  ;;  %7790 = vmatmul.mubr.bf16.gmra.mrb[28].mxu1 %v9559_v23  ;;  %v11691_v17 = vld [vmem:[%s15564_s1 + $0x5e4] ss:$8 sps:$4 sm:$0xff]   ;;  %v11692_v23 = vld [vmem:[%s15564_s1 + $0x5e0] ss:$8 sps:$4 sm:$0xff]  }
 0x47b   :  { %6316 = vmatpush1.bf16.msra.mxu0 %v11676_v35  ;;  %7811 = vmatpush1.bf16.msra.mxu1 %v11676_v35  ;;  %v11695_v35 = vld [vmem:[%s15564_s1 + $0x604] ss:$8 sps:$4 sm:$0xff]  }
 0x47c   :  { %6317 = vmatprep.subr.bf16.mxu0 %v11677_v36  ;;  %7812 = vmatprep.subr.bf16.mxu1 %v11677_v36  ;;  %v11347_v36 = vld [vmem:[%s15565_s0 + $0x66c] ss:$100 sps:$4 sm:$0xff]  }
 0x47d   :  { %6335 = vmatprep.mubr.bf16.mxu0 %v11343_v32  ;;  %7830 = vmatprep.mubr.bf16.mxu1 %v11346_v34  ;;  %v11344_v32 = vld [vmem:[%s15565_s0 + $0x85c] ss:$100 sps:$4 sm:$0xff]   ;;  %v11694_v34 = vld [vmem:[%s15564_s1 + $0x5f0] ss:$8 sps:$4 sm:$0xff]  }
 0x47f   :  { %6318 = vmatpush1.bf16.msra.mxu0 %v11678_v37  ;;  %7813 = vmatpush1.bf16.msra.mxu1 %v11678_v37  ;;  %v11349_v37 = vld [vmem:[%s15565_s0 + $0x928] ss:$100 sps:$4 sm:$0xff]  }
 0x480   :  { %6319 = vmatprep.subr.bf16.mxu0 %v11679_v47  ;;  %7814 = vmatprep.subr.bf16.mxu1 %v11679_v47  ;;  %v11696_v47 = vld [vmem:[%s15564_s1 + $0x600] ss:$8 sps:$4 sm:$0xff]  }
 0x483   :  { %6320 = vmatpush1.bf16.msra.mxu0 %v11680_v51  ;;  %7815 = vmatpush1.bf16.msra.mxu1 %v11680_v51  ;;  %v11697_v51 = vld [vmem:[%s15564_s1 + $0x614] ss:$8 sps:$4 sm:$0xff]  }
 0x484   :  { %6321 = vmatprep.subr.bf16.mxu0 %v11681_v53  ;;  %7816 = vmatprep.subr.bf16.mxu1 %v11681_v53  ;;  %v11351_v53 = vld [vmem:[%s15565_s0 + $0x668] ss:$100 sps:$4 sm:$0xff]  }
 0x487   :  { %6322 = vmatpush1.bf16.msra.mxu0 %v11682_v54  ;;  %7817 = vmatpush1.bf16.msra.mxu1 %v11682_v54  ;;  %v11352_v54 = vld [vmem:[%s15565_s0 + $0x924] ss:$100 sps:$4 sm:$0xff]  }
 0x488   :  { %6323 = vmatprep.subr.bf16.mxu0 %v11683_v63  ;;  %7818 = vmatprep.subr.bf16.mxu1 %v11683_v63  ;;  %v11698_v63 = vld [vmem:[%s15564_s1 + $0x610] ss:$8 sps:$4 sm:$0xff]  }
 0x48b   :  { %6324 = vmatpush1.bf16.msra.mxu0 %v11684_v3  ;;  %7819 = vmatpush1.bf16.msra.mxu1 %v11684_v3  ;;  %v11699_v3 = vld [vmem:[%s15564_s1 + $0x624] ss:$8 sps:$4 sm:$0xff]  }
 0x48c   :  { %6325 = vmatprep.subr.bf16.mxu0 %v11685_v5  ;;  %7820 = vmatprep.subr.bf16.mxu1 %v11685_v5  ;;  %v11353_v5 = vld [vmem:[%s15565_s0 + $0x734] ss:$100 sps:$4 sm:$0xff]  }
 0x48f   :  { %6326 = vmatpush1.bf16.msra.mxu0 %v11686_v6  ;;  %7821 = vmatpush1.bf16.msra.mxu1 %v11686_v6  ;;  %v11355_v6 = vld [vmem:[%s15565_s0 + $0x9f0] ss:$100 sps:$4 sm:$0xff]  }
 0x490   :  { %6327 = vmatprep.subr.bf16.mxu0 %v11687_v13  ;;  %7822 = vmatprep.subr.bf16.mxu1 %v11687_v13  ;;  %v11700_v13 = vld [vmem:[%s15564_s1 + $0x620] ss:$8 sps:$4 sm:$0xff]  }
 0x493   :  { %6328 = vmatpush1.bf16.msra.mxu0 %v11688_v14  ;;  %7823 = vmatpush1.bf16.msra.mxu1 %v11688_v14  ;;  %v11701_v14 = vld [vmem:[%s15564_s1 + $0x634] ss:$8 sps:$4 sm:$0xff]  }
 0x494   :  { %6329 = vmatprep.subr.bf16.mxu0 %v11689_v15  ;;  %7824 = vmatprep.subr.bf16.mxu1 %v11689_v15  ;;  %v11357_v15 = vld [vmem:[%s15565_s0 + $0x730] ss:$100 sps:$4 sm:$0xff]  }
 0x497   :  { %6330 = vmatpush1.bf16.msra.mxu0 %v11690_v16  ;;  %7825 = vmatpush1.bf16.msra.mxu1 %v11690_v16  ;;  %v11358_v16 = vld [vmem:[%s15565_s0 + $0x9ec] ss:$100 sps:$4 sm:$0xff]  }
 0x498   :  { %6331 = vmatprep.subr.bf16.mxu0 %v11691_v17  ;;  %7826 = vmatprep.subr.bf16.mxu1 %v11691_v17  ;;  %v9277_v17 = vld [vmem:[%s15565_s0 + $0x7f8] sm:$0xff] }
 0x49b   :  { %6332 = vmatpush1.bf16.msra.mxu0 %v11692_v23  ;;  %7827 = vmatpush1.bf16.msra.mxu1 %v11692_v23  ;;  %v9468_v23 = vld [vmem:[%s15565_s0 + $0xab4] sm:$0xff] }
 0x49c   :  { %6333 = vmatprep.subr.bf16.mxu0 %v11693_v24  ;;  %7828 = vmatprep.subr.bf16.mxu1 %v11693_v24  ;;  %v11702_v24 = vld [vmem:[%s15564_s1 + $0x630] ss:$8 sps:$4 sm:$0xff]  }
 0x49f   :  { %6334 = vmatpush1.bf16.msra.mxu0 %v11694_v34  ;;  %7829 = vmatpush1.bf16.msra.mxu1 %v11694_v34  ;;  %v9562_v34 = vcombine.high %v9468_v23, %v9468_v23 }
 0x4a0   :  { %6374 = vmatprep.subr.bf16.mxu0 %v11695_v35  ;;  %7869 = vmatprep.subr.bf16.mxu1 %v11695_v35  ;;  %v11704_v35 = vld [vmem:[%s15564_s1 + $0x640] ss:$8 sps:$4 sm:$0xff]  }
 0x4a2   :  { %6336 = vmatmul.mubr.bf16.vlgmr.msra.gmra.mrb[16].mxu0 %v11341_v28  ;;  %7831 = vmatmul.mubr.bf16.vlgmr.msra.gmra.mrb[16].mxu1 %v11344_v32  ;;  %v11703_v28 = vld [vmem:[%s15564_s1 + $0x644] ss:$8 sps:$4 sm:$0xff]   ;;  %v9371_v32 = vcombine.high %v9277_v17, %v9277_v17 }
 0x4a3   :  { %6375 = vmatpush1.bf16.msra.mxu0 %v11696_v47  ;;  %7870 = vmatpush1.bf16.msra.mxu1 %v11696_v47  ;;  %v9561_v47 = vcombine.low %v9468_v23, %v9468_v23  ;;  %v11716_v23 = vld [vmem:[%s15564_s1 + $0x6a0] ss:$8 sps:$4 sm:$0xff]  }
 0x4a4   :  { %6376 = vmatprep.subr.bf16.mxu0 %v11697_v51  ;;  %7871 = vmatprep.subr.bf16.mxu1 %v11697_v51  ;;  %v11706_v51 = vld [vmem:[%s15564_s1 + $0x650] ss:$8 sps:$4 sm:$0xff]  }
 0x4a5   :  { %6345 = vmatprep.mubr.bf16.mxu0 %v11347_v36  ;;  %7840 = vmatprep.mubr.bf16.mxu1 %v11349_v37  ;;  %v11705_v36 = vld [vmem:[%s15564_s1 + $0x654] ss:$8 sps:$4 sm:$0xff]   ;;  %v9370_v37 = vcombine.low %v9277_v17, %v9277_v17  ;;  %v11715_v17 = vld [vmem:[%s15564_s1 + $0x6a4] ss:$8 sps:$4 sm:$0xff]  }
 0x4a7   :  { %6377 = vmatpush1.bf16.msra.mxu0 %v11698_v63  ;;  %7872 = vmatpush1.bf16.msra.mxu1 %v11698_v63  ;;  %v11368_v63 = vld [vmem:[%s15565_s0 + $0x868] ss:$100 sps:$4 sm:$0xff]  }
 0x4a8   :  { %6378 = vmatprep.subr.bf16.mxu0 %v11699_v3  ;;  %7873 = vmatprep.subr.bf16.mxu1 %v11699_v3  ;;  %v11708_v3 = vld [vmem:[%s15564_s1 + $0x660] ss:$8 sps:$4 sm:$0xff]  }
 0x4aa   :  { %6346 = vmatmul.mubr.bf16.gmra.mrb[20].mxu0 %v11351_v53  ;;  %7841 = vmatmul.mubr.bf16.gmra.mrb[20].mxu1 %v11352_v54  ;;  %v11707_v53 = vld [vmem:[%s15564_s1 + $0x664] ss:$8 sps:$4 sm:$0xff]  }
 0x4ab   :  { %6379 = vmatpush1.bf16.msra.mxu0 %v11700_v13  ;;  %7874 = vmatpush1.bf16.msra.mxu1 %v11700_v13  ;;  %v11365_v54 = vld [vmem:[%s15565_s0 + $0x5ac] ss:$100 sps:$4 sm:$0xff]  }
 0x4ac   :  { %6380 = vmatprep.subr.bf16.mxu0 %v11701_v14  ;;  %7875 = vmatprep.subr.bf16.mxu1 %v11701_v14  ;;  %v11711_v13 = vld [vmem:[%s15564_s1 + $0x684] ss:$8 sps:$4 sm:$0xff]   ;;  %v11712_v14 = vld [vmem:[%s15564_s1 + $0x680] ss:$8 sps:$4 sm:$0xff]  }
 0x4ad   :  { %6355 = vmatprep.mubr.bf16.mxu0 %v11353_v5  ;;  %7850 = vmatprep.mubr.bf16.mxu1 %v11355_v6  ;;  %v11709_v5 = vld [vmem:[%s15564_s1 + $0x674] ss:$8 sps:$4 sm:$0xff]   ;;  %v11710_v6 = vld [vmem:[%s15564_s1 + $0x670] ss:$8 sps:$4 sm:$0xff]  }
 0x4af   :  { %6381 = vmatpush1.bf16.msra.mxu0 %v11702_v24  ;;  %7876 = vmatpush1.bf16.msra.mxu1 %v11702_v24  ;;  %v11717_v24 = vld [vmem:[%s15564_s1 + $0x6b4] ss:$8 sps:$4 sm:$0xff]  }
 0x4b0   :  { %6382 = vmatprep.subr.bf16.mxu0 %v11703_v28  ;;  %7877 = vmatprep.subr.bf16.mxu1 %v11703_v28  ;;  %v11718_v28 = vld [vmem:[%s15564_s1 + $0x6b0] ss:$8 sps:$4 sm:$0xff]  }
 0x4b2   :  { %6356 = vmatmul.mubr.bf16.gmra.mrb[24].mxu0 %v11357_v15  ;;  %7851 = vmatmul.mubr.bf16.gmra.mrb[24].mxu1 %v11358_v16  ;;  %v11713_v15 = vld [vmem:[%s15564_s1 + $0x694] ss:$8 sps:$4 sm:$0xff]   ;;  %v11714_v16 = vld [vmem:[%s15564_s1 + $0x690] ss:$8 sps:$4 sm:$0xff]  }
 0x4b3   :  { %6383 = vmatpush1.bf16.msra.mxu0 %v11704_v35  ;;  %7878 = vmatpush1.bf16.msra.mxu1 %v11704_v35  ;;  %v11721_v35 = vld [vmem:[%s15564_s1 + $0x6d4] ss:$8 sps:$4 sm:$0xff]  }
 0x4b4   :  { %6384 = vmatprep.subr.bf16.mxu0 %v11705_v36  ;;  %7879 = vmatprep.subr.bf16.mxu1 %v11705_v36  ;;  %v11722_v36 = vld [vmem:[%s15564_s1 + $0x6d0] ss:$8 sps:$4 sm:$0xff]  }
 0x4b5   :  { %6365 = vmatprep.mubr.bf16.mxu0 %v9371_v32  ;;  %7860 = vmatprep.mubr.bf16.mxu1 %v9562_v34  ;;  %v11719_v32 = vld [vmem:[%s15564_s1 + $0x6c4] ss:$8 sps:$4 sm:$0xff]   ;;  %v11720_v34 = vld [vmem:[%s15564_s1 + $0x6c0] ss:$8 sps:$4 sm:$0xff]  }
 0x4b7   :  { %6385 = vmatpush1.bf16.msra.mxu0 %v11706_v51  ;;  %7880 = vmatpush1.bf16.msra.mxu1 %v11706_v51  ;;  %v11725_v51 = vld [vmem:[%s15564_s1 + $0x6f4] ss:$8 sps:$4 sm:$0xff]  }
 0x4b8   :  { %6386 = vmatprep.subr.bf16.mxu0 %v11707_v53  ;;  %7881 = vmatprep.subr.bf16.mxu1 %v11707_v53  ;;  %v11363_v53 = vld [vmem:[%s15565_s0 + $0x5a8] ss:$100 sps:$4 sm:$0xff]  }
 0x4ba   :  { %6366 = vmatmul.mubr.bf16.gmra.mrb[28].mxu0 %v9370_v37  ;;  %7861 = vmatmul.mubr.bf16.gmra.mrb[28].mxu1 %v9561_v47  ;;  %v11723_v37 = vld [vmem:[%s15564_s1 + $0x6e4] ss:$8 sps:$4 sm:$0xff]   ;;  %v11724_v47 = vld [vmem:[%s15564_s1 + $0x6e0] ss:$8 sps:$4 sm:$0xff]  }
 0x4bb   :  { %6387 = vmatpush1.bf16.msra.mxu0 %v11708_v3  ;;  %7882 = vmatpush1.bf16.msra.mxu1 %v11708_v3  ;;  %v11727_v3 = vld [vmem:[%s15564_s1 + $0x704] ss:$8 sps:$4 sm:$0xff]  }
 0x4bc   :  { %6388 = vmatprep.subr.bf16.mxu0 %v11709_v5  ;;  %7883 = vmatprep.subr.bf16.mxu1 %v11709_v5  ;;  %v11369_v5 = vld [vmem:[%s15565_s0 + $0x674] ss:$100 sps:$4 sm:$0xff]  }
 0x4bd   :  { %6406 = vmatprep.mubr.bf16.mxu0 %v11365_v54  ;;  %7901 = vmatprep.mubr.bf16.mxu1 %v11368_v63  ;;  %v11366_v54 = vld [vmem:[%s15565_s0 + $0x864] ss:$100 sps:$4 sm:$0xff]   ;;  %v11726_v63 = vld [vmem:[%s15564_s1 + $0x6f0] ss:$8 sps:$4 sm:$0xff]  }
 0x4bf   :  { %6389 = vmatpush1.bf16.msra.mxu0 %v11710_v6  ;;  %7884 = vmatpush1.bf16.msra.mxu1 %v11710_v6  ;;  %v11371_v6 = vld [vmem:[%s15565_s0 + $0x930] ss:$100 sps:$4 sm:$0xff]  }
 0x4c0   :  { %6390 = vmatprep.subr.bf16.mxu0 %v11711_v13  ;;  %7885 = vmatprep.subr.bf16.mxu1 %v11711_v13  ;;  %v11728_v13 = vld [vmem:[%s15564_s1 + $0x700] ss:$8 sps:$4 sm:$0xff]  }
 0x4c3   :  { %6391 = vmatpush1.bf16.msra.mxu0 %v11712_v14  ;;  %7886 = vmatpush1.bf16.msra.mxu1 %v11712_v14  ;;  %v11729_v14 = vld [vmem:[%s15564_s1 + $0x714] ss:$8 sps:$4 sm:$0xff]  }
 0x4c4   :  { %6392 = vmatprep.subr.bf16.mxu0 %v11713_v15  ;;  %7887 = vmatprep.subr.bf16.mxu1 %v11713_v15  ;;  %v11373_v15 = vld [vmem:[%s15565_s0 + $0x670] ss:$100 sps:$4 sm:$0xff]  }
 0x4c7   :  { %6393 = vmatpush1.bf16.msra.mxu0 %v11714_v16  ;;  %7888 = vmatpush1.bf16.msra.mxu1 %v11714_v16  ;;  %v11374_v16 = vld [vmem:[%s15565_s0 + $0x92c] ss:$100 sps:$4 sm:$0xff]  }
 0x4c8   :  { %6394 = vmatprep.subr.bf16.mxu0 %v11715_v17  ;;  %7889 = vmatprep.subr.bf16.mxu1 %v11715_v17  ;;  %v11730_v17 = vld [vmem:[%s15564_s1 + $0x710] ss:$8 sps:$4 sm:$0xff]  }
 0x4cb   :  { %6395 = vmatpush1.bf16.msra.mxu0 %v11716_v23  ;;  %7890 = vmatpush1.bf16.msra.mxu1 %v11716_v23  ;;  %v11731_v23 = vld [vmem:[%s15564_s1 + $0x724] ss:$8 sps:$4 sm:$0xff]  }
 0x4cc   :  { %6396 = vmatprep.subr.bf16.mxu0 %v11717_v24  ;;  %7891 = vmatprep.subr.bf16.mxu1 %v11717_v24  ;;  %v11375_v24 = vld [vmem:[%s15565_s0 + $0x73c] ss:$100 sps:$4 sm:$0xff]  }
 0x4cf   :  { %6397 = vmatpush1.bf16.msra.mxu0 %v11718_v28  ;;  %7892 = vmatpush1.bf16.msra.mxu1 %v11718_v28  ;;  %v11377_v28 = vld [vmem:[%s15565_s0 + $0x9f8] ss:$100 sps:$4 sm:$0xff]  }
 0x4d0   :  { %6398 = vmatprep.subr.bf16.mxu0 %v11719_v32  ;;  %7893 = vmatprep.subr.bf16.mxu1 %v11719_v32  ;;  %v11732_v32 = vld [vmem:[%s15564_s1 + $0x720] ss:$8 sps:$4 sm:$0xff]  }
 0x4d3   :  { %6399 = vmatpush1.bf16.msra.mxu0 %v11720_v34  ;;  %7894 = vmatpush1.bf16.msra.mxu1 %v11720_v34  ;;  %v11733_v34 = vld [vmem:[%s15564_s1 + $0x734] ss:$8 sps:$4 sm:$0xff]  }
 0x4d4   :  { %6400 = vmatprep.subr.bf16.mxu0 %v11721_v35  ;;  %7895 = vmatprep.subr.bf16.mxu1 %v11721_v35  ;;  %v11379_v35 = vld [vmem:[%s15565_s0 + $0x738] ss:$100 sps:$4 sm:$0xff]  }
 0x4d7   :  { %6401 = vmatpush1.bf16.msra.mxu0 %v11722_v36  ;;  %7896 = vmatpush1.bf16.msra.mxu1 %v11722_v36  ;;  %v11380_v36 = vld [vmem:[%s15565_s0 + $0x9f4] ss:$100 sps:$4 sm:$0xff]  }
 0x4d8   :  { %6402 = vmatprep.subr.bf16.mxu0 %v11723_v37  ;;  %7897 = vmatprep.subr.bf16.mxu1 %v11723_v37  ;;  %v9278_v37 = vld [vmem:[%s15565_s0 + $0x800] sm:$0xff] }
 0x4db   :  { %6403 = vmatpush1.bf16.msra.mxu0 %v11724_v47  ;;  %7898 = vmatpush1.bf16.msra.mxu1 %v11724_v47  ;;  %v9469_v47 = vld [vmem:[%s15565_s0 + $0xabc] sm:$0xff] }
 0x4dc   :  { %6404 = vmatprep.subr.bf16.mxu0 %v11725_v51  ;;  %7899 = vmatprep.subr.bf16.mxu1 %v11725_v51  ;;  %v11734_v51 = vld [vmem:[%s15564_s1 + $0x730] ss:$8 sps:$4 sm:$0xff]  }
 0x4df   :  { %6405 = vmatpush1.bf16.msra.mxu0 %v11726_v63  ;;  %7900 = vmatpush1.bf16.msra.mxu1 %v11726_v63  ;;  %v9564_v63 = vcombine.high %v9469_v47, %v9469_v47 }
 0x4e0   :  { %6445 = vmatprep.subr.bf16.mxu0 %v11727_v3  ;;  %7940 = vmatprep.subr.bf16.mxu1 %v11727_v3  ;;  %v11736_v3 = vld [vmem:[%s15564_s1 + $0x740] ss:$8 sps:$4 sm:$0xff]  }
 0x4e2   :  { %6407 = vmatmul.mubr.bf16.vlgmr.msra.gmra.mrb[16].mxu0 %v11363_v53  ;;  %7902 = vmatmul.mubr.bf16.vlgmr.msra.gmra.mrb[16].mxu1 %v11366_v54  ;;  %v11735_v53 = vld [vmem:[%s15564_s1 + $0x744] ss:$8 sps:$4 sm:$0xff]   ;;  %v9373_v54 = vcombine.high %v9278_v37, %v9278_v37 }
 0x4e3   :  { %6446 = vmatpush1.bf16.msra.mxu0 %v11728_v13  ;;  %7941 = vmatpush1.bf16.msra.mxu1 %v11728_v13  ;;  %v9563_v13 = vcombine.low %v9469_v47, %v9469_v47  ;;  %v11748_v47 = vld [vmem:[%s15564_s1 + $0x7a0] ss:$8 sps:$4 sm:$0xff]  }
 0x4e4   :  { %6447 = vmatprep.subr.bf16.mxu0 %v11729_v14  ;;  %7942 = vmatprep.subr.bf16.mxu1 %v11729_v14  ;;  %v11738_v14 = vld [vmem:[%s15564_s1 + $0x750] ss:$8 sps:$4 sm:$0xff]  }
 0x4e5   :  { %6416 = vmatprep.mubr.bf16.mxu0 %v11369_v5  ;;  %7911 = vmatprep.mubr.bf16.mxu1 %v11371_v6  ;;  %v11737_v5 = vld [vmem:[%s15564_s1 + $0x754] ss:$8 sps:$4 sm:$0xff]   ;;  %v9372_v6 = vcombine.low %v9278_v37, %v9278_v37  ;;  %v11747_v37 = vld [vmem:[%s15564_s1 + $0x7a4] ss:$8 sps:$4 sm:$0xff]  }
 0x4e7   :  { %6448 = vmatpush1.bf16.msra.mxu0 %v11730_v17  ;;  %7943 = vmatpush1.bf16.msra.mxu1 %v11730_v17  ;;  %v11390_v17 = vld [vmem:[%s15565_s0 + $0x870] ss:$100 sps:$4 sm:$0xff]  }
 0x4e8   :  { %6449 = vmatprep.subr.bf16.mxu0 %v11731_v23  ;;  %7944 = vmatprep.subr.bf16.mxu1 %v11731_v23  ;;  %v11740_v23 = vld [vmem:[%s15564_s1 + $0x760] ss:$8 sps:$4 sm:$0xff]  }
 0x4ea   :  { %6417 = vmatmul.mubr.bf16.gmra.mrb[20].mxu0 %v11373_v15  ;;  %7912 = vmatmul.mubr.bf16.gmra.mrb[20].mxu1 %v11374_v16  ;;  %v11739_v15 = vld [vmem:[%s15564_s1 + $0x764] ss:$8 sps:$4 sm:$0xff]   ;;  %v11387_v16 = vld [vmem:[%s15565_s0 + $0x5b4] ss:$100 sps:$4 sm:$0xff]  }
 0x4eb   :  { %6450 = vmatpush1.bf16.msra.mxu0 %v11732_v32  ;;  %7945 = vmatpush1.bf16.msra.mxu1 %v11732_v32  ;;  %v11743_v32 = vld [vmem:[%s15564_s1 + $0x784] ss:$8 sps:$4 sm:$0xff]  }
 0x4ec   :  { %6451 = vmatprep.subr.bf16.mxu0 %v11733_v34  ;;  %7946 = vmatprep.subr.bf16.mxu1 %v11733_v34  ;;  %v11744_v34 = vld [vmem:[%s15564_s1 + $0x780] ss:$8 sps:$4 sm:$0xff]  }
 0x4ed   :  { %6426 = vmatprep.mubr.bf16.mxu0 %v11375_v24  ;;  %7921 = vmatprep.mubr.bf16.mxu1 %v11377_v28  ;;  %v11741_v24 = vld [vmem:[%s15564_s1 + $0x774] ss:$8 sps:$4 sm:$0xff]   ;;  %v11742_v28 = vld [vmem:[%s15564_s1 + $0x770] ss:$8 sps:$4 sm:$0xff]  }
 0x4ef   :  { %6452 = vmatpush1.bf16.msra.mxu0 %v11734_v51  ;;  %7947 = vmatpush1.bf16.msra.mxu1 %v11734_v51  ;;  %v11749_v51 = vld [vmem:[%s15564_s1 + $0x7b4] ss:$8 sps:$4 sm:$0xff]  }
 0x4f0   :  { %6453 = vmatprep.subr.bf16.mxu0 %v11735_v53  ;;  %7948 = vmatprep.subr.bf16.mxu1 %v11735_v53  ;;  %v11750_v53 = vld [vmem:[%s15564_s1 + $0x7b0] ss:$8 sps:$4 sm:$0xff]  }
 0x4f2   :  { %6427 = vmatmul.mubr.bf16.gmra.mrb[24].mxu0 %v11379_v35  ;;  %7922 = vmatmul.mubr.bf16.gmra.mrb[24].mxu1 %v11380_v36  ;;  %v11745_v35 = vld [vmem:[%s15564_s1 + $0x794] ss:$8 sps:$4 sm:$0xff]   ;;  %v11746_v36 = vld [vmem:[%s15564_s1 + $0x790] ss:$8 sps:$4 sm:$0xff]  }
 0x4f3   :  { %6454 = vmatpush1.bf16.msra.mxu0 %v11736_v3  ;;  %7949 = vmatpush1.bf16.msra.mxu1 %v11736_v3  ;;  %v11753_v3 = vld [vmem:[%s15564_s1 + $0x7d4] ss:$8 sps:$4 sm:$0xff]  }
 0x4f4   :  { %6455 = vmatprep.subr.bf16.mxu0 %v11737_v5  ;;  %7950 = vmatprep.subr.bf16.mxu1 %v11737_v5  ;;  %v11754_v5 = vld [vmem:[%s15564_s1 + $0x7d0] ss:$8 sps:$4 sm:$0xff]  }
 0x4f5   :  { %6436 = vmatprep.mubr.bf16.mxu0 %v9373_v54  ;;  %7931 = vmatprep.mubr.bf16.mxu1 %v9564_v63  ;;  %v11751_v54 = vld [vmem:[%s15564_s1 + $0x7c4] ss:$8 sps:$4 sm:$0xff]   ;;  %v11752_v63 = vld [vmem:[%s15564_s1 + $0x7c0] ss:$8 sps:$4 sm:$0xff]  }
 0x4f7   :  { %6456 = vmatpush1.bf16.msra.mxu0 %v11738_v14  ;;  %7951 = vmatpush1.bf16.msra.mxu1 %v11738_v14  ;;  %v11757_v14 = vld [vmem:[%s15564_s1 + $0x7f4] ss:$8 sps:$4 sm:$0xff]  }
 0x4f8   :  { %6457 = vmatprep.subr.bf16.mxu0 %v11739_v15  ;;  %7952 = vmatprep.subr.bf16.mxu1 %v11739_v15  ;;  %v11385_v15 = vld [vmem:[%s15565_s0 + $0x5b0] ss:$100 sps:$4 sm:$0xff]  }
 0x4fa   :  { %6437 = vmatmul.mubr.bf16.gmra.mrb[28].mxu0 %v9372_v6  ;;  %7932 = vmatmul.mubr.bf16.gmra.mrb[28].mxu1 %v9563_v13  ;;  %v11755_v6 = vld [vmem:[%s15564_s1 + $0x7e4] ss:$8 sps:$4 sm:$0xff]   ;;  %v11756_v13 = vld [vmem:[%s15564_s1 + $0x7e0] ss:$8 sps:$4 sm:$0xff]  }
 0x4fb   :  { %6458 = vmatpush1.bf16.msra.mxu0 %v11740_v23  ;;  %7953 = vmatpush1.bf16.msra.mxu1 %v11740_v23  ;;  %v11759_v23 = vld [vmem:[%s15564_s1 + $0x804] ss:$8 sps:$4 sm:$0xff]  }
 0x4fc   :  { %6459 = vmatprep.subr.bf16.mxu0 %v11741_v24  ;;  %7954 = vmatprep.subr.bf16.mxu1 %v11741_v24  ;;  %v11391_v24 = vld [vmem:[%s15565_s0 + $0x67c] ss:$100 sps:$4 sm:$0xff]  }
 0x4fd   :  { %6477 = vmatprep.mubr.bf16.mxu0 %v11387_v16  ;;  %7972 = vmatprep.mubr.bf16.mxu1 %v11390_v17  ;;  %v11388_v16 = vld [vmem:[%s15565_s0 + $0x86c] ss:$100 sps:$4 sm:$0xff]  }
 0x4fe   :  { %v11758_v17 = vld [vmem:[%s15564_s1 + $0x7f0] ss:$8 sps:$4 sm:$0xff]  }
 0x4ff   :  { %6460 = vmatpush1.bf16.msra.mxu0 %v11742_v28  ;;  %7955 = vmatpush1.bf16.msra.mxu1 %v11742_v28  ;;  %v11393_v28 = vld [vmem:[%s15565_s0 + $0x938] ss:$100 sps:$4 sm:$0xff]  }
 0x500   :  { %6461 = vmatprep.subr.bf16.mxu0 %v11743_v32  ;;  %7956 = vmatprep.subr.bf16.mxu1 %v11743_v32  ;;  %v11760_v32 = vld [vmem:[%s15564_s1 + $0x800] ss:$8 sps:$4 sm:$0xff]  }
 0x503   :  { %6462 = vmatpush1.bf16.msra.mxu0 %v11744_v34  ;;  %7957 = vmatpush1.bf16.msra.mxu1 %v11744_v34  ;;  %v11761_v34 = vld [vmem:[%s15564_s1 + $0x814] ss:$8 sps:$4 sm:$0xff]  }
 0x504   :  { %6463 = vmatprep.subr.bf16.mxu0 %v11745_v35  ;;  %7958 = vmatprep.subr.bf16.mxu1 %v11745_v35  ;;  %v11395_v35 = vld [vmem:[%s15565_s0 + $0x678] ss:$100 sps:$4 sm:$0xff]  }
 0x507   :  { %6464 = vmatpush1.bf16.msra.mxu0 %v11746_v36  ;;  %7959 = vmatpush1.bf16.msra.mxu1 %v11746_v36  ;;  %v11396_v36 = vld [vmem:[%s15565_s0 + $0x934] ss:$100 sps:$4 sm:$0xff]  }
 0x508   :  { %6465 = vmatprep.subr.bf16.mxu0 %v11747_v37  ;;  %7960 = vmatprep.subr.bf16.mxu1 %v11747_v37  ;;  %v11762_v37 = vld [vmem:[%s15564_s1 + $0x810] ss:$8 sps:$4 sm:$0xff]  }
 0x50b   :  { %6466 = vmatpush1.bf16.msra.mxu0 %v11748_v47  ;;  %7961 = vmatpush1.bf16.msra.mxu1 %v11748_v47  ;;  %v11763_v47 = vld [vmem:[%s15564_s1 + $0x824] ss:$8 sps:$4 sm:$0xff]  }
 0x50c   :  { %6467 = vmatprep.subr.bf16.mxu0 %v11749_v51  ;;  %7962 = vmatprep.subr.bf16.mxu1 %v11749_v51  ;;  %v11397_v51 = vld [vmem:[%s15565_s0 + $0x744] ss:$100 sps:$4 sm:$0xff]  }
 0x50f   :  { %6468 = vmatpush1.bf16.msra.mxu0 %v11750_v53  ;;  %7963 = vmatpush1.bf16.msra.mxu1 %v11750_v53  ;;  %v11399_v53 = vld [vmem:[%s15565_s0 + $0xa00] ss:$100 sps:$4 sm:$0xff]  }
 0x510   :  { %6469 = vmatprep.subr.bf16.mxu0 %v11751_v54  ;;  %7964 = vmatprep.subr.bf16.mxu1 %v11751_v54  ;;  %v11764_v54 = vld [vmem:[%s15564_s1 + $0x820] ss:$8 sps:$4 sm:$0xff]  }
 0x513   :  { %6470 = vmatpush1.bf16.msra.mxu0 %v11752_v63  ;;  %7965 = vmatpush1.bf16.msra.mxu1 %v11752_v63  ;;  %v11765_v63 = vld [vmem:[%s15564_s1 + $0x834] ss:$8 sps:$4 sm:$0xff]  }
 0x514   :  { %6471 = vmatprep.subr.bf16.mxu0 %v11753_v3  ;;  %7966 = vmatprep.subr.bf16.mxu1 %v11753_v3  ;;  %v11401_v3 = vld [vmem:[%s15565_s0 + $0x740] ss:$100 sps:$4 sm:$0xff]  }
 0x517   :  { %6472 = vmatpush1.bf16.msra.mxu0 %v11754_v5  ;;  %7967 = vmatpush1.bf16.msra.mxu1 %v11754_v5  ;;  %v11402_v5 = vld [vmem:[%s15565_s0 + $0x9fc] ss:$100 sps:$4 sm:$0xff]  }
 0x518   :  { %6473 = vmatprep.subr.bf16.mxu0 %v11755_v6  ;;  %7968 = vmatprep.subr.bf16.mxu1 %v11755_v6  ;;  %v9279_v6 = vld [vmem:[%s15565_s0 + $0x808] sm:$0xff] }
 0x51b   :  { %6474 = vmatpush1.bf16.msra.mxu0 %v11756_v13  ;;  %7969 = vmatpush1.bf16.msra.mxu1 %v11756_v13  ;;  %v9470_v13 = vld [vmem:[%s15565_s0 + $0xac4] sm:$0xff] }
 0x51c   :  { %6475 = vmatprep.subr.bf16.mxu0 %v11757_v14  ;;  %7970 = vmatprep.subr.bf16.mxu1 %v11757_v14  ;;  %v11766_v14 = vld [vmem:[%s15564_s1 + $0x830] ss:$8 sps:$4 sm:$0xff]  }
 0x51f   :  { %6476 = vmatpush1.bf16.msra.mxu0 %v11758_v17  ;;  %7971 = vmatpush1.bf16.msra.mxu1 %v11758_v17  ;;  %v9566_v17 = vcombine.high %v9470_v13, %v9470_v13 }
 0x520   :  { %6516 = vmatprep.subr.bf16.mxu0 %v11759_v23  ;;  %8011 = vmatprep.subr.bf16.mxu1 %v11759_v23  ;;  %v11768_v23 = vld [vmem:[%s15564_s1 + $0x840] ss:$8 sps:$4 sm:$0xff]  }
 0x522   :  { %6478 = vmatmul.mubr.bf16.vlgmr.msra.gmra.mrb[16].mxu0 %v11385_v15  ;;  %7973 = vmatmul.mubr.bf16.vlgmr.msra.gmra.mrb[16].mxu1 %v11388_v16  ;;  %v11767_v15 = vld [vmem:[%s15564_s1 + $0x844] ss:$8 sps:$4 sm:$0xff]   ;;  %v9375_v16 = vcombine.high %v9279_v6, %v9279_v6 }
 0x523   :  { %6517 = vmatpush1.bf16.msra.mxu0 %v11760_v32  ;;  %8012 = vmatpush1.bf16.msra.mxu1 %v11760_v32  ;;  %v9565_v32 = vcombine.low %v9470_v13, %v9470_v13  ;;  %v11780_v13 = vld [vmem:[%s15564_s1 + $0x8a0] ss:$8 sps:$4 sm:$0xff]  }
 0x524   :  { %6518 = vmatprep.subr.bf16.mxu0 %v11761_v34  ;;  %8013 = vmatprep.subr.bf16.mxu1 %v11761_v34  ;;  %v11770_v34 = vld [vmem:[%s15564_s1 + $0x850] ss:$8 sps:$4 sm:$0xff]  }
 0x525   :  { %6487 = vmatprep.mubr.bf16.mxu0 %v11391_v24  ;;  %7982 = vmatprep.mubr.bf16.mxu1 %v11393_v28  ;;  %v11769_v24 = vld [vmem:[%s15564_s1 + $0x854] ss:$8 sps:$4 sm:$0xff]   ;;  %v9374_v28 = vcombine.low %v9279_v6, %v9279_v6  ;;  %v11779_v6 = vld [vmem:[%s15564_s1 + $0x8a4] ss:$8 sps:$4 sm:$0xff]  }
 0x527   :  { %6519 = vmatpush1.bf16.msra.mxu0 %v11762_v37  ;;  %8014 = vmatpush1.bf16.msra.mxu1 %v11762_v37  ;;  %v11412_v37 = vld [vmem:[%s15565_s0 + $0x878] ss:$100 sps:$4 sm:$0xff]  }
 0x528   :  { %6520 = vmatprep.subr.bf16.mxu0 %v11763_v47  ;;  %8015 = vmatprep.subr.bf16.mxu1 %v11763_v47  ;;  %v11772_v47 = vld [vmem:[%s15564_s1 + $0x860] ss:$8 sps:$4 sm:$0xff]  }
 0x52a   :  { %6488 = vmatmul.mubr.bf16.gmra.mrb[20].mxu0 %v11395_v35  ;;  %7983 = vmatmul.mubr.bf16.gmra.mrb[20].mxu1 %v11396_v36  ;;  %v11771_v35 = vld [vmem:[%s15564_s1 + $0x864] ss:$8 sps:$4 sm:$0xff]   ;;  %v11409_v36 = vld [vmem:[%s15565_s0 + $0x5bc] ss:$100 sps:$4 sm:$0xff]  }
 0x52b   :  { %6521 = vmatpush1.bf16.msra.mxu0 %v11764_v54  ;;  %8016 = vmatpush1.bf16.msra.mxu1 %v11764_v54  ;;  %v11775_v54 = vld [vmem:[%s15564_s1 + $0x884] ss:$8 sps:$4 sm:$0xff]  }
 0x52c   :  { %6522 = vmatprep.subr.bf16.mxu0 %v11765_v63  ;;  %8017 = vmatprep.subr.bf16.mxu1 %v11765_v63  ;;  %v11776_v63 = vld [vmem:[%s15564_s1 + $0x880] ss:$8 sps:$4 sm:$0xff]  }
 0x52d   :  { %6497 = vmatprep.mubr.bf16.mxu0 %v11397_v51  ;;  %7992 = vmatprep.mubr.bf16.mxu1 %v11399_v53  ;;  %v11773_v51 = vld [vmem:[%s15564_s1 + $0x874] ss:$8 sps:$4 sm:$0xff]   ;;  %v11774_v53 = vld [vmem:[%s15564_s1 + $0x870] ss:$8 sps:$4 sm:$0xff]  }
 0x52f   :  { %6523 = vmatpush1.bf16.msra.mxu0 %v11766_v14  ;;  %8018 = vmatpush1.bf16.msra.mxu1 %v11766_v14  ;;  %v11781_v14 = vld [vmem:[%s15564_s1 + $0x8b4] ss:$8 sps:$4 sm:$0xff]  }
 0x530   :  { %6524 = vmatprep.subr.bf16.mxu0 %v11767_v15  ;;  %8019 = vmatprep.subr.bf16.mxu1 %v11767_v15  ;;  %v11782_v15 = vld [vmem:[%s15564_s1 + $0x8b0] ss:$8 sps:$4 sm:$0xff]  }
 0x532   :  { %6498 = vmatmul.mubr.bf16.gmra.mrb[24].mxu0 %v11401_v3  ;;  %7993 = vmatmul.mubr.bf16.gmra.mrb[24].mxu1 %v11402_v5  ;;  %v11777_v3 = vld [vmem:[%s15564_s1 + $0x894] ss:$8 sps:$4 sm:$0xff]   ;;  %v11778_v5 = vld [vmem:[%s15564_s1 + $0x890] ss:$8 sps:$4 sm:$0xff]  }
 0x533   :  { %6525 = vmatpush1.bf16.msra.mxu0 %v11768_v23  ;;  %8020 = vmatpush1.bf16.msra.mxu1 %v11768_v23  ;;  %v11785_v23 = vld [vmem:[%s15564_s1 + $0x8d4] ss:$8 sps:$4 sm:$0xff]  }
 0x534   :  { %6526 = vmatprep.subr.bf16.mxu0 %v11769_v24  ;;  %8021 = vmatprep.subr.bf16.mxu1 %v11769_v24  ;;  %v11786_v24 = vld [vmem:[%s15564_s1 + $0x8d0] ss:$8 sps:$4 sm:$0xff]  }
 0x535   :  { %6507 = vmatprep.mubr.bf16.mxu0 %v9375_v16  ;;  %8002 = vmatprep.mubr.bf16.mxu1 %v9566_v17  ;;  %v11783_v16 = vld [vmem:[%s15564_s1 + $0x8c4] ss:$8 sps:$4 sm:$0xff]   ;;  %v11784_v17 = vld [vmem:[%s15564_s1 + $0x8c0] ss:$8 sps:$4 sm:$0xff]  }
 0x537   :  { %6527 = vmatpush1.bf16.msra.mxu0 %v11770_v34  ;;  %8022 = vmatpush1.bf16.msra.mxu1 %v11770_v34  ;;  %v11789_v34 = vld [vmem:[%s15564_s1 + $0x8f4] ss:$8 sps:$4 sm:$0xff]  }
 0x538   :  { %6528 = vmatprep.subr.bf16.mxu0 %v11771_v35  ;;  %8023 = vmatprep.subr.bf16.mxu1 %v11771_v35  ;;  %v11407_v35 = vld [vmem:[%s15565_s0 + $0x5b8] ss:$100 sps:$4 sm:$0xff]  }
 0x53a   :  { %6508 = vmatmul.mubr.bf16.gmra.mrb[28].mxu0 %v9374_v28  ;;  %8003 = vmatmul.mubr.bf16.gmra.mrb[28].mxu1 %v9565_v32  ;;  %v11787_v28 = vld [vmem:[%s15564_s1 + $0x8e4] ss:$8 sps:$4 sm:$0xff]   ;;  %v11788_v32 = vld [vmem:[%s15564_s1 + $0x8e0] ss:$8 sps:$4 sm:$0xff]  }
 0x53b   :  { %6529 = vmatpush1.bf16.msra.mxu0 %v11772_v47  ;;  %8024 = vmatpush1.bf16.msra.mxu1 %v11772_v47  ;;  %v11791_v47 = vld [vmem:[%s15564_s1 + $0x904] ss:$8 sps:$4 sm:$0xff]  }
 0x53c   :  { %6530 = vmatprep.subr.bf16.mxu0 %v11773_v51  ;;  %8025 = vmatprep.subr.bf16.mxu1 %v11773_v51  ;;  %v11413_v51 = vld [vmem:[%s15565_s0 + $0x684] ss:$100 sps:$4 sm:$0xff]  }
 0x53d   :  { %6548 = vmatprep.mubr.bf16.mxu0 %v11409_v36  ;;  %8043 = vmatprep.mubr.bf16.mxu1 %v11412_v37  ;;  %v11410_v36 = vld [vmem:[%s15565_s0 + $0x874] ss:$100 sps:$4 sm:$0xff]  }
 0x53e   :  { %v11790_v37 = vld [vmem:[%s15564_s1 + $0x8f0] ss:$8 sps:$4 sm:$0xff]  }
 0x53f   :  { %6531 = vmatpush1.bf16.msra.mxu0 %v11774_v53  ;;  %8026 = vmatpush1.bf16.msra.mxu1 %v11774_v53  ;;  %v11415_v53 = vld [vmem:[%s15565_s0 + $0x940] ss:$100 sps:$4 sm:$0xff]  }
 0x540   :  { %6532 = vmatprep.subr.bf16.mxu0 %v11775_v54  ;;  %8027 = vmatprep.subr.bf16.mxu1 %v11775_v54  ;;  %v11792_v54 = vld [vmem:[%s15564_s1 + $0x900] ss:$8 sps:$4 sm:$0xff]  }
 0x543   :  { %6533 = vmatpush1.bf16.msra.mxu0 %v11776_v63  ;;  %8028 = vmatpush1.bf16.msra.mxu1 %v11776_v63  ;;  %v11793_v63 = vld [vmem:[%s15564_s1 + $0x914] ss:$8 sps:$4 sm:$0xff]  }
 0x544   :  { %6534 = vmatprep.subr.bf16.mxu0 %v11777_v3  ;;  %8029 = vmatprep.subr.bf16.mxu1 %v11777_v3  ;;  %v11417_v3 = vld [vmem:[%s15565_s0 + $0x680] ss:$100 sps:$4 sm:$0xff]  }
 0x547   :  { %6535 = vmatpush1.bf16.msra.mxu0 %v11778_v5  ;;  %8030 = vmatpush1.bf16.msra.mxu1 %v11778_v5  ;;  %v11418_v5 = vld [vmem:[%s15565_s0 + $0x93c] ss:$100 sps:$4 sm:$0xff]  }
 0x548   :  { %6536 = vmatprep.subr.bf16.mxu0 %v11779_v6  ;;  %8031 = vmatprep.subr.bf16.mxu1 %v11779_v6  ;;  %v11794_v6 = vld [vmem:[%s15564_s1 + $0x910] ss:$8 sps:$4 sm:$0xff]  }
 0x54b   :  { %6537 = vmatpush1.bf16.msra.mxu0 %v11780_v13  ;;  %8032 = vmatpush1.bf16.msra.mxu1 %v11780_v13  ;;  %v11795_v13 = vld [vmem:[%s15564_s1 + $0x924] ss:$8 sps:$4 sm:$0xff]  }
 0x54c   :  { %6538 = vmatprep.subr.bf16.mxu0 %v11781_v14  ;;  %8033 = vmatprep.subr.bf16.mxu1 %v11781_v14  ;;  %v11419_v14 = vld [vmem:[%s15565_s0 + $0x74c] ss:$100 sps:$4 sm:$0xff]  }
 0x54f   :  { %6539 = vmatpush1.bf16.msra.mxu0 %v11782_v15  ;;  %8034 = vmatpush1.bf16.msra.mxu1 %v11782_v15  ;;  %v11421_v15 = vld [vmem:[%s15565_s0 + $0xa08] ss:$100 sps:$4 sm:$0xff]  }
 0x550   :  { %6540 = vmatprep.subr.bf16.mxu0 %v11783_v16  ;;  %8035 = vmatprep.subr.bf16.mxu1 %v11783_v16  ;;  %v11796_v16 = vld [vmem:[%s15564_s1 + $0x920] ss:$8 sps:$4 sm:$0xff]  }
 0x553   :  { %6541 = vmatpush1.bf16.msra.mxu0 %v11784_v17  ;;  %8036 = vmatpush1.bf16.msra.mxu1 %v11784_v17  ;;  %v11797_v17 = vld [vmem:[%s15564_s1 + $0x934] ss:$8 sps:$4 sm:$0xff]  }
 0x554   :  { %6542 = vmatprep.subr.bf16.mxu0 %v11785_v23  ;;  %8037 = vmatprep.subr.bf16.mxu1 %v11785_v23  ;;  %v11423_v23 = vld [vmem:[%s15565_s0 + $0x748] ss:$100 sps:$4 sm:$0xff]  }
 0x557   :  { %6543 = vmatpush1.bf16.msra.mxu0 %v11786_v24  ;;  %8038 = vmatpush1.bf16.msra.mxu1 %v11786_v24  ;;  %v11424_v24 = vld [vmem:[%s15565_s0 + $0xa04] ss:$100 sps:$4 sm:$0xff]  }
 0x558   :  { %6544 = vmatprep.subr.bf16.mxu0 %v11787_v28  ;;  %8039 = vmatprep.subr.bf16.mxu1 %v11787_v28  ;;  %v9280_v28 = vld [vmem:[%s15565_s0 + $0x810] sm:$0xff] }
 0x55b   :  { %6545 = vmatpush1.bf16.msra.mxu0 %v11788_v32  ;;  %8040 = vmatpush1.bf16.msra.mxu1 %v11788_v32  ;;  %v9471_v32 = vld [vmem:[%s15565_s0 + $0xacc] sm:$0xff] }
 0x55c   :  { %6546 = vmatprep.subr.bf16.mxu0 %v11789_v34  ;;  %8041 = vmatprep.subr.bf16.mxu1 %v11789_v34  ;;  %v11798_v34 = vld [vmem:[%s15564_s1 + $0x930] ss:$8 sps:$4 sm:$0xff]  }
 0x55f   :  { %6547 = vmatpush1.bf16.msra.mxu0 %v11790_v37  ;;  %8042 = vmatpush1.bf16.msra.mxu1 %v11790_v37  ;;  %v9568_v37 = vcombine.high %v9471_v32, %v9471_v32 }
 0x560   :  { %6587 = vmatprep.subr.bf16.mxu0 %v11791_v47  ;;  %8082 = vmatprep.subr.bf16.mxu1 %v11791_v47  ;;  %v11800_v47 = vld [vmem:[%s15564_s1 + $0x940] ss:$8 sps:$4 sm:$0xff]  }
 0x562   :  { %6549 = vmatmul.mubr.bf16.vlgmr.msra.gmra.mrb[16].mxu0 %v11407_v35  ;;  %8044 = vmatmul.mubr.bf16.vlgmr.msra.gmra.mrb[16].mxu1 %v11410_v36  ;;  %v11799_v35 = vld [vmem:[%s15564_s1 + $0x944] ss:$8 sps:$4 sm:$0xff]   ;;  %v9377_v36 = vcombine.high %v9280_v28, %v9280_v28 }
 0x563   :  { %6588 = vmatpush1.bf16.msra.mxu0 %v11792_v54  ;;  %8083 = vmatpush1.bf16.msra.mxu1 %v11792_v54  ;;  %v9567_v54 = vcombine.low %v9471_v32, %v9471_v32  ;;  %v11812_v32 = vld [vmem:[%s15564_s1 + $0x9a0] ss:$8 sps:$4 sm:$0xff]  }
 0x564   :  { %6589 = vmatprep.subr.bf16.mxu0 %v11793_v63  ;;  %8084 = vmatprep.subr.bf16.mxu1 %v11793_v63  ;;  %v11802_v63 = vld [vmem:[%s15564_s1 + $0x950] ss:$8 sps:$4 sm:$0xff]  }
 0x565   :  { %6558 = vmatprep.mubr.bf16.mxu0 %v11413_v51  ;;  %8053 = vmatprep.mubr.bf16.mxu1 %v11415_v53  ;;  %v11801_v51 = vld [vmem:[%s15564_s1 + $0x954] ss:$8 sps:$4 sm:$0xff]   ;;  %v9376_v53 = vcombine.low %v9280_v28, %v9280_v28  ;;  %v11811_v28 = vld [vmem:[%s15564_s1 + $0x9a4] ss:$8 sps:$4 sm:$0xff]  }
 0x567   :  { %6590 = vmatpush1.bf16.msra.mxu0 %v11794_v6  ;;  %8085 = vmatpush1.bf16.msra.mxu1 %v11794_v6  ;;  %v11434_v6 = vld [vmem:[%s15565_s0 + $0x880] ss:$100 sps:$4 sm:$0xff]  }
 0x568   :  { %6591 = vmatprep.subr.bf16.mxu0 %v11795_v13  ;;  %8086 = vmatprep.subr.bf16.mxu1 %v11795_v13  ;;  %v11804_v13 = vld [vmem:[%s15564_s1 + $0x960] ss:$8 sps:$4 sm:$0xff]  }
 0x56a   :  { %6559 = vmatmul.mubr.bf16.gmra.mrb[20].mxu0 %v11417_v3  ;;  %8054 = vmatmul.mubr.bf16.gmra.mrb[20].mxu1 %v11418_v5  ;;  %v11803_v3 = vld [vmem:[%s15564_s1 + $0x964] ss:$8 sps:$4 sm:$0xff]  }
 0x56b   :  { %6592 = vmatpush1.bf16.msra.mxu0 %v11796_v16  ;;  %8087 = vmatpush1.bf16.msra.mxu1 %v11796_v16  ;;  %v11431_v5 = vld [vmem:[%s15565_s0 + $0x5c4] ss:$100 sps:$4 sm:$0xff]  }
 0x56c   :  { %6593 = vmatprep.subr.bf16.mxu0 %v11797_v17  ;;  %8088 = vmatprep.subr.bf16.mxu1 %v11797_v17  ;;  %v11807_v16 = vld [vmem:[%s15564_s1 + $0x984] ss:$8 sps:$4 sm:$0xff]   ;;  %v11808_v17 = vld [vmem:[%s15564_s1 + $0x980] ss:$8 sps:$4 sm:$0xff]  }
 0x56d   :  { %6568 = vmatprep.mubr.bf16.mxu0 %v11419_v14  ;;  %8063 = vmatprep.mubr.bf16.mxu1 %v11421_v15  ;;  %v11805_v14 = vld [vmem:[%s15564_s1 + $0x974] ss:$8 sps:$4 sm:$0xff]   ;;  %v11806_v15 = vld [vmem:[%s15564_s1 + $0x970] ss:$8 sps:$4 sm:$0xff]  }
 0x56f   :  { %6594 = vmatpush1.bf16.msra.mxu0 %v11798_v34  ;;  %8089 = vmatpush1.bf16.msra.mxu1 %v11798_v34  ;;  %v11813_v34 = vld [vmem:[%s15564_s1 + $0x9b4] ss:$8 sps:$4 sm:$0xff]  }
 0x570   :  { %6595 = vmatprep.subr.bf16.mxu0 %v11799_v35  ;;  %8090 = vmatprep.subr.bf16.mxu1 %v11799_v35  ;;  %v11814_v35 = vld [vmem:[%s15564_s1 + $0x9b0] ss:$8 sps:$4 sm:$0xff]  }
 0x572   :  { %6569 = vmatmul.mubr.bf16.gmra.mrb[24].mxu0 %v11423_v23  ;;  %8064 = vmatmul.mubr.bf16.gmra.mrb[24].mxu1 %v11424_v24  ;;  %v11809_v23 = vld [vmem:[%s15564_s1 + $0x994] ss:$8 sps:$4 sm:$0xff]   ;;  %v11810_v24 = vld [vmem:[%s15564_s1 + $0x990] ss:$8 sps:$4 sm:$0xff]  }
 0x573   :  { %6596 = vmatpush1.bf16.msra.mxu0 %v11800_v47  ;;  %8091 = vmatpush1.bf16.msra.mxu1 %v11800_v47  ;;  %v11817_v47 = vld [vmem:[%s15564_s1 + $0x9d4] ss:$8 sps:$4 sm:$0xff]  }
 0x574   :  { %6597 = vmatprep.subr.bf16.mxu0 %v11801_v51  ;;  %8092 = vmatprep.subr.bf16.mxu1 %v11801_v51  ;;  %v11818_v51 = vld [vmem:[%s15564_s1 + $0x9d0] ss:$8 sps:$4 sm:$0xff]  }
 0x575   :  { %6578 = vmatprep.mubr.bf16.mxu0 %v9377_v36  ;;  %8073 = vmatprep.mubr.bf16.mxu1 %v9568_v37  ;;  %v11815_v36 = vld [vmem:[%s15564_s1 + $0x9c4] ss:$8 sps:$4 sm:$0xff]   ;;  %v11816_v37 = vld [vmem:[%s15564_s1 + $0x9c0] ss:$8 sps:$4 sm:$0xff]  }
 0x577   :  { %6598 = vmatpush1.bf16.msra.mxu0 %v11802_v63  ;;  %8093 = vmatpush1.bf16.msra.mxu1 %v11802_v63  ;;  %v11821_v63 = vld [vmem:[%s15564_s1 + $0x9f4] ss:$8 sps:$4 sm:$0xff]  }
 0x578   :  { %6599 = vmatprep.subr.bf16.mxu0 %v11803_v3  ;;  %8094 = vmatprep.subr.bf16.mxu1 %v11803_v3  ;;  %v11429_v3 = vld [vmem:[%s15565_s0 + $0x5c0] ss:$100 sps:$4 sm:$0xff]  }
 0x57a   :  { %6579 = vmatmul.mubr.bf16.gmra.mrb[28].mxu0 %v9376_v53  ;;  %8074 = vmatmul.mubr.bf16.gmra.mrb[28].mxu1 %v9567_v54  ;;  %v11819_v53 = vld [vmem:[%s15564_s1 + $0x9e4] ss:$8 sps:$4 sm:$0xff]   ;;  %v11820_v54 = vld [vmem:[%s15564_s1 + $0x9e0] ss:$8 sps:$4 sm:$0xff]  }
 0x57b   :  { %6600 = vmatpush1.bf16.msra.mxu0 %v11804_v13  ;;  %8095 = vmatpush1.bf16.msra.mxu1 %v11804_v13  ;;  %v11823_v13 = vld [vmem:[%s15564_s1 + $0xa04] ss:$8 sps:$4 sm:$0xff]  }
 0x57c   :  { %6601 = vmatprep.subr.bf16.mxu0 %v11805_v14  ;;  %8096 = vmatprep.subr.bf16.mxu1 %v11805_v14  ;;  %v11435_v14 = vld [vmem:[%s15565_s0 + $0x68c] ss:$100 sps:$4 sm:$0xff]  }
 0x57d   :  { %6619 = vmatprep.mubr.bf16.mxu0 %v11431_v5  ;;  %8114 = vmatprep.mubr.bf16.mxu1 %v11434_v6  ;;  %v11432_v5 = vld [vmem:[%s15565_s0 + $0x87c] ss:$100 sps:$4 sm:$0xff]   ;;  %v11822_v6 = vld [vmem:[%s15564_s1 + $0x9f0] ss:$8 sps:$4 sm:$0xff]  }
 0x57f   :  { %6602 = vmatpush1.bf16.msra.mxu0 %v11806_v15  ;;  %8097 = vmatpush1.bf16.msra.mxu1 %v11806_v15  ;;  %v11437_v15 = vld [vmem:[%s15565_s0 + $0x948] ss:$100 sps:$4 sm:$0xff]  }
 0x580   :  { %6603 = vmatprep.subr.bf16.mxu0 %v11807_v16  ;;  %8098 = vmatprep.subr.bf16.mxu1 %v11807_v16  ;;  %v11824_v16 = vld [vmem:[%s15564_s1 + $0xa00] ss:$8 sps:$4 sm:$0xff]  }
 0x583   :  { %6604 = vmatpush1.bf16.msra.mxu0 %v11808_v17  ;;  %8099 = vmatpush1.bf16.msra.mxu1 %v11808_v17  ;;  %v11825_v17 = vld [vmem:[%s15564_s1 + $0xa14] ss:$8 sps:$4 sm:$0xff]  }
 0x584   :  { %6605 = vmatprep.subr.bf16.mxu0 %v11809_v23  ;;  %8100 = vmatprep.subr.bf16.mxu1 %v11809_v23  ;;  %v11439_v23 = vld [vmem:[%s15565_s0 + $0x688] ss:$100 sps:$4 sm:$0xff]  }
 0x587   :  { %6606 = vmatpush1.bf16.msra.mxu0 %v11810_v24  ;;  %8101 = vmatpush1.bf16.msra.mxu1 %v11810_v24  ;;  %v11440_v24 = vld [vmem:[%s15565_s0 + $0x944] ss:$100 sps:$4 sm:$0xff]  }
 0x588   :  { %6607 = vmatprep.subr.bf16.mxu0 %v11811_v28  ;;  %8102 = vmatprep.subr.bf16.mxu1 %v11811_v28  ;;  %v11826_v28 = vld [vmem:[%s15564_s1 + $0xa10] ss:$8 sps:$4 sm:$0xff]  }
 0x58b   :  { %6608 = vmatpush1.bf16.msra.mxu0 %v11812_v32  ;;  %8103 = vmatpush1.bf16.msra.mxu1 %v11812_v32  ;;  %v11827_v32 = vld [vmem:[%s15564_s1 + $0xa24] ss:$8 sps:$4 sm:$0xff]  }
 0x58c   :  { %6609 = vmatprep.subr.bf16.mxu0 %v11813_v34  ;;  %8104 = vmatprep.subr.bf16.mxu1 %v11813_v34  ;;  %v11441_v34 = vld [vmem:[%s15565_s0 + $0x754] ss:$100 sps:$4 sm:$0xff]  }
 0x58f   :  { %6610 = vmatpush1.bf16.msra.mxu0 %v11814_v35  ;;  %8105 = vmatpush1.bf16.msra.mxu1 %v11814_v35  ;;  %v11443_v35 = vld [vmem:[%s15565_s0 + $0xa10] ss:$100 sps:$4 sm:$0xff]  }
 0x590   :  { %6611 = vmatprep.subr.bf16.mxu0 %v11815_v36  ;;  %8106 = vmatprep.subr.bf16.mxu1 %v11815_v36  ;;  %v11828_v36 = vld [vmem:[%s15564_s1 + $0xa20] ss:$8 sps:$4 sm:$0xff]  }
 0x593   :  { %6612 = vmatpush1.bf16.msra.mxu0 %v11816_v37  ;;  %8107 = vmatpush1.bf16.msra.mxu1 %v11816_v37  ;;  %v11829_v37 = vld [vmem:[%s15564_s1 + $0xa34] ss:$8 sps:$4 sm:$0xff]  }
 0x594   :  { %6613 = vmatprep.subr.bf16.mxu0 %v11817_v47  ;;  %8108 = vmatprep.subr.bf16.mxu1 %v11817_v47  ;;  %v11445_v47 = vld [vmem:[%s15565_s0 + $0x750] ss:$100 sps:$4 sm:$0xff]  }
 0x597   :  { %6614 = vmatpush1.bf16.msra.mxu0 %v11818_v51  ;;  %8109 = vmatpush1.bf16.msra.mxu1 %v11818_v51  ;;  %v11446_v51 = vld [vmem:[%s15565_s0 + $0xa0c] ss:$100 sps:$4 sm:$0xff]  }
 0x598   :  { %6615 = vmatprep.subr.bf16.mxu0 %v11819_v53  ;;  %8110 = vmatprep.subr.bf16.mxu1 %v11819_v53  ;;  %v9281_v53 = vld [vmem:[%s15565_s0 + $0x818] sm:$0xff] }
 0x59b   :  { %6616 = vmatpush1.bf16.msra.mxu0 %v11820_v54  ;;  %8111 = vmatpush1.bf16.msra.mxu1 %v11820_v54  ;;  %v9472_v54 = vld [vmem:[%s15565_s0 + $0xad4] sm:$0xff] }
 0x59c   :  { %6617 = vmatprep.subr.bf16.mxu0 %v11821_v63  ;;  %8112 = vmatprep.subr.bf16.mxu1 %v11821_v63  ;;  %v11830_v63 = vld [vmem:[%s15564_s1 + $0xa30] ss:$8 sps:$4 sm:$0xff]  }
 0x59f   :  { %6618 = vmatpush1.bf16.msra.mxu0 %v11822_v6  ;;  %8113 = vmatpush1.bf16.msra.mxu1 %v11822_v6  ;;  %v9570_v6 = vcombine.high %v9472_v54, %v9472_v54 }
 0x5a0   :  { %6658 = vmatprep.subr.bf16.mxu0 %v11823_v13  ;;  %8153 = vmatprep.subr.bf16.mxu1 %v11823_v13  ;;  %v11832_v13 = vld [vmem:[%s15564_s1 + $0xa40] ss:$8 sps:$4 sm:$0xff]  }
 0x5a2   :  { %6620 = vmatmul.mubr.bf16.vlgmr.msra.gmra.mrb[16].mxu0 %v11429_v3  ;;  %8115 = vmatmul.mubr.bf16.vlgmr.msra.gmra.mrb[16].mxu1 %v11432_v5  ;;  %v11831_v3 = vld [vmem:[%s15564_s1 + $0xa44] ss:$8 sps:$4 sm:$0xff]   ;;  %v9379_v5 = vcombine.high %v9281_v53, %v9281_v53 }
 0x5a3   :  { %6659 = vmatpush1.bf16.msra.mxu0 %v11824_v16  ;;  %8154 = vmatpush1.bf16.msra.mxu1 %v11824_v16  ;;  %v9569_v16 = vcombine.low %v9472_v54, %v9472_v54  ;;  %v11844_v54 = vld [vmem:[%s15564_s1 + $0xaa0] ss:$8 sps:$4 sm:$0xff]  }
 0x5a4   :  { %6660 = vmatprep.subr.bf16.mxu0 %v11825_v17  ;;  %8155 = vmatprep.subr.bf16.mxu1 %v11825_v17  ;;  %v11834_v17 = vld [vmem:[%s15564_s1 + $0xa50] ss:$8 sps:$4 sm:$0xff]  }
 0x5a5   :  { %6629 = vmatprep.mubr.bf16.mxu0 %v11435_v14  ;;  %8124 = vmatprep.mubr.bf16.mxu1 %v11437_v15  ;;  %v11833_v14 = vld [vmem:[%s15564_s1 + $0xa54] ss:$8 sps:$4 sm:$0xff]   ;;  %v9378_v15 = vcombine.low %v9281_v53, %v9281_v53  ;;  %v11843_v53 = vld [vmem:[%s15564_s1 + $0xaa4] ss:$8 sps:$4 sm:$0xff]  }
 0x5a7   :  { %6661 = vmatpush1.bf16.msra.mxu0 %v11826_v28  ;;  %8156 = vmatpush1.bf16.msra.mxu1 %v11826_v28  ;;  %v11456_v28 = vld [vmem:[%s15565_s0 + $0x888] ss:$100 sps:$4 sm:$0xff]  }
 0x5a8   :  { %6662 = vmatprep.subr.bf16.mxu0 %v11827_v32  ;;  %8157 = vmatprep.subr.bf16.mxu1 %v11827_v32  ;;  %v11836_v32 = vld [vmem:[%s15564_s1 + $0xa60] ss:$8 sps:$4 sm:$0xff]  }
 0x5aa   :  { %6630 = vmatmul.mubr.bf16.gmra.mrb[20].mxu0 %v11439_v23  ;;  %8125 = vmatmul.mubr.bf16.gmra.mrb[20].mxu1 %v11440_v24  ;;  %v11835_v23 = vld [vmem:[%s15564_s1 + $0xa64] ss:$8 sps:$4 sm:$0xff]  }
 0x5ab   :  { %6663 = vmatpush1.bf16.msra.mxu0 %v11828_v36  ;;  %8158 = vmatpush1.bf16.msra.mxu1 %v11828_v36  ;;  %v11453_v24 = vld [vmem:[%s15565_s0 + $0x5cc] ss:$100 sps:$4 sm:$0xff]  }
 0x5ac   :  { %6664 = vmatprep.subr.bf16.mxu0 %v11829_v37  ;;  %8159 = vmatprep.subr.bf16.mxu1 %v11829_v37  ;;  %v11839_v36 = vld [vmem:[%s15564_s1 + $0xa84] ss:$8 sps:$4 sm:$0xff]   ;;  %v11840_v37 = vld [vmem:[%s15564_s1 + $0xa80] ss:$8 sps:$4 sm:$0xff]  }
 0x5ad   :  { %6639 = vmatprep.mubr.bf16.mxu0 %v11441_v34  ;;  %8134 = vmatprep.mubr.bf16.mxu1 %v11443_v35  ;;  %v11837_v34 = vld [vmem:[%s15564_s1 + $0xa74] ss:$8 sps:$4 sm:$0xff]   ;;  %v11838_v35 = vld [vmem:[%s15564_s1 + $0xa70] ss:$8 sps:$4 sm:$0xff]  }
 0x5af   :  { %6665 = vmatpush1.bf16.msra.mxu0 %v11830_v63  ;;  %8160 = vmatpush1.bf16.msra.mxu1 %v11830_v63  ;;  %v11845_v63 = vld [vmem:[%s15564_s1 + $0xab4] ss:$8 sps:$4 sm:$0xff]  }
 0x5b0   :  { %6666 = vmatprep.subr.bf16.mxu0 %v11831_v3  ;;  %8161 = vmatprep.subr.bf16.mxu1 %v11831_v3  ;;  %v11846_v3 = vld [vmem:[%s15564_s1 + $0xab0] ss:$8 sps:$4 sm:$0xff]  }
 0x5b2   :  { %6640 = vmatmul.mubr.bf16.gmra.mrb[24].mxu0 %v11445_v47  ;;  %8135 = vmatmul.mubr.bf16.gmra.mrb[24].mxu1 %v11446_v51  ;;  %v11841_v47 = vld [vmem:[%s15564_s1 + $0xa94] ss:$8 sps:$4 sm:$0xff]   ;;  %v11842_v51 = vld [vmem:[%s15564_s1 + $0xa90] ss:$8 sps:$4 sm:$0xff]  }
 0x5b3   :  { %6667 = vmatpush1.bf16.msra.mxu0 %v11832_v13  ;;  %8162 = vmatpush1.bf16.msra.mxu1 %v11832_v13  ;;  %v11849_v13 = vld [vmem:[%s15564_s1 + $0xad4] ss:$8 sps:$4 sm:$0xff]  }
 0x5b4   :  { %6668 = vmatprep.subr.bf16.mxu0 %v11833_v14  ;;  %8163 = vmatprep.subr.bf16.mxu1 %v11833_v14  ;;  %v11850_v14 = vld [vmem:[%s15564_s1 + $0xad0] ss:$8 sps:$4 sm:$0xff]  }
 0x5b5   :  { %6649 = vmatprep.mubr.bf16.mxu0 %v9379_v5  ;;  %8144 = vmatprep.mubr.bf16.mxu1 %v9570_v6  ;;  %v11847_v5 = vld [vmem:[%s15564_s1 + $0xac4] ss:$8 sps:$4 sm:$0xff]   ;;  %v11848_v6 = vld [vmem:[%s15564_s1 + $0xac0] ss:$8 sps:$4 sm:$0xff]  }
 0x5b7   :  { %6669 = vmatpush1.bf16.msra.mxu0 %v11834_v17  ;;  %8164 = vmatpush1.bf16.msra.mxu1 %v11834_v17  ;;  %v11853_v17 = vld [vmem:[%s15564_s1 + $0xaf4] ss:$8 sps:$4 sm:$0xff]  }
 0x5b8   :  { %6670 = vmatprep.subr.bf16.mxu0 %v11835_v23  ;;  %8165 = vmatprep.subr.bf16.mxu1 %v11835_v23  ;;  %v11451_v23 = vld [vmem:[%s15565_s0 + $0x5c8] ss:$100 sps:$4 sm:$0xff]  }
 0x5ba   :  { %6650 = vmatmul.mubr.bf16.gmra.mrb[28].mxu0 %v9378_v15  ;;  %8145 = vmatmul.mubr.bf16.gmra.mrb[28].mxu1 %v9569_v16  ;;  %v11851_v15 = vld [vmem:[%s15564_s1 + $0xae4] ss:$8 sps:$4 sm:$0xff]   ;;  %v11852_v16 = vld [vmem:[%s15564_s1 + $0xae0] ss:$8 sps:$4 sm:$0xff]  }
 0x5bb   :  { %6671 = vmatpush1.bf16.msra.mxu0 %v11836_v32  ;;  %8166 = vmatpush1.bf16.msra.mxu1 %v11836_v32  ;;  %v11855_v32 = vld [vmem:[%s15564_s1 + $0xb04] ss:$8 sps:$4 sm:$0xff]  }
 0x5bc   :  { %6672 = vmatprep.subr.bf16.mxu0 %v11837_v34  ;;  %8167 = vmatprep.subr.bf16.mxu1 %v11837_v34  ;;  %v11457_v34 = vld [vmem:[%s15565_s0 + $0x694] ss:$100 sps:$4 sm:$0xff]  }
 0x5bd   :  { %6690 = vmatprep.mubr.bf16.mxu0 %v11453_v24  ;;  %8185 = vmatprep.mubr.bf16.mxu1 %v11456_v28  ;;  %v11454_v24 = vld [vmem:[%s15565_s0 + $0x884] ss:$100 sps:$4 sm:$0xff]   ;;  %v11854_v28 = vld [vmem:[%s15564_s1 + $0xaf0] ss:$8 sps:$4 sm:$0xff]  }
 0x5bf   :  { %6673 = vmatpush1.bf16.msra.mxu0 %v11838_v35  ;;  %8168 = vmatpush1.bf16.msra.mxu1 %v11838_v35  ;;  %v11459_v35 = vld [vmem:[%s15565_s0 + $0x950] ss:$100 sps:$4 sm:$0xff]  }
 0x5c0   :  { %6674 = vmatprep.subr.bf16.mxu0 %v11839_v36  ;;  %8169 = vmatprep.subr.bf16.mxu1 %v11839_v36  ;;  %v11856_v36 = vld [vmem:[%s15564_s1 + $0xb00] ss:$8 sps:$4 sm:$0xff]  }
 0x5c3   :  { %6675 = vmatpush1.bf16.msra.mxu0 %v11840_v37  ;;  %8170 = vmatpush1.bf16.msra.mxu1 %v11840_v37  ;;  %v11857_v37 = vld [vmem:[%s15564_s1 + $0xb14] ss:$8 sps:$4 sm:$0xff]  }
 0x5c4   :  { %6676 = vmatprep.subr.bf16.mxu0 %v11841_v47  ;;  %8171 = vmatprep.subr.bf16.mxu1 %v11841_v47  ;;  %v11461_v47 = vld [vmem:[%s15565_s0 + $0x690] ss:$100 sps:$4 sm:$0xff]  }
 0x5c7   :  { %6677 = vmatpush1.bf16.msra.mxu0 %v11842_v51  ;;  %8172 = vmatpush1.bf16.msra.mxu1 %v11842_v51  ;;  %v11462_v51 = vld [vmem:[%s15565_s0 + $0x94c] ss:$100 sps:$4 sm:$0xff]  }
 0x5c8   :  { %6678 = vmatprep.subr.bf16.mxu0 %v11843_v53  ;;  %8173 = vmatprep.subr.bf16.mxu1 %v11843_v53  ;;  %v11858_v53 = vld [vmem:[%s15564_s1 + $0xb10] ss:$8 sps:$4 sm:$0xff]  }
 0x5cb   :  { %6679 = vmatpush1.bf16.msra.mxu0 %v11844_v54  ;;  %8174 = vmatpush1.bf16.msra.mxu1 %v11844_v54  ;;  %v11859_v54 = vld [vmem:[%s15564_s1 + $0xb24] ss:$8 sps:$4 sm:$0xff]  }
 0x5cc   :  { %6680 = vmatprep.subr.bf16.mxu0 %v11845_v63  ;;  %8175 = vmatprep.subr.bf16.mxu1 %v11845_v63  ;;  %v11463_v63 = vld [vmem:[%s15565_s0 + $0x75c] ss:$100 sps:$4 sm:$0xff]  }
 0x5cf   :  { %6681 = vmatpush1.bf16.msra.mxu0 %v11846_v3  ;;  %8176 = vmatpush1.bf16.msra.mxu1 %v11846_v3  ;;  %v11465_v3 = vld [vmem:[%s15565_s0 + $0xa18] ss:$100 sps:$4 sm:$0xff]  }
 0x5d0   :  { %6682 = vmatprep.subr.bf16.mxu0 %v11847_v5  ;;  %8177 = vmatprep.subr.bf16.mxu1 %v11847_v5  ;;  %v11860_v5 = vld [vmem:[%s15564_s1 + $0xb20] ss:$8 sps:$4 sm:$0xff]  }
 0x5d3   :  { %6683 = vmatpush1.bf16.msra.mxu0 %v11848_v6  ;;  %8178 = vmatpush1.bf16.msra.mxu1 %v11848_v6  ;;  %v11861_v6 = vld [vmem:[%s15564_s1 + $0xb34] ss:$8 sps:$4 sm:$0xff]  }
 0x5d4   :  { %6684 = vmatprep.subr.bf16.mxu0 %v11849_v13  ;;  %8179 = vmatprep.subr.bf16.mxu1 %v11849_v13  ;;  %v11467_v13 = vld [vmem:[%s15565_s0 + $0x758] ss:$100 sps:$4 sm:$0xff]  }
 0x5d7   :  { %6685 = vmatpush1.bf16.msra.mxu0 %v11850_v14  ;;  %8180 = vmatpush1.bf16.msra.mxu1 %v11850_v14  ;;  %v11468_v14 = vld [vmem:[%s15565_s0 + $0xa14] ss:$100 sps:$4 sm:$0xff]  }
 0x5d8   :  { %6686 = vmatprep.subr.bf16.mxu0 %v11851_v15  ;;  %8181 = vmatprep.subr.bf16.mxu1 %v11851_v15  ;;  %v9282_v15 = vld [vmem:[%s15565_s0 + $0x820] sm:$0xff] }
 0x5db   :  { %6687 = vmatpush1.bf16.msra.mxu0 %v11852_v16  ;;  %8182 = vmatpush1.bf16.msra.mxu1 %v11852_v16  ;;  %v9473_v16 = vld [vmem:[%s15565_s0 + $0xadc] sm:$0xff] }
 0x5dc   :  { %6688 = vmatprep.subr.bf16.mxu0 %v11853_v17  ;;  %8183 = vmatprep.subr.bf16.mxu1 %v11853_v17  ;;  %v11862_v17 = vld [vmem:[%s15564_s1 + $0xb30] ss:$8 sps:$4 sm:$0xff]  }
 0x5df   :  { %6689 = vmatpush1.bf16.msra.mxu0 %v11854_v28  ;;  %8184 = vmatpush1.bf16.msra.mxu1 %v11854_v28  ;;  %v9572_v28 = vcombine.high %v9473_v16, %v9473_v16 }
 0x5e0   :  { %6729 = vmatprep.subr.bf16.mxu0 %v11855_v32  ;;  %8224 = vmatprep.subr.bf16.mxu1 %v11855_v32  ;;  %v11864_v32 = vld [vmem:[%s15564_s1 + $0xb40] ss:$8 sps:$4 sm:$0xff]  }
 0x5e2   :  { %6691 = vmatmul.mubr.bf16.vlgmr.msra.gmra.mrb[16].mxu0 %v11451_v23  ;;  %8186 = vmatmul.mubr.bf16.vlgmr.msra.gmra.mrb[16].mxu1 %v11454_v24  ;;  %v11863_v23 = vld [vmem:[%s15564_s1 + $0xb44] ss:$8 sps:$4 sm:$0xff]   ;;  %v9381_v24 = vcombine.high %v9282_v15, %v9282_v15 }
 0x5e3   :  { %6730 = vmatpush1.bf16.msra.mxu0 %v11856_v36  ;;  %8225 = vmatpush1.bf16.msra.mxu1 %v11856_v36  ;;  %v9571_v36 = vcombine.low %v9473_v16, %v9473_v16  ;;  %v11876_v16 = vld [vmem:[%s15564_s1 + $0xba0] ss:$8 sps:$4 sm:$0xff]  }
 0x5e4   :  { %6731 = vmatprep.subr.bf16.mxu0 %v11857_v37  ;;  %8226 = vmatprep.subr.bf16.mxu1 %v11857_v37  ;;  %v11866_v37 = vld [vmem:[%s15564_s1 + $0xb50] ss:$8 sps:$4 sm:$0xff]  }
 0x5e5   :  { %6700 = vmatprep.mubr.bf16.mxu0 %v11457_v34  ;;  %8195 = vmatprep.mubr.bf16.mxu1 %v11459_v35  ;;  %v11865_v34 = vld [vmem:[%s15564_s1 + $0xb54] ss:$8 sps:$4 sm:$0xff]   ;;  %v9380_v35 = vcombine.low %v9282_v15, %v9282_v15  ;;  %v11875_v15 = vld [vmem:[%s15564_s1 + $0xba4] ss:$8 sps:$4 sm:$0xff]  }
 0x5e7   :  { %6732 = vmatpush1.bf16.msra.mxu0 %v11858_v53  ;;  %8227 = vmatpush1.bf16.msra.mxu1 %v11858_v53  ;;  %v11478_v53 = vld [vmem:[%s15565_s0 + $0x890] ss:$100 sps:$4 sm:$0xff]  }
 0x5e8   :  { %6733 = vmatprep.subr.bf16.mxu0 %v11859_v54  ;;  %8228 = vmatprep.subr.bf16.mxu1 %v11859_v54  ;;  %v11868_v54 = vld [vmem:[%s15564_s1 + $0xb60] ss:$8 sps:$4 sm:$0xff]  }
 0x5ea   :  { %6701 = vmatmul.mubr.bf16.gmra.mrb[20].mxu0 %v11461_v47  ;;  %8196 = vmatmul.mubr.bf16.gmra.mrb[20].mxu1 %v11462_v51  ;;  %v11867_v47 = vld [vmem:[%s15564_s1 + $0xb64] ss:$8 sps:$4 sm:$0xff]   ;;  %v11475_v51 = vld [vmem:[%s15565_s0 + $0x5d4] ss:$100 sps:$4 sm:$0xff]  }
 0x5eb   :  { %6734 = vmatpush1.bf16.msra.mxu0 %v11860_v5  ;;  %8229 = vmatpush1.bf16.msra.mxu1 %v11860_v5  ;;  %v11871_v5 = vld [vmem:[%s15564_s1 + $0xb84] ss:$8 sps:$4 sm:$0xff]  }
 0x5ec   :  { %6735 = vmatprep.subr.bf16.mxu0 %v11861_v6  ;;  %8230 = vmatprep.subr.bf16.mxu1 %v11861_v6  ;;  %v11872_v6 = vld [vmem:[%s15564_s1 + $0xb80] ss:$8 sps:$4 sm:$0xff]  }
 0x5ed   :  { %6710 = vmatprep.mubr.bf16.mxu0 %v11463_v63  ;;  %8205 = vmatprep.mubr.bf16.mxu1 %v11465_v3  ;;  %v11869_v63 = vld [vmem:[%s15564_s1 + $0xb74] ss:$8 sps:$4 sm:$0xff]   ;;  %v11870_v3 = vld [vmem:[%s15564_s1 + $0xb70] ss:$8 sps:$4 sm:$0xff]  }
 0x5ef   :  { %6736 = vmatpush1.bf16.msra.mxu0 %v11862_v17  ;;  %8231 = vmatpush1.bf16.msra.mxu1 %v11862_v17  ;;  %v11877_v17 = vld [vmem:[%s15564_s1 + $0xbb4] ss:$8 sps:$4 sm:$0xff]  }
 0x5f0   :  { %6737 = vmatprep.subr.bf16.mxu0 %v11863_v23  ;;  %8232 = vmatprep.subr.bf16.mxu1 %v11863_v23  ;;  %v11878_v23 = vld [vmem:[%s15564_s1 + $0xbb0] ss:$8 sps:$4 sm:$0xff]  }
 0x5f2   :  { %6711 = vmatmul.mubr.bf16.gmra.mrb[24].mxu0 %v11467_v13  ;;  %8206 = vmatmul.mubr.bf16.gmra.mrb[24].mxu1 %v11468_v14  ;;  %v11873_v13 = vld [vmem:[%s15564_s1 + $0xb94] ss:$8 sps:$4 sm:$0xff]   ;;  %v11874_v14 = vld [vmem:[%s15564_s1 + $0xb90] ss:$8 sps:$4 sm:$0xff]  }
 0x5f3   :  { %6738 = vmatpush1.bf16.msra.mxu0 %v11864_v32  ;;  %8233 = vmatpush1.bf16.msra.mxu1 %v11864_v32  ;;  %v11881_v32 = vld [vmem:[%s15564_s1 + $0xbd4] ss:$8 sps:$4 sm:$0xff]  }
 0x5f4   :  { %6739 = vmatprep.subr.bf16.mxu0 %v11865_v34  ;;  %8234 = vmatprep.subr.bf16.mxu1 %v11865_v34  ;;  %v11882_v34 = vld [vmem:[%s15564_s1 + $0xbd0] ss:$8 sps:$4 sm:$0xff]  }
 0x5f5   :  { %6720 = vmatprep.mubr.bf16.mxu0 %v9381_v24  ;;  %8215 = vmatprep.mubr.bf16.mxu1 %v9572_v28  ;;  %v11879_v24 = vld [vmem:[%s15564_s1 + $0xbc4] ss:$8 sps:$4 sm:$0xff]   ;;  %v11880_v28 = vld [vmem:[%s15564_s1 + $0xbc0] ss:$8 sps:$4 sm:$0xff]  }
 0x5f7   :  { %6740 = vmatpush1.bf16.msra.mxu0 %v11866_v37  ;;  %8235 = vmatpush1.bf16.msra.mxu1 %v11866_v37  ;;  %v11885_v37 = vld [vmem:[%s15564_s1 + $0xbf4] ss:$8 sps:$4 sm:$0xff]  }
 0x5f8   :  { %6741 = vmatprep.subr.bf16.mxu0 %v11867_v47  ;;  %8236 = vmatprep.subr.bf16.mxu1 %v11867_v47  ;;  %v11473_v47 = vld [vmem:[%s15565_s0 + $0x5d0] ss:$100 sps:$4 sm:$0xff]  }
 0x5fa   :  { %6721 = vmatmul.mubr.bf16.gmra.mrb[28].mxu0 %v9380_v35  ;;  %8216 = vmatmul.mubr.bf16.gmra.mrb[28].mxu1 %v9571_v36  ;;  %v11883_v35 = vld [vmem:[%s15564_s1 + $0xbe4] ss:$8 sps:$4 sm:$0xff]   ;;  %v11884_v36 = vld [vmem:[%s15564_s1 + $0xbe0] ss:$8 sps:$4 sm:$0xff]  }
 0x5fb   :  { %6742 = vmatpush1.bf16.msra.mxu0 %v11868_v54  ;;  %8237 = vmatpush1.bf16.msra.mxu1 %v11868_v54  ;;  %v11887_v54 = vld [vmem:[%s15564_s1 + $0xc04] ss:$8 sps:$4 sm:$0xff]  }
 0x5fc   :  { %6743 = vmatprep.subr.bf16.mxu0 %v11869_v63  ;;  %8238 = vmatprep.subr.bf16.mxu1 %v11869_v63  ;;  %v11479_v63 = vld [vmem:[%s15565_s0 + $0x69c] ss:$100 sps:$4 sm:$0xff]  }
 0x5fd   :  { %6761 = vmatprep.mubr.bf16.mxu0 %v11475_v51  ;;  %8256 = vmatprep.mubr.bf16.mxu1 %v11478_v53  ;;  %v11476_v51 = vld [vmem:[%s15565_s0 + $0x88c] ss:$100 sps:$4 sm:$0xff]  }
 0x5fe   :  { %v11886_v53 = vld [vmem:[%s15564_s1 + $0xbf0] ss:$8 sps:$4 sm:$0xff]  }
 0x5ff   :  { %6744 = vmatpush1.bf16.msra.mxu0 %v11870_v3  ;;  %8239 = vmatpush1.bf16.msra.mxu1 %v11870_v3  ;;  %v11481_v3 = vld [vmem:[%s15565_s0 + $0x958] ss:$100 sps:$4 sm:$0xff]  }
 0x600   :  { %6745 = vmatprep.subr.bf16.mxu0 %v11871_v5  ;;  %8240 = vmatprep.subr.bf16.mxu1 %v11871_v5  ;;  %v11888_v5 = vld [vmem:[%s15564_s1 + $0xc00] ss:$8 sps:$4 sm:$0xff]  }
 0x603   :  { %6746 = vmatpush1.bf16.msra.mxu0 %v11872_v6  ;;  %8241 = vmatpush1.bf16.msra.mxu1 %v11872_v6  ;;  %v11889_v6 = vld [vmem:[%s15564_s1 + $0xc14] ss:$8 sps:$4 sm:$0xff]  }
 0x604   :  { %6747 = vmatprep.subr.bf16.mxu0 %v11873_v13  ;;  %8242 = vmatprep.subr.bf16.mxu1 %v11873_v13  ;;  %v11483_v13 = vld [vmem:[%s15565_s0 + $0x698] ss:$100 sps:$4 sm:$0xff]  }
 0x607   :  { %6748 = vmatpush1.bf16.msra.mxu0 %v11874_v14  ;;  %8243 = vmatpush1.bf16.msra.mxu1 %v11874_v14  ;;  %v11484_v14 = vld [vmem:[%s15565_s0 + $0x954] ss:$100 sps:$4 sm:$0xff]  }
 0x608   :  { %6749 = vmatprep.subr.bf16.mxu0 %v11875_v15  ;;  %8244 = vmatprep.subr.bf16.mxu1 %v11875_v15  ;;  %v11890_v15 = vld [vmem:[%s15564_s1 + $0xc10] ss:$8 sps:$4 sm:$0xff]  }
 0x60b   :  { %6750 = vmatpush1.bf16.msra.mxu0 %v11876_v16  ;;  %8245 = vmatpush1.bf16.msra.mxu1 %v11876_v16  ;;  %v11891_v16 = vld [vmem:[%s15564_s1 + $0xc24] ss:$8 sps:$4 sm:$0xff]  }
 0x60c   :  { %6751 = vmatprep.subr.bf16.mxu0 %v11877_v17  ;;  %8246 = vmatprep.subr.bf16.mxu1 %v11877_v17  ;;  %v11485_v17 = vld [vmem:[%s15565_s0 + $0x764] ss:$100 sps:$4 sm:$0xff]  }
 0x60f   :  { %6752 = vmatpush1.bf16.msra.mxu0 %v11878_v23  ;;  %8247 = vmatpush1.bf16.msra.mxu1 %v11878_v23  ;;  %v11487_v23 = vld [vmem:[%s15565_s0 + $0xa20] ss:$100 sps:$4 sm:$0xff]  }
 0x610   :  { %6753 = vmatprep.subr.bf16.mxu0 %v11879_v24  ;;  %8248 = vmatprep.subr.bf16.mxu1 %v11879_v24  ;;  %v11892_v24 = vld [vmem:[%s15564_s1 + $0xc20] ss:$8 sps:$4 sm:$0xff]  }
 0x613   :  { %6754 = vmatpush1.bf16.msra.mxu0 %v11880_v28  ;;  %8249 = vmatpush1.bf16.msra.mxu1 %v11880_v28  ;;  %v11893_v28 = vld [vmem:[%s15564_s1 + $0xc34] ss:$8 sps:$4 sm:$0xff]  }
 0x614   :  { %6755 = vmatprep.subr.bf16.mxu0 %v11881_v32  ;;  %8250 = vmatprep.subr.bf16.mxu1 %v11881_v32  ;;  %v11489_v32 = vld [vmem:[%s15565_s0 + $0x760] ss:$100 sps:$4 sm:$0xff]  }
 0x617   :  { %6756 = vmatpush1.bf16.msra.mxu0 %v11882_v34  ;;  %8251 = vmatpush1.bf16.msra.mxu1 %v11882_v34  ;;  %v11490_v34 = vld [vmem:[%s15565_s0 + $0xa1c] ss:$100 sps:$4 sm:$0xff]  }
 0x618   :  { %6757 = vmatprep.subr.bf16.mxu0 %v11883_v35  ;;  %8252 = vmatprep.subr.bf16.mxu1 %v11883_v35  ;;  %v9283_v35 = vld [vmem:[%s15565_s0 + $0x828] sm:$0xff] }
 0x61b   :  { %6758 = vmatpush1.bf16.msra.mxu0 %v11884_v36  ;;  %8253 = vmatpush1.bf16.msra.mxu1 %v11884_v36  ;;  %v9474_v36 = vld [vmem:[%s15565_s0 + $0xae4] sm:$0xff] }
 0x61c   :  { %6759 = vmatprep.subr.bf16.mxu0 %v11885_v37  ;;  %8254 = vmatprep.subr.bf16.mxu1 %v11885_v37  ;;  %v11894_v37 = vld [vmem:[%s15564_s1 + $0xc30] ss:$8 sps:$4 sm:$0xff]  }
 0x61f   :  { %6760 = vmatpush1.bf16.msra.mxu0 %v11886_v53  ;;  %8255 = vmatpush1.bf16.msra.mxu1 %v11886_v53  ;;  %v9574_v53 = vcombine.high %v9474_v36, %v9474_v36 }
 0x620   :  { %6800 = vmatprep.subr.bf16.mxu0 %v11887_v54  ;;  %8295 = vmatprep.subr.bf16.mxu1 %v11887_v54  ;;  %v11896_v54 = vld [vmem:[%s15564_s1 + $0xc40] ss:$8 sps:$4 sm:$0xff]  }
 0x622   :  { %6762 = vmatmul.mubr.bf16.vlgmr.msra.gmra.mrb[16].mxu0 %v11473_v47  ;;  %8257 = vmatmul.mubr.bf16.vlgmr.msra.gmra.mrb[16].mxu1 %v11476_v51  ;;  %v11895_v47 = vld [vmem:[%s15564_s1 + $0xc44] ss:$8 sps:$4 sm:$0xff]   ;;  %v9383_v51 = vcombine.high %v9283_v35, %v9283_v35 }
 0x623   :  { %6801 = vmatpush1.bf16.msra.mxu0 %v11888_v5  ;;  %8296 = vmatpush1.bf16.msra.mxu1 %v11888_v5  ;;  %v9573_v5 = vcombine.low %v9474_v36, %v9474_v36  ;;  %v11502_v36 = vld [vmem:[%s15565_s0 + $0xaec] ss:$0 sps:$4 sm:$0xff]  }
 0x624   :  { %6802 = vmatprep.subr.bf16.mxu0 %v11889_v6  ;;  %8297 = vmatprep.subr.bf16.mxu1 %v11889_v6  ;;  %v11898_v6 = vld [vmem:[%s15564_s1 + $0xc50] ss:$8 sps:$4 sm:$0xff]  }
 0x625   :  { %6771 = vmatprep.mubr.bf16.mxu0 %v11479_v63  ;;  %8266 = vmatprep.mubr.bf16.mxu1 %v11481_v3  ;;  %v11897_v63 = vld [vmem:[%s15564_s1 + $0xc54] ss:$8 sps:$4 sm:$0xff]   ;;  %v9382_v3 = vcombine.low %v9283_v35, %v9283_v35  ;;  %v11501_v35 = vld [vmem:[%s15565_s0 + $0x830] ss:$0 sps:$4 sm:$0xff]  }
 0x627   :  { %6803 = vmatpush1.bf16.msra.mxu0 %v11890_v15  ;;  %8298 = vmatpush1.bf16.msra.mxu1 %v11890_v15  ;;  %v11901_v15 = vld [vmem:[%s15564_s1 + $0xc74] ss:$8 sps:$4 sm:$0xff]  }
 0x628   :  { %6804 = vmatprep.subr.bf16.mxu0 %v11891_v16  ;;  %8299 = vmatprep.subr.bf16.mxu1 %v11891_v16  ;;  %v11495_v16 = vld [vmem:[%s15565_s0 + $0x5d8] ss:$100 sps:$4 sm:$0xff]  }
 0x62a   :  { %6772 = vmatmul.mubr.bf16.gmra.mrb[20].mxu0 %v11483_v13  ;;  %8267 = vmatmul.mubr.bf16.gmra.mrb[20].mxu1 %v11484_v14  ;;  %v11899_v13 = vld [vmem:[%s15564_s1 + $0xc64] ss:$8 sps:$4 sm:$0xff]   ;;  %v11900_v14 = vld [vmem:[%s15564_s1 + $0xc60] ss:$8 sps:$4 sm:$0xff]  }
 0x62b   :  { %6805 = vmatpush1.bf16.msra.mxu0 %v11892_v24  ;;  %8300 = vmatpush1.bf16.msra.mxu1 %v11892_v24  ;;  %v11497_v24 = vld [vmem:[%s15565_s0 + $0x6a0] ss:$100 sps:$4 sm:$0xff]  }
 0x62c   :  { %6806 = vmatprep.subr.bf16.mxu0 %v11893_v28  ;;  %8301 = vmatprep.subr.bf16.mxu1 %v11893_v28  ;;  %v11498_v28 = vld [vmem:[%s15565_s0 + $0x95c] ss:$100 sps:$4 sm:$0xff]  }
 0x62d   :  { %6781 = vmatprep.mubr.bf16.mxu0 %v11485_v17  ;;  %8276 = vmatprep.mubr.bf16.mxu1 %v11487_v23  ;;  %v11496_v17 = vld [vmem:[%s15565_s0 + $0x894] ss:$100 sps:$4 sm:$0xff]  }
 0x62e   :  { %v11902_v23 = vld [vmem:[%s15564_s1 + $0xc70] ss:$8 sps:$4 sm:$0xff]  }
 0x62f   :  { %6807 = vmatpush1.bf16.msra.mxu0 %v11894_v37  ;;  %8302 = vmatpush1.bf16.msra.mxu1 %v11894_v37  ;;  %v8382_v37 = vlaneseq }
 0x630   :  { %6808 = vmatprep.subr.bf16.mxu0 %v11895_v47  ;;  %8303 = vmatprep.subr.bf16.mxu1 %v11895_v47 }
 0x631   :  { %v8383_v47 = vshrl.u32 %v8382_v37, 7 }
 0x632   :  { %6782 = vmatmul.mubr.bf16.gmra.mrb[24].mxu0 %v11489_v32  ;;  %8277 = vmatmul.mubr.bf16.gmra.mrb[24].mxu1 %v11490_v34  ;;  %v11499_v32 = vld [vmem:[%s15565_s0 + $0x768] ss:$100 sps:$4 sm:$0xff]  }
 0x633   :  { %6809 = vmatpush1.bf16.msra.mxu0 %v11896_v54  ;;  %8304 = vmatpush1.bf16.msra.mxu1 %v11896_v54  ;;  %v11500_v34 = vld [vmem:[%s15565_s0 + $0xa24] ss:$100 sps:$4 sm:$0xff]   ;;  %v8388_v54 = vsub.s32 1, %v8383_v47 }
 0x634   :  { %6810 = vmatprep.subr.bf16.mxu0 %v11897_v63  ;;  %8305 = vmatprep.subr.bf16.mxu1 %v11897_v63 }
 0x635   :  { %6791 = vmatprep.mubr.bf16.mxu0 %v9383_v51  ;;  %8286 = vmatprep.mubr.bf16.mxu1 %v9574_v53  ;;  %v8384_v51 = vsub.s32 0, %v8383_v47  ;;  %v8380_v53 = vld [vmem:[%s15566_s2] sm:$0x3] }
 0x637   :  { %6811 = vmatpush1.bf16.msra.mxu0 %v11898_v6  ;;  %8306 = vmatpush1.bf16.msra.mxu1 %v11898_v6 }
 0x638   :  { %6812 = vmatprep.subr.bf16.mxu0 %v11899_v13  ;;  %8307 = vmatprep.subr.bf16.mxu1 %v11899_v13 }
 0x63a   :  { %6792 = vmatmul.mubr.bf16.gmra.mrb[28].mxu0 %v9382_v3  ;;  %8287 = vmatmul.mubr.bf16.gmra.mrb[28].mxu1 %v9573_v5  ;;  %v15486_v5 = vrot.slane %v8380_v53, %v8384_v51 }
 0x63b   :  { %6813 = vmatpush1.bf16.msra.mxu0 %v11900_v14  ;;  %8308 = vmatpush1.bf16.msra.mxu1 %v11900_v14 }
 0x63c   :  { %6814 = vmatprep.subr.bf16.mxu0 %v11901_v15  ;;  %8309 = vmatprep.subr.bf16.mxu1 %v11901_v15  ;;  %v15491_v15 = vrot.slane %v8380_v53, %v8388_v54 }
 0x63d   :  { %6832 = vmatprep.mubr.bf16.mxu0 %v11903_v40  ;;  %8327 = vmatprep.mubr.bf16.mxu1 %v11903_v40 }
 0x63f   :  { %6815 = vmatpush1.bf16.msra.mxu0 %v11902_v23  ;;  %8310 = vmatpush1.bf16.msra.mxu1 %v11902_v23 }
 0x642   :  { %6833 = vmatmul.mubr.bf16.vlgmr.msra.gmra.mrb[16].mxu0 %v11495_v16  ;;  %8328 = vmatmul.mubr.bf16.vlgmr.msra.gmra.mrb[16].mxu1 %v11496_v17 }
 0x643   :  { %6842 = vmatprep.mubr.bf16.mxu0 %v11903_v40  ;;  %8337 = vmatprep.mubr.bf16.mxu1 %v11903_v40 }
 0x64a   :  { %6843 = vmatmul.mubr.bf16.gmra.mrb[20].mxu0 %v11497_v24  ;;  %8338 = vmatmul.mubr.bf16.gmra.mrb[20].mxu1 %v11498_v28 }
 0x64b   :  { %6852 = vmatprep.mubr.bf16.mxu0 %v11903_v40  ;;  %8347 = vmatprep.mubr.bf16.mxu1 %v11903_v40 }
 0x652   :  { %6853 = vmatmul.mubr.bf16.gmra.mrb[24].mxu0 %v11499_v32  ;;  %8348 = vmatmul.mubr.bf16.gmra.mrb[24].mxu1 %v11500_v34 }
 0x653   :  { %6862 = vmatprep.mubr.bf16.mxu0 %v11903_v40  ;;  %8357 = vmatprep.mubr.bf16.mxu1 %v11903_v40 }
 0x65a   :  { %6863 = vmatmul.mubr.bf16.gmra.mrb[28].mxu0 %v11501_v35  ;;  %8358 = vmatmul.mubr.bf16.gmra.mrb[28].mxu1 %v11502_v36 }
 0x715   :  { %v6834_v63 = vpop.f32.mrb[16].mxu0  ;;  %v8329_v40 = vpop.f32.mrb[16].mxu1 }
 0x716   :  { %v6871_v3 = vmax.f32 %v5376_v20, %v6834_v63  ;;  %v6836_v6 = vpop.f32.mrb[17].mxu0  ;;  %v8331_v13 = vpop.f32.mrb[17].mxu1 }
 0x717   :  { %v6872_v14 = vmax.f32 %v5377_v25, %v6836_v6  ;;  %v6838_v16 = vpop.f32.mrb[18].mxu0  ;;  %v8333_v17 = vpop.f32.mrb[18].mxu1 }
 0x718   :  { %v8366_v23 = vmax.f32 %v6871_v3, %v8329_v40  ;;  %v6873_v24 = vmax.f32 %v5378_v29, %v6838_v16  ;;  %v6840_v28 = vpop.f32.mrb[19].mxu0  ;;  %v8335_v18 = vpop.f32.mrb[19].mxu1 }
 0x719   :  { %v8367_v19 = vmax.f32 %v6872_v14, %v8331_v13  ;;  %v6874_v20 = vmax.f32 %v5379_v33, %v6840_v28 }
 0x71a   :  { %v8392_v32 = vadd.f32 %v15486_v5, %v8366_v23  ;;  %v8368_v21 = vmax.f32 %v6873_v24, %v8333_v17 }
 0x71b   :  { %v8393_v22 = vadd.f32 %v15491_v15, %v8367_v19  ;;  %v8369_v25 = vmax.f32 %v6874_v20, %v8335_v18 }
 0x71c   :  { %vm8406_vm0 = vcmp.ge.f32.partialorder %v8392_v32, 0.0  ;;  %v8420_v34 = vmul.f32 0.005, %v8392_v32  ;;  %v8394_v35 = vadd.f32 %v15486_v5, %v8368_v21 }
 0x71d   :  { %vm8407_vm1 = vcmp.ge.f32.partialorder %v8393_v22, 0.0  ;;  %v8421_v26 = vmul.f32 0.005, %v8393_v22  ;;  %v8395_v27 = vadd.f32 %v15491_v15, %v8369_v25  ;;  %v6844_v29 = vpop.f32.mrb[20].mxu0  ;;  %v8339_v36 = vpop.f32.mrb[20].mxu1 }
 0x71e   :  { %v8434_v37 = vsel %vm8406_vm0, %v8392_v32, %v8420_v34  ;;  %vm8408_vm2 = vcmp.ge.f32.partialorder %v8394_v35, 0.0  ;;  %v8422_v30 = vmul.f32 0.005, %v8394_v35  ;;  %v6875_v31 = vmax.f32 %v5380_v41, %v6844_v29  ;;  %v6846_v33 = vpop.f32.mrb[21].mxu0  ;;  %v8341_v47 = vpop.f32.mrb[21].mxu1 }
 0x71f   :  { %v8435_v51 = vsel %vm8407_vm1, %v8393_v22, %v8421_v26  ;;  %vm8409_vm3 = vcmp.ge.f32.partialorder %v8395_v27, 0.0  ;;  %v8423_v53 = vmul.f32 0.005, %v8395_v27  ;;  %v6876_v54 = vmax.f32 %v5381_v44, %v6846_v33  ;;  %v6848_v63 = vpop.f32.mrb[22].mxu0  ;;  %v8343_v40 = vpop.f32.mrb[22].mxu1 }
 0x720   :  { %v9583_v3 = vpack.c.bf16 %v8435_v51, %v8434_v37  ;;  %v8436_v6 = vsel %vm8408_vm2, %v8394_v35, %v8422_v30  ;;  %v8370_v13 = vmax.f32 %v6875_v31, %v8339_v36  ;;  %v6877_v14 = vmax.f32 %v5382_v48, %v6848_v63  ;;  %v6850_v38 = vpop.f32.mrb[23].mxu0  ;;  %v8345_v39 = vpop.f32.mrb[23].mxu1 }
 0x721   :  { %v8437_v41 = vsel %vm8409_vm3, %v8395_v27, %v8423_v53  ;;  %v8371_v16 = vmax.f32 %v6876_v54, %v8341_v47  ;;  %v6878_v17 = vmax.f32 %v5383_v52, %v6850_v38 }
 0x722   :  { %8492 = vst [vmem:[%s15567_s3] sm:$0xff] %v9583_v3  ;;  %v9584_v42 = vpack.c.bf16 %v8437_v41, %v8436_v6  ;;  %v8396_v43 = vadd.f32 %v15486_v5, %v8370_v13  ;;  %v8372_v44 = vmax.f32 %v6877_v14, %v8343_v40 }
 0x723   :  { %v8397_v23 = vadd.f32 %v15491_v15, %v8371_v16  ;;  %v8373_v45 = vmax.f32 %v6878_v17, %v8345_v39 }
 0x724   :  { %8493 = vst [vmem:[%s15567_s3 + $0x8] sm:$0xff] %v9584_v42  ;;  %vm8410_vm4 = vcmp.ge.f32.partialorder %v8396_v43, 0.0  ;;  %v8424_v46 = vmul.f32 0.005, %v8396_v43  ;;  %v8398_v48 = vadd.f32 %v15486_v5, %v8372_v44 }
 0x725   :  { %vm8411_vm5 = vcmp.ge.f32.partialorder %v8397_v23, 0.0  ;;  %v8425_v49 = vmul.f32 0.005, %v8397_v23  ;;  %v8399_v50 = vadd.f32 %v15491_v15, %v8373_v45  ;;  %v6854_v52 = vpop.f32.mrb[24].mxu0  ;;  %v8349_v24 = vpop.f32.mrb[24].mxu1 }
 0x726   :  { %v8438_v28 = vsel %vm8410_vm4, %v8396_v43, %v8424_v46  ;;  %vm8412_vm6 = vcmp.ge.f32.partialorder %v8398_v48, 0.0  ;;  %v8426_v18 = vmul.f32 0.005, %v8398_v48  ;;  %v6879_v19 = vmax.f32 %v5384_v57, %v6854_v52  ;;  %v6856_v20 = vpop.f32.mrb[25].mxu0  ;;  %v8351_v32 = vpop.f32.mrb[25].mxu1 }
 0x727   :  { %v8439_v21 = vsel %vm8411_vm5, %v8397_v23, %v8425_v49  ;;  %vm8413_vm7 = vcmp.ge.f32.partialorder %v8399_v50, 0.0  ;;  %v8427_v22 = vmul.f32 0.005, %v8399_v50  ;;  %v6880_v25 = vmax.f32 %v5385_v60, %v6856_v20  ;;  %v6858_v34 = vpop.f32.mrb[26].mxu0  ;;  %v8353_v35 = vpop.f32.mrb[26].mxu1 }
 0x728   :  { %v9585_v26 = vpack.c.bf16 %v8439_v21, %v8438_v28  ;;  %v8440_v27 = vsel %vm8412_vm6, %v8398_v48, %v8426_v18  ;;  %v8374_v29 = vmax.f32 %v6879_v19, %v8349_v24  ;;  %v6881_v36 = vmax.f32 %v5386_v0, %v6858_v34  ;;  %v6860_v55 = vpop.f32.mrb[27].mxu0  ;;  %v8355_v56 = vpop.f32.mrb[27].mxu1 }
 0x729   :  { %v8441_v57 = vsel %vm8413_vm7, %v8399_v50, %v8427_v22  ;;  %v8375_v37 = vmax.f32 %v6880_v25, %v8351_v32  ;;  %v6882_v30 = vmax.f32 %v5387_v4, %v6860_v55 }
 0x72a   :  { %8494 = vst [vmem:[%s15567_s3 + $0x10] sm:$0xff] %v9585_v26  ;;  %v9586_v58 = vpack.c.bf16 %v8441_v57, %v8440_v27  ;;  %v8400_v59 = vadd.f32 %v15486_v5, %v8374_v29  ;;  %v8376_v60 = vmax.f32 %v6881_v36, %v8353_v35 }
 0x72b   :  { %v8401_v31 = vadd.f32 %v15491_v15, %v8375_v37  ;;  %v8377_v61 = vmax.f32 %v6882_v30, %v8355_v56 }
 0x72c   :  { %8495 = vst [vmem:[%s15567_s3 + $0x18] sm:$0xff] %v9586_v58  ;;  %vm8414_vm8 = vcmp.ge.f32.partialorder %v8400_v59, 0.0  ;;  %v8428_v62 = vmul.f32 0.005, %v8400_v59  ;;  %v8402_v0 = vadd.f32 %v15486_v5, %v8376_v60 }
 0x72d   :  { %vm8415_vm9 = vcmp.ge.f32.partialorder %v8401_v31, 0.0  ;;  %v8429_v1 = vmul.f32 0.005, %v8401_v31  ;;  %v8403_v2 = vadd.f32 %v15491_v15, %v8377_v61  ;;  %v6864_v4 = vpop.f32.mrb[28].mxu0  ;;  %v8359_v33 = vpop.f32.mrb[28].mxu1 }
 0x72e   :  { %v8442_v47 = vsel %vm8414_vm8, %v8400_v59, %v8428_v62  ;;  %vm8416_vm10 = vcmp.ge.f32.partialorder %v8402_v0, 0.0  ;;  %v8430_v51 = vmul.f32 0.005, %v8402_v0  ;;  %v6883_v53 = vmax.f32 %v5388_v9, %v6864_v4  ;;  %v6866_v54 = vpop.f32.mrb[29].mxu0  ;;  %v8361_v63 = vpop.f32.mrb[29].mxu1 }
 0x72f   :  { %v8443_v40 = vsel %vm8415_vm9, %v8401_v31, %v8429_v1  ;;  %vm8417_vm11 = vcmp.ge.f32.partialorder %v8403_v2, 0.0  ;;  %v8431_v3 = vmul.f32 0.005, %v8403_v2  ;;  %v6884_v6 = vmax.f32 %v5389_v12, %v6866_v54  ;;  %v6868_v13 = vpop.f32.mrb[30].mxu0  ;;  %v8363_v14 = vpop.f32.mrb[30].mxu1 }
 0x730   :  { %v9587_v38 = vpack.c.bf16 %v8443_v40, %v8442_v47  ;;  %v8444_v39 = vsel %vm8416_vm10, %v8402_v0, %v8430_v51  ;;  %v8378_v41 = vmax.f32 %v6883_v53, %v8359_v33  ;;  %v6869_v16 = vpop.f32.mrb[31].mxu0  ;;  %v8364_v17 = vpop.f32.mrb[31].mxu1 }
 0x731   :  { %v8445_v42 = vsel %vm8417_vm11, %v8403_v2, %v8431_v3  ;;  %v8379_v43 = vmax.f32 %v6884_v6, %v8361_v63 }
 0x732   :  { %8496 = vst [vmem:[%s15567_s3 + $0x20] sm:$0xff] %v9587_v38  ;;  %v9588_v7 = vpack.c.bf16 %v8445_v42, %v8444_v39  ;;  %v8404_v8 = vadd.f32 %v15486_v5, %v8378_v41 }
 0x733   :  { %v8405_v9 = vadd.f32 %v15491_v15, %v8379_v43 }
 0x734   :  { %8497 = vst [vmem:[%s15567_s3 + $0x28] sm:$0xff] %v9588_v7  ;;  %vm8418_vm12 = vcmp.ge.f32.partialorder %v8404_v8, 0.0  ;;  %v8432_v10 = vmul.f32 0.005, %v8404_v8 }
 0x735   :  { %vm8419_vm13 = vcmp.ge.f32.partialorder %v8405_v9, 0.0  ;;  %v8433_v11 = vmul.f32 0.005, %v8405_v9 }
 0x736   :  { %v8446_v12 = vsel %vm8418_vm12, %v8404_v8, %v8432_v10 }
 0x737   :  { %v8447_v44 = vsel %vm8419_vm13, %v8405_v9, %v8433_v11 }
 0x738   :  { %v9589_v23 = vpack.c.bf16 %v8447_v44, %v8446_v12 }
 0x73a   :  { %8498 = vst [vmem:[%s15567_s3 + $0x30] sm:$0xff] %v9589_v23 }

</bundles_post_ra>
